<compile_context>
chip_gen: v7x
topology: tpu7x:2x2x1
jax: 0.10.0
libtpu: 0.0.40
codegen_flags: <defaults>
</compile_context>

<pallas_src>
import jax
import jax.numpy as jnp
from jax.experimental import pallas as pl
from jax.experimental.pallas import tpu as pltpu

C = 3          # RGB channels (normalization_mean / std have 3 entries)
KSIZE = 3      # synthetic generator conv kernel size
MEAN = 0.5
STD = 0.5

_VMEM_TILE_BUDGET = 24 * 1024 * 1024   # double-buffered in+out tiles (v7x-safe)


def _make_gan_kernel(TH, RH, W):
    """Fused (folded-normalization) 3x3 conv -> tanh -> denormalize, one H tile.

    The TH-row tile is processed in CPT = TH // RH row chunks so that at most
    one shifted (RH, W) slab plus 3 accumulators is live at a time.

    Refs:
      w_ref   : SMEM f32[C*C*3*3]    folded conv weights, index order (o,i,kh,kw)
      b_ref   : SMEM f32[C]          folded conv bias
      top_ref : VMEM f32[CPT, C, W]  row directly above each RH-chunk
      x_ref   : VMEM f32[C, TH, W]   raw image tile (values in [0,1])
      bot_ref : VMEM f32[CPT, C, W]  row directly below each RH-chunk
      o_ref   : VMEM f32[C, TH, W]   output tile in [0,1]-ish range
    """
    CPT = TH // RH

    def kernel(w_ref, b_ref, top_ref, x_ref, bot_ref, o_ref):
        pad = jnp.float32(MEAN)  # raw-space pad == 0 after normalization fold
        col = jax.lax.broadcasted_iota(jnp.int32, (RH, W), 1)
        row = jax.lax.broadcasted_iota(jnp.int32, (RH, W), 0)
        left_edge = col == 0
        right_edge = col == W - 1
        first_row = row == 0
        last_row = row == RH - 1

        for ch in range(CPT):                      # row chunks (static unroll)
            r0 = ch * RH
            accs = [None] * C                      # one accumulator per out ch
            for c in range(C):                     # input channel
                xc = x_ref[c, r0:r0 + RH, :]                  # (RH, W)
                row_above = top_ref[ch:ch + 1, c, :]          # (1, W)
                row_below = bot_ref[ch:ch + 1, c, :]          # (1, W)
                for dy in range(KSIZE):            # vertical kernel offset
                    if dy == 0:                    # needs row y-1
                        base = jnp.where(first_row, row_above,
                                         pltpu.roll(xc, 1, axis=0))
                    elif dy == 1:
                        base = xc
                    else:                          # needs row y+1
                        base = jnp.where(last_row, row_below,
                                         pltpu.roll(xc, RH - 1, axis=0))
                    for dx in range(KSIZE):        # horizontal kernel offset
                        # Each shifted/masked slab is built exactly once and
                        # reused by all 3 output channels below.
                        if dx == 0:
                            slab = jnp.where(left_edge, pad,
                                             pltpu.roll(base, 1, axis=1))
                        elif dx == 1:
                            slab = base
                        else:
                            slab = jnp.where(right_edge, pad,
                                             pltpu.roll(base, W - 1, axis=1))
                        for d in range(C):         # output channel (innermost)
                            w = w_ref[((d * C + c) * KSIZE + dy) * KSIZE + dx]
                            t = w * slab
                            accs[d] = t if accs[d] is None else accs[d] + t
            for d in range(C):
                # tanh (EUP, free under a VALU-bound loop) + denormalization.
                o_ref[d, r0:r0 + RH, :] = (
                    jnp.tanh(accs[d] + b_ref[d]) * STD + MEAN)

    return kernel


def _pick_tile_h(H, W):
    """Grid tile height: as large as the double-buffered VMEM budget allows."""
    # Double-buffered in+out footprint ~= 4 * C * TH * W * 4 bytes.
    max_th = max(8, _VMEM_TILE_BUDGET // (4 * C * W * 4))
    if H <= max_th:
        return H  # whole image in one grid step (amortize ~0.35 us/step)
    cands = [t for t in range(8, max_th + 1, 8) if H % t == 0]
    if not cands:
        return H  # odd H: single full-height tile (block dims == array dims)

    def score(t):
        nt = H // t
        # Prefer an even tile count >= 4 (feeds both v7x TensorCores with >= 2
        # pipelined steps each), then even, then the largest tile.
        return (nt % 2 == 0 and nt >= 4, nt % 2 == 0, t)

    return max(cands, key=score)


def _pick_chunk_h(TH, W):
    """In-kernel row chunk so one (RH, W) f32 slab is <= 8 vregs (no spills)."""
    target = max(8, ((8 * 8 * 128) // max(W, 1)) // 8 * 8)
    if TH <= target:
        return TH
    for rh in range(target, 7, -8):
        if TH % rh == 0 and rh % 8 == 0:
            return rh
    return TH  # fallback: no chunking


def gan_forward(img, weights, bias, tile_h=None):
    """Pallas implementation of GanModel.forward.

    Args:
      img:     f32[1, C, H, W]  input image in NCHW (values in [0, 1]).
      weights: f32[C, C, 3, 3]  synthetic generator conv weights (OIHW),
                                defined in the *normalized* domain.
      bias:    f32[C]           synthetic generator conv bias.
      tile_h:  optional override for the grid tile height (testing).

    Returns:
      f32[C, H, W]  (matches `res.view(res.shape[1], res.shape[2], res.shape[3])`).
    """
    assert img.ndim == 4 and img.shape[0] == 1 and img.shape[1] == C
    _, _, H, W = img.shape
    x = img[0].astype(jnp.float32)  # (C, H, W)

    TH = tile_h if tile_h is not None else _pick_tile_h(H, W)
    assert H % TH == 0
    RH = _pick_chunk_h(TH, W)
    NT = H // TH          # grid steps
    CPT = TH // RH        # row chunks per tile
    NC = NT * CPT         # row chunks over the whole image

    # Fold the affine normalization into the conv parameters:
    #   conv((x-MEAN)/STD, w) + b == conv(x, w/STD) + (b - (MEAN/STD)*sum(w))
    # valid (including borders) as long as the raw-space pad value is MEAN.
    w32 = weights.astype(jnp.float32)
    w_f = (w32 / STD).reshape(-1)                                   # (C*C*3*3,)
    b_f = bias.astype(jnp.float32) - (MEAN / STD) * jnp.sum(w32, axis=(1, 2, 3))

    # Tiny per-chunk halo rows (row above / below each RH-row chunk); constant
    # MEAN at the image border.  Shaped (NC, C, W) so each grid step's block is
    # (CPT, C, W) with last two dims equal to the full array dims.
    pad_row = jnp.full((C, 1, W), MEAN, dtype=jnp.float32)
    if NC > 1:
        top = jnp.concatenate([pad_row, x[:, RH - 1:H - 1:RH, :]], axis=1)
        bot = jnp.concatenate([x[:, RH:H:RH, :], pad_row], axis=1)
    else:
        top = pad_row
        bot = pad_row
    top = jnp.transpose(top, (1, 0, 2))   # (NC, C, W)
    bot = jnp.transpose(bot, (1, 0, 2))   # (NC, C, W)

    # VMEM limit sized to the real double-buffered footprint + ~25% headroom.
    step_bytes = 4 * C * W * (2 * TH + 2 * CPT)   # in + out tiles + halo blocks
    vmem_limit = int(min(max(2.5 * step_bytes, 16 * 1024 * 1024),
                         48 * 1024 * 1024))

    out = pl.pallas_call(
        _make_gan_kernel(TH, RH, W),
        out_shape=jax.ShapeDtypeStruct((C, H, W), jnp.float32),
        grid=(NT,),
        in_specs=[
            pl.BlockSpec(memory_space=pltpu.MemorySpace.SMEM),   # folded weights
            pl.BlockSpec(memory_space=pltpu.MemorySpace.SMEM),   # folded bias
            pl.BlockSpec((CPT, C, W), lambda i: (i, 0, 0)),      # top halo rows
            pl.BlockSpec((C, TH, W), lambda i: (0, i, 0)),       # image H-tile
            pl.BlockSpec((CPT, C, W), lambda i: (i, 0, 0)),      # bottom halo rows
        ],
        out_specs=pl.BlockSpec((C, TH, W), lambda i: (0, i, 0)),
        compiler_params=pltpu.CompilerParams(
            dimension_semantics=("parallel",),   # megacore-shardable (v7x)
            vmem_limit_bytes=vmem_limit,
        ),
    )(w_f, b_f, top, x, bot)
    return out


def _reference_forward(img, weights, bias):
    """Pure-JAX reference (normalized-domain conv, zero 'SAME' padding)."""
    xn = (img.astype(jnp.float32) - MEAN) / STD  # NCHW
    y = jax.lax.conv_general_dilated(
        xn, weights.astype(jnp.float32), window_strides=(1, 1), padding="SAME",
        dimension_numbers=("NCHW", "OIHW", "NCHW"),
        precision=jax.lax.Precision.HIGHEST,
    ) + bias.reshape(1, C, 1, 1)
    res = jnp.tanh(y)[0]  # (C, H, W)
    return res * STD + MEAN


if __name__ == "__main__":
    key = jax.random.PRNGKey(0)
    k_img, k_w, k_b = jax.random.split(key, 3)

    # Small but lane-aligned (W multiple of 128); H=W=128 runs as ONE grid step
    # with 2 in-kernel row chunks (exercises image-border and chunk-boundary
    # halos).
    H = W = 128
    img = jax.random.uniform(k_img, (1, C, H, W), dtype=jnp.float32)       # [0,1]
    weights = 0.1 * jax.random.normal(k_w, (C, C, KSIZE, KSIZE), jnp.float32)
    bias = 0.05 * jax.random.normal(k_b, (C,), jnp.float32)

    out = jax.block_until_ready(gan_forward(img, weights, bias))
    ref = _reference_forward(img, weights, bias)
    assert out.shape == (C, H, W), out.shape
    assert jnp.allclose(out, ref, atol=2e-5, rtol=2e-5), (
        float(jnp.max(jnp.abs(out - ref))))

    # Also exercise the multi-tile grid path (NT=2) with multi-chunk tiles
    # (CPT=4) to cover inter-tile halo indexing.
    H2 = W2 = 256
    img2 = jax.random.uniform(k_img, (1, C, H2, W2), dtype=jnp.float32)
    out2 = jax.block_until_ready(gan_forward(img2, weights, bias, tile_h=128))
    ref2 = _reference_forward(img2, weights, bias)
    assert out2.shape == (C, H2, W2), out2.shape
    assert jnp.allclose(out2, ref2, atol=2e-5, rtol=2e-5), (
        float(jnp.max(jnp.abs(out2 - ref2))))

    print("KERNEL_OK")
</pallas_src>

<mosaic_0001>
module attributes {stable_mosaic.version = 11 : i64} {
  func.func @kernel(%arg0: i32, %arg1: memref<81xf32, #tpu.memory_space<smem>>, %arg2: memref<3xf32, #tpu.memory_space<smem>>, %arg3: memref<2x3x128xf32, #tpu.memory_space<vmem>>, %arg4: memref<3x128x128xf32, #tpu.memory_space<vmem>>, %arg5: memref<2x3x128xf32, #tpu.memory_space<vmem>>, %arg6: memref<3x128x128xf32, #tpu.memory_space<vmem>>) attributes {dimension_semantics = [#tpu.dimension_semantics<parallel>], iteration_bounds = array<i64: 1>, scalar_prefetch = 0 : i64, scratch_operands = 0 : i64, tpu.core_type = #tpu.core_type<tc>, window_params = [{transform_indices = @transform_0, window_bounds = array<i64: 81>}, {transform_indices = @transform_1, window_bounds = array<i64: 3>}, {transform_indices = @transform_2, window_bounds = array<i64: 2, 3, 128>}, {transform_indices = @transform_3, window_bounds = array<i64: 3, 128, 128>}, {transform_indices = @transform_4, window_bounds = array<i64: 2, 3, 128>}, {transform_indices = @transform_5, window_bounds = array<i64: 3, 128, 128>}]} {
    %0 = tpu.iota {dimensions = array<i32: 1>} : vector<64x128xi32>
    %1 = tpu.iota {dimensions = array<i32: 0>} : vector<64x128xi32>
    %c0_i32 = arith.constant 0 : i32
    %2 = vector.broadcast %c0_i32 : i32 to vector<64x128xi32>
    %3 = arith.cmpi eq, %0, %2 : vector<64x128xi32>
    %c127_i32 = arith.constant 127 : i32
    %4 = vector.broadcast %c127_i32 : i32 to vector<64x128xi32>
    %5 = arith.cmpi eq, %0, %4 : vector<64x128xi32>
    %c0_i32_0 = arith.constant 0 : i32
    %6 = vector.broadcast %c0_i32_0 : i32 to vector<64x128xi32>
    %7 = arith.cmpi eq, %1, %6 : vector<64x128xi32>
    %c63_i32 = arith.constant 63 : i32
    %8 = vector.broadcast %c63_i32 : i32 to vector<64x128xi32>
    %9 = arith.cmpi eq, %1, %8 : vector<64x128xi32>
    %c0 = arith.constant 0 : index
    %c0_1 = arith.constant 0 : index
    %c0_2 = arith.constant 0 : index
    %10 = vector.load %arg4[%c0, %c0_1, %c0_2] : memref<3x128x128xf32, #tpu.memory_space<vmem>>, vector<1x64x128xf32>
    %11 = vector.shape_cast %10 : vector<1x64x128xf32> to vector<64x128xf32>
    %c0_3 = arith.constant 0 : index
    %c0_4 = arith.constant 0 : index
    %c0_5 = arith.constant 0 : index
    %12 = vector.load %arg3[%c0_3, %c0_4, %c0_5] : memref<2x3x128xf32, #tpu.memory_space<vmem>>, vector<1x1x128xf32>
    %13 = vector.shape_cast %12 : vector<1x1x128xf32> to vector<1x128xf32>
    %c0_6 = arith.constant 0 : index
    %c0_7 = arith.constant 0 : index
    %c0_8 = arith.constant 0 : index
    %14 = vector.load %arg5[%c0_6, %c0_7, %c0_8] : memref<2x3x128xf32, #tpu.memory_space<vmem>>, vector<1x1x128xf32>
    %15 = vector.shape_cast %14 : vector<1x1x128xf32> to vector<1x128xf32>
    %c1_i32 = arith.constant 1 : i32
    %16 = tpu.dynamic_rotate %11 by %c1_i32 dim 0 : vector<64x128xf32>, i32 -> vector<64x128xf32>
    %17 = vector.shape_cast %13 : vector<1x128xf32> to vector<1x128xf32>
    %18 = vector.broadcast %17 : vector<1x128xf32> to vector<64x128xf32>
    %19 = arith.select %7, %18, %16 : vector<64x128xi1>, vector<64x128xf32>
    %c1_i32_9 = arith.constant 1 : i32
    %20 = tpu.dynamic_rotate %19 by %c1_i32_9 dim 1 : vector<64x128xf32>, i32 -> vector<64x128xf32>
    %cst = arith.constant 5.000000e-01 : f32
    %21 = vector.broadcast %cst : f32 to vector<64x128xf32>
    %22 = arith.select %3, %21, %20 : vector<64x128xi1>, vector<64x128xf32>
    %c0_10 = arith.constant 0 : index
    %23 = memref.load %arg1[%c0_10] : memref<81xf32, #tpu.memory_space<smem>>
    %24 = vector.broadcast %23 : f32 to vector<64x128xf32>
    %25 = arith.mulf %24, %22 : vector<64x128xf32>
    %c27 = arith.constant 27 : index
    %26 = memref.load %arg1[%c27] : memref<81xf32, #tpu.memory_space<smem>>
    %27 = vector.broadcast %26 : f32 to vector<64x128xf32>
    %28 = arith.mulf %27, %22 : vector<64x128xf32>
    %c54 = arith.constant 54 : index
    %29 = memref.load %arg1[%c54] : memref<81xf32, #tpu.memory_space<smem>>
    %30 = vector.broadcast %29 : f32 to vector<64x128xf32>
    %31 = arith.mulf %30, %22 : vector<64x128xf32>
    %c1 = arith.constant 1 : index
    %32 = memref.load %arg1[%c1] : memref<81xf32, #tpu.memory_space<smem>>
    %33 = vector.broadcast %32 : f32 to vector<64x128xf32>
    %34 = arith.mulf %33, %19 : vector<64x128xf32>
    %35 = arith.addf %25, %34 : vector<64x128xf32>
    %c28 = arith.constant 28 : index
    %36 = memref.load %arg1[%c28] : memref<81xf32, #tpu.memory_space<smem>>
    %37 = vector.broadcast %36 : f32 to vector<64x128xf32>
    %38 = arith.mulf %37, %19 : vector<64x128xf32>
    %39 = arith.addf %28, %38 : vector<64x128xf32>
    %c55 = arith.constant 55 : index
    %40 = memref.load %arg1[%c55] : memref<81xf32, #tpu.memory_space<smem>>
    %41 = vector.broadcast %40 : f32 to vector<64x128xf32>
    %42 = arith.mulf %41, %19 : vector<64x128xf32>
    %43 = arith.addf %31, %42 : vector<64x128xf32>
    %c127_i32_11 = arith.constant 127 : i32
    %44 = tpu.dynamic_rotate %19 by %c127_i32_11 dim 1 : vector<64x128xf32>, i32 -> vector<64x128xf32>
    %cst_12 = arith.constant 5.000000e-01 : f32
    %45 = vector.broadcast %cst_12 : f32 to vector<64x128xf32>
    %46 = arith.select %5, %45, %44 : vector<64x128xi1>, vector<64x128xf32>
    %c2 = arith.constant 2 : index
    %47 = memref.load %arg1[%c2] : memref<81xf32, #tpu.memory_space<smem>>
    %48 = vector.broadcast %47 : f32 to vector<64x128xf32>
    %49 = arith.mulf %48, %46 : vector<64x128xf32>
    %50 = arith.addf %35, %49 : vector<64x128xf32>
    %c29 = arith.constant 29 : index
    %51 = memref.load %arg1[%c29] : memref<81xf32, #tpu.memory_space<smem>>
    %52 = vector.broadcast %51 : f32 to vector<64x128xf32>
    %53 = arith.mulf %52, %46 : vector<64x128xf32>
    %54 = arith.addf %39, %53 : vector<64x128xf32>
    %c56 = arith.constant 56 : index
    %55 = memref.load %arg1[%c56] : memref<81xf32, #tpu.memory_space<smem>>
    %56 = vector.broadcast %55 : f32 to vector<64x128xf32>
    %57 = arith.mulf %56, %46 : vector<64x128xf32>
    %58 = arith.addf %43, %57 : vector<64x128xf32>
    %c1_i32_13 = arith.constant 1 : i32
    %59 = tpu.dynamic_rotate %11 by %c1_i32_13 dim 1 : vector<64x128xf32>, i32 -> vector<64x128xf32>
    %cst_14 = arith.constant 5.000000e-01 : f32
    %60 = vector.broadcast %cst_14 : f32 to vector<64x128xf32>
    %61 = arith.select %3, %60, %59 : vector<64x128xi1>, vector<64x128xf32>
    %c3 = arith.constant 3 : index
    %62 = memref.load %arg1[%c3] : memref<81xf32, #tpu.memory_space<smem>>
    %63 = vector.broadcast %62 : f32 to vector<64x128xf32>
    %64 = arith.mulf %63, %61 : vector<64x128xf32>
    %65 = arith.addf %50, %64 : vector<64x128xf32>
    %c30 = arith.constant 30 : index
    %66 = memref.load %arg1[%c30] : memref<81xf32, #tpu.memory_space<smem>>
    %67 = vector.broadcast %66 : f32 to vector<64x128xf32>
    %68 = arith.mulf %67, %61 : vector<64x128xf32>
    %69 = arith.addf %54, %68 : vector<64x128xf32>
    %c57 = arith.constant 57 : index
    %70 = memref.load %arg1[%c57] : memref<81xf32, #tpu.memory_space<smem>>
    %71 = vector.broadcast %70 : f32 to vector<64x128xf32>
    %72 = arith.mulf %71, %61 : vector<64x128xf32>
    %73 = arith.addf %58, %72 : vector<64x128xf32>
    %c4 = arith.constant 4 : index
    %74 = memref.load %arg1[%c4] : memref<81xf32, #tpu.memory_space<smem>>
    %75 = vector.broadcast %74 : f32 to vector<64x128xf32>
    %76 = arith.mulf %75, %11 : vector<64x128xf32>
    %77 = arith.addf %65, %76 : vector<64x128xf32>
    %c31 = arith.constant 31 : index
    %78 = memref.load %arg1[%c31] : memref<81xf32, #tpu.memory_space<smem>>
    %79 = vector.broadcast %78 : f32 to vector<64x128xf32>
    %80 = arith.mulf %79, %11 : vector<64x128xf32>
    %81 = arith.addf %69, %80 : vector<64x128xf32>
    %c58 = arith.constant 58 : index
    %82 = memref.load %arg1[%c58] : memref<81xf32, #tpu.memory_space<smem>>
    %83 = vector.broadcast %82 : f32 to vector<64x128xf32>
    %84 = arith.mulf %83, %11 : vector<64x128xf32>
    %85 = arith.addf %73, %84 : vector<64x128xf32>
    %c127_i32_15 = arith.constant 127 : i32
    %86 = tpu.dynamic_rotate %11 by %c127_i32_15 dim 1 : vector<64x128xf32>, i32 -> vector<64x128xf32>
    %cst_16 = arith.constant 5.000000e-01 : f32
    %87 = vector.broadcast %cst_16 : f32 to vector<64x128xf32>
    %88 = arith.select %5, %87, %86 : vector<64x128xi1>, vector<64x128xf32>
    %c5 = arith.constant 5 : index
    %89 = memref.load %arg1[%c5] : memref<81xf32, #tpu.memory_space<smem>>
    %90 = vector.broadcast %89 : f32 to vector<64x128xf32>
    %91 = arith.mulf %90, %88 : vector<64x128xf32>
    %92 = arith.addf %77, %91 : vector<64x128xf32>
    %c32 = arith.constant 32 : index
    %93 = memref.load %arg1[%c32] : memref<81xf32, #tpu.memory_space<smem>>
    %94 = vector.broadcast %93 : f32 to vector<64x128xf32>
    %95 = arith.mulf %94, %88 : vector<64x128xf32>
    %96 = arith.addf %81, %95 : vector<64x128xf32>
    %c59 = arith.constant 59 : index
    %97 = memref.load %arg1[%c59] : memref<81xf32, #tpu.memory_space<smem>>
    %98 = vector.broadcast %97 : f32 to vector<64x128xf32>
    %99 = arith.mulf %98, %88 : vector<64x128xf32>
    %100 = arith.addf %85, %99 : vector<64x128xf32>
    %c63_i32_17 = arith.constant 63 : i32
    %101 = tpu.dynamic_rotate %11 by %c63_i32_17 dim 0 : vector<64x128xf32>, i32 -> vector<64x128xf32>
    %102 = vector.shape_cast %15 : vector<1x128xf32> to vector<1x128xf32>
    %103 = vector.broadcast %102 : vector<1x128xf32> to vector<64x128xf32>
    %104 = arith.select %9, %103, %101 : vector<64x128xi1>, vector<64x128xf32>
    %c1_i32_18 = arith.constant 1 : i32
    %105 = tpu.dynamic_rotate %104 by %c1_i32_18 dim 1 : vector<64x128xf32>, i32 -> vector<64x128xf32>
    %cst_19 = arith.constant 5.000000e-01 : f32
    %106 = vector.broadcast %cst_19 : f32 to vector<64x128xf32>
    %107 = arith.select %3, %106, %105 : vector<64x128xi1>, vector<64x128xf32>
    %c6 = arith.constant 6 : index
    %108 = memref.load %arg1[%c6] : memref<81xf32, #tpu.memory_space<smem>>
    %109 = vector.broadcast %108 : f32 to vector<64x128xf32>
    %110 = arith.mulf %109, %107 : vector<64x128xf32>
    %111 = arith.addf %92, %110 : vector<64x128xf32>
    %c33 = arith.constant 33 : index
    %112 = memref.load %arg1[%c33] : memref<81xf32, #tpu.memory_space<smem>>
    %113 = vector.broadcast %112 : f32 to vector<64x128xf32>
    %114 = arith.mulf %113, %107 : vector<64x128xf32>
    %115 = arith.addf %96, %114 : vector<64x128xf32>
    %c60 = arith.constant 60 : index
    %116 = memref.load %arg1[%c60] : memref<81xf32, #tpu.memory_space<smem>>
    %117 = vector.broadcast %116 : f32 to vector<64x128xf32>
    %118 = arith.mulf %117, %107 : vector<64x128xf32>
    %119 = arith.addf %100, %118 : vector<64x128xf32>
    %c7 = arith.constant 7 : index
    %120 = memref.load %arg1[%c7] : memref<81xf32, #tpu.memory_space<smem>>
    %121 = vector.broadcast %120 : f32 to vector<64x128xf32>
    %122 = arith.mulf %121, %104 : vector<64x128xf32>
    %123 = arith.addf %111, %122 : vector<64x128xf32>
    %c34 = arith.constant 34 : index
    %124 = memref.load %arg1[%c34] : memref<81xf32, #tpu.memory_space<smem>>
    %125 = vector.broadcast %124 : f32 to vector<64x128xf32>
    %126 = arith.mulf %125, %104 : vector<64x128xf32>
    %127 = arith.addf %115, %126 : vector<64x128xf32>
    %c61 = arith.constant 61 : index
    %128 = memref.load %arg1[%c61] : memref<81xf32, #tpu.memory_space<smem>>
    %129 = vector.broadcast %128 : f32 to vector<64x128xf32>
    %130 = arith.mulf %129, %104 : vector<64x128xf32>
    %131 = arith.addf %119, %130 : vector<64x128xf32>
    %c127_i32_20 = arith.constant 127 : i32
    %132 = tpu.dynamic_rotate %104 by %c127_i32_20 dim 1 : vector<64x128xf32>, i32 -> vector<64x128xf32>
    %cst_21 = arith.constant 5.000000e-01 : f32
    %133 = vector.broadcast %cst_21 : f32 to vector<64x128xf32>
    %134 = arith.select %5, %133, %132 : vector<64x128xi1>, vector<64x128xf32>
    %c8 = arith.constant 8 : index
    %135 = memref.load %arg1[%c8] : memref<81xf32, #tpu.memory_space<smem>>
    %136 = vector.broadcast %135 : f32 to vector<64x128xf32>
    %137 = arith.mulf %136, %134 : vector<64x128xf32>
    %138 = arith.addf %123, %137 : vector<64x128xf32>
    %c35 = arith.constant 35 : index
    %139 = memref.load %arg1[%c35] : memref<81xf32, #tpu.memory_space<smem>>
    %140 = vector.broadcast %139 : f32 to vector<64x128xf32>
    %141 = arith.mulf %140, %134 : vector<64x128xf32>
    %142 = arith.addf %127, %141 : vector<64x128xf32>
    %c62 = arith.constant 62 : index
    %143 = memref.load %arg1[%c62] : memref<81xf32, #tpu.memory_space<smem>>
    %144 = vector.broadcast %143 : f32 to vector<64x128xf32>
    %145 = arith.mulf %144, %134 : vector<64x128xf32>
    %146 = arith.addf %131, %145 : vector<64x128xf32>
    %c1_22 = arith.constant 1 : index
    %c0_23 = arith.constant 0 : index
    %c0_24 = arith.constant 0 : index
    %147 = vector.load %arg4[%c1_22, %c0_23, %c0_24] : memref<3x128x128xf32, #tpu.memory_space<vmem>>, vector<1x64x128xf32>
    %148 = vector.shape_cast %147 : vector<1x64x128xf32> to vector<64x128xf32>
    %c0_25 = arith.constant 0 : index
    %c1_26 = arith.constant 1 : index
    %c0_27 = arith.constant 0 : index
    %149 = vector.load %arg3[%c0_25, %c1_26, %c0_27] : memref<2x3x128xf32, #tpu.memory_space<vmem>>, vector<1x1x128xf32>
    %150 = vector.shape_cast %149 : vector<1x1x128xf32> to vector<1x128xf32>
    %c0_28 = arith.constant 0 : index
    %c1_29 = arith.constant 1 : index
    %c0_30 = arith.constant 0 : index
    %151 = vector.load %arg5[%c0_28, %c1_29, %c0_30] : memref<2x3x128xf32, #tpu.memory_space<vmem>>, vector<1x1x128xf32>
    %152 = vector.shape_cast %151 : vector<1x1x128xf32> to vector<1x128xf32>
    %c1_i32_31 = arith.constant 1 : i32
    %153 = tpu.dynamic_rotate %148 by %c1_i32_31 dim 0 : vector<64x128xf32>, i32 -> vector<64x128xf32>
    %154 = vector.shape_cast %150 : vector<1x128xf32> to vector<1x128xf32>
    %155 = vector.broadcast %154 : vector<1x128xf32> to vector<64x128xf32>
    %156 = arith.select %7, %155, %153 : vector<64x128xi1>, vector<64x128xf32>
    %c1_i32_32 = arith.constant 1 : i32
    %157 = tpu.dynamic_rotate %156 by %c1_i32_32 dim 1 : vector<64x128xf32>, i32 -> vector<64x128xf32>
    %cst_33 = arith.constant 5.000000e-01 : f32
    %158 = vector.broadcast %cst_33 : f32 to vector<64x128xf32>
    %159 = arith.select %3, %158, %157 : vector<64x128xi1>, vector<64x128xf32>
    %c9 = arith.constant 9 : index
    %160 = memref.load %arg1[%c9] : memref<81xf32, #tpu.memory_space<smem>>
    %161 = vector.broadcast %160 : f32 to vector<64x128xf32>
    %162 = arith.mulf %161, %159 : vector<64x128xf32>
    %163 = arith.addf %138, %162 : vector<64x128xf32>
    %c36 = arith.constant 36 : index
    %164 = memref.load %arg1[%c36] : memref<81xf32, #tpu.memory_space<smem>>
    %165 = vector.broadcast %164 : f32 to vector<64x128xf32>
    %166 = arith.mulf %165, %159 : vector<64x128xf32>
    %167 = arith.addf %142, %166 : vector<64x128xf32>
    %c63 = arith.constant 63 : index
    %168 = memref.load %arg1[%c63] : memref<81xf32, #tpu.memory_space<smem>>
    %169 = vector.broadcast %168 : f32 to vector<64x128xf32>
    %170 = arith.mulf %169, %159 : vector<64x128xf32>
    %171 = arith.addf %146, %170 : vector<64x128xf32>
    %c10 = arith.constant 10 : index
    %172 = memref.load %arg1[%c10] : memref<81xf32, #tpu.memory_space<smem>>
    %173 = vector.broadcast %172 : f32 to vector<64x128xf32>
    %174 = arith.mulf %173, %156 : vector<64x128xf32>
    %175 = arith.addf %163, %174 : vector<64x128xf32>
    %c37 = arith.constant 37 : index
    %176 = memref.load %arg1[%c37] : memref<81xf32, #tpu.memory_space<smem>>
    %177 = vector.broadcast %176 : f32 to vector<64x128xf32>
    %178 = arith.mulf %177, %156 : vector<64x128xf32>
    %179 = arith.addf %167, %178 : vector<64x128xf32>
    %c64 = arith.constant 64 : index
    %180 = memref.load %arg1[%c64] : memref<81xf32, #tpu.memory_space<smem>>
    %181 = vector.broadcast %180 : f32 to vector<64x128xf32>
    %182 = arith.mulf %181, %156 : vector<64x128xf32>
    %183 = arith.addf %171, %182 : vector<64x128xf32>
    %c127_i32_34 = arith.constant 127 : i32
    %184 = tpu.dynamic_rotate %156 by %c127_i32_34 dim 1 : vector<64x128xf32>, i32 -> vector<64x128xf32>
    %cst_35 = arith.constant 5.000000e-01 : f32
    %185 = vector.broadcast %cst_35 : f32 to vector<64x128xf32>
    %186 = arith.select %5, %185, %184 : vector<64x128xi1>, vector<64x128xf32>
    %c11 = arith.constant 11 : index
    %187 = memref.load %arg1[%c11] : memref<81xf32, #tpu.memory_space<smem>>
    %188 = vector.broadcast %187 : f32 to vector<64x128xf32>
    %189 = arith.mulf %188, %186 : vector<64x128xf32>
    %190 = arith.addf %175, %189 : vector<64x128xf32>
    %c38 = arith.constant 38 : index
    %191 = memref.load %arg1[%c38] : memref<81xf32, #tpu.memory_space<smem>>
    %192 = vector.broadcast %191 : f32 to vector<64x128xf32>
    %193 = arith.mulf %192, %186 : vector<64x128xf32>
    %194 = arith.addf %179, %193 : vector<64x128xf32>
    %c65 = arith.constant 65 : index
    %195 = memref.load %arg1[%c65] : memref<81xf32, #tpu.memory_space<smem>>
    %196 = vector.broadcast %195 : f32 to vector<64x128xf32>
    %197 = arith.mulf %196, %186 : vector<64x128xf32>
    %198 = arith.addf %183, %197 : vector<64x128xf32>
    %c1_i32_36 = arith.constant 1 : i32
    %199 = tpu.dynamic_rotate %148 by %c1_i32_36 dim 1 : vector<64x128xf32>, i32 -> vector<64x128xf32>
    %cst_37 = arith.constant 5.000000e-01 : f32
    %200 = vector.broadcast %cst_37 : f32 to vector<64x128xf32>
    %201 = arith.select %3, %200, %199 : vector<64x128xi1>, vector<64x128xf32>
    %c12 = arith.constant 12 : index
    %202 = memref.load %arg1[%c12] : memref<81xf32, #tpu.memory_space<smem>>
    %203 = vector.broadcast %202 : f32 to vector<64x128xf32>
    %204 = arith.mulf %203, %201 : vector<64x128xf32>
    %205 = arith.addf %190, %204 : vector<64x128xf32>
    %c39 = arith.constant 39 : index
    %206 = memref.load %arg1[%c39] : memref<81xf32, #tpu.memory_space<smem>>
    %207 = vector.broadcast %206 : f32 to vector<64x128xf32>
    %208 = arith.mulf %207, %201 : vector<64x128xf32>
    %209 = arith.addf %194, %208 : vector<64x128xf32>
    %c66 = arith.constant 66 : index
    %210 = memref.load %arg1[%c66] : memref<81xf32, #tpu.memory_space<smem>>
    %211 = vector.broadcast %210 : f32 to vector<64x128xf32>
    %212 = arith.mulf %211, %201 : vector<64x128xf32>
    %213 = arith.addf %198, %212 : vector<64x128xf32>
    %c13 = arith.constant 13 : index
    %214 = memref.load %arg1[%c13] : memref<81xf32, #tpu.memory_space<smem>>
    %215 = vector.broadcast %214 : f32 to vector<64x128xf32>
    %216 = arith.mulf %215, %148 : vector<64x128xf32>
    %217 = arith.addf %205, %216 : vector<64x128xf32>
    %c40 = arith.constant 40 : index
    %218 = memref.load %arg1[%c40] : memref<81xf32, #tpu.memory_space<smem>>
    %219 = vector.broadcast %218 : f32 to vector<64x128xf32>
    %220 = arith.mulf %219, %148 : vector<64x128xf32>
    %221 = arith.addf %209, %220 : vector<64x128xf32>
    %c67 = arith.constant 67 : index
    %222 = memref.load %arg1[%c67] : memref<81xf32, #tpu.memory_space<smem>>
    %223 = vector.broadcast %222 : f32 to vector<64x128xf32>
    %224 = arith.mulf %223, %148 : vector<64x128xf32>
    %225 = arith.addf %213, %224 : vector<64x128xf32>
    %c127_i32_38 = arith.constant 127 : i32
    %226 = tpu.dynamic_rotate %148 by %c127_i32_38 dim 1 : vector<64x128xf32>, i32 -> vector<64x128xf32>
    %cst_39 = arith.constant 5.000000e-01 : f32
    %227 = vector.broadcast %cst_39 : f32 to vector<64x128xf32>
    %228 = arith.select %5, %227, %226 : vector<64x128xi1>, vector<64x128xf32>
    %c14 = arith.constant 14 : index
    %229 = memref.load %arg1[%c14] : memref<81xf32, #tpu.memory_space<smem>>
    %230 = vector.broadcast %229 : f32 to vector<64x128xf32>
    %231 = arith.mulf %230, %228 : vector<64x128xf32>
    %232 = arith.addf %217, %231 : vector<64x128xf32>
    %c41 = arith.constant 41 : index
    %233 = memref.load %arg1[%c41] : memref<81xf32, #tpu.memory_space<smem>>
    %234 = vector.broadcast %233 : f32 to vector<64x128xf32>
    %235 = arith.mulf %234, %228 : vector<64x128xf32>
    %236 = arith.addf %221, %235 : vector<64x128xf32>
    %c68 = arith.constant 68 : index
    %237 = memref.load %arg1[%c68] : memref<81xf32, #tpu.memory_space<smem>>
    %238 = vector.broadcast %237 : f32 to vector<64x128xf32>
    %239 = arith.mulf %238, %228 : vector<64x128xf32>
    %240 = arith.addf %225, %239 : vector<64x128xf32>
    %c63_i32_40 = arith.constant 63 : i32
    %241 = tpu.dynamic_rotate %148 by %c63_i32_40 dim 0 : vector<64x128xf32>, i32 -> vector<64x128xf32>
    %242 = vector.shape_cast %152 : vector<1x128xf32> to vector<1x128xf32>
    %243 = vector.broadcast %242 : vector<1x128xf32> to vector<64x128xf32>
    %244 = arith.select %9, %243, %241 : vector<64x128xi1>, vector<64x128xf32>
    %c1_i32_41 = arith.constant 1 : i32
    %245 = tpu.dynamic_rotate %244 by %c1_i32_41 dim 1 : vector<64x128xf32>, i32 -> vector<64x128xf32>
    %cst_42 = arith.constant 5.000000e-01 : f32
    %246 = vector.broadcast %cst_42 : f32 to vector<64x128xf32>
    %247 = arith.select %3, %246, %245 : vector<64x128xi1>, vector<64x128xf32>
    %c15 = arith.constant 15 : index
    %248 = memref.load %arg1[%c15] : memref<81xf32, #tpu.memory_space<smem>>
    %249 = vector.broadcast %248 : f32 to vector<64x128xf32>
    %250 = arith.mulf %249, %247 : vector<64x128xf32>
    %251 = arith.addf %232, %250 : vector<64x128xf32>
    %c42 = arith.constant 42 : index
    %252 = memref.load %arg1[%c42] : memref<81xf32, #tpu.memory_space<smem>>
    %253 = vector.broadcast %252 : f32 to vector<64x128xf32>
    %254 = arith.mulf %253, %247 : vector<64x128xf32>
    %255 = arith.addf %236, %254 : vector<64x128xf32>
    %c69 = arith.constant 69 : index
    %256 = memref.load %arg1[%c69] : memref<81xf32, #tpu.memory_space<smem>>
    %257 = vector.broadcast %256 : f32 to vector<64x128xf32>
    %258 = arith.mulf %257, %247 : vector<64x128xf32>
    %259 = arith.addf %240, %258 : vector<64x128xf32>
    %c16 = arith.constant 16 : index
    %260 = memref.load %arg1[%c16] : memref<81xf32, #tpu.memory_space<smem>>
    %261 = vector.broadcast %260 : f32 to vector<64x128xf32>
    %262 = arith.mulf %261, %244 : vector<64x128xf32>
    %263 = arith.addf %251, %262 : vector<64x128xf32>
    %c43 = arith.constant 43 : index
    %264 = memref.load %arg1[%c43] : memref<81xf32, #tpu.memory_space<smem>>
    %265 = vector.broadcast %264 : f32 to vector<64x128xf32>
    %266 = arith.mulf %265, %244 : vector<64x128xf32>
    %267 = arith.addf %255, %266 : vector<64x128xf32>
    %c70 = arith.constant 70 : index
    %268 = memref.load %arg1[%c70] : memref<81xf32, #tpu.memory_space<smem>>
    %269 = vector.broadcast %268 : f32 to vector<64x128xf32>
    %270 = arith.mulf %269, %244 : vector<64x128xf32>
    %271 = arith.addf %259, %270 : vector<64x128xf32>
    %c127_i32_43 = arith.constant 127 : i32
    %272 = tpu.dynamic_rotate %244 by %c127_i32_43 dim 1 : vector<64x128xf32>, i32 -> vector<64x128xf32>
    %cst_44 = arith.constant 5.000000e-01 : f32
    %273 = vector.broadcast %cst_44 : f32 to vector<64x128xf32>
    %274 = arith.select %5, %273, %272 : vector<64x128xi1>, vector<64x128xf32>
    %c17 = arith.constant 17 : index
    %275 = memref.load %arg1[%c17] : memref<81xf32, #tpu.memory_space<smem>>
    %276 = vector.broadcast %275 : f32 to vector<64x128xf32>
    %277 = arith.mulf %276, %274 : vector<64x128xf32>
    %278 = arith.addf %263, %277 : vector<64x128xf32>
    %c44 = arith.constant 44 : index
    %279 = memref.load %arg1[%c44] : memref<81xf32, #tpu.memory_space<smem>>
    %280 = vector.broadcast %279 : f32 to vector<64x128xf32>
    %281 = arith.mulf %280, %274 : vector<64x128xf32>
    %282 = arith.addf %267, %281 : vector<64x128xf32>
    %c71 = arith.constant 71 : index
    %283 = memref.load %arg1[%c71] : memref<81xf32, #tpu.memory_space<smem>>
    %284 = vector.broadcast %283 : f32 to vector<64x128xf32>
    %285 = arith.mulf %284, %274 : vector<64x128xf32>
    %286 = arith.addf %271, %285 : vector<64x128xf32>
    %c2_45 = arith.constant 2 : index
    %c0_46 = arith.constant 0 : index
    %c0_47 = arith.constant 0 : index
    %287 = vector.load %arg4[%c2_45, %c0_46, %c0_47] : memref<3x128x128xf32, #tpu.memory_space<vmem>>, vector<1x64x128xf32>
    %288 = vector.shape_cast %287 : vector<1x64x128xf32> to vector<64x128xf32>
    %c0_48 = arith.constant 0 : index
    %c2_49 = arith.constant 2 : index
    %c0_50 = arith.constant 0 : index
    %289 = vector.load %arg3[%c0_48, %c2_49, %c0_50] : memref<2x3x128xf32, #tpu.memory_space<vmem>>, vector<1x1x128xf32>
    %290 = vector.shape_cast %289 : vector<1x1x128xf32> to vector<1x128xf32>
    %c0_51 = arith.constant 0 : index
    %c2_52 = arith.constant 2 : index
    %c0_53 = arith.constant 0 : index
    %291 = vector.load %arg5[%c0_51, %c2_52, %c0_53] : memref<2x3x128xf32, #tpu.memory_space<vmem>>, vector<1x1x128xf32>
    %292 = vector.shape_cast %291 : vector<1x1x128xf32> to vector<1x128xf32>
    %c1_i32_54 = arith.constant 1 : i32
    %293 = tpu.dynamic_rotate %288 by %c1_i32_54 dim 0 : vector<64x128xf32>, i32 -> vector<64x128xf32>
    %294 = vector.shape_cast %290 : vector<1x128xf32> to vector<1x128xf32>
    %295 = vector.broadcast %294 : vector<1x128xf32> to vector<64x128xf32>
    %296 = arith.select %7, %295, %293 : vector<64x128xi1>, vector<64x128xf32>
    %c1_i32_55 = arith.constant 1 : i32
    %297 = tpu.dynamic_rotate %296 by %c1_i32_55 dim 1 : vector<64x128xf32>, i32 -> vector<64x128xf32>
    %cst_56 = arith.constant 5.000000e-01 : f32
    %298 = vector.broadcast %cst_56 : f32 to vector<64x128xf32>
    %299 = arith.select %3, %298, %297 : vector<64x128xi1>, vector<64x128xf32>
    %c18 = arith.constant 18 : index
    %300 = memref.load %arg1[%c18] : memref<81xf32, #tpu.memory_space<smem>>
    %301 = vector.broadcast %300 : f32 to vector<64x128xf32>
    %302 = arith.mulf %301, %299 : vector<64x128xf32>
    %303 = arith.addf %278, %302 : vector<64x128xf32>
    %c45 = arith.constant 45 : index
    %304 = memref.load %arg1[%c45] : memref<81xf32, #tpu.memory_space<smem>>
    %305 = vector.broadcast %304 : f32 to vector<64x128xf32>
    %306 = arith.mulf %305, %299 : vector<64x128xf32>
    %307 = arith.addf %282, %306 : vector<64x128xf32>
    %c72 = arith.constant 72 : index
    %308 = memref.load %arg1[%c72] : memref<81xf32, #tpu.memory_space<smem>>
    %309 = vector.broadcast %308 : f32 to vector<64x128xf32>
    %310 = arith.mulf %309, %299 : vector<64x128xf32>
    %311 = arith.addf %286, %310 : vector<64x128xf32>
    %c19 = arith.constant 19 : index
    %312 = memref.load %arg1[%c19] : memref<81xf32, #tpu.memory_space<smem>>
    %313 = vector.broadcast %312 : f32 to vector<64x128xf32>
    %314 = arith.mulf %313, %296 : vector<64x128xf32>
    %315 = arith.addf %303, %314 : vector<64x128xf32>
    %c46 = arith.constant 46 : index
    %316 = memref.load %arg1[%c46] : memref<81xf32, #tpu.memory_space<smem>>
    %317 = vector.broadcast %316 : f32 to vector<64x128xf32>
    %318 = arith.mulf %317, %296 : vector<64x128xf32>
    %319 = arith.addf %307, %318 : vector<64x128xf32>
    %c73 = arith.constant 73 : index
    %320 = memref.load %arg1[%c73] : memref<81xf32, #tpu.memory_space<smem>>
    %321 = vector.broadcast %320 : f32 to vector<64x128xf32>
    %322 = arith.mulf %321, %296 : vector<64x128xf32>
    %323 = arith.addf %311, %322 : vector<64x128xf32>
    %c127_i32_57 = arith.constant 127 : i32
    %324 = tpu.dynamic_rotate %296 by %c127_i32_57 dim 1 : vector<64x128xf32>, i32 -> vector<64x128xf32>
    %cst_58 = arith.constant 5.000000e-01 : f32
    %325 = vector.broadcast %cst_58 : f32 to vector<64x128xf32>
    %326 = arith.select %5, %325, %324 : vector<64x128xi1>, vector<64x128xf32>
    %c20 = arith.constant 20 : index
    %327 = memref.load %arg1[%c20] : memref<81xf32, #tpu.memory_space<smem>>
    %328 = vector.broadcast %327 : f32 to vector<64x128xf32>
    %329 = arith.mulf %328, %326 : vector<64x128xf32>
    %330 = arith.addf %315, %329 : vector<64x128xf32>
    %c47 = arith.constant 47 : index
    %331 = memref.load %arg1[%c47] : memref<81xf32, #tpu.memory_space<smem>>
    %332 = vector.broadcast %331 : f32 to vector<64x128xf32>
    %333 = arith.mulf %332, %326 : vector<64x128xf32>
    %334 = arith.addf %319, %333 : vector<64x128xf32>
    %c74 = arith.constant 74 : index
    %335 = memref.load %arg1[%c74] : memref<81xf32, #tpu.memory_space<smem>>
    %336 = vector.broadcast %335 : f32 to vector<64x128xf32>
    %337 = arith.mulf %336, %326 : vector<64x128xf32>
    %338 = arith.addf %323, %337 : vector<64x128xf32>
    %c1_i32_59 = arith.constant 1 : i32
    %339 = tpu.dynamic_rotate %288 by %c1_i32_59 dim 1 : vector<64x128xf32>, i32 -> vector<64x128xf32>
    %cst_60 = arith.constant 5.000000e-01 : f32
    %340 = vector.broadcast %cst_60 : f32 to vector<64x128xf32>
    %341 = arith.select %3, %340, %339 : vector<64x128xi1>, vector<64x128xf32>
    %c21 = arith.constant 21 : index
    %342 = memref.load %arg1[%c21] : memref<81xf32, #tpu.memory_space<smem>>
    %343 = vector.broadcast %342 : f32 to vector<64x128xf32>
    %344 = arith.mulf %343, %341 : vector<64x128xf32>
    %345 = arith.addf %330, %344 : vector<64x128xf32>
    %c48 = arith.constant 48 : index
    %346 = memref.load %arg1[%c48] : memref<81xf32, #tpu.memory_space<smem>>
    %347 = vector.broadcast %346 : f32 to vector<64x128xf32>
    %348 = arith.mulf %347, %341 : vector<64x128xf32>
    %349 = arith.addf %334, %348 : vector<64x128xf32>
    %c75 = arith.constant 75 : index
    %350 = memref.load %arg1[%c75] : memref<81xf32, #tpu.memory_space<smem>>
    %351 = vector.broadcast %350 : f32 to vector<64x128xf32>
    %352 = arith.mulf %351, %341 : vector<64x128xf32>
    %353 = arith.addf %338, %352 : vector<64x128xf32>
    %c22 = arith.constant 22 : index
    %354 = memref.load %arg1[%c22] : memref<81xf32, #tpu.memory_space<smem>>
    %355 = vector.broadcast %354 : f32 to vector<64x128xf32>
    %356 = arith.mulf %355, %288 : vector<64x128xf32>
    %357 = arith.addf %345, %356 : vector<64x128xf32>
    %c49 = arith.constant 49 : index
    %358 = memref.load %arg1[%c49] : memref<81xf32, #tpu.memory_space<smem>>
    %359 = vector.broadcast %358 : f32 to vector<64x128xf32>
    %360 = arith.mulf %359, %288 : vector<64x128xf32>
    %361 = arith.addf %349, %360 : vector<64x128xf32>
    %c76 = arith.constant 76 : index
    %362 = memref.load %arg1[%c76] : memref<81xf32, #tpu.memory_space<smem>>
    %363 = vector.broadcast %362 : f32 to vector<64x128xf32>
    %364 = arith.mulf %363, %288 : vector<64x128xf32>
    %365 = arith.addf %353, %364 : vector<64x128xf32>
    %c127_i32_61 = arith.constant 127 : i32
    %366 = tpu.dynamic_rotate %288 by %c127_i32_61 dim 1 : vector<64x128xf32>, i32 -> vector<64x128xf32>
    %cst_62 = arith.constant 5.000000e-01 : f32
    %367 = vector.broadcast %cst_62 : f32 to vector<64x128xf32>
    %368 = arith.select %5, %367, %366 : vector<64x128xi1>, vector<64x128xf32>
    %c23 = arith.constant 23 : index
    %369 = memref.load %arg1[%c23] : memref<81xf32, #tpu.memory_space<smem>>
    %370 = vector.broadcast %369 : f32 to vector<64x128xf32>
    %371 = arith.mulf %370, %368 : vector<64x128xf32>
    %372 = arith.addf %357, %371 : vector<64x128xf32>
    %c50 = arith.constant 50 : index
    %373 = memref.load %arg1[%c50] : memref<81xf32, #tpu.memory_space<smem>>
    %374 = vector.broadcast %373 : f32 to vector<64x128xf32>
    %375 = arith.mulf %374, %368 : vector<64x128xf32>
    %376 = arith.addf %361, %375 : vector<64x128xf32>
    %c77 = arith.constant 77 : index
    %377 = memref.load %arg1[%c77] : memref<81xf32, #tpu.memory_space<smem>>
    %378 = vector.broadcast %377 : f32 to vector<64x128xf32>
    %379 = arith.mulf %378, %368 : vector<64x128xf32>
    %380 = arith.addf %365, %379 : vector<64x128xf32>
    %c63_i32_63 = arith.constant 63 : i32
    %381 = tpu.dynamic_rotate %288 by %c63_i32_63 dim 0 : vector<64x128xf32>, i32 -> vector<64x128xf32>
    %382 = vector.shape_cast %292 : vector<1x128xf32> to vector<1x128xf32>
    %383 = vector.broadcast %382 : vector<1x128xf32> to vector<64x128xf32>
    %384 = arith.select %9, %383, %381 : vector<64x128xi1>, vector<64x128xf32>
    %c1_i32_64 = arith.constant 1 : i32
    %385 = tpu.dynamic_rotate %384 by %c1_i32_64 dim 1 : vector<64x128xf32>, i32 -> vector<64x128xf32>
    %cst_65 = arith.constant 5.000000e-01 : f32
    %386 = vector.broadcast %cst_65 : f32 to vector<64x128xf32>
    %387 = arith.select %3, %386, %385 : vector<64x128xi1>, vector<64x128xf32>
    %c24 = arith.constant 24 : index
    %388 = memref.load %arg1[%c24] : memref<81xf32, #tpu.memory_space<smem>>
    %389 = vector.broadcast %388 : f32 to vector<64x128xf32>
    %390 = arith.mulf %389, %387 : vector<64x128xf32>
    %391 = arith.addf %372, %390 : vector<64x128xf32>
    %c51 = arith.constant 51 : index
    %392 = memref.load %arg1[%c51] : memref<81xf32, #tpu.memory_space<smem>>
    %393 = vector.broadcast %392 : f32 to vector<64x128xf32>
    %394 = arith.mulf %393, %387 : vector<64x128xf32>
    %395 = arith.addf %376, %394 : vector<64x128xf32>
    %c78 = arith.constant 78 : index
    %396 = memref.load %arg1[%c78] : memref<81xf32, #tpu.memory_space<smem>>
    %397 = vector.broadcast %396 : f32 to vector<64x128xf32>
    %398 = arith.mulf %397, %387 : vector<64x128xf32>
    %399 = arith.addf %380, %398 : vector<64x128xf32>
    %c25 = arith.constant 25 : index
    %400 = memref.load %arg1[%c25] : memref<81xf32, #tpu.memory_space<smem>>
    %401 = vector.broadcast %400 : f32 to vector<64x128xf32>
    %402 = arith.mulf %401, %384 : vector<64x128xf32>
    %403 = arith.addf %391, %402 : vector<64x128xf32>
    %c52 = arith.constant 52 : index
    %404 = memref.load %arg1[%c52] : memref<81xf32, #tpu.memory_space<smem>>
    %405 = vector.broadcast %404 : f32 to vector<64x128xf32>
    %406 = arith.mulf %405, %384 : vector<64x128xf32>
    %407 = arith.addf %395, %406 : vector<64x128xf32>
    %c79 = arith.constant 79 : index
    %408 = memref.load %arg1[%c79] : memref<81xf32, #tpu.memory_space<smem>>
    %409 = vector.broadcast %408 : f32 to vector<64x128xf32>
    %410 = arith.mulf %409, %384 : vector<64x128xf32>
    %411 = arith.addf %399, %410 : vector<64x128xf32>
    %c127_i32_66 = arith.constant 127 : i32
    %412 = tpu.dynamic_rotate %384 by %c127_i32_66 dim 1 : vector<64x128xf32>, i32 -> vector<64x128xf32>
    %cst_67 = arith.constant 5.000000e-01 : f32
    %413 = vector.broadcast %cst_67 : f32 to vector<64x128xf32>
    %414 = arith.select %5, %413, %412 : vector<64x128xi1>, vector<64x128xf32>
    %c26 = arith.constant 26 : index
    %415 = memref.load %arg1[%c26] : memref<81xf32, #tpu.memory_space<smem>>
    %416 = vector.broadcast %415 : f32 to vector<64x128xf32>
    %417 = arith.mulf %416, %414 : vector<64x128xf32>
    %418 = arith.addf %403, %417 : vector<64x128xf32>
    %c53 = arith.constant 53 : index
    %419 = memref.load %arg1[%c53] : memref<81xf32, #tpu.memory_space<smem>>
    %420 = vector.broadcast %419 : f32 to vector<64x128xf32>
    %421 = arith.mulf %420, %414 : vector<64x128xf32>
    %422 = arith.addf %407, %421 : vector<64x128xf32>
    %c80 = arith.constant 80 : index
    %423 = memref.load %arg1[%c80] : memref<81xf32, #tpu.memory_space<smem>>
    %424 = vector.broadcast %423 : f32 to vector<64x128xf32>
    %425 = arith.mulf %424, %414 : vector<64x128xf32>
    %426 = arith.addf %411, %425 : vector<64x128xf32>
    %c0_68 = arith.constant 0 : index
    %427 = memref.load %arg2[%c0_68] : memref<3xf32, #tpu.memory_space<smem>>
    %428 = vector.broadcast %427 : f32 to vector<64x128xf32>
    %429 = arith.addf %418, %428 : vector<64x128xf32>
    %430 = math.tanh %429 : vector<64x128xf32>
    %cst_69 = arith.constant 5.000000e-01 : f32
    %431 = vector.broadcast %cst_69 : f32 to vector<64x128xf32>
    %432 = arith.mulf %430, %431 : vector<64x128xf32>
    %cst_70 = arith.constant 5.000000e-01 : f32
    %433 = vector.broadcast %cst_70 : f32 to vector<64x128xf32>
    %434 = arith.addf %432, %433 : vector<64x128xf32>
    %c0_71 = arith.constant 0 : index
    %c0_72 = arith.constant 0 : index
    %c0_73 = arith.constant 0 : index
    %435 = vector.load %arg6[%c0_71, %c0_72, %c0_73] : memref<3x128x128xf32, #tpu.memory_space<vmem>>, vector<1x64x128xf32>
    %436 = vector.shape_cast %435 : vector<1x64x128xf32> to vector<64x128xf32>
    %437 = vector.shape_cast %434 : vector<64x128xf32> to vector<1x64x128xf32>
    tpu.vector_store %arg6[%c0_71, %c0_72, %c0_73], %437 {strides = array<i32>} : memref<3x128x128xf32, #tpu.memory_space<vmem>>, vector<1x64x128xf32>,
    %c1_74 = arith.constant 1 : index
    %438 = memref.load %arg2[%c1_74] : memref<3xf32, #tpu.memory_space<smem>>
    %439 = vector.broadcast %438 : f32 to vector<64x128xf32>
    %440 = arith.addf %422, %439 : vector<64x128xf32>
    %441 = math.tanh %440 : vector<64x128xf32>
    %cst_75 = arith.constant 5.000000e-01 : f32
    %442 = vector.broadcast %cst_75 : f32 to vector<64x128xf32>
    %443 = arith.mulf %441, %442 : vector<64x128xf32>
    %cst_76 = arith.constant 5.000000e-01 : f32
    %444 = vector.broadcast %cst_76 : f32 to vector<64x128xf32>
    %445 = arith.addf %443, %444 : vector<64x128xf32>
    %c1_77 = arith.constant 1 : index
    %c0_78 = arith.constant 0 : index
    %c0_79 = arith.constant 0 : index
    %446 = vector.load %arg6[%c1_77, %c0_78, %c0_79] : memref<3x128x128xf32, #tpu.memory_space<vmem>>, vector<1x64x128xf32>
    %447 = vector.shape_cast %446 : vector<1x64x128xf32> to vector<64x128xf32>
    %448 = vector.shape_cast %445 : vector<64x128xf32> to vector<1x64x128xf32>
    tpu.vector_store %arg6[%c1_77, %c0_78, %c0_79], %448 {strides = array<i32>} : memref<3x128x128xf32, #tpu.memory_space<vmem>>, vector<1x64x128xf32>,
    %c2_80 = arith.constant 2 : index
    %449 = memref.load %arg2[%c2_80] : memref<3xf32, #tpu.memory_space<smem>>
    %450 = vector.broadcast %449 : f32 to vector<64x128xf32>
    %451 = arith.addf %426, %450 : vector<64x128xf32>
    %452 = math.tanh %451 : vector<64x128xf32>
    %cst_81 = arith.constant 5.000000e-01 : f32
    %453 = vector.broadcast %cst_81 : f32 to vector<64x128xf32>
    %454 = arith.mulf %452, %453 : vector<64x128xf32>
    %cst_82 = arith.constant 5.000000e-01 : f32
    %455 = vector.broadcast %cst_82 : f32 to vector<64x128xf32>
    %456 = arith.addf %454, %455 : vector<64x128xf32>
    %c2_83 = arith.constant 2 : index
    %c0_84 = arith.constant 0 : index
    %c0_85 = arith.constant 0 : index
    %457 = vector.load %arg6[%c2_83, %c0_84, %c0_85] : memref<3x128x128xf32, #tpu.memory_space<vmem>>, vector<1x64x128xf32>
    %458 = vector.shape_cast %457 : vector<1x64x128xf32> to vector<64x128xf32>
    %459 = vector.shape_cast %456 : vector<64x128xf32> to vector<1x64x128xf32>
    tpu.vector_store %arg6[%c2_83, %c0_84, %c0_85], %459 {strides = array<i32>} : memref<3x128x128xf32, #tpu.memory_space<vmem>>, vector<1x64x128xf32>,
    %c0_86 = arith.constant 0 : index
    %c64_87 = arith.constant 64 : index
    %c0_88 = arith.constant 0 : index
    %460 = vector.load %arg4[%c0_86, %c64_87, %c0_88] : memref<3x128x128xf32, #tpu.memory_space<vmem>>, vector<1x64x128xf32>
    %461 = vector.shape_cast %460 : vector<1x64x128xf32> to vector<64x128xf32>
    %c1_89 = arith.constant 1 : index
    %c0_90 = arith.constant 0 : index
    %c0_91 = arith.constant 0 : index
    %462 = vector.load %arg3[%c1_89, %c0_90, %c0_91] : memref<2x3x128xf32, #tpu.memory_space<vmem>>, vector<1x1x128xf32>
    %463 = vector.shape_cast %462 : vector<1x1x128xf32> to vector<1x128xf32>
    %c1_92 = arith.constant 1 : index
    %c0_93 = arith.constant 0 : index
    %c0_94 = arith.constant 0 : index
    %464 = vector.load %arg5[%c1_92, %c0_93, %c0_94] : memref<2x3x128xf32, #tpu.memory_space<vmem>>, vector<1x1x128xf32>
    %465 = vector.shape_cast %464 : vector<1x1x128xf32> to vector<1x128xf32>
    %c1_i32_95 = arith.constant 1 : i32
    %466 = tpu.dynamic_rotate %461 by %c1_i32_95 dim 0 : vector<64x128xf32>, i32 -> vector<64x128xf32>
    %467 = vector.shape_cast %463 : vector<1x128xf32> to vector<1x128xf32>
    %468 = vector.broadcast %467 : vector<1x128xf32> to vector<64x128xf32>
    %469 = arith.select %7, %468, %466 : vector<64x128xi1>, vector<64x128xf32>
    %c1_i32_96 = arith.constant 1 : i32
    %470 = tpu.dynamic_rotate %469 by %c1_i32_96 dim 1 : vector<64x128xf32>, i32 -> vector<64x128xf32>
    %cst_97 = arith.constant 5.000000e-01 : f32
    %471 = vector.broadcast %cst_97 : f32 to vector<64x128xf32>
    %472 = arith.select %3, %471, %470 : vector<64x128xi1>, vector<64x128xf32>
    %c0_98 = arith.constant 0 : index
    %473 = memref.load %arg1[%c0_98] : memref<81xf32, #tpu.memory_space<smem>>
    %474 = vector.broadcast %473 : f32 to vector<64x128xf32>
    %475 = arith.mulf %474, %472 : vector<64x128xf32>
    %c27_99 = arith.constant 27 : index
    %476 = memref.load %arg1[%c27_99] : memref<81xf32, #tpu.memory_space<smem>>
    %477 = vector.broadcast %476 : f32 to vector<64x128xf32>
    %478 = arith.mulf %477, %472 : vector<64x128xf32>
    %c54_100 = arith.constant 54 : index
    %479 = memref.load %arg1[%c54_100] : memref<81xf32, #tpu.memory_space<smem>>
    %480 = vector.broadcast %479 : f32 to vector<64x128xf32>
    %481 = arith.mulf %480, %472 : vector<64x128xf32>
    %c1_101 = arith.constant 1 : index
    %482 = memref.load %arg1[%c1_101] : memref<81xf32, #tpu.memory_space<smem>>
    %483 = vector.broadcast %482 : f32 to vector<64x128xf32>
    %484 = arith.mulf %483, %469 : vector<64x128xf32>
    %485 = arith.addf %475, %484 : vector<64x128xf32>
    %c28_102 = arith.constant 28 : index
    %486 = memref.load %arg1[%c28_102] : memref<81xf32, #tpu.memory_space<smem>>
    %487 = vector.broadcast %486 : f32 to vector<64x128xf32>
    %488 = arith.mulf %487, %469 : vector<64x128xf32>
    %489 = arith.addf %478, %488 : vector<64x128xf32>
    %c55_103 = arith.constant 55 : index
    %490 = memref.load %arg1[%c55_103] : memref<81xf32, #tpu.memory_space<smem>>
    %491 = vector.broadcast %490 : f32 to vector<64x128xf32>
    %492 = arith.mulf %491, %469 : vector<64x128xf32>
    %493 = arith.addf %481, %492 : vector<64x128xf32>
    %c127_i32_104 = arith.constant 127 : i32
    %494 = tpu.dynamic_rotate %469 by %c127_i32_104 dim 1 : vector<64x128xf32>, i32 -> vector<64x128xf32>
    %cst_105 = arith.constant 5.000000e-01 : f32
    %495 = vector.broadcast %cst_105 : f32 to vector<64x128xf32>
    %496 = arith.select %5, %495, %494 : vector<64x128xi1>, vector<64x128xf32>
    %c2_106 = arith.constant 2 : index
    %497 = memref.load %arg1[%c2_106] : memref<81xf32, #tpu.memory_space<smem>>
    %498 = vector.broadcast %497 : f32 to vector<64x128xf32>
    %499 = arith.mulf %498, %496 : vector<64x128xf32>
    %500 = arith.addf %485, %499 : vector<64x128xf32>
    %c29_107 = arith.constant 29 : index
    %501 = memref.load %arg1[%c29_107] : memref<81xf32, #tpu.memory_space<smem>>
    %502 = vector.broadcast %501 : f32 to vector<64x128xf32>
    %503 = arith.mulf %502, %496 : vector<64x128xf32>
    %504 = arith.addf %489, %503 : vector<64x128xf32>
    %c56_108 = arith.constant 56 : index
    %505 = memref.load %arg1[%c56_108] : memref<81xf32, #tpu.memory_space<smem>>
    %506 = vector.broadcast %505 : f32 to vector<64x128xf32>
    %507 = arith.mulf %506, %496 : vector<64x128xf32>
    %508 = arith.addf %493, %507 : vector<64x128xf32>
    %c1_i32_109 = arith.constant 1 : i32
    %509 = tpu.dynamic_rotate %461 by %c1_i32_109 dim 1 : vector<64x128xf32>, i32 -> vector<64x128xf32>
    %cst_110 = arith.constant 5.000000e-01 : f32
    %510 = vector.broadcast %cst_110 : f32 to vector<64x128xf32>
    %511 = arith.select %3, %510, %509 : vector<64x128xi1>, vector<64x128xf32>
    %c3_111 = arith.constant 3 : index
    %512 = memref.load %arg1[%c3_111] : memref<81xf32, #tpu.memory_space<smem>>
    %513 = vector.broadcast %512 : f32 to vector<64x128xf32>
    %514 = arith.mulf %513, %511 : vector<64x128xf32>
    %515 = arith.addf %500, %514 : vector<64x128xf32>
    %c30_112 = arith.constant 30 : index
    %516 = memref.load %arg1[%c30_112] : memref<81xf32, #tpu.memory_space<smem>>
    %517 = vector.broadcast %516 : f32 to vector<64x128xf32>
    %518 = arith.mulf %517, %511 : vector<64x128xf32>
    %519 = arith.addf %504, %518 : vector<64x128xf32>
    %c57_113 = arith.constant 57 : index
    %520 = memref.load %arg1[%c57_113] : memref<81xf32, #tpu.memory_space<smem>>
    %521 = vector.broadcast %520 : f32 to vector<64x128xf32>
    %522 = arith.mulf %521, %511 : vector<64x128xf32>
    %523 = arith.addf %508, %522 : vector<64x128xf32>
    %c4_114 = arith.constant 4 : index
    %524 = memref.load %arg1[%c4_114] : memref<81xf32, #tpu.memory_space<smem>>
    %525 = vector.broadcast %524 : f32 to vector<64x128xf32>
    %526 = arith.mulf %525, %461 : vector<64x128xf32>
    %527 = arith.addf %515, %526 : vector<64x128xf32>
    %c31_115 = arith.constant 31 : index
    %528 = memref.load %arg1[%c31_115] : memref<81xf32, #tpu.memory_space<smem>>
    %529 = vector.broadcast %528 : f32 to vector<64x128xf32>
    %530 = arith.mulf %529, %461 : vector<64x128xf32>
    %531 = arith.addf %519, %530 : vector<64x128xf32>
    %c58_116 = arith.constant 58 : index
    %532 = memref.load %arg1[%c58_116] : memref<81xf32, #tpu.memory_space<smem>>
    %533 = vector.broadcast %532 : f32 to vector<64x128xf32>
    %534 = arith.mulf %533, %461 : vector<64x128xf32>
    %535 = arith.addf %523, %534 : vector<64x128xf32>
    %c127_i32_117 = arith.constant 127 : i32
    %536 = tpu.dynamic_rotate %461 by %c127_i32_117 dim 1 : vector<64x128xf32>, i32 -> vector<64x128xf32>
    %cst_118 = arith.constant 5.000000e-01 : f32
    %537 = vector.broadcast %cst_118 : f32 to vector<64x128xf32>
    %538 = arith.select %5, %537, %536 : vector<64x128xi1>, vector<64x128xf32>
    %c5_119 = arith.constant 5 : index
    %539 = memref.load %arg1[%c5_119] : memref<81xf32, #tpu.memory_space<smem>>
    %540 = vector.broadcast %539 : f32 to vector<64x128xf32>
    %541 = arith.mulf %540, %538 : vector<64x128xf32>
    %542 = arith.addf %527, %541 : vector<64x128xf32>
    %c32_120 = arith.constant 32 : index
    %543 = memref.load %arg1[%c32_120] : memref<81xf32, #tpu.memory_space<smem>>
    %544 = vector.broadcast %543 : f32 to vector<64x128xf32>
    %545 = arith.mulf %544, %538 : vector<64x128xf32>
    %546 = arith.addf %531, %545 : vector<64x128xf32>
    %c59_121 = arith.constant 59 : index
    %547 = memref.load %arg1[%c59_121] : memref<81xf32, #tpu.memory_space<smem>>
    %548 = vector.broadcast %547 : f32 to vector<64x128xf32>
    %549 = arith.mulf %548, %538 : vector<64x128xf32>
    %550 = arith.addf %535, %549 : vector<64x128xf32>
    %c63_i32_122 = arith.constant 63 : i32
    %551 = tpu.dynamic_rotate %461 by %c63_i32_122 dim 0 : vector<64x128xf32>, i32 -> vector<64x128xf32>
    %552 = vector.shape_cast %465 : vector<1x128xf32> to vector<1x128xf32>
    %553 = vector.broadcast %552 : vector<1x128xf32> to vector<64x128xf32>
    %554 = arith.select %9, %553, %551 : vector<64x128xi1>, vector<64x128xf32>
    %c1_i32_123 = arith.constant 1 : i32
    %555 = tpu.dynamic_rotate %554 by %c1_i32_123 dim 1 : vector<64x128xf32>, i32 -> vector<64x128xf32>
    %cst_124 = arith.constant 5.000000e-01 : f32
    %556 = vector.broadcast %cst_124 : f32 to vector<64x128xf32>
    %557 = arith.select %3, %556, %555 : vector<64x128xi1>, vector<64x128xf32>
    %c6_125 = arith.constant 6 : index
    %558 = memref.load %arg1[%c6_125] : memref<81xf32, #tpu.memory_space<smem>>
    %559 = vector.broadcast %558 : f32 to vector<64x128xf32>
    %560 = arith.mulf %559, %557 : vector<64x128xf32>
    %561 = arith.addf %542, %560 : vector<64x128xf32>
    %c33_126 = arith.constant 33 : index
    %562 = memref.load %arg1[%c33_126] : memref<81xf32, #tpu.memory_space<smem>>
    %563 = vector.broadcast %562 : f32 to vector<64x128xf32>
    %564 = arith.mulf %563, %557 : vector<64x128xf32>
    %565 = arith.addf %546, %564 : vector<64x128xf32>
    %c60_127 = arith.constant 60 : index
    %566 = memref.load %arg1[%c60_127] : memref<81xf32, #tpu.memory_space<smem>>
    %567 = vector.broadcast %566 : f32 to vector<64x128xf32>
    %568 = arith.mulf %567, %557 : vector<64x128xf32>
    %569 = arith.addf %550, %568 : vector<64x128xf32>
    %c7_128 = arith.constant 7 : index
    %570 = memref.load %arg1[%c7_128] : memref<81xf32, #tpu.memory_space<smem>>
    %571 = vector.broadcast %570 : f32 to vector<64x128xf32>
    %572 = arith.mulf %571, %554 : vector<64x128xf32>
    %573 = arith.addf %561, %572 : vector<64x128xf32>
    %c34_129 = arith.constant 34 : index
    %574 = memref.load %arg1[%c34_129] : memref<81xf32, #tpu.memory_space<smem>>
    %575 = vector.broadcast %574 : f32 to vector<64x128xf32>
    %576 = arith.mulf %575, %554 : vector<64x128xf32>
    %577 = arith.addf %565, %576 : vector<64x128xf32>
    %c61_130 = arith.constant 61 : index
    %578 = memref.load %arg1[%c61_130] : memref<81xf32, #tpu.memory_space<smem>>
    %579 = vector.broadcast %578 : f32 to vector<64x128xf32>
    %580 = arith.mulf %579, %554 : vector<64x128xf32>
    %581 = arith.addf %569, %580 : vector<64x128xf32>
    %c127_i32_131 = arith.constant 127 : i32
    %582 = tpu.dynamic_rotate %554 by %c127_i32_131 dim 1 : vector<64x128xf32>, i32 -> vector<64x128xf32>
    %cst_132 = arith.constant 5.000000e-01 : f32
    %583 = vector.broadcast %cst_132 : f32 to vector<64x128xf32>
    %584 = arith.select %5, %583, %582 : vector<64x128xi1>, vector<64x128xf32>
    %c8_133 = arith.constant 8 : index
    %585 = memref.load %arg1[%c8_133] : memref<81xf32, #tpu.memory_space<smem>>
    %586 = vector.broadcast %585 : f32 to vector<64x128xf32>
    %587 = arith.mulf %586, %584 : vector<64x128xf32>
    %588 = arith.addf %573, %587 : vector<64x128xf32>
    %c35_134 = arith.constant 35 : index
    %589 = memref.load %arg1[%c35_134] : memref<81xf32, #tpu.memory_space<smem>>
    %590 = vector.broadcast %589 : f32 to vector<64x128xf32>
    %591 = arith.mulf %590, %584 : vector<64x128xf32>
    %592 = arith.addf %577, %591 : vector<64x128xf32>
    %c62_135 = arith.constant 62 : index
    %593 = memref.load %arg1[%c62_135] : memref<81xf32, #tpu.memory_space<smem>>
    %594 = vector.broadcast %593 : f32 to vector<64x128xf32>
    %595 = arith.mulf %594, %584 : vector<64x128xf32>
    %596 = arith.addf %581, %595 : vector<64x128xf32>
    %c1_136 = arith.constant 1 : index
    %c64_137 = arith.constant 64 : index
    %c0_138 = arith.constant 0 : index
    %597 = vector.load %arg4[%c1_136, %c64_137, %c0_138] : memref<3x128x128xf32, #tpu.memory_space<vmem>>, vector<1x64x128xf32>
    %598 = vector.shape_cast %597 : vector<1x64x128xf32> to vector<64x128xf32>
    %c1_139 = arith.constant 1 : index
    %c1_140 = arith.constant 1 : index
    %c0_141 = arith.constant 0 : index
    %599 = vector.load %arg3[%c1_139, %c1_140, %c0_141] : memref<2x3x128xf32, #tpu.memory_space<vmem>>, vector<1x1x128xf32>
    %600 = vector.shape_cast %599 : vector<1x1x128xf32> to vector<1x128xf32>
    %c1_142 = arith.constant 1 : index
    %c1_143 = arith.constant 1 : index
    %c0_144 = arith.constant 0 : index
    %601 = vector.load %arg5[%c1_142, %c1_143, %c0_144] : memref<2x3x128xf32, #tpu.memory_space<vmem>>, vector<1x1x128xf32>
    %602 = vector.shape_cast %601 : vector<1x1x128xf32> to vector<1x128xf32>
    %c1_i32_145 = arith.constant 1 : i32
    %603 = tpu.dynamic_rotate %598 by %c1_i32_145 dim 0 : vector<64x128xf32>, i32 -> vector<64x128xf32>
    %604 = vector.shape_cast %600 : vector<1x128xf32> to vector<1x128xf32>
    %605 = vector.broadcast %604 : vector<1x128xf32> to vector<64x128xf32>
    %606 = arith.select %7, %605, %603 : vector<64x128xi1>, vector<64x128xf32>
    %c1_i32_146 = arith.constant 1 : i32
    %607 = tpu.dynamic_rotate %606 by %c1_i32_146 dim 1 : vector<64x128xf32>, i32 -> vector<64x128xf32>
    %cst_147 = arith.constant 5.000000e-01 : f32
    %608 = vector.broadcast %cst_147 : f32 to vector<64x128xf32>
    %609 = arith.select %3, %608, %607 : vector<64x128xi1>, vector<64x128xf32>
    %c9_148 = arith.constant 9 : index
    %610 = memref.load %arg1[%c9_148] : memref<81xf32, #tpu.memory_space<smem>>
    %611 = vector.broadcast %610 : f32 to vector<64x128xf32>
    %612 = arith.mulf %611, %609 : vector<64x128xf32>
    %613 = arith.addf %588, %612 : vector<64x128xf32>
    %c36_149 = arith.constant 36 : index
    %614 = memref.load %arg1[%c36_149] : memref<81xf32, #tpu.memory_space<smem>>
    %615 = vector.broadcast %614 : f32 to vector<64x128xf32>
    %616 = arith.mulf %615, %609 : vector<64x128xf32>
    %617 = arith.addf %592, %616 : vector<64x128xf32>
    %c63_150 = arith.constant 63 : index
    %618 = memref.load %arg1[%c63_150] : memref<81xf32, #tpu.memory_space<smem>>
    %619 = vector.broadcast %618 : f32 to vector<64x128xf32>
    %620 = arith.mulf %619, %609 : vector<64x128xf32>
    %621 = arith.addf %596, %620 : vector<64x128xf32>
    %c10_151 = arith.constant 10 : index
    %622 = memref.load %arg1[%c10_151] : memref<81xf32, #tpu.memory_space<smem>>
    %623 = vector.broadcast %622 : f32 to vector<64x128xf32>
    %624 = arith.mulf %623, %606 : vector<64x128xf32>
    %625 = arith.addf %613, %624 : vector<64x128xf32>
    %c37_152 = arith.constant 37 : index
    %626 = memref.load %arg1[%c37_152] : memref<81xf32, #tpu.memory_space<smem>>
    %627 = vector.broadcast %626 : f32 to vector<64x128xf32>
    %628 = arith.mulf %627, %606 : vector<64x128xf32>
    %629 = arith.addf %617, %628 : vector<64x128xf32>
    %c64_153 = arith.constant 64 : index
    %630 = memref.load %arg1[%c64_153] : memref<81xf32, #tpu.memory_space<smem>>
    %631 = vector.broadcast %630 : f32 to vector<64x128xf32>
    %632 = arith.mulf %631, %606 : vector<64x128xf32>
    %633 = arith.addf %621, %632 : vector<64x128xf32>
    %c127_i32_154 = arith.constant 127 : i32
    %634 = tpu.dynamic_rotate %606 by %c127_i32_154 dim 1 : vector<64x128xf32>, i32 -> vector<64x128xf32>
    %cst_155 = arith.constant 5.000000e-01 : f32
    %635 = vector.broadcast %cst_155 : f32 to vector<64x128xf32>
    %636 = arith.select %5, %635, %634 : vector<64x128xi1>, vector<64x128xf32>
    %c11_156 = arith.constant 11 : index
    %637 = memref.load %arg1[%c11_156] : memref<81xf32, #tpu.memory_space<smem>>
    %638 = vector.broadcast %637 : f32 to vector<64x128xf32>
    %639 = arith.mulf %638, %636 : vector<64x128xf32>
    %640 = arith.addf %625, %639 : vector<64x128xf32>
    %c38_157 = arith.constant 38 : index
    %641 = memref.load %arg1[%c38_157] : memref<81xf32, #tpu.memory_space<smem>>
    %642 = vector.broadcast %641 : f32 to vector<64x128xf32>
    %643 = arith.mulf %642, %636 : vector<64x128xf32>
    %644 = arith.addf %629, %643 : vector<64x128xf32>
    %c65_158 = arith.constant 65 : index
    %645 = memref.load %arg1[%c65_158] : memref<81xf32, #tpu.memory_space<smem>>
    %646 = vector.broadcast %645 : f32 to vector<64x128xf32>
    %647 = arith.mulf %646, %636 : vector<64x128xf32>
    %648 = arith.addf %633, %647 : vector<64x128xf32>
    %c1_i32_159 = arith.constant 1 : i32
    %649 = tpu.dynamic_rotate %598 by %c1_i32_159 dim 1 : vector<64x128xf32>, i32 -> vector<64x128xf32>
    %cst_160 = arith.constant 5.000000e-01 : f32
    %650 = vector.broadcast %cst_160 : f32 to vector<64x128xf32>
    %651 = arith.select %3, %650, %649 : vector<64x128xi1>, vector<64x128xf32>
    %c12_161 = arith.constant 12 : index
    %652 = memref.load %arg1[%c12_161] : memref<81xf32, #tpu.memory_space<smem>>
    %653 = vector.broadcast %652 : f32 to vector<64x128xf32>
    %654 = arith.mulf %653, %651 : vector<64x128xf32>
    %655 = arith.addf %640, %654 : vector<64x128xf32>
    %c39_162 = arith.constant 39 : index
    %656 = memref.load %arg1[%c39_162] : memref<81xf32, #tpu.memory_space<smem>>
    %657 = vector.broadcast %656 : f32 to vector<64x128xf32>
    %658 = arith.mulf %657, %651 : vector<64x128xf32>
    %659 = arith.addf %644, %658 : vector<64x128xf32>
    %c66_163 = arith.constant 66 : index
    %660 = memref.load %arg1[%c66_163] : memref<81xf32, #tpu.memory_space<smem>>
    %661 = vector.broadcast %660 : f32 to vector<64x128xf32>
    %662 = arith.mulf %661, %651 : vector<64x128xf32>
    %663 = arith.addf %648, %662 : vector<64x128xf32>
    %c13_164 = arith.constant 13 : index
    %664 = memref.load %arg1[%c13_164] : memref<81xf32, #tpu.memory_space<smem>>
    %665 = vector.broadcast %664 : f32 to vector<64x128xf32>
    %666 = arith.mulf %665, %598 : vector<64x128xf32>
    %667 = arith.addf %655, %666 : vector<64x128xf32>
    %c40_165 = arith.constant 40 : index
    %668 = memref.load %arg1[%c40_165] : memref<81xf32, #tpu.memory_space<smem>>
    %669 = vector.broadcast %668 : f32 to vector<64x128xf32>
    %670 = arith.mulf %669, %598 : vector<64x128xf32>
    %671 = arith.addf %659, %670 : vector<64x128xf32>
    %c67_166 = arith.constant 67 : index
    %672 = memref.load %arg1[%c67_166] : memref<81xf32, #tpu.memory_space<smem>>
    %673 = vector.broadcast %672 : f32 to vector<64x128xf32>
    %674 = arith.mulf %673, %598 : vector<64x128xf32>
    %675 = arith.addf %663, %674 : vector<64x128xf32>
    %c127_i32_167 = arith.constant 127 : i32
    %676 = tpu.dynamic_rotate %598 by %c127_i32_167 dim 1 : vector<64x128xf32>, i32 -> vector<64x128xf32>
    %cst_168 = arith.constant 5.000000e-01 : f32
    %677 = vector.broadcast %cst_168 : f32 to vector<64x128xf32>
    %678 = arith.select %5, %677, %676 : vector<64x128xi1>, vector<64x128xf32>
    %c14_169 = arith.constant 14 : index
    %679 = memref.load %arg1[%c14_169] : memref<81xf32, #tpu.memory_space<smem>>
    %680 = vector.broadcast %679 : f32 to vector<64x128xf32>
    %681 = arith.mulf %680, %678 : vector<64x128xf32>
    %682 = arith.addf %667, %681 : vector<64x128xf32>
    %c41_170 = arith.constant 41 : index
    %683 = memref.load %arg1[%c41_170] : memref<81xf32, #tpu.memory_space<smem>>
    %684 = vector.broadcast %683 : f32 to vector<64x128xf32>
    %685 = arith.mulf %684, %678 : vector<64x128xf32>
    %686 = arith.addf %671, %685 : vector<64x128xf32>
    %c68_171 = arith.constant 68 : index
    %687 = memref.load %arg1[%c68_171] : memref<81xf32, #tpu.memory_space<smem>>
    %688 = vector.broadcast %687 : f32 to vector<64x128xf32>
    %689 = arith.mulf %688, %678 : vector<64x128xf32>
    %690 = arith.addf %675, %689 : vector<64x128xf32>
    %c63_i32_172 = arith.constant 63 : i32
    %691 = tpu.dynamic_rotate %598 by %c63_i32_172 dim 0 : vector<64x128xf32>, i32 -> vector<64x128xf32>
    %692 = vector.shape_cast %602 : vector<1x128xf32> to vector<1x128xf32>
    %693 = vector.broadcast %692 : vector<1x128xf32> to vector<64x128xf32>
    %694 = arith.select %9, %693, %691 : vector<64x128xi1>, vector<64x128xf32>
    %c1_i32_173 = arith.constant 1 : i32
    %695 = tpu.dynamic_rotate %694 by %c1_i32_173 dim 1 : vector<64x128xf32>, i32 -> vector<64x128xf32>
    %cst_174 = arith.constant 5.000000e-01 : f32
    %696 = vector.broadcast %cst_174 : f32 to vector<64x128xf32>
    %697 = arith.select %3, %696, %695 : vector<64x128xi1>, vector<64x128xf32>
    %c15_175 = arith.constant 15 : index
    %698 = memref.load %arg1[%c15_175] : memref<81xf32, #tpu.memory_space<smem>>
    %699 = vector.broadcast %698 : f32 to vector<64x128xf32>
    %700 = arith.mulf %699, %697 : vector<64x128xf32>
    %701 = arith.addf %682, %700 : vector<64x128xf32>
    %c42_176 = arith.constant 42 : index
    %702 = memref.load %arg1[%c42_176] : memref<81xf32, #tpu.memory_space<smem>>
    %703 = vector.broadcast %702 : f32 to vector<64x128xf32>
    %704 = arith.mulf %703, %697 : vector<64x128xf32>
    %705 = arith.addf %686, %704 : vector<64x128xf32>
    %c69_177 = arith.constant 69 : index
    %706 = memref.load %arg1[%c69_177] : memref<81xf32, #tpu.memory_space<smem>>
    %707 = vector.broadcast %706 : f32 to vector<64x128xf32>
    %708 = arith.mulf %707, %697 : vector<64x128xf32>
    %709 = arith.addf %690, %708 : vector<64x128xf32>
    %c16_178 = arith.constant 16 : index
    %710 = memref.load %arg1[%c16_178] : memref<81xf32, #tpu.memory_space<smem>>
    %711 = vector.broadcast %710 : f32 to vector<64x128xf32>
    %712 = arith.mulf %711, %694 : vector<64x128xf32>
    %713 = arith.addf %701, %712 : vector<64x128xf32>
    %c43_179 = arith.constant 43 : index
    %714 = memref.load %arg1[%c43_179] : memref<81xf32, #tpu.memory_space<smem>>
    %715 = vector.broadcast %714 : f32 to vector<64x128xf32>
    %716 = arith.mulf %715, %694 : vector<64x128xf32>
    %717 = arith.addf %705, %716 : vector<64x128xf32>
    %c70_180 = arith.constant 70 : index
    %718 = memref.load %arg1[%c70_180] : memref<81xf32, #tpu.memory_space<smem>>
    %719 = vector.broadcast %718 : f32 to vector<64x128xf32>
    %720 = arith.mulf %719, %694 : vector<64x128xf32>
    %721 = arith.addf %709, %720 : vector<64x128xf32>
    %c127_i32_181 = arith.constant 127 : i32
    %722 = tpu.dynamic_rotate %694 by %c127_i32_181 dim 1 : vector<64x128xf32>, i32 -> vector<64x128xf32>
    %cst_182 = arith.constant 5.000000e-01 : f32
    %723 = vector.broadcast %cst_182 : f32 to vector<64x128xf32>
    %724 = arith.select %5, %723, %722 : vector<64x128xi1>, vector<64x128xf32>
    %c17_183 = arith.constant 17 : index
    %725 = memref.load %arg1[%c17_183] : memref<81xf32, #tpu.memory_space<smem>>
    %726 = vector.broadcast %725 : f32 to vector<64x128xf32>
    %727 = arith.mulf %726, %724 : vector<64x128xf32>
    %728 = arith.addf %713, %727 : vector<64x128xf32>
    %c44_184 = arith.constant 44 : index
    %729 = memref.load %arg1[%c44_184] : memref<81xf32, #tpu.memory_space<smem>>
    %730 = vector.broadcast %729 : f32 to vector<64x128xf32>
    %731 = arith.mulf %730, %724 : vector<64x128xf32>
    %732 = arith.addf %717, %731 : vector<64x128xf32>
    %c71_185 = arith.constant 71 : index
    %733 = memref.load %arg1[%c71_185] : memref<81xf32, #tpu.memory_space<smem>>
    %734 = vector.broadcast %733 : f32 to vector<64x128xf32>
    %735 = arith.mulf %734, %724 : vector<64x128xf32>
    %736 = arith.addf %721, %735 : vector<64x128xf32>
    %c2_186 = arith.constant 2 : index
    %c64_187 = arith.constant 64 : index
    %c0_188 = arith.constant 0 : index
    %737 = vector.load %arg4[%c2_186, %c64_187, %c0_188] : memref<3x128x128xf32, #tpu.memory_space<vmem>>, vector<1x64x128xf32>
    %738 = vector.shape_cast %737 : vector<1x64x128xf32> to vector<64x128xf32>
    %c1_189 = arith.constant 1 : index
    %c2_190 = arith.constant 2 : index
    %c0_191 = arith.constant 0 : index
    %739 = vector.load %arg3[%c1_189, %c2_190, %c0_191] : memref<2x3x128xf32, #tpu.memory_space<vmem>>, vector<1x1x128xf32>
    %740 = vector.shape_cast %739 : vector<1x1x128xf32> to vector<1x128xf32>
    %c1_192 = arith.constant 1 : index
    %c2_193 = arith.constant 2 : index
    %c0_194 = arith.constant 0 : index
    %741 = vector.load %arg5[%c1_192, %c2_193, %c0_194] : memref<2x3x128xf32, #tpu.memory_space<vmem>>, vector<1x1x128xf32>
    %742 = vector.shape_cast %741 : vector<1x1x128xf32> to vector<1x128xf32>
    %c1_i32_195 = arith.constant 1 : i32
    %743 = tpu.dynamic_rotate %738 by %c1_i32_195 dim 0 : vector<64x128xf32>, i32 -> vector<64x128xf32>
    %744 = vector.shape_cast %740 : vector<1x128xf32> to vector<1x128xf32>
    %745 = vector.broadcast %744 : vector<1x128xf32> to vector<64x128xf32>
    %746 = arith.select %7, %745, %743 : vector<64x128xi1>, vector<64x128xf32>
    %c1_i32_196 = arith.constant 1 : i32
    %747 = tpu.dynamic_rotate %746 by %c1_i32_196 dim 1 : vector<64x128xf32>, i32 -> vector<64x128xf32>
    %cst_197 = arith.constant 5.000000e-01 : f32
    %748 = vector.broadcast %cst_197 : f32 to vector<64x128xf32>
    %749 = arith.select %3, %748, %747 : vector<64x128xi1>, vector<64x128xf32>
    %c18_198 = arith.constant 18 : index
    %750 = memref.load %arg1[%c18_198] : memref<81xf32, #tpu.memory_space<smem>>
    %751 = vector.broadcast %750 : f32 to vector<64x128xf32>
    %752 = arith.mulf %751, %749 : vector<64x128xf32>
    %753 = arith.addf %728, %752 : vector<64x128xf32>
    %c45_199 = arith.constant 45 : index
    %754 = memref.load %arg1[%c45_199] : memref<81xf32, #tpu.memory_space<smem>>
    %755 = vector.broadcast %754 : f32 to vector<64x128xf32>
    %756 = arith.mulf %755, %749 : vector<64x128xf32>
    %757 = arith.addf %732, %756 : vector<64x128xf32>
    %c72_200 = arith.constant 72 : index
    %758 = memref.load %arg1[%c72_200] : memref<81xf32, #tpu.memory_space<smem>>
    %759 = vector.broadcast %758 : f32 to vector<64x128xf32>
    %760 = arith.mulf %759, %749 : vector<64x128xf32>
    %761 = arith.addf %736, %760 : vector<64x128xf32>
    %c19_201 = arith.constant 19 : index
    %762 = memref.load %arg1[%c19_201] : memref<81xf32, #tpu.memory_space<smem>>
    %763 = vector.broadcast %762 : f32 to vector<64x128xf32>
    %764 = arith.mulf %763, %746 : vector<64x128xf32>
    %765 = arith.addf %753, %764 : vector<64x128xf32>
    %c46_202 = arith.constant 46 : index
    %766 = memref.load %arg1[%c46_202] : memref<81xf32, #tpu.memory_space<smem>>
    %767 = vector.broadcast %766 : f32 to vector<64x128xf32>
    %768 = arith.mulf %767, %746 : vector<64x128xf32>
    %769 = arith.addf %757, %768 : vector<64x128xf32>
    %c73_203 = arith.constant 73 : index
    %770 = memref.load %arg1[%c73_203] : memref<81xf32, #tpu.memory_space<smem>>
    %771 = vector.broadcast %770 : f32 to vector<64x128xf32>
    %772 = arith.mulf %771, %746 : vector<64x128xf32>
    %773 = arith.addf %761, %772 : vector<64x128xf32>
    %c127_i32_204 = arith.constant 127 : i32
    %774 = tpu.dynamic_rotate %746 by %c127_i32_204 dim 1 : vector<64x128xf32>, i32 -> vector<64x128xf32>
    %cst_205 = arith.constant 5.000000e-01 : f32
    %775 = vector.broadcast %cst_205 : f32 to vector<64x128xf32>
    %776 = arith.select %5, %775, %774 : vector<64x128xi1>, vector<64x128xf32>
    %c20_206 = arith.constant 20 : index
    %777 = memref.load %arg1[%c20_206] : memref<81xf32, #tpu.memory_space<smem>>
    %778 = vector.broadcast %777 : f32 to vector<64x128xf32>
    %779 = arith.mulf %778, %776 : vector<64x128xf32>
    %780 = arith.addf %765, %779 : vector<64x128xf32>
    %c47_207 = arith.constant 47 : index
    %781 = memref.load %arg1[%c47_207] : memref<81xf32, #tpu.memory_space<smem>>
    %782 = vector.broadcast %781 : f32 to vector<64x128xf32>
    %783 = arith.mulf %782, %776 : vector<64x128xf32>
    %784 = arith.addf %769, %783 : vector<64x128xf32>
    %c74_208 = arith.constant 74 : index
    %785 = memref.load %arg1[%c74_208] : memref<81xf32, #tpu.memory_space<smem>>
    %786 = vector.broadcast %785 : f32 to vector<64x128xf32>
    %787 = arith.mulf %786, %776 : vector<64x128xf32>
    %788 = arith.addf %773, %787 : vector<64x128xf32>
    %c1_i32_209 = arith.constant 1 : i32
    %789 = tpu.dynamic_rotate %738 by %c1_i32_209 dim 1 : vector<64x128xf32>, i32 -> vector<64x128xf32>
    %cst_210 = arith.constant 5.000000e-01 : f32
    %790 = vector.broadcast %cst_210 : f32 to vector<64x128xf32>
    %791 = arith.select %3, %790, %789 : vector<64x128xi1>, vector<64x128xf32>
    %c21_211 = arith.constant 21 : index
    %792 = memref.load %arg1[%c21_211] : memref<81xf32, #tpu.memory_space<smem>>
    %793 = vector.broadcast %792 : f32 to vector<64x128xf32>
    %794 = arith.mulf %793, %791 : vector<64x128xf32>
    %795 = arith.addf %780, %794 : vector<64x128xf32>
    %c48_212 = arith.constant 48 : index
    %796 = memref.load %arg1[%c48_212] : memref<81xf32, #tpu.memory_space<smem>>
    %797 = vector.broadcast %796 : f32 to vector<64x128xf32>
    %798 = arith.mulf %797, %791 : vector<64x128xf32>
    %799 = arith.addf %784, %798 : vector<64x128xf32>
    %c75_213 = arith.constant 75 : index
    %800 = memref.load %arg1[%c75_213] : memref<81xf32, #tpu.memory_space<smem>>
    %801 = vector.broadcast %800 : f32 to vector<64x128xf32>
    %802 = arith.mulf %801, %791 : vector<64x128xf32>
    %803 = arith.addf %788, %802 : vector<64x128xf32>
    %c22_214 = arith.constant 22 : index
    %804 = memref.load %arg1[%c22_214] : memref<81xf32, #tpu.memory_space<smem>>
    %805 = vector.broadcast %804 : f32 to vector<64x128xf32>
    %806 = arith.mulf %805, %738 : vector<64x128xf32>
    %807 = arith.addf %795, %806 : vector<64x128xf32>
    %c49_215 = arith.constant 49 : index
    %808 = memref.load %arg1[%c49_215] : memref<81xf32, #tpu.memory_space<smem>>
    %809 = vector.broadcast %808 : f32 to vector<64x128xf32>
    %810 = arith.mulf %809, %738 : vector<64x128xf32>
    %811 = arith.addf %799, %810 : vector<64x128xf32>
    %c76_216 = arith.constant 76 : index
    %812 = memref.load %arg1[%c76_216] : memref<81xf32, #tpu.memory_space<smem>>
    %813 = vector.broadcast %812 : f32 to vector<64x128xf32>
    %814 = arith.mulf %813, %738 : vector<64x128xf32>
    %815 = arith.addf %803, %814 : vector<64x128xf32>
    %c127_i32_217 = arith.constant 127 : i32
    %816 = tpu.dynamic_rotate %738 by %c127_i32_217 dim 1 : vector<64x128xf32>, i32 -> vector<64x128xf32>
    %cst_218 = arith.constant 5.000000e-01 : f32
    %817 = vector.broadcast %cst_218 : f32 to vector<64x128xf32>
    %818 = arith.select %5, %817, %816 : vector<64x128xi1>, vector<64x128xf32>
    %c23_219 = arith.constant 23 : index
    %819 = memref.load %arg1[%c23_219] : memref<81xf32, #tpu.memory_space<smem>>
    %820 = vector.broadcast %819 : f32 to vector<64x128xf32>
    %821 = arith.mulf %820, %818 : vector<64x128xf32>
    %822 = arith.addf %807, %821 : vector<64x128xf32>
    %c50_220 = arith.constant 50 : index
    %823 = memref.load %arg1[%c50_220] : memref<81xf32, #tpu.memory_space<smem>>
    %824 = vector.broadcast %823 : f32 to vector<64x128xf32>
    %825 = arith.mulf %824, %818 : vector<64x128xf32>
    %826 = arith.addf %811, %825 : vector<64x128xf32>
    %c77_221 = arith.constant 77 : index
    %827 = memref.load %arg1[%c77_221] : memref<81xf32, #tpu.memory_space<smem>>
    %828 = vector.broadcast %827 : f32 to vector<64x128xf32>
    %829 = arith.mulf %828, %818 : vector<64x128xf32>
    %830 = arith.addf %815, %829 : vector<64x128xf32>
    %c63_i32_222 = arith.constant 63 : i32
    %831 = tpu.dynamic_rotate %738 by %c63_i32_222 dim 0 : vector<64x128xf32>, i32 -> vector<64x128xf32>
    %832 = vector.shape_cast %742 : vector<1x128xf32> to vector<1x128xf32>
    %833 = vector.broadcast %832 : vector<1x128xf32> to vector<64x128xf32>
    %834 = arith.select %9, %833, %831 : vector<64x128xi1>, vector<64x128xf32>
    %c1_i32_223 = arith.constant 1 : i32
    %835 = tpu.dynamic_rotate %834 by %c1_i32_223 dim 1 : vector<64x128xf32>, i32 -> vector<64x128xf32>
    %cst_224 = arith.constant 5.000000e-01 : f32
    %836 = vector.broadcast %cst_224 : f32 to vector<64x128xf32>
    %837 = arith.select %3, %836, %835 : vector<64x128xi1>, vector<64x128xf32>
    %c24_225 = arith.constant 24 : index
    %838 = memref.load %arg1[%c24_225] : memref<81xf32, #tpu.memory_space<smem>>
    %839 = vector.broadcast %838 : f32 to vector<64x128xf32>
    %840 = arith.mulf %839, %837 : vector<64x128xf32>
    %841 = arith.addf %822, %840 : vector<64x128xf32>
    %c51_226 = arith.constant 51 : index
    %842 = memref.load %arg1[%c51_226] : memref<81xf32, #tpu.memory_space<smem>>
    %843 = vector.broadcast %842 : f32 to vector<64x128xf32>
    %844 = arith.mulf %843, %837 : vector<64x128xf32>
    %845 = arith.addf %826, %844 : vector<64x128xf32>
    %c78_227 = arith.constant 78 : index
    %846 = memref.load %arg1[%c78_227] : memref<81xf32, #tpu.memory_space<smem>>
    %847 = vector.broadcast %846 : f32 to vector<64x128xf32>
    %848 = arith.mulf %847, %837 : vector<64x128xf32>
    %849 = arith.addf %830, %848 : vector<64x128xf32>
    %c25_228 = arith.constant 25 : index
    %850 = memref.load %arg1[%c25_228] : memref<81xf32, #tpu.memory_space<smem>>
    %851 = vector.broadcast %850 : f32 to vector<64x128xf32>
    %852 = arith.mulf %851, %834 : vector<64x128xf32>
    %853 = arith.addf %841, %852 : vector<64x128xf32>
    %c52_229 = arith.constant 52 : index
    %854 = memref.load %arg1[%c52_229] : memref<81xf32, #tpu.memory_space<smem>>
    %855 = vector.broadcast %854 : f32 to vector<64x128xf32>
    %856 = arith.mulf %855, %834 : vector<64x128xf32>
    %857 = arith.addf %845, %856 : vector<64x128xf32>
    %c79_230 = arith.constant 79 : index
    %858 = memref.load %arg1[%c79_230] : memref<81xf32, #tpu.memory_space<smem>>
    %859 = vector.broadcast %858 : f32 to vector<64x128xf32>
    %860 = arith.mulf %859, %834 : vector<64x128xf32>
    %861 = arith.addf %849, %860 : vector<64x128xf32>
    %c127_i32_231 = arith.constant 127 : i32
    %862 = tpu.dynamic_rotate %834 by %c127_i32_231 dim 1 : vector<64x128xf32>, i32 -> vector<64x128xf32>
    %cst_232 = arith.constant 5.000000e-01 : f32
    %863 = vector.broadcast %cst_232 : f32 to vector<64x128xf32>
    %864 = arith.select %5, %863, %862 : vector<64x128xi1>, vector<64x128xf32>
    %c26_233 = arith.constant 26 : index
    %865 = memref.load %arg1[%c26_233] : memref<81xf32, #tpu.memory_space<smem>>
    %866 = vector.broadcast %865 : f32 to vector<64x128xf32>
    %867 = arith.mulf %866, %864 : vector<64x128xf32>
    %868 = arith.addf %853, %867 : vector<64x128xf32>
    %c53_234 = arith.constant 53 : index
    %869 = memref.load %arg1[%c53_234] : memref<81xf32, #tpu.memory_space<smem>>
    %870 = vector.broadcast %869 : f32 to vector<64x128xf32>
    %871 = arith.mulf %870, %864 : vector<64x128xf32>
    %872 = arith.addf %857, %871 : vector<64x128xf32>
    %c80_235 = arith.constant 80 : index
    %873 = memref.load %arg1[%c80_235] : memref<81xf32, #tpu.memory_space<smem>>
    %874 = vector.broadcast %873 : f32 to vector<64x128xf32>
    %875 = arith.mulf %874, %864 : vector<64x128xf32>
    %876 = arith.addf %861, %875 : vector<64x128xf32>
    %c0_236 = arith.constant 0 : index
    %877 = memref.load %arg2[%c0_236] : memref<3xf32, #tpu.memory_space<smem>>
    %878 = vector.broadcast %877 : f32 to vector<64x128xf32>
    %879 = arith.addf %868, %878 : vector<64x128xf32>
    %880 = math.tanh %879 : vector<64x128xf32>
    %cst_237 = arith.constant 5.000000e-01 : f32
    %881 = vector.broadcast %cst_237 : f32 to vector<64x128xf32>
    %882 = arith.mulf %880, %881 : vector<64x128xf32>
    %cst_238 = arith.constant 5.000000e-01 : f32
    %883 = vector.broadcast %cst_238 : f32 to vector<64x128xf32>
    %884 = arith.addf %882, %883 : vector<64x128xf32>
    %c0_239 = arith.constant 0 : index
    %c64_240 = arith.constant 64 : index
    %c0_241 = arith.constant 0 : index
    %885 = vector.load %arg6[%c0_239, %c64_240, %c0_241] : memref<3x128x128xf32, #tpu.memory_space<vmem>>, vector<1x64x128xf32>
    %886 = vector.shape_cast %885 : vector<1x64x128xf32> to vector<64x128xf32>
    %887 = vector.shape_cast %884 : vector<64x128xf32> to vector<1x64x128xf32>
    tpu.vector_store %arg6[%c0_239, %c64_240, %c0_241], %887 {strides = array<i32>} : memref<3x128x128xf32, #tpu.memory_space<vmem>>, vector<1x64x128xf32>,
    %c1_242 = arith.constant 1 : index
    %888 = memref.load %arg2[%c1_242] : memref<3xf32, #tpu.memory_space<smem>>
    %889 = vector.broadcast %888 : f32 to vector<64x128xf32>
    %890 = arith.addf %872, %889 : vector<64x128xf32>
    %891 = math.tanh %890 : vector<64x128xf32>
    %cst_243 = arith.constant 5.000000e-01 : f32
    %892 = vector.broadcast %cst_243 : f32 to vector<64x128xf32>
    %893 = arith.mulf %891, %892 : vector<64x128xf32>
    %cst_244 = arith.constant 5.000000e-01 : f32
    %894 = vector.broadcast %cst_244 : f32 to vector<64x128xf32>
    %895 = arith.addf %893, %894 : vector<64x128xf32>
    %c1_245 = arith.constant 1 : index
    %c64_246 = arith.constant 64 : index
    %c0_247 = arith.constant 0 : index
    %896 = vector.load %arg6[%c1_245, %c64_246, %c0_247] : memref<3x128x128xf32, #tpu.memory_space<vmem>>, vector<1x64x128xf32>
    %897 = vector.shape_cast %896 : vector<1x64x128xf32> to vector<64x128xf32>
    %898 = vector.shape_cast %895 : vector<64x128xf32> to vector<1x64x128xf32>
    tpu.vector_store %arg6[%c1_245, %c64_246, %c0_247], %898 {strides = array<i32>} : memref<3x128x128xf32, #tpu.memory_space<vmem>>, vector<1x64x128xf32>,
    %c2_248 = arith.constant 2 : index
    %899 = memref.load %arg2[%c2_248] : memref<3xf32, #tpu.memory_space<smem>>
    %900 = vector.broadcast %899 : f32 to vector<64x128xf32>
    %901 = arith.addf %876, %900 : vector<64x128xf32>
    %902 = math.tanh %901 : vector<64x128xf32>
    %cst_249 = arith.constant 5.000000e-01 : f32
    %903 = vector.broadcast %cst_249 : f32 to vector<64x128xf32>
    %904 = arith.mulf %902, %903 : vector<64x128xf32>
    %cst_250 = arith.constant 5.000000e-01 : f32
    %905 = vector.broadcast %cst_250 : f32 to vector<64x128xf32>
    %906 = arith.addf %904, %905 : vector<64x128xf32>
    %c2_251 = arith.constant 2 : index
    %c64_252 = arith.constant 64 : index
    %c0_253 = arith.constant 0 : index
    %907 = vector.load %arg6[%c2_251, %c64_252, %c0_253] : memref<3x128x128xf32, #tpu.memory_space<vmem>>, vector<1x64x128xf32>
    %908 = vector.shape_cast %907 : vector<1x64x128xf32> to vector<64x128xf32>
    %909 = vector.shape_cast %906 : vector<64x128xf32> to vector<1x64x128xf32>
    tpu.vector_store %arg6[%c2_251, %c64_252, %c0_253], %909 {strides = array<i32>} : memref<3x128x128xf32, #tpu.memory_space<vmem>>, vector<1x64x128xf32>,
    return
  }
  func.func @transform_0(%arg0: i32) -> i32 {
    %c0_i32 = arith.constant 0 : i32
    %c0_i32_0 = arith.constant 0 : i32
    return %c0_i32 : i32
  }
  func.func @transform_1(%arg0: i32) -> i32 {
    %c0_i32 = arith.constant 0 : i32
    %c0_i32_0 = arith.constant 0 : i32
    return %c0_i32 : i32
  }
  func.func @transform_2(%arg0: i32) -> (i32, i32, i32) {
    %c0_i32 = arith.constant 0 : i32
    %c0_i32_0 = arith.constant 0 : i32
    %c0_i32_1 = arith.constant 0 : i32
    return %arg0, %c0_i32, %c0_i32_0 : i32, i32, i32
  }
  func.func @transform_3(%arg0: i32) -> (i32, i32, i32) {
    %c0_i32 = arith.constant 0 : i32
    %c0_i32_0 = arith.constant 0 : i32
    %c0_i32_1 = arith.constant 0 : i32
    return %c0_i32, %arg0, %c0_i32_0 : i32, i32, i32
  }
  func.func @transform_4(%arg0: i32) -> (i32, i32, i32) {
    %c0_i32 = arith.constant 0 : i32
    %c0_i32_0 = arith.constant 0 : i32
    %c0_i32_1 = arith.constant 0 : i32
    return %arg0, %c0_i32, %c0_i32_0 : i32, i32, i32
  }
  func.func @transform_5(%arg0: i32) -> (i32, i32, i32) {
    %c0_i32 = arith.constant 0 : i32
    %c0_i32_0 = arith.constant 0 : i32
    %c0_i32_1 = arith.constant 0 : i32
    return %c0_i32, %arg0, %c0_i32_0 : i32, i32, i32
  }
}

</mosaic_0001>

<bundles_post_ra>
// kernel: tpu_custom_call.1
= control target key start
LH: loop header
LB: loop body
LE: loop exit
PB: predicated region body
PF: predicated region fallthrough
CT: control target
= control target key end

     0   :  { %10 = vsyncpa [#allocation5], 0  ;;  %s12482_s0 = inlined_call_operand.vmem [shape: f32[81], index: 0, kind: input, shape index: {}]   ;;  %s12483_s1 = inlined_call_operand.vmem [shape: f32[3], index: 1, kind: input, shape index: {}]   ;;  %s12484_s2 = inlined_call_operand.vmem [shape: f32[2,3,128], index: 2, kind: input, shape index: {}]   ;;  %s12485_s3 = inlined_call_operand.hbm [shape: f32[3,128,128], index: 3, kind: input, shape index: {}]   ;;  %s12486_s4 = inlined_call_operand.vmem [shape: f32[2,3,128], index: 4, kind: input, shape index: {}]   ;;  %s12487_s5 = inlined_call_operand.hbm [shape: f32[3,128,128], index: 5, kind: output, shape index: {}]  }
   0x1   :  { %11 = vsyncpa [#allocation7], 0 }
   0x2   :  { %12 = vsyncpa [#allocation3], 0 }
   0x3   :  { %13 = vsyncpa [#allocation4], 0  ;;  %s20_s20 = sshll.u32 %s12482_s0, 4  ;;  %s30_s23 = sshll.u32 %s12483_s1, 4  ;;  %s21_s20 = int_to_ptr.vmem [resolvable:$true] %s20_s20  ;;  %s31_s23 = int_to_ptr.vmem [resolvable:$true] %s30_s23 }
   0x4   :  { %s4839_s24 = scalar_lea.vmem %s21_s20, 16  ;;  %p4844_p1 = scmp.lt.s32.totalorder %s21_s20, %s21_s20 }
   0x5   :  { %p4840_p0 = scmp.ne.s32.totalorder %s21_s20, %s4839_s24  ;;  %p4845_p2 = scmp.lt.s32.totalorder %s4839_s24, %s4839_s24 }
   0x7   :  { %p4846_p3 = por %p4845_p2, %p4844_p1 }
   0x9   :  { %p4847_p4 = pnand %p4846_p3, %p4840_p0 }
   0xb   :  { %4850 = shalt.err (!%p4847_p4)
}
   0xc   :  { %s4915_s25 = smov [#allocation2]   ;;  %s4851_s26 = scalar_lea.vmem %s31_s23, 16 }
   0xd   :  { %23 = dma.vmem_to_smem %s21_s20, 16, %s4915_s25, [#allocation5]  }
   0xe   :  { %p4852_p5 = scmp.ne.s32.totalorder %s31_s23, %s4851_s26  ;;  %p4856_p6 = scmp.lt.s32.totalorder %s31_s23, %s31_s23 }
   0xf   :  { %p4857_p7 = scmp.lt.s32.totalorder %s4851_s26, %s4851_s26 }
  0x11   :  { %p4858_p8 = por %p4857_p7, %p4856_p6 }
  0x13   :  { %p4859_p9 = pnand %p4858_p8, %p4852_p5 }
  0x15   :  { %4862 = shalt.err (!%p4859_p9)
}
  0x16   :  { %s4916_s0 = smov [#allocation6]   ;;  %s4917_s1 = smov [#allocation8]  }
  0x17   :  { %33 = dma.vmem_to_smem %s31_s23, 16, %s4916_s0, [#allocation7]  }
  0x18   :  { %s41_s27 = sshll.u32 %s4917_s1, 4  ;;  %s4863_s30 = scalar_lea.hbm %s12485_s3, 6144  ;;  %s42_s27 = int_to_ptr.vmem [resolvable:$true] %s41_s27 }
  0x19   :  { %p4864_p10 = scmp.ne.s32.totalorder %s12485_s3, %s4863_s30  ;;  %p4867_p11 = scmp.lt.u32.totalorder %s4863_s30, %s12485_s3 }
  0x1b   :  { %p4869_p12 = pnand %p4867_p11, %p4864_p10 }
  0x1d   :  { %4872 = shalt.err (!%p4869_p12)
}
  0x1e   :  { %s4873_s10 = scalar_lea.vmem %s42_s27, 6144  ;;  %p4878_p0 = scmp.lt.s32.totalorder %s42_s27, %s42_s27 }
  0x1f   :  { %p4874_p13 = scmp.ne.s32.totalorder %s42_s27, %s4873_s10  ;;  %p4879_p1 = scmp.lt.s32.totalorder %s4873_s10, %s4873_s10 }
  0x21   :  { %p4880_p2 = por %p4879_p1, %p4878_p0 }
  0x23   :  { %p4881_p3 = pnand %p4880_p2, %p4874_p13 }
  0x25   :  { %4884 = shalt.err (!%p4881_p3)
}
  0x26   :  { %s4918_s11 = smov 128   ;;  %s4919_s12 = smov 8  }
  0x27   :  { %47 = dma.hbm_to_vmem [thread:$0]  %s12485_s3, 6144, %s42_s27, [#allocation3], %s4918_s11, %s4918_s11, %s4919_s12  }
  0x28   :  { %4907 = dma.done.wait [#allocation5], 16  }
  0x29   :  { %4908 = vsyncadd [#allocation5], 4294967280 }
  0x2a   :  { %4909 = dma.done.wait [#allocation7], 16  }
  0x2b   :  { %4910 = vsyncadd [#allocation7], 4294967280 }
  0x2c   :  { %4911 = dma.done.wait [#allocation3], 6144  }
  0x2d   :  { %4912 = vsyncadd [#allocation3], 4294961152 }
  0x2e   :  { %59 = sfence }
  0x2f   :  { %v60_v0 = vlaneseq  ;;  %v4974_v1 = vld [vmem:[#allocation8] sm:$0xff]  ;;  %v4976_v2 = vld [vmem:[#allocation8 + $0x8] sm:$0xff]  ;;  %v4978_v3 = vld [vmem:[#allocation8 + $0x10] sm:$0xff]  ;;  %s4920_s16 = smov 1   ;;  %s4921_s17 = smov 127  }
  0x30   :  { %v99_v4 = vrot.slane %v4974_v1, 7  ;;  %v100_v5 = vrot.slane %v4976_v2, 7  ;;  %v101_v6 = vrot.slane %v4978_v3, 7  ;;  %v4983_v7 = vld [vmem:[#allocation8 + $0x18] sm:$0xff]  ;;  %v4496_v12 = vld [vmem:[%s12484_s2] ss:$0 sm:$0xff] }
  0x31   :  { %v4985_v8 = vld [vmem:[#allocation8 + $0x38] sm:$0xff]  ;;  %v4988_v9 = vshrl.u32 %v60_v0, 7  ;;  %v102_v10 = vrot.slane %v4983_v7, 7  ;;  %v4995_v13 = vld [vmem:[#allocation8 + $0x20] sm:$0xff]  ;;  %v4999_v14 = vld [vmem:[#allocation8 + $0x28] sm:$0xff]  ;;  %v525_v15 = vrot.slane %v4976_v2, 1 }
  0x32   :  { %v106_v11 = vrot.slane %v4985_v8, 7  ;;  %v526_v16 = vrot.slane %v4978_v3, 1  ;;  %v524_v20 = vrot.slane %v4974_v1, 1  ;;  %v103_v22 = vrot.slane %v4995_v13, 7  ;;  %v5030_v26 = vld [vmem:[#allocation8 + $0x30] sm:$0xff]  ;;  %v5139_v41 = vld [vmem:[#allocation8 + $0x80] sm:$0xff] }
  0x33   :  { %12686 = vst [vmem:[#allocation14_spill] sm:$0xff] %v4988_v9  ;;  %vm107_vm0 = vcmp.lt.s32.totalorder %v4988_v9, 1  ;;  %vm73_vm1 = vcmp.eq.s32.totalorder %v4988_v9, 0  ;;  %v104_v24 = vrot.slane %v4999_v14, 7  ;;  %vm532_vm2 = vcmp.lt.s32.totalorder %v4988_v9, 7  ;;  %v5141_v42 = vld [vmem:[#allocation8 + $0xb8] sm:$0xff] }
  0x34   :  { %v5005_v17 = vsel %vm107_vm0, %v99_v4, %v100_v5  ;;  %v5009_v18 = vsel %vm107_vm0, %v100_v5, %v101_v6  ;;  %v115_v19 = vsel %vm107_vm0, %v106_v11, %v99_v4  ;;  %v5020_v21 = vsel %vm107_vm0, %v101_v6, %v102_v10  ;;  %12687 = vst [vmem:[#allocation15_spill] sm:$0xff] %v5141_v42  ;;  %s5143_s18 = sld [smem:[#allocation2 + $0x1]]  ;;  %v5148_v44 = vld [vmem:[#allocation8 + $0x88] sm:$0xff]  ;;  %s5150_s19 = sld [smem:[#allocation2 + $0x1c]]  ;;  %v5154_v45 = vld [vmem:[#allocation8 + $0x90] sm:$0xff]  ;;  %v5166_v48 = vld [vmem:[#allocation8 + $0x98] sm:$0xff] }
  0x35   :  { %130 = vrot.lane.b32.xlu0 %v5005_v17, %s4920_s16  ;;  %132 = vrot.lane.b32.xlu1 %v5009_v18, %s4920_s16  ;;  %v5025_v23 = vsel %vm73_vm1, %v4496_v12, %v115_v19  ;;  %v527_v25 = vrot.slane %v4983_v7, 1  ;;  %v5034_v27 = vsel %vm532_vm2, %v525_v15, %v526_v16  ;;  %v5038_v28 = vsel %vm532_vm2, %v524_v20, %v525_v15  ;;  %s5152_s20 = sld [smem:[#allocation2 + $0x37]]  ;;  %s5156_s21 = sld [smem:[#allocation2]]  ;;  %v5179_v52 = vld [vmem:[#allocation8 + $0xa0] sm:$0xff]  ;;  %v5181_v53 = vld [vmem:[#allocation8 + $0xa8] sm:$0xff]  ;;  %v5183_v54 = vld [vmem:[#allocation8 + $0xb0] sm:$0xff] }
  0x36   :  { %v531_v30 = vrot.slane %v4985_v8, 1  ;;  %v5051_v31 = vsel %vm107_vm0, %v103_v22, %v104_v24  ;;  %v5055_v32 = vsel %vm107_vm0, %v102_v10, %v103_v22  ;;  %v105_v33 = vrot.slane %v5030_v26, 7  ;;  %12689 = vst [vmem:[#allocation17_spill] sm:$0xff] %v5154_v45  ;;  %s5158_s22 = sld [smem:[#allocation2 + $0x1b]]  ;;  %s5168_s23 = sld [smem:[#allocation2 + $0x36]] }
  0x37   :  { %v5042_v29 = vsel %vm532_vm2, %v526_v16, %v527_v25  ;;  %v528_v37 = vrot.slane %v4995_v13, 1  ;;  %v529_v39 = vrot.slane %v4999_v14, 1  ;;  %v530_v40 = vrot.slane %v5030_v26, 1  ;;  %v4514_v55 = vld [vmem:[%s12486_s4] ss:$0 sm:$0xff]  ;;  %s5203_s1 = sld [smem:[#allocation2 + $0x2]] }
  0x38   :  { %v5062_v34 = vsel %vm532_vm2, %v531_v30, %v524_v20  ;;  %v5070_v35 = vsel %vm107_vm0, %v105_v33, %v106_v11  ;;  %v5074_v36 = vsel %vm107_vm0, %v104_v24, %v105_v33  ;;  %v5146_v43 = vadd.s32 56, %v4988_v9  ;;  %v4524_v57 = vld [vmem:[%s12484_s2 + $0x1] ss:$0 sm:$0xff]  ;;  %s5230_s27 = sld [smem:[#allocation2 + $0x1d]]  ;;  %s5232_s28 = sld [smem:[#allocation2 + $0x4]] }
  0x39   :  { %134 = vrot.lane.b32.xlu1 %v5020_v21, %s4920_s16  ;;  %128 = vrot.lane.b32.xlu0 %v5025_v23, %s4920_s16  ;;  %v5135_v38 = vsel %vm532_vm2, %v527_v25, %v528_v37  ;;  %v774_v46 = vrot.slane %v5139_v41, 7  ;;  %v781_v47 = vrot.slane %v5141_v42, 7  ;;  %v5172_v49 = vsel %vm532_vm2, %v529_v39, %v530_v40  ;;  %s5248_s29 = sld [smem:[#allocation2 + $0x1f]]  ;;  %s5250_s30 = sld [smem:[#allocation2 + $0x3a]] }
  0x3a   :  { %12688 = vst [vmem:[#allocation16_spill] sm:$0xff] %v5146_v43  ;;  %v5176_v50 = vsel %vm532_vm2, %v528_v37, %v529_v39  ;;  %v775_v51 = vrot.slane %v5148_v44, 7  ;;  %vm88_vm3 = vcmp.eq.s32.totalorder %v5146_v43, 63  ;;  %v776_v56 = vrot.slane %v5154_v45, 7  ;;  %s5271_s6 = sld [smem:[#allocation2 + $0x38]]  ;;  %s5286_s7 = sld [smem:[#allocation2 + $0x3]] }
  0x3b   :  { %v777_v58 = vrot.slane %v5166_v48, 7  ;;  %v789_v59 = vsel %vm107_vm0, %v781_v47, %v774_v46  ;;  %v778_v60 = vrot.slane %v5179_v52, 7  ;;  %v779_v61 = vrot.slane %v5181_v53, 7  ;;  %s5288_s8 = sld [smem:[#allocation2 + $0x1e]]  ;;  %s5330_s9 = sld [smem:[#allocation2 + $0x39]] }
  0x3c   :  { %v780_v62 = vrot.slane %v5183_v54, 7  ;;  %v5206_v63 = vand.u32 127, %v60_v0  ;;  %v5212_v4 = vsel %vm532_vm2, %v530_v40, %v531_v30  ;;  %v5217_v5 = vsel %vm88_vm3, %v4514_v55, %v5062_v34  ;;  %s5344_s10 = sld [smem:[#allocation2 + $0x5]]  ;;  %s5358_s13 = sld [smem:[#allocation2 + $0x20]] }
  0x3d   :  { %138 = vrot.lane.b32.xlu1 %v5051_v31, %s4920_s16  ;;  %136 = vrot.lane.b32.xlu0 %v5055_v32, %s4920_s16  ;;  %v5221_v6 = vsel %vm107_vm0, %v774_v46, %v775_v51  ;;  %v5225_v10 = vsel %vm107_vm0, %v775_v51, %v776_v56  ;;  %v183_v0 = vstv %s5143_s18  ;;  %v201_v11 = vstv %s5150_s19  ;;  %s5382_s14 = sld [smem:[#allocation2 + $0x3b]]  ;;  %s5422_s3 = sld [smem:[#allocation2 + $0x7]] }
  0x3e   :  { %v219_v12 = vstv %s5152_s20  ;;  %v5236_v15 = vsel %vm73_vm1, %v4524_v57, %v789_v59  ;;  %v5240_v16 = vsel %vm107_vm0, %v776_v56, %v777_v58  ;;  %v5243_v19 = vstv %s5156_s21  ;;  %s5443_s15 = sld [smem:[#allocation2 + $0x22]]  ;;  %s5445_s18 = sld [smem:[#allocation2 + $0x3d]] }
  0x3f   :  { %v5246_v20 = vstv %s5158_s22  ;;  %v5258_v22 = vsel %vm107_vm0, %v777_v58, %v778_v60  ;;  %v5262_v24 = vsel %vm107_vm0, %v778_v60, %v779_v61  ;;  %v5266_v25 = vsel %vm107_vm0, %v779_v61, %v780_v62  ;;  %s5459_s19 = sld [smem:[#allocation2 + $0x6]]  ;;  %s5470_s20 = sld [smem:[#allocation2 + $0x21]] }
  0x40   :  { %v5269_v30 = vstv %s5168_s23  ;;  %v5275_v33 = vsel %vm107_vm0, %v780_v62, %v781_v47  ;;  %v5278_v34 = vmul.f32 %v183_v0, %v5005_v17  ;;  %v5281_v37 = vmul.f32 %v201_v11, %v5005_v17  ;;  %s5472_s21 = sld [smem:[#allocation2 + $0x3c]]  ;;  %s5557_s24 = sld [smem:[#allocation2 + $0x8]] }
  0x41   :  { %142 = vrot.lane.b32.xlu1 %v5070_v35, %s4920_s16  ;;  %140 = vrot.lane.b32.xlu0 %v5074_v36, %s4920_s16  ;;  %v5284_v39 = vmul.f32 %v219_v12, %v5005_v17  ;;  %v5291_v40 = vmul.f32 %v183_v0, %v5009_v18  ;;  %v5294_v46 = vmul.f32 %v201_v11, %v5009_v18  ;;  %v5328_v59 = vstv %s5203_s1  ;;  %s5559_s25 = sld [smem:[#allocation2 + $0x23]]  ;;  %s5579_s26 = sld [smem:[#allocation2 + $0x3e]] }
  0x42   :  { %v5297_v47 = vmul.f32 %v219_v12, %v5009_v18  ;;  %v5300_v51 = vmul.f32 %v183_v0, %v5020_v21  ;;  %v5306_v55 = vmul.f32 %v219_v12, %v5020_v21  ;;  %v5309_v56 = vmul.f32 %v183_v0, %v5025_v23  ;;  %12692 = vst [vmem:[#allocation20_spill] sm:$0xff] %v5328_v59  ;;  %s7058_s22 = sld [smem:[#allocation2 + $0x44]]  ;;  %s7257_s23 = sld [smem:[#allocation2 + $0xf]] }
  0x43   :  { %v5312_v57 = vmul.f32 %v201_v11, %v5025_v23  ;;  %v5325_v58 = vmul.f32 %v201_v11, %v5051_v31  ;;  %v5333_v60 = vmul.f32 %v219_v12, %v5051_v31  ;;  %v5336_v61 = vmul.f32 %v183_v0, %v5055_v32  ;;  %s7288_s0 = sld [smem:[#allocation2 + $0x45]]  ;;  %s7435_s1 = sld [smem:[#allocation2 + $0x10]] }
  0x44   :  { %v5342_v62 = vmul.f32 %v219_v12, %v5055_v32  ;;  %v5350_v59 = vmul.f32 %v201_v11, %v5070_v35  ;;  %vm71_vm4 = vcmp.eq.s32.totalorder %v5206_v63, 0  ;;  %vm72_vm5 = vcmp.eq.s32.totalorder %v5206_v63, 127 }
  0x45   :  { %238 = vrot.lane.b32.xlu1 %v5005_v17, %s4921_s17  ;;  %236 = vrot.lane.b32.xlu0 %v5025_v23, %s4921_s17  ;;  %v5303_v17 = vmul.f32 %v201_v11, %v5020_v21  ;;  %12691 = vst [vmem:[#allocation19_spill] sm:$0xff] %v5325_v58  ;;  %12693 = vst [vmem:[#allocation21_spill] sm:$0xff] %v5333_v60  ;;  %v5347_v58 = vmul.f32 %v183_v0, %v5070_v35  ;;  %v5391_v60 = vstv %s5286_s7  ;;  %s5709_s7 = sld [smem:[#allocation2 + $0x3f]] }
  0x46   :  { %12694 = vst [vmem:[#allocation22_spill] sm:$0xff] %v5336_v61  ;;  %12696 = vst [vmem:[#allocation24_spill] sm:$0xff] %v5342_v62  ;;  %v5356_v61 = vstv %s5230_s27  ;;  %v5364_v62 = vstv %s5232_s28  ;;  %s5628_s27 = sld [smem:[#allocation2 + $0xa]]  ;;  %s5630_s28 = sld [smem:[#allocation2 + $0x25]] }
  0x47   :  { %12697 = vst [vmem:[#allocation25_spill] sm:$0xff] %v5347_v58  ;;  %12698 = vst [vmem:[#allocation26_spill] sm:$0xff] %v5350_v59  ;;  %v5370_v58 = vstv %s5250_s30  ;;  %v5388_v59 = vstv %s5271_s6  ;;  %s5663_s30 = sld [smem:[#allocation2 + $0x9]]  ;;  %s5673_s6 = sld [smem:[#allocation2 + $0x24]] }
  0x48   :  { %12700 = vst [vmem:[#allocation28_spill] sm:$0xff] %v5356_v61  ;;  %v1222_v61 = vrot.slane %v5139_v41, 1  ;;  %12703 = vst [vmem:[#allocation31_spill] sm:$0xff] %v5391_v60  ;;  %v5492_v60 = vld [vmem:[#allocation8 + $0x138] sm:$0xff] }
  0x49   :  { %242 = vrot.lane.b32.xlu1 %v5020_v21, %s4921_s17  ;;  %240 = vrot.lane.b32.xlu0 %v5009_v18, %s4921_s17  ;;  %v5319_v18 = vmul.f32 %v219_v12, %v5025_v23  ;;  %v5322_v21 = vmul.f32 %v183_v0, %v5051_v31  ;;  %v5339_v23 = vmul.f32 %v201_v11, %v5055_v32 }
  0x4b   :  { %12690 = vst [vmem:[#allocation18_spill] sm:$0xff] %v5322_v21  ;;  %12695 = vst [vmem:[#allocation23_spill] sm:$0xff] %v5339_v23  ;;  %v5367_v23 = vstv %s5248_s29  ;;  %v5394_v21 = vstv %s5288_s8  ;;  %s5645_s29 = sld [smem:[#allocation2 + $0x40]]  ;;  %s5723_s8 = sld [smem:[#allocation2 + $0xb]] }
  0x4c   :  { %12704 = vst [vmem:[#allocation32_spill] sm:$0xff] %v5394_v21  ;;  %v1225_v21 = vrot.slane %v5166_v48, 1 }
  0x4d   :  { %246 = vrot.lane.b32.xlu1 %v5051_v31, %s4921_s17  ;;  %244 = vrot.lane.b32.xlu0 %v5055_v32, %s4921_s17  ;;  %v5353_v31 = vmul.f32 %v219_v12, %v5070_v35  ;;  %v5361_v32 = vmul.f32 %v183_v0, %v5074_v36  ;;  %v1223_v0 = vrot.slane %v5148_v44, 1 }
  0x4f   :  { %12699 = vst [vmem:[#allocation27_spill] sm:$0xff] %v5353_v31  ;;  %12701 = vst [vmem:[#allocation29_spill] sm:$0xff] %v5361_v32  ;;  %v1224_v32 = vrot.slane %v5154_v45, 1  ;;  %v5385_v31 = vmul.f32 %v219_v12, %v5074_v36  ;;  %v5406_v45 = vmul.f32 %v5370_v58, %v4976_v2  ;;  %v5414_v12 = vmul.f32 %v5367_v23, %v4974_v1 }
  0x51   :  { %250 = vrot.lane.b32.xlu1 %v5070_v35, %s4921_s17  ;;  %248 = vrot.lane.b32.xlu0 %v5074_v36, %s4921_s17  ;;  %v5377_v35 = vmul.f32 %v201_v11, %v5074_v36  ;;  %v5398_v11 = vmul.f32 %v5364_v62, %v4976_v2  ;;  %12707 = vst [vmem:[#allocation35_spill] sm:$0xff] %v5406_v45  ;;  %12709 = vst [vmem:[#allocation37_spill] sm:$0xff] %v5414_v12 }
  0x52   :  { %v5410_v36 = vmul.f32 %v5364_v62, %v4974_v1  ;;  %v5433_v12 = vsel %vm532_vm2, %v1222_v61, %v1223_v0  ;;  %v5452_v45 = vmul.f32 %v5367_v23, %v4983_v7 }
  0x53   :  { %12702 = vst [vmem:[#allocation30_spill] sm:$0xff] %v5377_v35  ;;  %12705 = vst [vmem:[#allocation33_spill] sm:$0xff] %v5398_v11  ;;  %v5402_v35 = vmul.f32 %v5367_v23, %v4976_v2  ;;  %v5418_v11 = vmul.f32 %v5370_v58, %v4974_v1 }
  0x54   :  { %12708 = vst [vmem:[#allocation36_spill] sm:$0xff] %v5410_v36  ;;  %12712 = vst [vmem:[#allocation40_spill] sm:$0xff] %v5433_v12  ;;  %v5448_v36 = vstv %s5344_s10  ;;  %v5456_v12 = vmul.f32 %v5370_v58, %v4983_v7  ;;  %s5743_s10 = sld [smem:[#allocation2 + $0x41]] }
  0x55   :  { %316 = vrot.lane.b32.xlu1 %v4976_v2, %s4920_s16  ;;  %314 = vrot.lane.b32.xlu0 %v4974_v1, %s4920_s16  ;;  %12706 = vst [vmem:[#allocation34_spill] sm:$0xff] %v5402_v35  ;;  %12710 = vst [vmem:[#allocation38_spill] sm:$0xff] %v5418_v11  ;;  %v1226_v35 = vrot.slane %v5179_v52, 1  ;;  %v5441_v11 = vmul.f32 %v5364_v62, %v4983_v7 }
  0x56   :  { %12715 = vst [vmem:[#allocation43_spill] sm:$0xff] %v5448_v36  ;;  %12716 = vst [vmem:[#allocation44_spill] sm:$0xff] %v5452_v45  ;;  %v1228_v36 = vrot.slane %v5183_v54, 1  ;;  %v5484_v45 = vmul.f32 %v5367_v23, %v4978_v3 }
  0x57   :  { %12714 = vst [vmem:[#allocation42_spill] sm:$0xff] %v5441_v11  ;;  %12717 = vst [vmem:[#allocation45_spill] sm:$0xff] %v5456_v12  ;;  %v5462_v11 = vstv %s5358_s13  ;;  %v5480_v12 = vsel %vm532_vm2, %v1225_v21, %v1226_v35  ;;  %s5950_s13 = sld [smem:[#allocation2 + $0xc]] }
  0x58   :  { %12718 = vst [vmem:[#allocation46_spill] sm:$0xff] %v5462_v11  ;;  %12721 = vst [vmem:[#allocation49_spill] sm:$0xff] %v5480_v12  ;;  %v5490_v11 = vld [vmem:[#allocation8 + $0x100] sm:$0xff]  ;;  %v5519_v12 = vmul.f32 %v5364_v62, %v4995_v13 }
  0x59   :  { %320 = vrot.lane.b32.xlu1 %v4983_v7, %s4920_s16  ;;  %318 = vrot.lane.b32.xlu0 %v4978_v3, %s4920_s16  ;;  %12722 = vst [vmem:[#allocation50_spill] sm:$0xff] %v5484_v45  ;;  %12724 = vst [vmem:[#allocation52_spill] sm:$0xff] %v5490_v11 }
  0x5a   :  { %12730 = vst [vmem:[#allocation58_spill] sm:$0xff] %v5519_v12 }
  0x5d   :  { %324 = vrot.lane.b32.xlu1 %v4999_v14, %s4920_s16  ;;  %322 = vrot.lane.b32.xlu0 %v4995_v13, %s4920_s16 }
  0x61   :  { %328 = vrot.lane.b32.xlu1 %v4985_v8, %s4920_s16  ;;  %326 = vrot.lane.b32.xlu0 %v5030_v26, %s4920_s16 }
  0x65   :  { %448 = vrot.lane.b32.xlu1 %v4976_v2, %s4921_s17  ;;  %446 = vrot.lane.b32.xlu0 %v4974_v1, %s4921_s17  ;;  %v5429_v2 = vstv %s5330_s9  ;;  %v5437_v1 = vsel %vm532_vm2, %v1223_v0, %v1224_v32  ;;  %v1227_v0 = vrot.slane %v5181_v53, 1  ;;  %s5725_s9 = sld [smem:[#allocation2 + $0x26]] }
  0x66   :  { %12711 = vst [vmem:[#allocation39_spill] sm:$0xff] %v5429_v2  ;;  %12713 = vst [vmem:[#allocation41_spill] sm:$0xff] %v5437_v1  ;;  %v5466_v1 = vmul.f32 %v5364_v62, %v4978_v3  ;;  %v1229_v2 = vrot.slane %v5141_v42, 1  ;;  %v5603_v42 = vstv %s5472_s21  ;;  %s7056_s21 = sld [smem:[#allocation2 + $0x29]] }
  0x67   :  { %v5515_v45 = vsel %vm532_vm2, %v1226_v35, %v1227_v0  ;;  %v4543_v35 = vld [vmem:[%s12486_s4 + $0x1] ss:$0 sm:$0xff]  ;;  %12743 = vst [vmem:[#allocation71_spill] sm:$0xff] %v5603_v42 }
  0x68   :  { %12719 = vst [vmem:[#allocation47_spill] sm:$0xff] %v5466_v1  ;;  %v5488_v1 = vmul.f32 %v5370_v58, %v4978_v3  ;;  %12729 = vst [vmem:[#allocation57_spill] sm:$0xff] %v5515_v45  ;;  %v1237_v12 = vsel %vm532_vm2, %v1229_v2, %v1222_v61  ;;  %v5567_v61 = vmul.f32 %v5364_v62, %v5030_v26  ;;  %v5597_v45 = vstv %s5459_s19  ;;  %v1465_v42 = vld [vmem:[#allocation8 + $0x120] sm:$0xff]  ;;  %s7026_s19 = sld [smem:[#allocation2 + $0x43]] }
  0x69   :  { %452 = vrot.lane.b32.xlu1 %v4983_v7, %s4921_s17  ;;  %450 = vrot.lane.b32.xlu0 %v4978_v3, %s4921_s17  ;;  %v5476_v7 = vsel %vm532_vm2, %v1224_v32, %v1225_v21  ;;  %v5499_v21 = vstv %s5382_s14  ;;  %v5503_v32 = vmul.f32 %v5364_v62, %v4999_v14  ;;  %v5507_v3 = vmul.f32 %v5367_v23, %v4999_v14  ;;  %s5952_s14 = sld [smem:[#allocation2 + $0x27]] }
  0x6a   :  { %12720 = vst [vmem:[#allocation48_spill] sm:$0xff] %v5476_v7  ;;  %12723 = vst [vmem:[#allocation51_spill] sm:$0xff] %v5488_v1  ;;  %v5511_v1 = vmul.f32 %v5370_v58, %v4999_v14  ;;  %v5527_v7 = vmul.f32 %v5370_v58, %v4995_v13 }
  0x6b   :  { %12725 = vst [vmem:[#allocation53_spill] sm:$0xff] %v5499_v21  ;;  %12726 = vst [vmem:[#allocation54_spill] sm:$0xff] %v5503_v32  ;;  %v5523_v32 = vmul.f32 %v5367_v23, %v4995_v13  ;;  %v5600_v21 = vstv %s5470_s20  ;;  %s7046_s20 = sld [smem:[#allocation2 + $0xe]] }
  0x6c   :  { %12727 = vst [vmem:[#allocation55_spill] sm:$0xff] %v5507_v3  ;;  %12728 = vst [vmem:[#allocation56_spill] sm:$0xff] %v5511_v1  ;;  %v1471_v1 = vrot.slane %v5490_v11, 7  ;;  %v5540_v3 = vld [vmem:[#allocation8 + $0x108] sm:$0xff] }
  0x6d   :  { %456 = vrot.lane.b32.xlu1 %v4999_v14, %s4921_s17  ;;  %454 = vrot.lane.b32.xlu0 %v4995_v13, %s4921_s17  ;;  %12731 = vst [vmem:[#allocation59_spill] sm:$0xff] %v5523_v32  ;;  %12732 = vst [vmem:[#allocation60_spill] sm:$0xff] %v5527_v7  ;;  %v5531_v14 = vsel %vm532_vm2, %v1227_v0, %v1228_v36  ;;  %v5544_v13 = vmul.f32 %v5364_v62, %v4985_v8  ;;  %v5574_v32 = vstv %s5443_s15  ;;  %s6083_s15 = sld [smem:[#allocation2 + $0xd]] }
  0x6e   :  { %12733 = vst [vmem:[#allocation61_spill] sm:$0xff] %v5531_v14  ;;  %v5548_v0 = vmul.f32 %v5367_v23, %v4985_v8  ;;  %v5552_v7 = vmul.f32 %v5370_v58, %v4985_v8  ;;  %v5555_v14 = vstv %s5422_s3  ;;  %12737 = vst [vmem:[#allocation65_spill] sm:$0xff] %v5567_v61  ;;  %v5591_v62 = vmul.f32 %v5370_v58, %v5030_v26  ;;  %v1464_v61 = vld [vmem:[#allocation8 + $0x118] sm:$0xff]  ;;  %s5976_s3 = sld [smem:[#allocation2 + $0x42]] }
  0x6f   :  { %12734 = vst [vmem:[#allocation62_spill] sm:$0xff] %v5544_v13  ;;  %v5587_v13 = vsel %vm88_vm3, %v4543_v35, %v1237_v12  ;;  %12742 = vst [vmem:[#allocation70_spill] sm:$0xff] %v5600_v21  ;;  %v12744_v12 = vrot.slane %v5492_v60, 7  ;;  %v5614_v58 = vmul.f32 %v5555_v14, %v5038_v28  ;;  %v5626_v43 = vmul.f32 %v5555_v14, %v5034_v27  ;;  %v1466_v21 = vld [vmem:[#allocation8 + $0x128] sm:$0xff] }
  0x70   :  { %12735 = vst [vmem:[#allocation63_spill] sm:$0xff] %v5548_v0  ;;  %12736 = vst [vmem:[#allocation64_spill] sm:$0xff] %v5552_v7  ;;  %v5577_v7 = vstv %s5445_s18  ;;  %v5583_v0 = vsel %vm532_vm2, %v1228_v36, %v1229_v2  ;;  %v4553_v36 = vld [vmem:[%s12484_s2 + $0x2] ss:$0 sm:$0xff]  ;;  %v5618_v2 = vmul.f32 %v5574_v32, %v5038_v28  ;;  %s6124_s18 = sld [smem:[#allocation2 + $0x28]] }
  0x71   :  { %460 = vrot.lane.b32.xlu1 %v4985_v8, %s4921_s17  ;;  %458 = vrot.lane.b32.xlu0 %v5030_v26, %s4921_s17  ;;  %v5571_v8 = vmul.f32 %v5367_v23, %v5030_v26  ;;  %12739 = vst [vmem:[#allocation67_spill] sm:$0xff] %v5583_v0  ;;  %12740 = vst [vmem:[#allocation68_spill] sm:$0xff] %v5587_v13  ;;  %v1472_v23 = vrot.slane %v5540_v3, 7  ;;  %v1486_v26 = vsel %vm107_vm0, %v12744_v12, %v1471_v1 }
  0x72   :  { %12745 = vst [vmem:[#allocation72_spill] sm:$0xff] %v5614_v58  ;;  %12746 = vst [vmem:[#allocation73_spill] sm:$0xff] %v5618_v2  ;;  %v5622_v35 = vmul.f32 %v5577_v7, %v5038_v28  ;;  %v5642_v12 = vmul.f32 %v5577_v7, %v5034_v27  ;;  %v1474_v2 = vrot.slane %v1464_v61, 7  ;;  %v5649_v58 = vsel %vm73_vm1, %v4553_v36, %v1486_v26 }
  0x73   :  { %12738 = vst [vmem:[#allocation66_spill] sm:$0xff] %v5571_v8  ;;  %v5594_v8 = vld [vmem:[#allocation8 + $0x110] sm:$0xff]  ;;  %12748 = vst [vmem:[#allocation75_spill] sm:$0xff] %v5626_v43  ;;  %v5653_v43 = vsel %vm107_vm0, %v1471_v1, %v1472_v23  ;;  %v5667_v61 = vmul.f32 %v5577_v7, %v5042_v29  ;;  %v5671_v36 = vmul.f32 %v5555_v14, %v5135_v38  ;;  %v1475_v1 = vrot.slane %v1465_v42, 7 }
  0x74   :  { %12741 = vst [vmem:[#allocation69_spill] sm:$0xff] %v5594_v8  ;;  %12747 = vst [vmem:[#allocation74_spill] sm:$0xff] %v5622_v35  ;;  %v1473_v35 = vrot.slane %v5594_v8, 7  ;;  %v1476_v26 = vrot.slane %v1466_v21, 7  ;;  %v5695_v42 = vstv %s5579_s26  ;;  %s7286_s26 = sld [smem:[#allocation2 + $0x2a]] }
  0x75   :  { %555 = vrot.lane.b32.xlu1 %v5034_v27, %s4920_s16  ;;  %553 = vrot.lane.b32.xlu0 %v5038_v28, %s4920_s16  ;;  %12750 = vst [vmem:[#allocation77_spill] sm:$0xff] %v5642_v12  ;;  %12751 = vst [vmem:[#allocation78_spill] sm:$0xff] %v5649_v58  ;;  %v1467_v12 = vld [vmem:[#allocation8 + $0x130] sm:$0xff] }
  0x76   :  { %12752 = vst [vmem:[#allocation79_spill] sm:$0xff] %v5653_v43  ;;  %12755 = vst [vmem:[#allocation82_spill] sm:$0xff] %v5667_v61  ;;  %v5679_v43 = vstv %s5559_s25  ;;  %v5699_v21 = vsel %vm107_vm0, %v1472_v23, %v1473_v35  ;;  %v5717_v23 = vmul.f32 %v5577_v7, %v5176_v50  ;;  %s8297_s25 = sld [smem:[#allocation2 + $0x31]] }
  0x77   :  { %12756 = vst [vmem:[#allocation83_spill] sm:$0xff] %v5671_v36  ;;  %12759 = vst [vmem:[#allocation86_spill] sm:$0xff] %v5699_v21  ;;  %v1477_v36 = vrot.slane %v1467_v12, 7  ;;  %v5741_v12 = vmul.f32 %v5577_v7, %v5172_v49 }
  0x78   :  { %12763 = vst [vmem:[#allocation90_spill] sm:$0xff] %v5717_v23  ;;  %v5755_v23 = vstv %s5630_s28  ;;  %s7461_s28 = sld [smem:[#allocation2 + $0x46]] }
  0x79   :  { %559 = vrot.lane.b32.xlu1 %v5135_v38, %s4920_s16  ;;  %557 = vrot.lane.b32.xlu0 %v5042_v29, %s4920_s16  ;;  %12768 = vst [vmem:[#allocation95_spill] sm:$0xff] %v5741_v12  ;;  %v5774_v12 = vstv %s5645_s29  ;;  %s7475_s29 = sld [smem:[#allocation2 + $0x11]] }
  0x7d   :  { %563 = vrot.lane.b32.xlu1 %v5172_v49, %s4920_s16  ;;  %561 = vrot.lane.b32.xlu0 %v5176_v50, %s4920_s16 }
  0x81   :  { %565 = vrot.lane.b32.xlu0 %v5212_v4, %s4920_s16  ;;  %567 = vrot.lane.b32.xlu1 %v5217_v5, %s4920_s16 }
  0x85   :  { %685 = vrot.lane.b32.xlu0 %v5038_v28, %s4921_s17  ;;  %687 = vrot.lane.b32.xlu1 %v5034_v27, %s4921_s17  ;;  %v5638_v28 = vmul.f32 %v5574_v32, %v5034_v27  ;;  %v5661_v27 = vmul.f32 %v5574_v32, %v5042_v29 }
  0x87   :  { %12749 = vst [vmem:[#allocation76_spill] sm:$0xff] %v5638_v28  ;;  %v5657_v28 = vmul.f32 %v5555_v14, %v5042_v29  ;;  %12754 = vst [vmem:[#allocation81_spill] sm:$0xff] %v5661_v27  ;;  %v5683_v27 = vmul.f32 %v5574_v32, %v5135_v38 }
  0x89   :  { %689 = vrot.lane.b32.xlu0 %v5042_v29, %s4921_s17  ;;  %691 = vrot.lane.b32.xlu1 %v5135_v38, %s4921_s17  ;;  %12753 = vst [vmem:[#allocation80_spill] sm:$0xff] %v5657_v28  ;;  %v5676_v28 = vstv %s5557_s24  ;;  %12757 = vst [vmem:[#allocation84_spill] sm:$0xff] %v5683_v27  ;;  %v5687_v29 = vmul.f32 %v5577_v7, %v5135_v38  ;;  %v5703_v27 = vsel %vm107_vm0, %v1473_v35, %v1474_v2  ;;  %s8295_s24 = sld [smem:[#allocation2 + $0x16]] }
  0x8a   :  { %12760 = vst [vmem:[#allocation87_spill] sm:$0xff] %v5703_v27  ;;  %v5707_v38 = vmul.f32 %v5555_v14, %v5176_v50  ;;  %v5721_v35 = vmul.f32 %v5555_v14, %v5172_v49 }
  0x8b   :  { %12758 = vst [vmem:[#allocation85_spill] sm:$0xff] %v5687_v29  ;;  %v5713_v29 = vmul.f32 %v5574_v32, %v5176_v50 }
  0x8c   :  { %12761 = vst [vmem:[#allocation88_spill] sm:$0xff] %v5707_v38  ;;  %12764 = vst [vmem:[#allocation91_spill] sm:$0xff] %v5721_v35  ;;  %v5729_v38 = vsel %vm107_vm0, %v1474_v2, %v1475_v1  ;;  %v5747_v2 = vmul.f32 %v5555_v14, %v5212_v4  ;;  %v881_v35 = vstv %s5628_s27  ;;  %s7437_s27 = sld [smem:[#allocation2 + $0x2b]] }
  0x8d   :  { %693 = vrot.lane.b32.xlu0 %v5176_v50, %s4921_s17  ;;  %695 = vrot.lane.b32.xlu1 %v5172_v49, %s4921_s17  ;;  %12762 = vst [vmem:[#allocation89_spill] sm:$0xff] %v5713_v29  ;;  %12765 = vst [vmem:[#allocation92_spill] sm:$0xff] %v5729_v38  ;;  %v5733_v29 = vsel %vm107_vm0, %v1475_v1, %v1476_v26  ;;  %v5737_v50 = vmul.f32 %v5574_v32, %v5172_v49 }
  0x8e   :  { %12766 = vst [vmem:[#allocation93_spill] sm:$0xff] %v5733_v29  ;;  %12769 = vst [vmem:[#allocation96_spill] sm:$0xff] %v5747_v2  ;;  %v5751_v1 = vmul.f32 %v5574_v32, %v5212_v4  ;;  %v5763_v49 = vmul.f32 %v5577_v7, %v5212_v4  ;;  %v5767_v2 = vmul.f32 %v5555_v14, %v5217_v5  ;;  %v12775_v29 = vrot.slane %v5492_v60, 7 }
  0x8f   :  { %12767 = vst [vmem:[#allocation94_spill] sm:$0xff] %v5737_v50  ;;  %v5778_v50 = vsel %vm107_vm0, %v1476_v26, %v1477_v36  ;;  %v5788_v14 = vmul.f32 %v5577_v7, %v5217_v5  ;;  %v5801_v60 = vmul.f32 %v5755_v23, %v5236_v15  ;;  %v5812_v7 = vmul.f32 %v5755_v23, %v5221_v6 }
  0x90   :  { %12770 = vst [vmem:[#allocation97_spill] sm:$0xff] %v5751_v1  ;;  %12771 = vst [vmem:[#allocation98_spill] sm:$0xff] %v5763_v49  ;;  %v5771_v1 = vmul.f32 %v5574_v32, %v5217_v5  ;;  %v5791_v32 = vstv %s5663_s30  ;;  %v5816_v26 = vmul.f32 %v5774_v12, %v5221_v6  ;;  %v12820_v49 = vld [vmem:[#allocation30_spill] sm:$0xff]  ;;  %s7477_s30 = sld [smem:[#allocation2 + $0x2c]] }
  0x91   :  { %697 = vrot.lane.b32.xlu0 %v5212_v4, %s4921_s17  ;;  %699 = vrot.lane.b32.xlu1 %v5217_v5, %s4921_s17  ;;  %12772 = vst [vmem:[#allocation99_spill] sm:$0xff] %v5767_v2  ;;  %12774 = vst [vmem:[#allocation101_spill] sm:$0xff] %v5778_v50  ;;  %v5784_v4 = vsel %vm107_vm0, %v1477_v36, %v12775_v29  ;;  %v5797_v2 = vmul.f32 %v881_v35, %v5236_v15 }
  0x92   :  { %12773 = vst [vmem:[#allocation100_spill] sm:$0xff] %v5771_v1  ;;  %12776 = vst [vmem:[#allocation102_spill] sm:$0xff] %v5784_v4  ;;  %v5794_v1 = vstv %s5673_s6  ;;  %v5804_v36 = vmul.f32 %v881_v35, %v5221_v6  ;;  %v5808_v5 = vmul.f32 %v5774_v12, %v5236_v15  ;;  %v5819_v29 = vmul.f32 %v881_v35, %v5225_v10  ;;  %s7487_s6 = sld [smem:[#allocation2 + $0x47]] }
  0x93   :  { %12777 = vst [vmem:[#allocation103_spill] sm:$0xff] %v5788_v14  ;;  %12778 = vst [vmem:[#allocation104_spill] sm:$0xff] %v5791_v32 }
  0x94   :  { %12779 = vst [vmem:[#allocation105_spill] sm:$0xff] %v5794_v1  ;;  %12780 = vst [vmem:[#allocation106_spill] sm:$0xff] %v5797_v2 }
  0x95   :  { %802 = vrot.lane.b32.xlu0 %v5236_v15, %s4920_s16  ;;  %804 = vrot.lane.b32.xlu1 %v5221_v6, %s4920_s16  ;;  %12781 = vst [vmem:[#allocation107_spill] sm:$0xff] %v5801_v60  ;;  %12782 = vst [vmem:[#allocation108_spill] sm:$0xff] %v5804_v36  ;;  %v5826_v36 = vstv %s5709_s7  ;;  %v5843_v60 = vstv %s5725_s9  ;;  %s7744_s9 = sld [smem:[#allocation2 + $0x12]]  ;;  %s8578_s7 = sld [smem:[#allocation2 + $0x4e]] }
  0x96   :  { %12783 = vst [vmem:[#allocation109_spill] sm:$0xff] %v5808_v5  ;;  %12784 = vst [vmem:[#allocation110_spill] sm:$0xff] %v5812_v7  ;;  %v5830_v5 = vmul.f32 %v5755_v23, %v5225_v10  ;;  %v5834_v7 = vmul.f32 %v5774_v12, %v5225_v10 }
  0x97   :  { %12785 = vst [vmem:[#allocation111_spill] sm:$0xff] %v5816_v26  ;;  %12786 = vst [vmem:[#allocation112_spill] sm:$0xff] %v5819_v29  ;;  %v5837_v26 = vmul.f32 %v881_v35, %v5240_v16  ;;  %v5840_v29 = vstv %s5723_s8  ;;  %s8714_s8 = sld [smem:[#allocation2 + $0x19]] }
  0x98   :  { %12787 = vst [vmem:[#allocation113_spill] sm:$0xff] %v5826_v36  ;;  %12788 = vst [vmem:[#allocation114_spill] sm:$0xff] %v5830_v5  ;;  %v5854_v36 = vstv %s5743_s10  ;;  %s7746_s10 = sld [smem:[#allocation2 + $0x2d]] }
  0x99   :  { %806 = vrot.lane.b32.xlu0 %v5225_v10, %s4920_s16  ;;  %808 = vrot.lane.b32.xlu1 %v5240_v16, %s4920_s16  ;;  %12789 = vst [vmem:[#allocation115_spill] sm:$0xff] %v5834_v7  ;;  %12790 = vst [vmem:[#allocation116_spill] sm:$0xff] %v5837_v26  ;;  %v5857_v7 = vmul.f32 %v881_v35, %v5258_v22  ;;  %v5861_v26 = vmul.f32 %v5755_v23, %v5258_v22 }
  0x9a   :  { %12791 = vst [vmem:[#allocation117_spill] sm:$0xff] %v5840_v29  ;;  %12792 = vst [vmem:[#allocation118_spill] sm:$0xff] %v5843_v60  ;;  %v5865_v60 = vmul.f32 %v5774_v12, %v5258_v22  ;;  %v5872_v29 = vmul.f32 %v881_v35, %v5262_v24 }
  0x9b   :  { %12795 = vst [vmem:[#allocation121_spill] sm:$0xff] %v5854_v36  ;;  %12796 = vst [vmem:[#allocation122_spill] sm:$0xff] %v5857_v7  ;;  %v5876_v7 = vmul.f32 %v5755_v23, %v5262_v24 }
  0x9c   :  { %12797 = vst [vmem:[#allocation123_spill] sm:$0xff] %v5861_v26  ;;  %12798 = vst [vmem:[#allocation124_spill] sm:$0xff] %v5865_v60 }
  0x9d   :  { %810 = vrot.lane.b32.xlu0 %v5258_v22, %s4920_s16  ;;  %812 = vrot.lane.b32.xlu1 %v5262_v24, %s4920_s16  ;;  %12799 = vst [vmem:[#allocation125_spill] sm:$0xff] %v5872_v29  ;;  %12800 = vst [vmem:[#allocation126_spill] sm:$0xff] %v5876_v7  ;;  %v5890_v7 = vmul.f32 %v5774_v12, %v5262_v24  ;;  %v5893_v29 = vmul.f32 %v881_v35, %v5266_v25 }
  0x9f   :  { %12801 = vst [vmem:[#allocation127_spill] sm:$0xff] %v5890_v7  ;;  %12802 = vst [vmem:[#allocation128_spill] sm:$0xff] %v5893_v29 }
  0xa1   :  { %814 = vrot.lane.b32.xlu0 %v5266_v25, %s4920_s16  ;;  %816 = vrot.lane.b32.xlu1 %v5275_v33, %s4920_s16 }
  0xa5   :  { %934 = vrot.lane.b32.xlu0 %v5236_v15, %s4921_s17  ;;  %936 = vrot.lane.b32.xlu1 %v5221_v6, %s4921_s17  ;;  %v5847_v6 = vmul.f32 %v5755_v23, %v5240_v16  ;;  %v5851_v15 = vmul.f32 %v5774_v12, %v5240_v16 }
  0xa7   :  { %12793 = vst [vmem:[#allocation119_spill] sm:$0xff] %v5847_v6  ;;  %12794 = vst [vmem:[#allocation120_spill] sm:$0xff] %v5851_v15  ;;  %v131_v5 = vpop.permute.xlu0 %130  ;;  %v133_v2 = vpop.permute.xlu1 %132 }
  0xa8   :  { %v145_v6 = vsel %vm71_vm4, 0.5, %v131_v5  ;;  %v146_v15 = vsel %vm71_vm4, 0.5, %v133_v2 }
  0xa9   :  { %v155_v36 = vmul.f32 %v5243_v19, %v145_v6  ;;  %v165_v26 = vmul.f32 %v5246_v20, %v145_v6  ;;  %v175_v1 = vmul.f32 %v5269_v30, %v145_v6  ;;  %v156_v60 = vmul.f32 %v5243_v19, %v146_v15  ;;  %938 = vrot.lane.b32.xlu0 %v5225_v10, %s4921_s17 }
  0xaa   :  { %v166_v2 = vmul.f32 %v5246_v20, %v146_v15  ;;  %v176_v5 = vmul.f32 %v5269_v30, %v146_v15  ;;  %940 = vrot.lane.b32.xlu1 %v5240_v16, %s4921_s17  ;;  %v5900_v10 = vmul.f32 %v5755_v23, %v5266_v25  ;;  %v5904_v15 = vmul.f32 %v5774_v12, %v5266_v25 }
  0xab   :  { %v5896_v6 = vadd.f32 %v5278_v34, %v155_v36  ;;  %v135_v32 = vpop.permute.xlu1 %134  ;;  %v129_v14 = vpop.permute.xlu0 %128  ;;  %v5907_v16 = vmul.f32 %v881_v35, %v5275_v33  ;;  %v5910_v7 = vadd.f32 %v5281_v37, %v165_v26  ;;  %v5913_v29 = vadd.f32 %v5284_v39, %v175_v1 }
  0xac   :  { %12803 = vst [vmem:[#allocation129_spill] sm:$0xff] %v5900_v10  ;;  %12804 = vst [vmem:[#allocation130_spill] sm:$0xff] %v5904_v15  ;;  %v147_v34 = vsel %vm71_vm4, 0.5, %v135_v32  ;;  %v144_v36 = vsel %vm71_vm4, 0.5, %v129_v14  ;;  %v5921_v10 = vadd.f32 %v5291_v40, %v156_v60  ;;  %v5929_v39 = vadd.f32 %v5294_v46, %v166_v2 }
  0xad   :  { %12805 = vst [vmem:[#allocation131_spill] sm:$0xff] %v5907_v16  ;;  %v157_v35 = vmul.f32 %v5243_v19, %v147_v34  ;;  %v167_v16 = vmul.f32 %v5246_v20, %v147_v34  ;;  %v177_v37 = vmul.f32 %v5269_v30, %v147_v34  ;;  %942 = vrot.lane.b32.xlu0 %v5258_v22, %s4921_s17 }
  0xae   :  { %v5932_v1 = vadd.f32 %v5297_v47, %v176_v5  ;;  %v154_v14 = vmul.f32 %v5243_v19, %v144_v36  ;;  %v164_v40 = vmul.f32 %v5246_v20, %v144_v36  ;;  %944 = vrot.lane.b32.xlu1 %v5262_v24, %s4921_s17  ;;  %v174_v60 = vmul.f32 %v5269_v30, %v144_v36 }
  0xaf   :  { %v5939_v32 = vadd.f32 %v5300_v51, %v157_v35  ;;  %v139_v26 = vpop.permute.xlu1 %138  ;;  %v137_v22 = vpop.permute.xlu0 %136  ;;  %v5944_v46 = vmul.f32 %v5755_v23, %v5275_v33  ;;  %v5948_v47 = vmul.f32 %v5774_v12, %v5275_v33  ;;  %v5955_v24 = vadd.f32 %v5303_v17, %v167_v16 }
  0xb0   :  { %v5958_v51 = vadd.f32 %v5306_v55, %v177_v37  ;;  %v149_v2 = vsel %vm71_vm4, 0.5, %v139_v26  ;;  %v148_v23 = vsel %vm71_vm4, 0.5, %v137_v22  ;;  %v192_v17 = vadd.f32 %v5309_v56, %v154_v14  ;;  %v12808_v26 = vld [vmem:[#allocation18_spill] sm:$0xff]  ;;  %v12810_v56 = vld [vmem:[#allocation21_spill] sm:$0xff] }
  0xb1   :  { %12806 = vst [vmem:[#allocation132_spill] sm:$0xff] %v5944_v46  ;;  %12807 = vst [vmem:[#allocation133_spill] sm:$0xff] %v5948_v47  ;;  %v159_v5 = vmul.f32 %v5243_v19, %v149_v2  ;;  %v169_v12 = vmul.f32 %v5246_v20, %v149_v2  ;;  %v179_v34 = vmul.f32 %v5269_v30, %v149_v2  ;;  %946 = vrot.lane.b32.xlu0 %v5266_v25, %s4921_s17  ;;  %v12809_v2 = vld [vmem:[#allocation19_spill] sm:$0xff] }
  0xb2   :  { %v158_v36 = vmul.f32 %v5243_v19, %v148_v23  ;;  %v210_v55 = vadd.f32 %v5312_v57, %v164_v40  ;;  %v168_v16 = vmul.f32 %v5246_v20, %v148_v23  ;;  %v178_v35 = vmul.f32 %v5269_v30, %v148_v23  ;;  %948 = vrot.lane.b32.xlu1 %v5275_v33, %s4921_s17  ;;  %v12811_v23 = vld [vmem:[#allocation22_spill] sm:$0xff]  ;;  %v12812_v33 = vld [vmem:[#allocation23_spill] sm:$0xff] }
  0xb3   :  { %v228_v37 = vadd.f32 %v5319_v18, %v174_v60  ;;  %v5980_v22 = vadd.f32 %v12808_v26, %v159_v5  ;;  %v5983_v25 = vadd.f32 %v12809_v2, %v169_v12  ;;  %v5986_v14 = vadd.f32 %v12810_v56, %v179_v34  ;;  %v143_v57 = vpop.permute.xlu1 %142  ;;  %v141_v40 = vpop.permute.xlu0 %140 }
  0xb4   :  { %v5989_v47 = vadd.f32 %v12811_v23, %v158_v36  ;;  %v5992_v46 = vadd.f32 %v12812_v33, %v168_v16  ;;  %v151_v18 = vsel %vm71_vm4, 0.5, %v143_v57  ;;  %v150_v60 = vsel %vm71_vm4, 0.5, %v141_v40  ;;  %v12813_v36 = vld [vmem:[#allocation24_spill] sm:$0xff]  ;;  %v12815_v40 = vld [vmem:[#allocation25_spill] sm:$0xff]  ;;  %v12816_v33 = vld [vmem:[#allocation26_spill] sm:$0xff] }
  0xb5   :  { %v161_v5 = vmul.f32 %v5243_v19, %v151_v18  ;;  %v171_v12 = vmul.f32 %v5246_v20, %v151_v18  ;;  %v181_v34 = vmul.f32 %v5269_v30, %v151_v18  ;;  %v160_v26 = vmul.f32 %v5243_v19, %v150_v60  ;;  %1012 = vrot.lane.b32.xlu0 %v5139_v41, %s4920_s16  ;;  %v12817_v18 = vld [vmem:[#allocation27_spill] sm:$0xff] }
  0xb6   :  { %v6005_v16 = vadd.f32 %v12813_v36, %v178_v35  ;;  %v170_v2 = vmul.f32 %v5246_v20, %v150_v60  ;;  %v180_v56 = vmul.f32 %v5269_v30, %v150_v60  ;;  %1014 = vrot.lane.b32.xlu1 %v5148_v44, %s4920_s16  ;;  %v6012_v57 = vstv %s5950_s13  ;;  %v12819_v30 = vld [vmem:[#allocation29_spill] sm:$0xff]  ;;  %s7754_s13 = sld [smem:[#allocation2 + $0x48]] }
  0xb7   :  { %12814 = vst [vmem:[#allocation18_spill] sm:$0xff] %v6012_v57  ;;  %v6015_v23 = vadd.f32 %v12815_v40, %v161_v5  ;;  %v6018_v19 = vadd.f32 %v12816_v33, %v171_v12  ;;  %v6021_v15 = vadd.f32 %v12817_v18, %v181_v34  ;;  %v239_v35 = vpop.permute.xlu1 %238  ;;  %v237_v36 = vpop.permute.xlu0 %236  ;;  %v6024_v20 = vstv %s5952_s14  ;;  %v12821_v40 = vld [vmem:[#allocation20_spill] sm:$0xff]  ;;  %s7871_s14 = sld [smem:[#allocation2 + $0x13]] }
  0xb8   :  { %12818 = vst [vmem:[#allocation19_spill] sm:$0xff] %v6024_v20  ;;  %v6027_v60 = vadd.f32 %v12819_v30, %v160_v26  ;;  %v6030_v4 = vadd.f32 %v12820_v49, %v170_v2  ;;  %v253_v5 = vsel %vm72_vm5, 0.5, %v239_v35  ;;  %v252_v12 = vsel %vm72_vm5, 0.5, %v237_v36  ;;  %v12822_v33 = vld [vmem:[#allocation28_spill] sm:$0xff]  ;;  %v12823_v26 = vld [vmem:[#allocation17_spill] sm:$0xff] }
  0xb9   :  { %v263_v34 = vmul.f32 %v12821_v40, %v253_v5  ;;  %v281_v18 = vmul.f32 %v12822_v33, %v253_v5  ;;  %v299_v57 = vmul.f32 %v5388_v59, %v253_v5  ;;  %v262_v20 = vmul.f32 %v12821_v40, %v252_v12  ;;  %1016 = vrot.lane.b32.xlu0 %v12823_v26, %s4920_s16 }
  0xba   :  { %v6043_v49 = vadd.f32 %v5385_v31, %v180_v56  ;;  %v280_v2 = vmul.f32 %v12822_v33, %v252_v12  ;;  %v298_v35 = vmul.f32 %v5388_v59, %v252_v12  ;;  %1018 = vrot.lane.b32.xlu1 %v5166_v48, %s4920_s16  ;;  %v6050_v36 = vstv %s5976_s3  ;;  %s7891_s3 = sld [smem:[#allocation2 + $0x2e]] }
  0xbb   :  { %12824 = vst [vmem:[#allocation21_spill] sm:$0xff] %v6050_v36  ;;  %v6053_v30 = vadd.f32 %v263_v34, %v5896_v6  ;;  %v6056_v5 = vadd.f32 %v281_v18, %v5910_v7  ;;  %v6059_v50 = vadd.f32 %v299_v57, %v5913_v29  ;;  %v6061_v31 = vadd.f32 %v262_v20, %v192_v17  ;;  %v243_v56 = vpop.permute.xlu1 %242  ;;  %v241_v61 = vpop.permute.xlu0 %240 }
  0xbc   :  { %v6063_v38 = vadd.f32 %v280_v2, %v210_v55  ;;  %v6065_v12 = vadd.f32 %v298_v35, %v228_v37  ;;  %v255_v36 = vsel %vm72_vm5, 0.5, %v243_v56  ;;  %v254_v6 = vsel %vm72_vm5, 0.5, %v241_v61 }
  0xbd   :  { %v265_v7 = vmul.f32 %v12821_v40, %v255_v36  ;;  %v283_v34 = vmul.f32 %v12822_v33, %v255_v36  ;;  %v301_v29 = vmul.f32 %v5388_v59, %v255_v36  ;;  %v264_v17 = vmul.f32 %v12821_v40, %v254_v6  ;;  %1020 = vrot.lane.b32.xlu0 %v5179_v52, %s4920_s16 }
  0xbe   :  { %v282_v55 = vmul.f32 %v12822_v33, %v254_v6  ;;  %v300_v37 = vmul.f32 %v5388_v59, %v254_v6  ;;  %1022 = vrot.lane.b32.xlu1 %v5181_v53, %s4920_s16  ;;  %v12524_v61 = vrot.slane %v5490_v11, 1  ;;  %v1920_v57 = vrot.slane %v5540_v3, 1 }
  0xbf   :  { %v6086_v20 = vadd.f32 %v265_v7, %v5939_v32  ;;  %v6089_v18 = vadd.f32 %v283_v34, %v5955_v24  ;;  %v6092_v2 = vadd.f32 %v301_v29, %v5958_v51  ;;  %v6095_v35 = vadd.f32 %v264_v17, %v5921_v10  ;;  %v247_v36 = vpop.permute.xlu1 %246  ;;  %v245_v56 = vpop.permute.xlu0 %244  ;;  %v12825_v29 = vld [vmem:[#allocation15_spill] sm:$0xff] }
  0xc0   :  { %v6098_v6 = vadd.f32 %v282_v55, %v5929_v39  ;;  %v6101_v3 = vadd.f32 %v300_v37, %v5932_v1  ;;  %v257_v32 = vsel %vm72_vm5, 0.5, %v247_v36  ;;  %v256_v24 = vsel %vm72_vm5, 0.5, %v245_v56 }
  0xc1   :  { %v267_v51 = vmul.f32 %v12821_v40, %v257_v32  ;;  %v285_v7 = vmul.f32 %v12822_v33, %v257_v32  ;;  %v303_v10 = vmul.f32 %v5388_v59, %v257_v32  ;;  %v266_v34 = vmul.f32 %v12821_v40, %v256_v24  ;;  %1024 = vrot.lane.b32.xlu0 %v5183_v54, %s4920_s16 }
  0xc2   :  { %v284_v39 = vmul.f32 %v12822_v33, %v256_v24  ;;  %v302_v1 = vmul.f32 %v5388_v59, %v256_v24  ;;  %1026 = vrot.lane.b32.xlu1 %v12825_v29, %s4920_s16  ;;  %v6121_v17 = vsel %vm532_vm2, %v12524_v61, %v1920_v57 }
  0xc3   :  { %12826 = vst [vmem:[#allocation22_spill] sm:$0xff] %v6121_v17  ;;  %v6127_v37 = vadd.f32 %v267_v51, %v5980_v22  ;;  %v6130_v36 = vadd.f32 %v285_v7, %v5983_v25  ;;  %v6133_v56 = vadd.f32 %v303_v10, %v5986_v14  ;;  %v6136_v32 = vadd.f32 %v266_v34, %v5989_v47  ;;  %v251_v24 = vpop.permute.xlu1 %250  ;;  %v249_v61 = vpop.permute.xlu0 %248 }
  0xc4   :  { %v6139_v11 = vadd.f32 %v284_v39, %v5992_v46  ;;  %v6142_v55 = vadd.f32 %v302_v1, %v6005_v16  ;;  %v259_v22 = vsel %vm72_vm5, 0.5, %v251_v24  ;;  %v258_v25 = vsel %vm72_vm5, 0.5, %v249_v61 }
  0xc5   :  { %v269_v14 = vmul.f32 %v12821_v40, %v259_v22  ;;  %v287_v47 = vmul.f32 %v12822_v33, %v259_v22  ;;  %v305_v51 = vmul.f32 %v5388_v59, %v259_v22  ;;  %v268_v7 = vmul.f32 %v12821_v40, %v258_v25  ;;  %1144 = vrot.lane.b32.xlu0 %v5139_v41, %s4921_s17 }
  0xc6   :  { %v286_v46 = vmul.f32 %v12822_v33, %v258_v25  ;;  %v304_v16 = vmul.f32 %v5388_v59, %v258_v25  ;;  %1146 = vrot.lane.b32.xlu1 %v5148_v44, %s4921_s17  ;;  %v12827_v61 = vrot.slane %v5594_v8, 1  ;;  %v6165_v34 = vstv %s6083_s15  ;;  %v12831_v25 = vld [vmem:[#allocation32_spill] sm:$0xff]  ;;  %s7905_s15 = sld [smem:[#allocation2 + $0x49]] }
  0xc7   :  { %12829 = vst [vmem:[#allocation24_spill] sm:$0xff] %v6165_v34  ;;  %v6168_v40 = vadd.f32 %v269_v14, %v6015_v23  ;;  %v6171_v39 = vadd.f32 %v287_v47, %v6018_v19  ;;  %v6174_v33 = vadd.f32 %v305_v51, %v6021_v15  ;;  %v6177_v59 = vadd.f32 %v268_v7, %v6027_v60  ;;  %v317_v44 = vpop.permute.xlu1 %316  ;;  %v315_v1 = vpop.permute.xlu0 %314  ;;  %v12830_v15 = vld [vmem:[#allocation31_spill] sm:$0xff] }
  0xc8   :  { %v6162_v10 = vsel %vm532_vm2, %v1920_v57, %v12827_v61  ;;  %v6180_v57 = vadd.f32 %v286_v46, %v6030_v4  ;;  %v6183_v24 = vadd.f32 %v304_v16, %v6043_v49  ;;  %v331_v23 = vsel %vm71_vm4, 0.5, %v317_v44  ;;  %v12832_v14 = vld [vmem:[#allocation39_spill] sm:$0xff] }
  0xc9   :  { %12828 = vst [vmem:[#allocation23_spill] sm:$0xff] %v6162_v10  ;;  %v330_v19 = vsel %vm71_vm4, 0.5, %v315_v1  ;;  %v341_v22 = vmul.f32 %v12830_v15, %v331_v23  ;;  %v359_v60 = vmul.f32 %v12831_v25, %v331_v23  ;;  %v377_v47 = vmul.f32 %v12832_v14, %v331_v23  ;;  %1148 = vrot.lane.b32.xlu0 %v12823_v26, %s4921_s17 }
  0xca   :  { %v340_v51 = vmul.f32 %v12830_v15, %v330_v19  ;;  %v358_v4 = vmul.f32 %v12831_v25, %v330_v19  ;;  %v376_v49 = vmul.f32 %v12832_v14, %v330_v19  ;;  %1150 = vrot.lane.b32.xlu1 %v5166_v48, %s4921_s17  ;;  %v6201_v7 = vmul.f32 %v6165_v34, %v5139_v41 }
  0xcb   :  { %v6204_v46 = vstv %s6124_s18  ;;  %v349_v16 = vadd.f32 %v341_v22, %v6053_v30  ;;  %v367_v61 = vadd.f32 %v359_v60, %v6056_v5  ;;  %v385_v44 = vadd.f32 %v377_v47, %v6059_v50  ;;  %v321_v1 = vpop.permute.xlu1 %320  ;;  %v319_v23 = vpop.permute.xlu0 %318  ;;  %v12834_v22 = vld [vmem:[#allocation33_spill] sm:$0xff]  ;;  %v12835_v47 = vld [vmem:[#allocation34_spill] sm:$0xff]  ;;  %s7915_s18 = sld [smem:[#allocation2 + $0x14]] }
  0xcc   :  { %12833 = vst [vmem:[#allocation25_spill] sm:$0xff] %v6201_v7  ;;  %v348_v26 = vadd.f32 %v340_v51, %v6061_v31  ;;  %v366_v19 = vadd.f32 %v358_v4, %v6063_v38  ;;  %v384_v48 = vadd.f32 %v376_v49, %v6065_v12  ;;  %v333_v41 = vsel %vm71_vm4, 0.5, %v321_v1  ;;  %v12849_v7 = vld [vmem:[#allocation45_spill] sm:$0xff] }
  0xcd   :  { %v332_v9 = vsel %vm71_vm4, 0.5, %v319_v23  ;;  %v343_v30 = vmul.f32 %v12830_v15, %v333_v41  ;;  %v361_v5 = vmul.f32 %v12831_v25, %v333_v41  ;;  %v379_v50 = vmul.f32 %v12832_v14, %v333_v41  ;;  %1152 = vrot.lane.b32.xlu0 %v5179_v52, %s4921_s17 }
  0xce   :  { %v342_v31 = vmul.f32 %v12830_v15, %v332_v9  ;;  %v360_v38 = vmul.f32 %v12831_v25, %v332_v9  ;;  %v378_v12 = vmul.f32 %v12832_v14, %v332_v9  ;;  %1154 = vrot.lane.b32.xlu1 %v5181_v53, %s4921_s17  ;;  %v403_v60 = vadd.f32 %v12834_v22, %v349_v16 }
  0xcf   :  { %v421_v51 = vadd.f32 %v12835_v47, %v367_v61  ;;  %v351_v4 = vadd.f32 %v343_v30, %v6086_v20  ;;  %v369_v49 = vadd.f32 %v361_v5, %v6089_v18  ;;  %v6231_v1 = vadd.f32 %v379_v50, %v6092_v2  ;;  %v325_v23 = vpop.permute.xlu1 %324  ;;  %v323_v41 = vpop.permute.xlu0 %322  ;;  %v12836_v30 = vld [vmem:[#allocation35_spill] sm:$0xff]  ;;  %v12837_v50 = vld [vmem:[#allocation36_spill] sm:$0xff] }
  0xd0   :  { %v6234_v52 = vadd.f32 %v342_v31, %v6095_v35  ;;  %v6237_v9 = vadd.f32 %v360_v38, %v6098_v6  ;;  %v6240_v53 = vadd.f32 %v378_v12, %v6101_v3  ;;  %v335_v16 = vsel %vm71_vm4, 0.5, %v325_v23 }
  0xd1   :  { %v334_v20 = vsel %vm71_vm4, 0.5, %v323_v41  ;;  %v345_v18 = vmul.f32 %v12830_v15, %v335_v16  ;;  %v363_v2 = vmul.f32 %v12831_v25, %v335_v16  ;;  %v381_v35 = vmul.f32 %v12832_v14, %v335_v16  ;;  %1156 = vrot.lane.b32.xlu0 %v5183_v54, %s4921_s17 }
  0xd2   :  { %v344_v61 = vmul.f32 %v12830_v15, %v334_v20  ;;  %v362_v6 = vmul.f32 %v12831_v25, %v334_v20  ;;  %v380_v3 = vmul.f32 %v12832_v14, %v334_v20  ;;  %1158 = vrot.lane.b32.xlu1 %v12825_v29, %s4921_s17  ;;  %v439_v5 = vadd.f32 %v12836_v30, %v385_v44  ;;  %v12839_v20 = vld [vmem:[#allocation41_spill] sm:$0xff] }
  0xd3   :  { %v402_v31 = vadd.f32 %v12837_v50, %v348_v26  ;;  %v353_v38 = vadd.f32 %v345_v18, %v6127_v37  ;;  %v6260_v12 = vadd.f32 %v363_v2, %v6130_v36  ;;  %v6263_v22 = vadd.f32 %v381_v35, %v6133_v56  ;;  %v329_v47 = vpop.permute.xlu1 %328  ;;  %v327_v23 = vpop.permute.xlu0 %326  ;;  %v12840_v18 = vld [vmem:[#allocation37_spill] sm:$0xff]  ;;  %v12841_v35 = vld [vmem:[#allocation38_spill] sm:$0xff] }
  0xd4   :  { %v6266_v54 = vadd.f32 %v344_v61, %v6136_v32  ;;  %v6269_v41 = vadd.f32 %v362_v6, %v6139_v11  ;;  %v6272_v29 = vadd.f32 %v380_v3, %v6142_v55  ;;  %v337_v37 = vsel %vm71_vm4, 0.5, %v329_v47  ;;  %v12838_v11 = vld [vmem:[#allocation40_spill] sm:$0xff]  ;;  %v12843_v47 = vld [vmem:[#allocation46_spill] sm:$0xff] }
  0xd5   :  { %v336_v36 = vsel %vm71_vm4, 0.5, %v327_v23  ;;  %v347_v56 = vmul.f32 %v12830_v15, %v337_v37  ;;  %v365_v44 = vmul.f32 %v12831_v25, %v337_v37  ;;  %v383_v32 = vmul.f32 %v12832_v14, %v337_v37  ;;  %1250 = vrot.lane.b32.xlu0 %v12838_v11, %s4920_s16 }
  0xd6   :  { %v346_v26 = vmul.f32 %v12830_v15, %v336_v36  ;;  %v364_v55 = vmul.f32 %v12831_v25, %v336_v36  ;;  %v382_v16 = vmul.f32 %v12832_v14, %v336_v36  ;;  %1252 = vrot.lane.b32.xlu1 %v12839_v20, %s4920_s16  ;;  %v420_v2 = vadd.f32 %v12840_v18, %v366_v19 }
  0xd7   :  { %v438_v61 = vadd.f32 %v12841_v35, %v384_v48  ;;  %v6291_v6 = vadd.f32 %v347_v56, %v6168_v40  ;;  %v6294_v3 = vadd.f32 %v365_v44, %v6171_v39  ;;  %v6297_v15 = vadd.f32 %v383_v32, %v6174_v33  ;;  %v449_v14 = vpop.permute.xlu1 %448  ;;  %v447_v30 = vpop.permute.xlu0 %446  ;;  %v12842_v48 = vld [vmem:[#allocation43_spill] sm:$0xff]  ;;  %v12846_v44 = vld [vmem:[#allocation49_spill] sm:$0xff]  ;;  %v12847_v32 = vld [vmem:[#allocation42_spill] sm:$0xff] }
  0xd8   :  { %v6300_v25 = vadd.f32 %v346_v26, %v6177_v59  ;;  %v6303_v50 = vadd.f32 %v364_v55, %v6180_v57  ;;  %v6306_v19 = vadd.f32 %v382_v16, %v6183_v24  ;;  %v463_v40 = vsel %vm72_vm5, 0.5, %v449_v14  ;;  %v12844_v59 = vld [vmem:[#allocation53_spill] sm:$0xff]  ;;  %v12845_v57 = vld [vmem:[#allocation48_spill] sm:$0xff] }
  0xd9   :  { %v462_v39 = vsel %vm72_vm5, 0.5, %v447_v30  ;;  %v473_v33 = vmul.f32 %v12842_v48, %v463_v40  ;;  %v491_v23 = vmul.f32 %v12843_v47, %v463_v40  ;;  %v509_v37 = vmul.f32 %v12844_v59, %v463_v40  ;;  %1254 = vrot.lane.b32.xlu0 %v12845_v57, %s4920_s16  ;;  %v12848_v55 = vld [vmem:[#allocation44_spill] sm:$0xff] }
  0xda   :  { %v472_v36 = vmul.f32 %v12842_v48, %v462_v39  ;;  %v490_v24 = vmul.f32 %v12843_v47, %v462_v39  ;;  %v508_v56 = vmul.f32 %v12844_v59, %v462_v39  ;;  %1256 = vrot.lane.b32.xlu1 %v12846_v44, %s4920_s16  ;;  %v405_v26 = vadd.f32 %v12847_v32, %v351_v4 }
  0xdb   :  { %v423_v16 = vadd.f32 %v12848_v55, %v369_v49  ;;  %v6324_v18 = vadd.f32 %v473_v33, %v403_v60  ;;  %v6326_v35 = vadd.f32 %v491_v23, %v421_v51  ;;  %v6328_v14 = vadd.f32 %v509_v37, %v439_v5  ;;  %v453_v40 = vpop.permute.xlu1 %452  ;;  %v451_v8 = vpop.permute.xlu0 %450  ;;  %v12850_v5 = vld [vmem:[#allocation47_spill] sm:$0xff]  ;;  %v12854_v37 = vld [vmem:[#allocation61_spill] sm:$0xff] }
  0xdc   :  { %v6330_v30 = vadd.f32 %v472_v36, %v402_v31  ;;  %v6332_v34 = vadd.f32 %v490_v24, %v420_v2  ;;  %v6334_v39 = vadd.f32 %v508_v56, %v438_v61  ;;  %v441_v10 = vadd.f32 %v12849_v7, %v6231_v1  ;;  %v12851_v2 = vld [vmem:[#allocation57_spill] sm:$0xff]  ;;  %v12852_v61 = vld [vmem:[#allocation50_spill] sm:$0xff]  ;;  %v12853_v7 = vld [vmem:[#allocation51_spill] sm:$0xff] }
  0xdd   :  { %v465_v4 = vsel %vm72_vm5, 0.5, %v453_v40  ;;  %v404_v31 = vadd.f32 %v12850_v5, %v6234_v52  ;;  %1258 = vrot.lane.b32.xlu0 %v12851_v2, %s4920_s16  ;;  %v422_v33 = vadd.f32 %v12852_v61, %v6237_v9  ;;  %v440_v1 = vadd.f32 %v12853_v7, %v6240_v53  ;;  %v12855_v36 = vld [vmem:[#allocation54_spill] sm:$0xff]  ;;  %v12857_v61 = vld [vmem:[#allocation56_spill] sm:$0xff] }
  0xde   :  { %v475_v60 = vmul.f32 %v12842_v48, %v465_v4  ;;  %v493_v51 = vmul.f32 %v12843_v47, %v465_v4  ;;  %v511_v49 = vmul.f32 %v12844_v59, %v465_v4  ;;  %v464_v23 = vsel %vm72_vm5, 0.5, %v451_v8  ;;  %1260 = vrot.lane.b32.xlu1 %v12854_v37, %s4920_s16  ;;  %v12856_v8 = vld [vmem:[#allocation55_spill] sm:$0xff] }
  0xdf   :  { %v407_v24 = vadd.f32 %v12855_v36, %v353_v38  ;;  %v474_v55 = vmul.f32 %v12842_v48, %v464_v23  ;;  %v457_v9 = vpop.permute.xlu1 %456  ;;  %v455_v40 = vpop.permute.xlu0 %454  ;;  %v492_v53 = vmul.f32 %v12843_v47, %v464_v23  ;;  %v510_v4 = vmul.f32 %v12844_v59, %v464_v23 }
  0xe0   :  { %v6356_v56 = vadd.f32 %v475_v60, %v405_v26  ;;  %v6358_v52 = vadd.f32 %v493_v51, %v423_v16  ;;  %v6360_v32 = vadd.f32 %v511_v49, %v441_v10  ;;  %v425_v5 = vadd.f32 %v12856_v8, %v6260_v12  ;;  %v12858_v16 = vld [vmem:[#allocation58_spill] sm:$0xff]  ;;  %v12859_v51 = vld [vmem:[#allocation59_spill] sm:$0xff] }
  0xe1   :  { %v443_v38 = vadd.f32 %v12857_v61, %v6263_v22  ;;  %v6369_v26 = vadd.f32 %v474_v55, %v404_v31  ;;  %v467_v10 = vsel %vm72_vm5, 0.5, %v457_v9  ;;  %v406_v60 = vadd.f32 %v12858_v16, %v6266_v54  ;;  %1262 = vrot.lane.b32.xlu0 %v5583_v0, %s4920_s16  ;;  %v12860_v54 = vld [vmem:[#allocation60_spill] sm:$0xff]  ;;  %v12862_v16 = vld [vmem:[#allocation63_spill] sm:$0xff] }
  0xe2   :  { %v424_v49 = vadd.f32 %v12859_v51, %v6269_v41  ;;  %v6379_v7 = vadd.f32 %v492_v53, %v422_v33  ;;  %v6381_v12 = vadd.f32 %v510_v4, %v440_v1  ;;  %v477_v22 = vmul.f32 %v12842_v48, %v467_v10  ;;  %1264 = vrot.lane.b32.xlu1 %v5587_v13, %s4920_s16  ;;  %v12861_v33 = vld [vmem:[#allocation62_spill] sm:$0xff]  ;;  %v12863_v51 = vld [vmem:[#allocation64_spill] sm:$0xff] }
  0xe3   :  { %v495_v31 = vmul.f32 %v12843_v47, %v467_v10  ;;  %v513_v23 = vmul.f32 %v12844_v59, %v467_v10  ;;  %v442_v36 = vadd.f32 %v12860_v54, %v6272_v29  ;;  %v466_v41 = vsel %vm72_vm5, 0.5, %v455_v40  ;;  %v461_v55 = vpop.permute.xlu1 %460  ;;  %v459_v9 = vpop.permute.xlu0 %458 }
  0xe4   :  { %v409_v1 = vadd.f32 %v12861_v33, %v6291_v6  ;;  %v6394_v53 = vadd.f32 %v477_v22, %v407_v24  ;;  %v476_v8 = vmul.f32 %v12842_v48, %v466_v41  ;;  %v494_v61 = vmul.f32 %v12843_v47, %v466_v41 }
  0xe5   :  { %v6396_v4 = vadd.f32 %v495_v31, %v425_v5  ;;  %v6400_v10 = vadd.f32 %v513_v23, %v443_v38  ;;  %v512_v29 = vmul.f32 %v12844_v59, %v466_v41  ;;  %v427_v40 = vadd.f32 %v12862_v16, %v6294_v3  ;;  %1382 = vrot.lane.b32.xlu0 %v12838_v11, %s4921_s17  ;;  %v12864_v38 = vld [vmem:[#allocation65_spill] sm:$0xff]  ;;  %v12865_v41 = vld [vmem:[#allocation66_spill] sm:$0xff] }
  0xe6   :  { %v445_v54 = vadd.f32 %v12863_v51, %v6297_v15  ;;  %v6409_v6 = vadd.f32 %v476_v8, %v406_v60  ;;  %v6411_v24 = vadd.f32 %v494_v61, %v424_v49  ;;  %v469_v5 = vsel %vm72_vm5, 0.5, %v461_v55  ;;  %1384 = vrot.lane.b32.xlu1 %v12839_v20, %s4921_s17 }
  0xe7   :  { %v408_v22 = vadd.f32 %v12864_v38, %v6300_v25  ;;  %v6419_v3 = vadd.f32 %v512_v29, %v442_v36  ;;  %v479_v15 = vmul.f32 %v12842_v48, %v469_v5  ;;  %v497_v31 = vmul.f32 %v12843_v47, %v469_v5  ;;  %v556_v23 = vpop.permute.xlu1 %555  ;;  %v554_v49 = vpop.permute.xlu0 %553 }
  0xe8   :  { %v515_v60 = vmul.f32 %v12844_v59, %v469_v5  ;;  %v426_v33 = vadd.f32 %v12865_v41, %v6303_v50  ;;  %v444_v55 = vadd.f32 %v5591_v62, %v6306_v19  ;;  %v468_v25 = vsel %vm72_vm5, 0.5, %v459_v9  ;;  %v12866_v9 = vld [vmem:[#allocation70_spill] sm:$0xff] }
  0xe9   :  { %v570_v36 = vsel %vm71_vm4, 0.5, %v556_v23  ;;  %v6432_v8 = vadd.f32 %v479_v15, %v409_v1  ;;  %v6434_v61 = vadd.f32 %v497_v31, %v427_v40  ;;  %v478_v16 = vmul.f32 %v12842_v48, %v468_v25  ;;  %1386 = vrot.lane.b32.xlu0 %v12845_v57, %s4921_s17  ;;  %v12867_v40 = vld [vmem:[#allocation71_spill] sm:$0xff]  ;;  %v6450_v15 = vld [vmem:[#allocation8 + $0x80] sm:$0xff] }
  0xea   :  { %v6436_v29 = vadd.f32 %v515_v60, %v445_v54  ;;  %v496_v50 = vmul.f32 %v12843_v47, %v468_v25  ;;  %v514_v62 = vmul.f32 %v12844_v59, %v468_v25  ;;  %v580_v19 = vmul.f32 %v5597_v45, %v570_v36  ;;  %1388 = vrot.lane.b32.xlu1 %v12846_v44, %s4921_s17 }
  0xeb   :  { %v598_v51 = vmul.f32 %v12866_v9, %v570_v36  ;;  %v486_v1 = vadd.f32 %v478_v16, %v408_v22  ;;  %v616_v54 = vmul.f32 %v12867_v40, %v570_v36  ;;  %v569_v48 = vsel %vm71_vm4, 0.5, %v554_v49  ;;  %v560_v5 = vpop.permute.xlu1 %559  ;;  %v558_v38 = vpop.permute.xlu0 %557 }
  0xec   :  { %v6454_v47 = vmul.f32 %v6450_v15, %v6204_v46  ;;  %v504_v59 = vadd.f32 %v496_v50, %v426_v33  ;;  %v6456_v31 = vadd.f32 %v514_v62, %v444_v55  ;;  %v588_v60 = vadd.f32 %v580_v19, %v6324_v18  ;;  %v12869_v55 = vld [vmem:[#allocation76_spill] sm:$0xff] }
  0xed   :  { %v606_v22 = vadd.f32 %v598_v51, %v6326_v35  ;;  %v6461_v23 = vadd.f32 %v616_v54, %v6328_v14  ;;  %v579_v49 = vmul.f32 %v5597_v45, %v569_v48  ;;  %v597_v41 = vmul.f32 %v12866_v9, %v569_v48  ;;  %1390 = vrot.lane.b32.xlu0 %v12851_v2, %s4921_s17  ;;  %v12868_v35 = vld [vmem:[#allocation75_spill] sm:$0xff] }
  0xee   :  { %v615_v25 = vmul.f32 %v12867_v40, %v569_v48  ;;  %v572_v33 = vsel %vm71_vm4, 0.5, %v560_v5  ;;  %v571_v18 = vsel %vm71_vm4, 0.5, %v558_v38  ;;  %1392 = vrot.lane.b32.xlu1 %v12854_v37, %s4921_s17  ;;  %v6475_v14 = vadd.f32 %v12868_v35, %v588_v60 }
  0xef   :  { %v6478_v36 = vadd.f32 %v12869_v55, %v606_v22  ;;  %v587_v16 = vadd.f32 %v579_v49, %v6330_v30  ;;  %v605_v50 = vadd.f32 %v597_v41, %v6332_v34  ;;  %v582_v19 = vmul.f32 %v5597_v45, %v572_v33  ;;  %v564_v51 = vpop.permute.xlu1 %563  ;;  %v562_v54 = vpop.permute.xlu0 %561 }
  0xf0   :  { %v623_v62 = vadd.f32 %v615_v25, %v6334_v39  ;;  %v600_v48 = vmul.f32 %v12866_v9, %v572_v33  ;;  %v618_v5 = vmul.f32 %v12867_v40, %v572_v33  ;;  %v581_v38 = vmul.f32 %v5597_v45, %v571_v18 }
  0xf1   :  { %v599_v60 = vmul.f32 %v12866_v9, %v571_v18  ;;  %v6489_v22 = vadd.f32 %v582_v19, %v6356_v56  ;;  %v617_v30 = vmul.f32 %v12867_v40, %v571_v18  ;;  %v574_v34 = vsel %vm71_vm4, 0.5, %v564_v51  ;;  %1394 = vrot.lane.b32.xlu0 %v5583_v0, %s4921_s17 }
  0xf2   :  { %v573_v39 = vsel %vm71_vm4, 0.5, %v562_v54  ;;  %v6499_v49 = vadd.f32 %v600_v48, %v6358_v52  ;;  %v6502_v41 = vadd.f32 %v618_v5, %v6360_v32  ;;  %v589_v56 = vadd.f32 %v581_v38, %v6369_v26  ;;  %1396 = vrot.lane.b32.xlu1 %v5587_v13, %s4921_s17 }
  0xf3   :  { %v607_v25 = vadd.f32 %v599_v60, %v6379_v7  ;;  %v625_v33 = vadd.f32 %v617_v30, %v6381_v12  ;;  %v584_v18 = vmul.f32 %v5597_v45, %v574_v34  ;;  %v602_v35 = vmul.f32 %v12866_v9, %v574_v34  ;;  %v566_v52 = vpop.permute.xlu0 %565  ;;  %v568_v19 = vpop.permute.xlu1 %567 }
  0xf4   :  { %v620_v55 = vmul.f32 %v12867_v40, %v574_v34  ;;  %v583_v32 = vmul.f32 %v5597_v45, %v573_v39  ;;  %v601_v51 = vmul.f32 %v12866_v9, %v573_v39  ;;  %v619_v26 = vmul.f32 %v12867_v40, %v573_v39 }
  0xf5   :  { %v575_v7 = vsel %vm71_vm4, 0.5, %v566_v52  ;;  %v6518_v54 = vadd.f32 %v584_v18, %v6394_v53  ;;  %v6521_v12 = vadd.f32 %v602_v35, %v6396_v4  ;;  %1499 = vrot.lane.b32.xlu0 %v5649_v58, %s4920_s16  ;;  %v12870_v4 = vld [vmem:[#allocation79_spill] sm:$0xff]  ;;  %v576_v39 = vsel %vm71_vm4, 0.5, %v568_v19  ;;  %v12871_v35 = vld [vmem:[#allocation72_spill] sm:$0xff] }
  0xf6   :  { %v6524_v48 = vadd.f32 %v620_v55, %v6400_v10  ;;  %v585_v5 = vmul.f32 %v5597_v45, %v575_v7  ;;  %v591_v38 = vadd.f32 %v583_v32, %v6409_v6  ;;  %v609_v60 = vadd.f32 %v601_v51, %v6411_v24  ;;  %1501 = vrot.lane.b32.xlu1 %v12870_v4, %s4920_s16  ;;  %v12872_v51 = vld [vmem:[#allocation73_spill] sm:$0xff] }
  0xf7   :  { %v6532_v30 = vadd.f32 %v619_v26, %v6419_v3  ;;  %v603_v53 = vmul.f32 %v12866_v9, %v575_v7  ;;  %v621_v10 = vmul.f32 %v12867_v40, %v575_v7  ;;  %v686_v18 = vpop.permute.xlu0 %685  ;;  %v641_v6 = vadd.f32 %v12871_v35, %v587_v16  ;;  %v688_v55 = vpop.permute.xlu1 %687  ;;  %v12873_v7 = vld [vmem:[#allocation74_spill] sm:$0xff] }
  0xf8   :  { %v6537_v34 = vadd.f32 %v585_v5, %v486_v1  ;;  %v586_v3 = vmul.f32 %v5597_v45, %v576_v39  ;;  %v604_v52 = vmul.f32 %v12866_v9, %v576_v39  ;;  %v622_v32 = vmul.f32 %v12867_v40, %v576_v39 }
  0xf9   :  { %v6543_v24 = vadd.f32 %v603_v53, %v504_v59  ;;  %v6549_v1 = vadd.f32 %v621_v10, %v6456_v31  ;;  %v659_v26 = vadd.f32 %v12872_v51, %v605_v50  ;;  %v677_v5 = vadd.f32 %v12873_v7, %v623_v62  ;;  %1503 = vrot.lane.b32.xlu0 %v5699_v21, %s4920_s16  ;;  %v12874_v50 = vld [vmem:[#allocation77_spill] sm:$0xff] }
  0xfa   :  { %v701_v19 = vsel %vm72_vm5, 0.5, %v686_v18  ;;  %v6558_v59 = vadd.f32 %v586_v3, %v6432_v8  ;;  %v6561_v45 = vadd.f32 %v604_v52, %v6434_v61  ;;  %v6564_v9 = vadd.f32 %v622_v32, %v6436_v29  ;;  %1505 = vrot.lane.b32.xlu1 %v5703_v27, %s4920_s16  ;;  %v12875_v52 = vld [vmem:[#allocation80_spill] sm:$0xff] }
  0xfb   :  { %v711_v40 = vmul.f32 %v5676_v28, %v701_v19  ;;  %v729_v31 = vmul.f32 %v5679_v43, %v701_v19  ;;  %v747_v16 = vmul.f32 %v5695_v42, %v701_v19  ;;  %v678_v62 = vadd.f32 %v12874_v50, %v6461_v23  ;;  %v690_v61 = vpop.permute.xlu0 %689  ;;  %v692_v53 = vpop.permute.xlu1 %691  ;;  %v12876_v23 = vld [vmem:[#allocation81_spill] sm:$0xff] }
  0xfc   :  { %v702_v8 = vsel %vm72_vm5, 0.5, %v688_v55  ;;  %v643_v32 = vadd.f32 %v12875_v52, %v589_v56  ;;  %v661_v51 = vadd.f32 %v12876_v23, %v607_v25  ;;  %v12877_v55 = vld [vmem:[#allocation92_spill] sm:$0xff]  ;;  %v703_v56 = vsel %vm72_vm5, 0.5, %v690_v61  ;;  %v12880_v25 = vld [vmem:[#allocation83_spill] sm:$0xff]  ;;  %v12882_v50 = vld [vmem:[#allocation85_spill] sm:$0xff] }
  0xfd   :  { %v6575_v10 = vadd.f32 %v711_v40, %v641_v6  ;;  %v712_v29 = vmul.f32 %v5676_v28, %v702_v8  ;;  %v730_v39 = vmul.f32 %v5679_v43, %v702_v8  ;;  %v748_v18 = vmul.f32 %v5695_v42, %v702_v8  ;;  %1507 = vrot.lane.b32.xlu0 %v12877_v55, %s4920_s16  ;;  %v12878_v40 = vld [vmem:[#allocation82_spill] sm:$0xff]  ;;  %v12883_v52 = vld [vmem:[#allocation88_spill] sm:$0xff] }
  0xfe   :  { %v6580_v35 = vadd.f32 %v729_v31, %v659_v26  ;;  %v6582_v3 = vadd.f32 %v747_v16, %v677_v5  ;;  %v679_v26 = vadd.f32 %v12878_v40, %v625_v33  ;;  %v12879_v5 = vld [vmem:[#allocation93_spill] sm:$0xff]  ;;  %v644_v31 = vadd.f32 %v12880_v25, %v6489_v22  ;;  %v12881_v16 = vld [vmem:[#allocation84_spill] sm:$0xff] }
  0xff   :  { %v6589_v6 = vadd.f32 %v712_v29, %v6475_v14  ;;  %v6592_v7 = vadd.f32 %v730_v39, %v6478_v36  ;;  %v6594_v19 = vadd.f32 %v748_v18, %v678_v62  ;;  %1509 = vrot.lane.b32.xlu1 %v12879_v5, %s4920_s16  ;;  %v662_v14 = vadd.f32 %v12881_v16, %v6499_v49  ;;  %v694_v8 = vpop.permute.xlu0 %693  ;;  %v696_v62 = vpop.permute.xlu1 %695 }
 0x100   :  { %v680_v36 = vadd.f32 %v12882_v50, %v6502_v41  ;;  %v713_v29 = vmul.f32 %v5676_v28, %v703_v56  ;;  %v731_v33 = vmul.f32 %v5679_v43, %v703_v56  ;;  %v749_v39 = vmul.f32 %v5695_v42, %v703_v56  ;;  %v12884_v41 = vld [vmem:[#allocation101_spill] sm:$0xff] }
 0x101   :  { %v704_v61 = vsel %vm72_vm5, 0.5, %v692_v53  ;;  %v645_v23 = vadd.f32 %v12883_v52, %v591_v38  ;;  %1511 = vrot.lane.b32.xlu0 %v12884_v41, %s4920_s16  ;;  %v12885_v56 = vld [vmem:[#allocation89_spill] sm:$0xff]  ;;  %v12886_v53 = vld [vmem:[#allocation102_spill] sm:$0xff] }
 0x102   :  { %v714_v18 = vmul.f32 %v5676_v28, %v704_v61  ;;  %v732_v22 = vmul.f32 %v5679_v43, %v704_v61  ;;  %v750_v49 = vmul.f32 %v5695_v42, %v704_v61  ;;  %v6618_v40 = vadd.f32 %v713_v29, %v643_v32  ;;  %v12887_v38 = vld [vmem:[#allocation90_spill] sm:$0xff] }
 0x103   :  { %v6620_v25 = vadd.f32 %v731_v33, %v661_v51  ;;  %v6622_v16 = vadd.f32 %v749_v39, %v679_v26  ;;  %v663_v50 = vadd.f32 %v12885_v56, %v609_v60  ;;  %1513 = vrot.lane.b32.xlu1 %v12886_v53, %s4920_s16  ;;  %v681_v52 = vadd.f32 %v12887_v38, %v6532_v30  ;;  %v698_v32 = vpop.permute.xlu0 %697  ;;  %v700_v29 = vpop.permute.xlu1 %699  ;;  %v12888_v26 = vld [vmem:[#allocation91_spill] sm:$0xff]  ;;  %v12889_v33 = vld [vmem:[#allocation94_spill] sm:$0xff] }
 0x104   :  { %v6627_v13 = vadd.f32 %v714_v18, %v644_v31  ;;  %v6629_v0 = vadd.f32 %v732_v22, %v662_v14  ;;  %v6631_v61 = vadd.f32 %v750_v49, %v680_v36  ;;  %v705_v51 = vsel %vm72_vm5, 0.5, %v694_v8  ;;  %v12890_v31 = vld [vmem:[#allocation95_spill] sm:$0xff] }
 0x105   :  { %v646_v60 = vadd.f32 %v12888_v26, %v6518_v54  ;;  %v664_v39 = vadd.f32 %v12889_v33, %v6521_v12  ;;  %v682_v14 = vadd.f32 %v12890_v31, %v6524_v48  ;;  %v715_v36 = vmul.f32 %v5676_v28, %v705_v51  ;;  %1631 = vrot.lane.b32.xlu0 %v5649_v58, %s4921_s17  ;;  %v12891_v48 = vld [vmem:[#allocation96_spill] sm:$0xff] }
 0x106   :  { %v733_v18 = vmul.f32 %v5679_v43, %v705_v51  ;;  %v751_v30 = vmul.f32 %v5695_v42, %v705_v51  ;;  %v706_v22 = vsel %vm72_vm5, 0.5, %v696_v62  ;;  %v647_v49 = vadd.f32 %v12891_v48, %v6537_v34  ;;  %v12892_v51 = vld [vmem:[#allocation97_spill] sm:$0xff]  ;;  %v12893_v34 = vld [vmem:[#allocation98_spill] sm:$0xff] }
 0x107   :  { %v716_v54 = vmul.f32 %v5676_v28, %v706_v22  ;;  %v734_v8 = vmul.f32 %v5679_v43, %v706_v22  ;;  %v752_v12 = vmul.f32 %v5695_v42, %v706_v22  ;;  %1633 = vrot.lane.b32.xlu1 %v12870_v4, %s4921_s17  ;;  %v6657_v56 = vadd.f32 %v715_v36, %v645_v23  ;;  %v803_v33 = vpop.permute.xlu0 %802  ;;  %v805_v31 = vpop.permute.xlu1 %804  ;;  %v12895_v36 = vld [vmem:[#allocation100_spill] sm:$0xff] }
 0x108   :  { %v6659_v38 = vadd.f32 %v733_v18, %v663_v50  ;;  %v6661_v62 = vadd.f32 %v751_v30, %v681_v52  ;;  %v665_v26 = vadd.f32 %v12892_v51, %v6543_v24  ;;  %v683_v48 = vadd.f32 %v12893_v34, %v6549_v1  ;;  %v12894_v50 = vld [vmem:[#allocation99_spill] sm:$0xff] }
 0x109   :  { %v6665_v58 = vadd.f32 %v716_v54, %v646_v60  ;;  %v6667_v22 = vadd.f32 %v734_v8, %v664_v39  ;;  %v6669_v37 = vadd.f32 %v752_v12, %v682_v14  ;;  %v707_v23 = vsel %vm72_vm5, 0.5, %v698_v32  ;;  %v12896_v18 = vld [vmem:[#allocation103_spill] sm:$0xff]  ;;  %1635 = vrot.lane.b32.xlu0 %v5699_v21, %s4921_s17 }
 0x10a   :  { %v648_v52 = vadd.f32 %v12894_v50, %v6558_v59  ;;  %v666_v24 = vadd.f32 %v12895_v36, %v6561_v45  ;;  %v684_v60 = vadd.f32 %v12896_v18, %v6564_v9  ;;  %v717_v39 = vmul.f32 %v5676_v28, %v707_v23 }
 0x10b   :  { %v735_v14 = vmul.f32 %v5679_v43, %v707_v23  ;;  %v753_v1 = vmul.f32 %v5695_v42, %v707_v23  ;;  %v708_v32 = vsel %vm72_vm5, 0.5, %v700_v29  ;;  %1637 = vrot.lane.b32.xlu1 %v5703_v27, %s4921_s17  ;;  %v818_v30 = vsel %vm71_vm4, 0.5, %v803_v33  ;;  %v807_v54 = vpop.permute.xlu0 %806  ;;  %v809_v8 = vpop.permute.xlu1 %808  ;;  %v12897_v29 = vld [vmem:[#allocation104_spill] sm:$0xff]  ;;  %v12899_v33 = vld [vmem:[#allocation113_spill] sm:$0xff] }
 0x10c   :  { %v718_v59 = vmul.f32 %v5676_v28, %v708_v32  ;;  %v736_v45 = vmul.f32 %v5679_v43, %v708_v32  ;;  %v754_v9 = vmul.f32 %v5695_v42, %v708_v32  ;;  %v6695_v12 = vadd.f32 %v717_v39, %v647_v49  ;;  %v12898_v42 = vld [vmem:[#allocation105_spill] sm:$0xff] }
 0x10d   :  { %v6697_v51 = vadd.f32 %v735_v14, %v665_v26  ;;  %v6699_v34 = vadd.f32 %v753_v1, %v683_v48  ;;  %v828_v23 = vmul.f32 %v12897_v29, %v818_v30  ;;  %v846_v36 = vmul.f32 %v12898_v42, %v818_v30  ;;  %1639 = vrot.lane.b32.xlu0 %v12877_v55, %s4921_s17 }
 0x10e   :  { %v6702_v50 = vadd.f32 %v718_v59, %v648_v52  ;;  %v6704_v28 = vadd.f32 %v736_v45, %v666_v24  ;;  %v6706_v43 = vadd.f32 %v754_v9, %v684_v60  ;;  %v864_v26 = vmul.f32 %v12899_v33, %v818_v30 }
 0x10f   :  { %v836_v49 = vadd.f32 %v828_v23, %v6575_v10  ;;  %v819_v48 = vsel %vm71_vm4, 0.5, %v805_v31  ;;  %v820_v52 = vsel %vm71_vm4, 0.5, %v807_v54  ;;  %1641 = vrot.lane.b32.xlu1 %v12879_v5, %s4921_s17  ;;  %v854_v24 = vadd.f32 %v846_v36, %v6580_v35  ;;  %v811_v10 = vpop.permute.xlu0 %810  ;;  %v813_v14 = vpop.permute.xlu1 %812 }
 0x110   :  { %v829_v18 = vmul.f32 %v12897_v29, %v819_v48  ;;  %v847_v60 = vmul.f32 %v12898_v42, %v819_v48  ;;  %v865_v39 = vmul.f32 %v12899_v33, %v819_v48  ;;  %v872_v1 = vadd.f32 %v864_v26, %v6582_v3 }
 0x111   :  { %v830_v31 = vmul.f32 %v12897_v29, %v820_v52  ;;  %v848_v32 = vmul.f32 %v12898_v42, %v820_v52  ;;  %v866_v59 = vmul.f32 %v12899_v33, %v820_v52  ;;  %v821_v30 = vsel %vm71_vm4, 0.5, %v809_v8  ;;  %1643 = vrot.lane.b32.xlu0 %v12884_v41, %s4921_s17 }
 0x112   :  { %v837_v45 = vadd.f32 %v829_v18, %v6589_v6  ;;  %v855_v35 = vadd.f32 %v847_v60, %v6592_v7  ;;  %v873_v9 = vadd.f32 %v865_v39, %v6594_v19  ;;  %v831_v6 = vmul.f32 %v12897_v29, %v821_v30 }
 0x113   :  { %v6735_v3 = vadd.f32 %v830_v31, %v6618_v40  ;;  %v6738_v54 = vadd.f32 %v848_v32, %v6620_v25  ;;  %v6741_v23 = vadd.f32 %v866_v59, %v6622_v16  ;;  %1645 = vrot.lane.b32.xlu1 %v12886_v53, %s4921_s17  ;;  %v849_v7 = vmul.f32 %v12898_v42, %v821_v30  ;;  %v815_v25 = vpop.permute.xlu0 %814  ;;  %v817_v36 = vpop.permute.xlu1 %816  ;;  %v6780_v32 = vld [vmem:[#allocation8 + $0x108] sm:$0xff]  ;;  %v12908_v53 = vld [vmem:[#allocation121_spill] sm:$0xff] }
 0x114   :  { %v867_v19 = vmul.f32 %v12899_v33, %v821_v30  ;;  %v822_v8 = vsel %vm71_vm4, 0.5, %v811_v10  ;;  %v823_v40 = vsel %vm71_vm4, 0.5, %v813_v14  ;;  %v6753_v16 = vadd.f32 %v831_v6, %v6627_v13  ;;  %v6766_v14 = vld [vmem:[#allocation8 + $0x100] sm:$0xff] }
 0x115   :  { %v832_v26 = vmul.f32 %v12897_v29, %v822_v8  ;;  %v850_v48 = vmul.f32 %v12898_v42, %v822_v8  ;;  %v868_v52 = vmul.f32 %v12899_v33, %v822_v8  ;;  %v6759_v18 = vadd.f32 %v849_v7, %v6629_v0  ;;  %1709 = vrot.lane.b32.xlu0 %v6766_v14, %s4920_s16 }
 0x116   :  { %v6762_v60 = vadd.f32 %v867_v19, %v6631_v61  ;;  %v833_v39 = vmul.f32 %v12897_v29, %v823_v40  ;;  %v851_v10 = vmul.f32 %v12898_v42, %v823_v40  ;;  %v869_v61 = vmul.f32 %v12899_v33, %v823_v40 }
 0x117   :  { %v6771_v13 = vadd.f32 %v832_v26, %v6657_v56  ;;  %v6774_v31 = vadd.f32 %v850_v48, %v6659_v38  ;;  %v6777_v0 = vadd.f32 %v868_v52, %v6661_v62  ;;  %1711 = vrot.lane.b32.xlu1 %v6780_v32, %s4920_s16  ;;  %v824_v56 = vsel %vm71_vm4, 0.5, %v815_v25  ;;  %v935_v62 = vpop.permute.xlu0 %934  ;;  %v937_v6 = vpop.permute.xlu1 %936  ;;  %v12900_v26 = vld [vmem:[#allocation106_spill] sm:$0xff] }
 0x118   :  { %v6785_v59 = vadd.f32 %v833_v39, %v6665_v58  ;;  %v6788_v30 = vadd.f32 %v851_v10, %v6667_v22  ;;  %v825_v38 = vsel %vm71_vm4, 0.5, %v817_v36  ;;  %v6795_v7 = vadd.f32 %v869_v61, %v6669_v37  ;;  %v6804_v36 = vld [vmem:[#allocation8 + $0x110] sm:$0xff]  ;;  %v6818_v10 = vld [vmem:[#allocation8 + $0x118] sm:$0xff] }
 0x119   :  { %v834_v19 = vmul.f32 %v12897_v29, %v824_v56  ;;  %v852_v8 = vmul.f32 %v12898_v42, %v824_v56  ;;  %v870_v58 = vmul.f32 %v12899_v33, %v824_v56  ;;  %v835_v22 = vmul.f32 %v12897_v29, %v825_v38  ;;  %1713 = vrot.lane.b32.xlu0 %v6804_v36, %s4920_s16  ;;  %v12901_v29 = vld [vmem:[#allocation107_spill] sm:$0xff]  ;;  %v12903_v56 = vld [vmem:[#allocation108_spill] sm:$0xff] }
 0x11a   :  { %v853_v40 = vmul.f32 %v12898_v42, %v825_v38  ;;  %v871_v25 = vmul.f32 %v12899_v33, %v825_v38  ;;  %v890_v48 = vadd.f32 %v12900_v26, %v836_v49  ;;  %v908_v42 = vadd.f32 %v12901_v29, %v854_v24 }
 0x11b   :  { %v6809_v37 = vadd.f32 %v834_v19, %v6695_v12  ;;  %v6812_v52 = vadd.f32 %v852_v8, %v6697_v51  ;;  %v6815_v39 = vadd.f32 %v870_v58, %v6699_v34  ;;  %1715 = vrot.lane.b32.xlu1 %v6818_v10, %s4920_s16  ;;  %v6823_v49 = vadd.f32 %v835_v22, %v6702_v50  ;;  %v12902_v51 = vld [vmem:[#allocation109_spill] sm:$0xff]  ;;  %v939_v34 = vpop.permute.xlu0 %938  ;;  %v12904_v19 = vld [vmem:[#allocation110_spill] sm:$0xff]  ;;  %v12905_v58 = vld [vmem:[#allocation111_spill] sm:$0xff] }
 0x11c   :  { %v6826_v33 = vadd.f32 %v853_v40, %v6704_v28  ;;  %v6829_v12 = vadd.f32 %v871_v25, %v6706_v43  ;;  %v926_v61 = vadd.f32 %v12902_v51, %v872_v1  ;;  %v950_v24 = vsel %vm72_vm5, 0.5, %v935_v62  ;;  %v941_v50 = vpop.permute.xlu1 %940  ;;  %v12906_v22 = vld [vmem:[#allocation117_spill] sm:$0xff]  ;;  %v12907_v28 = vld [vmem:[#allocation118_spill] sm:$0xff]  ;;  %v12909_v62 = vld [vmem:[#allocation112_spill] sm:$0xff] }
 0x11d   :  { %v891_v38 = vadd.f32 %v12903_v56, %v837_v45  ;;  %v909_v8 = vadd.f32 %v12904_v19, %v855_v35  ;;  %v927_v26 = vadd.f32 %v12905_v58, %v873_v9  ;;  %v960_v29 = vmul.f32 %v12906_v22, %v950_v24  ;;  %v6842_v25 = vld [vmem:[#allocation8 + $0x120] sm:$0xff]  ;;  %v6851_v56 = vld [vmem:[#allocation8 + $0x128] sm:$0xff] }
 0x11e   :  { %v978_v40 = vmul.f32 %v12907_v28, %v950_v24  ;;  %v996_v43 = vmul.f32 %v12908_v53, %v950_v24  ;;  %v951_v1 = vsel %vm72_vm5, 0.5, %v937_v6  ;;  %1717 = vrot.lane.b32.xlu0 %v6842_v25, %s4920_s16  ;;  %v892_v51 = vadd.f32 %v12909_v62, %v6735_v3  ;;  %v12910_v58 = vld [vmem:[#allocation114_spill] sm:$0xff]  ;;  %v12911_v62 = vld [vmem:[#allocation115_spill] sm:$0xff] }
 0x11f   :  { %v961_v45 = vmul.f32 %v12906_v22, %v951_v1  ;;  %v979_v35 = vmul.f32 %v12907_v28, %v951_v1  ;;  %v997_v9 = vmul.f32 %v12908_v53, %v951_v1  ;;  %1719 = vrot.lane.b32.xlu1 %v6851_v56, %s4920_s16  ;;  %v6855_v6 = vadd.f32 %v960_v29, %v890_v48  ;;  %v943_v5 = vpop.permute.xlu0 %942  ;;  %v12913_v29 = vld [vmem:[#allocation119_spill] sm:$0xff] }
 0x120   :  { %v6857_v24 = vadd.f32 %v978_v40, %v908_v42  ;;  %v6859_v19 = vadd.f32 %v996_v43, %v926_v61  ;;  %v910_v41 = vadd.f32 %v12910_v58, %v6738_v54  ;;  %v928_v27 = vadd.f32 %v12911_v62, %v6741_v23  ;;  %v945_v21 = vpop.permute.xlu1 %944  ;;  %v12912_v42 = vld [vmem:[#allocation116_spill] sm:$0xff]  ;;  %v6888_v43 = vld [vmem:[#allocation8 + $0x138] sm:$0xff] }
 0x121   :  { %v6863_v55 = vadd.f32 %v961_v45, %v891_v38  ;;  %v6865_v1 = vadd.f32 %v979_v35, %v909_v8  ;;  %v6867_v3 = vadd.f32 %v997_v9, %v927_v26  ;;  %v952_v48 = vsel %vm72_vm5, 0.5, %v939_v34  ;;  %v12914_v38 = vld [vmem:[#allocation120_spill] sm:$0xff]  ;;  %v12915_v35 = vld [vmem:[#allocation122_spill] sm:$0xff] }
 0x122   :  { %v893_v61 = vadd.f32 %v12912_v42, %v6753_v16  ;;  %v911_v54 = vadd.f32 %v12913_v29, %v6759_v18  ;;  %v929_v40 = vadd.f32 %v12914_v38, %v6762_v60  ;;  %v6879_v8 = vld [vmem:[#allocation8 + $0x130] sm:$0xff]  ;;  %v962_v23 = vmul.f32 %v12906_v22, %v952_v48  ;;  %v12916_v42 = vld [vmem:[#allocation123_spill] sm:$0xff] }
 0x123   :  { %1721 = vrot.lane.b32.xlu0 %v6879_v8, %s4920_s16  ;;  %v980_v26 = vmul.f32 %v12907_v28, %v952_v48  ;;  %v998_v34 = vmul.f32 %v12908_v53, %v952_v48  ;;  %v953_v16 = vsel %vm72_vm5, 0.5, %v941_v50  ;;  %1723 = vrot.lane.b32.xlu1 %v6888_v43, %s4920_s16  ;;  %v894_v9 = vadd.f32 %v12915_v35, %v6771_v13  ;;  %v947_v58 = vpop.permute.xlu0 %946 }
 0x124   :  { %v963_v18 = vmul.f32 %v12906_v22, %v953_v16  ;;  %v981_v60 = vmul.f32 %v12907_v28, %v953_v16  ;;  %v999_v45 = vmul.f32 %v12908_v53, %v953_v16  ;;  %v6897_v62 = vadd.f32 %v962_v23, %v892_v51  ;;  %v949_v38 = vpop.permute.xlu1 %948  ;;  %v12917_v16 = vld [vmem:[#allocation124_spill] sm:$0xff] }
 0x125   :  { %v6899_v48 = vadd.f32 %v980_v26, %v910_v41  ;;  %v6901_v50 = vadd.f32 %v998_v34, %v928_v27  ;;  %v912_v29 = vadd.f32 %v12916_v42, %v6774_v31  ;;  %v930_v13 = vadd.f32 %v12917_v16, %v6777_v0  ;;  %v12918_v41 = vld [vmem:[#allocation125_spill] sm:$0xff]  ;;  %v12919_v31 = vld [vmem:[#allocation126_spill] sm:$0xff] }
 0x126   :  { %v6905_v4 = vadd.f32 %v963_v18, %v893_v61  ;;  %v6907_v2 = vadd.f32 %v981_v60, %v911_v54  ;;  %v6909_v44 = vadd.f32 %v999_v45, %v929_v40  ;;  %v954_v27 = vsel %vm72_vm5, 0.5, %v943_v5  ;;  %v12920_v54 = vld [vmem:[#allocation127_spill] sm:$0xff]  ;;  %v12922_v42 = vld [vmem:[#allocation129_spill] sm:$0xff] }
 0x127   :  { %1841 = vrot.lane.b32.xlu0 %v6766_v14, %s4921_s17  ;;  %v895_v51 = vadd.f32 %v12918_v41, %v6785_v59  ;;  %v913_v61 = vadd.f32 %v12919_v31, %v6788_v30  ;;  %v931_v23 = vadd.f32 %v12920_v54, %v6795_v7  ;;  %1843 = vrot.lane.b32.xlu1 %v6780_v32, %s4921_s17  ;;  %v955_v5 = vsel %vm72_vm5, 0.5, %v945_v21  ;;  %v1013_v26 = vpop.permute.xlu0 %1012  ;;  %v12921_v7 = vld [vmem:[#allocation128_spill] sm:$0xff]  ;;  %v12926_v31 = vld [vmem:[#allocation133_spill] sm:$0xff] }
 0x128   :  { %v964_v0 = vmul.f32 %v12906_v22, %v954_v27  ;;  %v982_v40 = vmul.f32 %v12907_v28, %v954_v27  ;;  %v1000_v14 = vmul.f32 %v12908_v53, %v954_v27  ;;  %v965_v59 = vmul.f32 %v12906_v22, %v955_v5  ;;  %v1015_v32 = vpop.permute.xlu1 %1014 }
 0x129   :  { %v983_v30 = vmul.f32 %v12907_v28, %v955_v5  ;;  %v1001_v34 = vmul.f32 %v12908_v53, %v955_v5  ;;  %v896_v18 = vadd.f32 %v12921_v7, %v6809_v37  ;;  %v914_v21 = vadd.f32 %v12922_v42, %v6812_v52  ;;  %v12923_v37 = vld [vmem:[#allocation130_spill] sm:$0xff]  ;;  %v12924_v52 = vld [vmem:[#allocation131_spill] sm:$0xff] }
 0x12a   :  { %v6935_v60 = vadd.f32 %v964_v0, %v894_v9  ;;  %v6937_v45 = vadd.f32 %v982_v40, %v912_v29  ;;  %v6939_v35 = vadd.f32 %v1000_v14, %v930_v13  ;;  %v6945_v16 = vadd.f32 %v965_v59, %v895_v51 }
 0x12b   :  { %1845 = vrot.lane.b32.xlu0 %v6804_v36, %s4921_s17  ;;  %v6947_v27 = vadd.f32 %v983_v30, %v913_v61  ;;  %v6949_v41 = vadd.f32 %v1001_v34, %v931_v23  ;;  %v932_v9 = vadd.f32 %v12923_v37, %v6815_v39  ;;  %1847 = vrot.lane.b32.xlu1 %v6818_v10, %s4921_s17  ;;  %v956_v29 = vsel %vm72_vm5, 0.5, %v947_v58  ;;  %v12925_v36 = vld [vmem:[#allocation132_spill] sm:$0xff]  ;;  %v1017_v54 = vpop.permute.xlu0 %1016 }
 0x12c   :  { %v897_v13 = vadd.f32 %v12924_v52, %v6823_v49  ;;  %v915_v51 = vadd.f32 %v12925_v36, %v6826_v33  ;;  %v933_v61 = vadd.f32 %v12926_v31, %v6829_v12  ;;  %v966_v23 = vmul.f32 %v12906_v22, %v956_v29  ;;  %v1019_v58 = vpop.permute.xlu1 %1018 }
 0x12d   :  { %v984_v39 = vmul.f32 %v12907_v28, %v956_v29  ;;  %v1002_v0 = vmul.f32 %v12908_v53, %v956_v29  ;;  %v957_v40 = vsel %vm72_vm5, 0.5, %v949_v38  ;;  %v1028_v12 = vsel %vm71_vm4, 0.5, %v1013_v26  ;;  %v12927_v38 = vld [vmem:[#allocation18_spill] sm:$0xff]  ;;  %v12928_v26 = vld [vmem:[#allocation19_spill] sm:$0xff] }
 0x12e   :  { %v967_v14 = vmul.f32 %v12906_v22, %v957_v40  ;;  %v985_v49 = vmul.f32 %v12907_v28, %v957_v40  ;;  %v1003_v33 = vmul.f32 %v12908_v53, %v957_v40  ;;  %v6975_v5 = vadd.f32 %v966_v23, %v896_v18 }
 0x12f   :  { %1849 = vrot.lane.b32.xlu0 %v6842_v25, %s4921_s17  ;;  %v6977_v59 = vadd.f32 %v984_v39, %v914_v21  ;;  %v6979_v30 = vadd.f32 %v1002_v0, %v932_v9  ;;  %v1038_v34 = vmul.f32 %v12927_v38, %v1028_v12  ;;  %1851 = vrot.lane.b32.xlu1 %v6851_v56, %s4921_s17  ;;  %v1021_v42 = vpop.permute.xlu0 %1020  ;;  %v12929_v21 = vld [vmem:[#allocation21_spill] sm:$0xff]  ;;  %v1029_v9 = vsel %vm71_vm4, 0.5, %v1015_v32 }
 0x130   :  { %v6984_v22 = vadd.f32 %v967_v14, %v897_v13  ;;  %v6986_v53 = vadd.f32 %v985_v49, %v915_v51  ;;  %v6988_v28 = vadd.f32 %v1003_v33, %v933_v61  ;;  %v1056_v7 = vmul.f32 %v12928_v26, %v1028_v12  ;;  %v1023_v52 = vpop.permute.xlu1 %1022 }
 0x131   :  { %v6992_v18 = vadd.f32 %v1038_v34, %v6855_v6  ;;  %v1074_v37 = vmul.f32 %v12929_v21, %v1028_v12  ;;  %v1030_v29 = vsel %vm71_vm4, 0.5, %v1017_v54  ;;  %v1039_v36 = vmul.f32 %v12927_v38, %v1029_v9 }
 0x132   :  { %v7000_v13 = vadd.f32 %v1056_v7, %v6857_v24  ;;  %v1057_v51 = vmul.f32 %v12928_v26, %v1029_v9  ;;  %v1075_v31 = vmul.f32 %v12929_v21, %v1029_v9  ;;  %v1040_v32 = vmul.f32 %v12927_v38, %v1030_v29  ;;  %v12930_v7 = vld [vmem:[#allocation23_spill] sm:$0xff] }
 0x133   :  { %1853 = vrot.lane.b32.xlu0 %v6879_v8, %s4921_s17  ;;  %v7008_v6 = vadd.f32 %v1074_v37, %v6859_v19  ;;  %v1058_v61 = vmul.f32 %v12928_v26, %v1030_v29  ;;  %v1076_v54 = vmul.f32 %v12929_v21, %v1030_v29  ;;  %1855 = vrot.lane.b32.xlu1 %v6888_v43, %s4921_s17  ;;  %v1031_v19 = vsel %vm71_vm4, 0.5, %v1019_v58  ;;  %v1025_v0 = vpop.permute.xlu0 %1024 }
 0x134   :  { %v7016_v24 = vadd.f32 %v1039_v36, %v6863_v55  ;;  %v7019_v23 = vadd.f32 %v1057_v51, %v6865_v1  ;;  %v7022_v39 = vadd.f32 %v1075_v31, %v6867_v3  ;;  %v7029_v40 = vadd.f32 %v1040_v32, %v6897_v62  ;;  %v1027_v49 = vpop.permute.xlu1 %1026 }
 0x135   :  { %v7032_v14 = vadd.f32 %v1058_v61, %v6899_v48  ;;  %v7035_v55 = vadd.f32 %v1076_v54, %v6901_v50  ;;  %v1041_v1 = vmul.f32 %v12927_v38, %v1031_v19  ;;  %v1059_v3 = vmul.f32 %v12928_v26, %v1031_v19 }
 0x136   :  { %v1077_v33 = vmul.f32 %v12929_v21, %v1031_v19  ;;  %v1032_v58 = vsel %vm71_vm4, 0.5, %v1021_v42  ;;  %v1033_v62 = vsel %vm71_vm4, 0.5, %v1023_v52  ;;  %v1035_v61 = vsel %vm71_vm4, 0.5, %v1027_v49 }
 0x137   :  { %1947 = vrot.lane.b32.xlu0 %v6121_v17, %s4920_s16  ;;  %v7049_v48 = vadd.f32 %v1041_v1, %v6905_v4  ;;  %v1042_v50 = vmul.f32 %v12927_v38, %v1032_v58  ;;  %v1060_v12 = vmul.f32 %v12928_v26, %v1032_v58  ;;  %v1078_v34 = vmul.f32 %v12929_v21, %v1032_v58  ;;  %v1145_v29 = vpop.permute.xlu0 %1144 }
 0x138   :  { %1949 = vrot.lane.b32.xlu1 %v12930_v7, %s4920_s16  ;;  %v7061_v42 = vadd.f32 %v1059_v3, %v6907_v2  ;;  %v7064_v37 = vadd.f32 %v1077_v33, %v6909_v44  ;;  %v1043_v4 = vmul.f32 %v12927_v38, %v1033_v62  ;;  %v1061_v9 = vmul.f32 %v12928_v26, %v1033_v62  ;;  %v1147_v31 = vpop.permute.xlu1 %1146 }
 0x139   :  { %v7069_v52 = vadd.f32 %v1042_v50, %v6935_v60  ;;  %v7072_v36 = vadd.f32 %v1060_v12, %v6937_v45  ;;  %v7075_v51 = vadd.f32 %v1078_v34, %v6939_v35  ;;  %v1079_v2 = vmul.f32 %v12929_v21, %v1033_v62  ;;  %v4791_v34 = vld [vmem:[#allocation8 + $0x88] sm:$0xff] }
 0x13a   :  { %v7079_v44 = vadd.f32 %v1043_v4, %v6945_v16  ;;  %v7082_v32 = vadd.f32 %v1061_v9, %v6947_v27  ;;  %v1034_v60 = vsel %vm71_vm4, 0.5, %v1025_v0  ;;  %v1045_v27 = vmul.f32 %v12927_v38, %v1035_v61 }
 0x13b   :  { %v7089_v45 = vadd.f32 %v1079_v2, %v6949_v41  ;;  %v1044_v35 = vmul.f32 %v12927_v38, %v1034_v60  ;;  %v1062_v54 = vmul.f32 %v12928_v26, %v1034_v60  ;;  %v1080_v16 = vmul.f32 %v12929_v21, %v1034_v60  ;;  %v1149_v49 = vpop.permute.xlu0 %1148 }
 0x13c   :  { %v1063_v19 = vmul.f32 %v12928_v26, %v1035_v61  ;;  %v1081_v0 = vmul.f32 %v12929_v21, %v1035_v61  ;;  %v7098_v1 = vstv %s7026_s19  ;;  %v1151_v38 = vpop.permute.xlu1 %1150  ;;  %v7112_v26 = vadd.f32 %v1045_v27, %v6984_v22  ;;  %s7917_s19 = sld [smem:[#allocation2 + $0x2f]] }
 0x13d   :  { %v7101_v41 = vadd.f32 %v1044_v35, %v6975_v5  ;;  %v7104_v3 = vadd.f32 %v1062_v54, %v6977_v59  ;;  %v7107_v33 = vadd.f32 %v1080_v16, %v6979_v30  ;;  %v1128_v58 = vmul.f32 %v6450_v15, %v7098_v1  ;;  %v12931_v30 = vld [vmem:[#allocation25_spill] sm:$0xff] }
 0x13e   :  { %v7115_v21 = vadd.f32 %v1063_v19, %v6986_v53  ;;  %v7118_v62 = vadd.f32 %v1081_v0, %v6988_v28  ;;  %v7121_v5 = vstv %s7046_s20  ;;  %v7124_v59 = vstv %s7056_s21  ;;  %v12932_v28 = vld [vmem:[#allocation24_spill] sm:$0xff]  ;;  %s7929_s20 = sld [smem:[#allocation2 + $0x4a]]  ;;  %s8130_s21 = sld [smem:[#allocation2 + $0x15]] }
 0x13f   :  { %v7127_v50 = vstv %s7058_s22  ;;  %v1100_v12 = vadd.f32 %v12931_v30, %v6992_v18  ;;  %v1118_v15 = vadd.f32 %v6454_v47, %v7000_v13  ;;  %v1136_v22 = vadd.f32 %v1128_v58, %v7008_v6  ;;  %v7138_v2 = vpop.permute.xlu0 %1152  ;;  %s8159_s22 = sld [smem:[#allocation2 + $0x30]] }
 0x140   :  { %v1160_v53 = vsel %vm72_vm5, 0.5, %v1145_v29  ;;  %v1093_v4 = vmul.f32 %v4791_v34, %v12932_v28  ;;  %v1111_v9 = vmul.f32 %v4791_v34, %v6204_v46  ;;  %v1129_v47 = vmul.f32 %v4791_v34, %v7098_v1  ;;  %v7144_v13 = vpop.permute.xlu1 %1154 }
 0x141   :  { %v1170_v60 = vmul.f32 %v7121_v5, %v1160_v53  ;;  %v1188_v61 = vmul.f32 %v7124_v59, %v1160_v53  ;;  %v1206_v18 = vmul.f32 %v7127_v50, %v1160_v53  ;;  %v1161_v35 = vsel %vm72_vm5, 0.5, %v1147_v31 }
 0x142   :  { %v1101_v6 = vadd.f32 %v1093_v4, %v7016_v24  ;;  %v1119_v29 = vadd.f32 %v1111_v9, %v7019_v23  ;;  %v1922_v54 = vrot.slane %v6818_v10, 1  ;;  %v1137_v0 = vadd.f32 %v1129_v47, %v7022_v39  ;;  %v12933_v23 = vld [vmem:[#allocation69_spill] sm:$0xff]  ;;  %v4792_v39 = vld [vmem:[#allocation8 + $0x90] sm:$0xff] }
 0x143   :  { %v7151_v16 = vadd.f32 %v1170_v60, %v1100_v12  ;;  %v7153_v27 = vadd.f32 %v1188_v61, %v1118_v15  ;;  %v7155_v19 = vadd.f32 %v1206_v18, %v1136_v22  ;;  %v1171_v58 = vmul.f32 %v7121_v5, %v1161_v35  ;;  %v7167_v10 = vpop.permute.xlu0 %1156 }
 0x144   :  { %v1189_v30 = vmul.f32 %v7124_v59, %v1161_v35  ;;  %v1207_v24 = vmul.f32 %v7127_v50, %v1161_v35  ;;  %v12934_v53 = vrot.slane %v12933_v23, 1  ;;  %v1923_v12 = vrot.slane %v6842_v25, 1  ;;  %v7175_v9 = vpop.permute.xlu1 %1158 }
 0x145   :  { %v1094_v15 = vmul.f32 %v4792_v39, %v12932_v28  ;;  %v1112_v22 = vmul.f32 %v4792_v39, %v6204_v46  ;;  %v1130_v4 = vmul.f32 %v4792_v39, %v7098_v1  ;;  %v7177_v60 = vadd.f32 %v1171_v58, %v1101_v6 }
 0x146   :  { %v7165_v31 = vsel %vm532_vm2, %v12934_v53, %v1922_v54  ;;  %v7179_v61 = vadd.f32 %v1189_v30, %v1119_v29  ;;  %v7181_v18 = vadd.f32 %v1207_v24, %v1137_v0  ;;  %v1162_v47 = vsel %vm72_vm5, 0.5, %v1149_v49  ;;  %v4793_v49 = vld [vmem:[#allocation8 + $0x98] sm:$0xff] }
 0x147   :  { %12936 = vst [vmem:[#allocation26_spill] sm:$0xff] %v7165_v31  ;;  %1951 = vrot.lane.b32.xlu0 %v7165_v31, %s4920_s16  ;;  %v7187_v25 = vsel %vm532_vm2, %v1922_v54, %v1923_v12  ;;  %v1102_v35 = vadd.f32 %v1094_v15, %v7029_v40  ;;  %v1120_v23 = vadd.f32 %v1112_v22, %v7032_v14  ;;  %v7198_v54 = vpop.permute.xlu0 %1250  ;;  %v1924_v30 = vrot.slane %v6851_v56, 1 }
 0x148   :  { %12937 = vst [vmem:[#allocation27_spill] sm:$0xff] %v7187_v25  ;;  %v1138_v53 = vadd.f32 %v1130_v4, %v7035_v55  ;;  %1953 = vrot.lane.b32.xlu1 %v7187_v25, %s4920_s16  ;;  %v1172_v6 = vmul.f32 %v7121_v5, %v1162_v47  ;;  %v1190_v29 = vmul.f32 %v7124_v59, %v1162_v47  ;;  %v1163_v55 = vsel %vm72_vm5, 0.5, %v1151_v38  ;;  %v7205_v24 = vpop.permute.xlu1 %1252 }
 0x149   :  { %v1208_v0 = vmul.f32 %v7127_v50, %v1162_v47  ;;  %v1095_v58 = vmul.f32 %v4793_v49, %v12932_v28  ;;  %v1113_v40 = vmul.f32 %v4793_v49, %v6204_v46  ;;  %v1131_v14 = vmul.f32 %v4793_v49, %v7098_v1 }
 0x14a   :  { %v7207_v39 = vadd.f32 %v1172_v6, %v1102_v35  ;;  %v7209_v15 = vadd.f32 %v1190_v29, %v1120_v23  ;;  %v1173_v49 = vmul.f32 %v7121_v5, %v1163_v55  ;;  %v1191_v38 = vmul.f32 %v7124_v59, %v1163_v55 }
 0x14b   :  { %v7211_v22 = vadd.f32 %v1208_v0, %v1138_v53  ;;  %v1103_v4 = vadd.f32 %v1095_v58, %v7049_v48  ;;  %v1121_v47 = vadd.f32 %v1113_v40, %v7061_v42  ;;  %v1139_v57 = vadd.f32 %v1131_v14, %v7064_v37  ;;  %v4794_v53 = vld [vmem:[#allocation8 + $0xa0] sm:$0xff]  ;;  %v7225_v48 = vpop.permute.xlu0 %1254 }
 0x14c   :  { %v1209_v56 = vmul.f32 %v7127_v50, %v1163_v55  ;;  %v7221_v35 = vsel %vm532_vm2, %v1923_v12, %v1924_v30  ;;  %v1925_v23 = vrot.slane %v6879_v8, 1  ;;  %v1096_v6 = vmul.f32 %v4794_v53, %v12932_v28  ;;  %v7235_v12 = vpop.permute.xlu1 %1256 }
 0x14d   :  { %12938 = vst [vmem:[#allocation29_spill] sm:$0xff] %v7221_v35  ;;  %v7227_v42 = vadd.f32 %v1173_v49, %v1103_v4  ;;  %v7229_v37 = vadd.f32 %v1191_v38, %v1121_v47  ;;  %1955 = vrot.lane.b32.xlu0 %v7221_v35, %s4920_s16  ;;  %v1114_v29 = vmul.f32 %v4794_v53, %v6204_v46  ;;  %v1164_v14 = vsel %vm72_vm5, 0.5, %v7138_v2  ;;  %v4795_v49 = vld [vmem:[#allocation8 + $0xa8] sm:$0xff] }
 0x14e   :  { %v1132_v0 = vmul.f32 %v4794_v53, %v7098_v1  ;;  %v7237_v58 = vadd.f32 %v1209_v56, %v1139_v57  ;;  %v7241_v8 = vsel %vm532_vm2, %v1924_v30, %v1925_v23  ;;  %v1104_v40 = vadd.f32 %v1096_v6, %v7069_v52 }
 0x14f   :  { %12939 = vst [vmem:[#allocation30_spill] sm:$0xff] %v7241_v8  ;;  %1957 = vrot.lane.b32.xlu1 %v7241_v8, %s4920_s16  ;;  %v1122_v55 = vadd.f32 %v1114_v29, %v7072_v36  ;;  %v1174_v57 = vmul.f32 %v7121_v5, %v1164_v14  ;;  %v1192_v47 = vmul.f32 %v7124_v59, %v1164_v14  ;;  %v7259_v56 = vpop.permute.xlu0 %1258  ;;  %v1165_v53 = vsel %vm72_vm5, 0.5, %v7144_v13 }
 0x150   :  { %v1140_v4 = vadd.f32 %v1132_v0, %v7075_v51  ;;  %v1210_v30 = vmul.f32 %v7127_v50, %v1164_v14  ;;  %v1097_v52 = vmul.f32 %v4795_v49, %v12932_v28  ;;  %v1115_v38 = vmul.f32 %v4795_v49, %v6204_v46  ;;  %v7269_v29 = vpop.permute.xlu1 %1260 }
 0x151   :  { %v1133_v2 = vmul.f32 %v4795_v49, %v7098_v1  ;;  %v7261_v36 = vadd.f32 %v1174_v57, %v1104_v40  ;;  %v7263_v51 = vadd.f32 %v1192_v47, %v1122_v55  ;;  %v1926_v6 = vrot.slane %v6888_v43, 1  ;;  %v4572_v40 = vld [vmem:[%s12486_s4 + $0x2] ss:$0 sm:$0xff]  ;;  %v4796_v57 = vld [vmem:[#allocation8 + $0xb0] sm:$0xff] }
 0x152   :  { %v7271_v0 = vadd.f32 %v1210_v30, %v1140_v4  ;;  %v1105_v14 = vadd.f32 %v1097_v52, %v7079_v44  ;;  %v1123_v49 = vadd.f32 %v1115_v38, %v7082_v32  ;;  %v1175_v55 = vmul.f32 %v7121_v5, %v1165_v53  ;;  %v12941_v44 = vld [vmem:[#allocation52_spill] sm:$0xff] }
 0x153   :  { %v1141_v20 = vadd.f32 %v1133_v2, %v7089_v45  ;;  %v1193_v13 = vmul.f32 %v7124_v59, %v1165_v53  ;;  %v1211_v43 = vmul.f32 %v7127_v50, %v1165_v53  ;;  %v7284_v4 = vsel %vm532_vm2, %v1925_v23, %v1926_v6  ;;  %v7299_v52 = vpop.permute.xlu0 %1262 }
 0x154   :  { %12940 = vst [vmem:[#allocation20_spill] sm:$0xff] %v7284_v4  ;;  %1959 = vrot.lane.b32.xlu0 %v7284_v4, %s4920_s16  ;;  %v12942_v32 = vrot.slane %v12941_v44, 1  ;;  %v1098_v47 = vmul.f32 %v4796_v57, %v12932_v28  ;;  %v1116_v30 = vmul.f32 %v4796_v57, %v6204_v46  ;;  %v1134_v23 = vmul.f32 %v4796_v57, %v7098_v1 }
 0x155   :  { %v7301_v38 = vadd.f32 %v1175_v55, %v1105_v14  ;;  %v7303_v2 = vadd.f32 %v1193_v13, %v1123_v49  ;;  %v7305_v53 = vadd.f32 %v1211_v43, %v1141_v20  ;;  %v1166_v20 = vsel %vm72_vm5, 0.5, %v7167_v10  ;;  %v4797_v13 = vld [vmem:[#allocation8 + $0xb8] sm:$0xff] }
 0x156   :  { %v1934_v45 = vsel %vm532_vm2, %v1926_v6, %v12942_v32  ;;  %v7311_v6 = vpop.permute.xlu1 %1264  ;;  %v1106_v32 = vadd.f32 %v1098_v47, %v7101_v41  ;;  %v1124_v57 = vadd.f32 %v1116_v30, %v7104_v3  ;;  %v1142_v14 = vadd.f32 %v1134_v23, %v7107_v33 }
 0x157   :  { %v7309_v44 = vsel %vm88_vm3, %v4572_v40, %v1934_v45  ;;  %v1176_v49 = vmul.f32 %v7121_v5, %v1166_v20  ;;  %v1194_v40 = vmul.f32 %v7124_v59, %v1166_v20  ;;  %v1212_v55 = vmul.f32 %v7127_v50, %v1166_v20  ;;  %v7335_v10 = vpop.permute.xlu0 %1382 }
 0x158   :  { %12944 = vst [vmem:[#allocation28_spill] sm:$0xff] %v7309_v44  ;;  %1961 = vrot.lane.b32.xlu1 %v7309_v44, %s4920_s16  ;;  %v1099_v43 = vmul.f32 %v4797_v13, %v12932_v28  ;;  %v1117_v45 = vmul.f32 %v4797_v13, %v6204_v46  ;;  %v1135_v41 = vmul.f32 %v4797_v13, %v7098_v1  ;;  %v1167_v3 = vsel %vm72_vm5, 0.5, %v7175_v9 }
 0x159   :  { %2079 = vrot.lane.b32.xlu0 %v6121_v17, %s4921_s17  ;;  %v7333_v33 = vstv %s7257_s23  ;;  %v7337_v47 = vadd.f32 %v1176_v49, %v1106_v32  ;;  %v7339_v28 = vadd.f32 %v1194_v40, %v1124_v57  ;;  %v7341_v46 = vadd.f32 %v1212_v55, %v1142_v14  ;;  %s8161_s23 = sld [smem:[#allocation2 + $0x4b]] }
 0x15a   :  { %v1107_v1 = vadd.f32 %v1099_v43, %v7112_v26  ;;  %v7344_v30 = vpop.permute.xlu1 %1384  ;;  %v1125_v9 = vadd.f32 %v1117_v45, %v7115_v21  ;;  %v1143_v23 = vadd.f32 %v1135_v41, %v7118_v62  ;;  %v1177_v20 = vmul.f32 %v7121_v5, %v1167_v3 }
 0x15b   :  { %v1195_v13 = vmul.f32 %v7124_v59, %v1167_v3  ;;  %v1213_v32 = vmul.f32 %v7127_v50, %v1167_v3  ;;  %v7354_v57 = vstv %s7286_s26  ;;  %v7357_v14 = vstv %s7288_s0  ;;  %v7370_v50 = vpop.permute.xlu0 %1386  ;;  %s8323_s26 = sld [smem:[#allocation2 + $0x4c]]  ;;  %s8325_s0 = sld [smem:[#allocation2 + $0x17]] }
 0x15c   :  { %2081 = vrot.lane.b32.xlu1 %v12930_v7, %s4921_s17  ;;  %v1266_v26 = vsel %vm71_vm4, 0.5, %v7198_v54  ;;  %v7362_v21 = vadd.f32 %v1177_v20, %v1107_v1  ;;  %v1267_v54 = vsel %vm71_vm4, 0.5, %v7205_v24  ;;  %v1268_v55 = vsel %vm71_vm4, 0.5, %v7225_v48 }
 0x15d   :  { %v7364_v62 = vadd.f32 %v1195_v13, %v1125_v9  ;;  %v1276_v5 = vmul.f32 %v7333_v33, %v1266_v26  ;;  %v1294_v59 = vmul.f32 %v7354_v57, %v1266_v26  ;;  %2083 = vrot.lane.b32.xlu0 %v7165_v31, %s4921_s17  ;;  %v7372_v49 = vadd.f32 %v1213_v32, %v1143_v23  ;;  %v12951_v31 = vld [vmem:[#allocation41_spill] sm:$0xff] }
 0x15e   :  { %v1312_v40 = vmul.f32 %v7357_v14, %v1266_v26  ;;  %v7381_v43 = vpop.permute.xlu1 %1388  ;;  %v1277_v3 = vmul.f32 %v7333_v33, %v1267_v54  ;;  %v1295_v1 = vmul.f32 %v7354_v57, %v1267_v54  ;;  %v1313_v48 = vmul.f32 %v7357_v14, %v1267_v54 }
 0x15f   :  { %v7384_v45 = vadd.f32 %v1276_v5, %v7151_v16  ;;  %v7387_v41 = vadd.f32 %v1294_v59, %v7153_v27  ;;  %v1278_v9 = vmul.f32 %v7333_v33, %v1268_v55  ;;  %v1296_v16 = vmul.f32 %v7354_v57, %v1268_v55 }
 0x160   :  { %2085 = vrot.lane.b32.xlu1 %v7187_v25, %s4921_s17  ;;  %v7394_v24 = vadd.f32 %v1312_v40, %v7155_v19  ;;  %v7400_v23 = vadd.f32 %v1277_v3, %v7177_v60  ;;  %v7403_v27 = vadd.f32 %v1295_v1, %v7179_v61  ;;  %v1314_v20 = vmul.f32 %v7357_v14, %v1268_v55  ;;  %v7411_v19 = vpop.permute.xlu0 %1390  ;;  %v7459_v1 = vld [vmem:[#allocation8 + $0x40] sm:$0xff] }
 0x161   :  { %v1269_v13 = vsel %vm71_vm4, 0.5, %v7235_v12  ;;  %2087 = vrot.lane.b32.xlu0 %v7221_v35, %s4921_s17  ;;  %v7414_v32 = vadd.f32 %v1313_v48, %v7181_v18  ;;  %v7417_v60 = vadd.f32 %v1278_v9, %v7207_v39  ;;  %v7420_v61 = vadd.f32 %v1296_v16, %v7209_v15  ;;  %12945 = vst [vmem:[#allocation17_spill] sm:$0xff] %v7459_v1 }
 0x162   :  { %v1279_v26 = vmul.f32 %v7333_v33, %v1269_v13  ;;  %v7423_v5 = vpop.permute.xlu1 %1392  ;;  %v7426_v12 = vadd.f32 %v1314_v20, %v7211_v22  ;;  %v1297_v59 = vmul.f32 %v7354_v57, %v1269_v13  ;;  %v1315_v40 = vmul.f32 %v7357_v14, %v1269_v13 }
 0x163   :  { %v1270_v18 = vsel %vm71_vm4, 0.5, %v7259_v56  ;;  %v1271_v56 = vsel %vm71_vm4, 0.5, %v7269_v29 }
 0x164   :  { %2089 = vrot.lane.b32.xlu1 %v7241_v8, %s4921_s17  ;;  %v7440_v39 = vadd.f32 %v1279_v26, %v7227_v42  ;;  %v1280_v15 = vmul.f32 %v7333_v33, %v1270_v18  ;;  %v1298_v22 = vmul.f32 %v7354_v57, %v1270_v18  ;;  %v1316_v54 = vmul.f32 %v7357_v14, %v1270_v18  ;;  %v7499_v18 = vld [vmem:[#allocation8 + $0x48] sm:$0xff] }
 0x165   :  { %v7446_v55 = vadd.f32 %v1297_v59, %v7229_v37  ;;  %v7449_v3 = vadd.f32 %v1315_v40, %v7237_v58  ;;  %2091 = vrot.lane.b32.xlu0 %v7284_v4, %s4921_s17  ;;  %v1272_v42 = vsel %vm71_vm4, 0.5, %v7299_v52  ;;  %v7463_v37 = vpop.permute.xlu0 %1394  ;;  %v1281_v9 = vmul.f32 %v7333_v33, %v1271_v56  ;;  %v7496_v59 = vld [vmem:[#allocation8 + $0x78] sm:$0xff]  ;;  %12946 = vst [vmem:[#allocation15_spill] sm:$0xff] %v7499_v18 }
 0x166   :  { %v7466_v58 = vadd.f32 %v1280_v15, %v7261_v36  ;;  %v7469_v48 = vadd.f32 %v1298_v22, %v7263_v51  ;;  %v7472_v29 = vadd.f32 %v1316_v54, %v7271_v0  ;;  %v7479_v52 = vpop.permute.xlu1 %1396  ;;  %v1299_v16 = vmul.f32 %v7354_v57, %v1271_v56 }
 0x167   :  { %v1317_v20 = vmul.f32 %v7357_v14, %v1271_v56  ;;  %v1282_v36 = vmul.f32 %v7333_v33, %v1272_v42  ;;  %v1300_v51 = vmul.f32 %v7354_v57, %v1272_v42  ;;  %v7490_v0 = vadd.f32 %v1281_v9, %v7301_v38 }
 0x168   :  { %2093 = vrot.lane.b32.xlu1 %v7309_v44, %s4921_s17  ;;  %v1318_v13 = vmul.f32 %v7357_v14, %v1272_v42  ;;  %v1273_v26 = vsel %vm71_vm4, 0.5, %v7311_v6  ;;  %v2297_v40 = vrot.slane %v7459_v1, 7  ;;  %v7502_v15 = vadd.f32 %v1299_v16, %v7303_v2 }
 0x169   :  { %v7505_v38 = vadd.f32 %v1317_v20, %v7305_v53  ;;  %v7508_v22 = vadd.f32 %v1282_v36, %v7337_v47  ;;  %v7511_v54 = vadd.f32 %v1300_v51, %v7339_v28  ;;  %v7513_v6 = vpop.permute.xlu0 %1499  ;;  %v1283_v42 = vmul.f32 %v7333_v33, %v1273_v26  ;;  %v4586_v47 = vld [vmem:[%s12484_s2 + $0x4] ss:$0 sm:$0xff]  ;;  %v12947_v36 = vld [vmem:[#allocation40_spill] sm:$0xff] }
 0x16a   :  { %v7516_v56 = vadd.f32 %v1318_v13, %v7341_v46  ;;  %v1301_v2 = vmul.f32 %v7354_v57, %v1273_v26  ;;  %v1319_v9 = vmul.f32 %v7357_v14, %v1273_v26  ;;  %v7521_v53 = vpop.permute.xlu1 %1501  ;;  %v12553_v28 = vrot.slane %v7496_v59, 7 }
 0x16b   :  { %v2298_v46 = vrot.slane %v7499_v18, 7  ;;  %v7529_v16 = vstv %s7435_s1  ;;  %v7532_v33 = vstv %s7437_s27  ;;  %v7535_v57 = vadd.f32 %v1283_v42, %v7362_v21  ;;  %s8333_s1 = sld [smem:[#allocation2 + $0x32]]  ;;  %s8335_s27 = sld [smem:[#allocation2 + $0x4d]] }
 0x16c   :  { %v7538_v14 = vadd.f32 %v1301_v2, %v7364_v62  ;;  %v7541_v20 = vadd.f32 %v1319_v9, %v7372_v49  ;;  %v1330_v51 = vmul.f32 %v7529_v16, %v12947_v36  ;;  %v2312_v13 = vsel %vm107_vm0, %v12553_v28, %v2297_v40 }
 0x16d   :  { %v7551_v26 = vsel %vm107_vm0, %v2297_v40, %v2298_v46  ;;  %v1348_v21 = vmul.f32 %v7532_v33, %v12947_v36  ;;  %v7556_v62 = vstv %s7461_s28  ;;  %v7560_v49 = vsel %vm73_vm1, %v4586_v47, %v2312_v13  ;;  %v7582_v44 = vpop.permute.xlu0 %1503  ;;  %s9257_s28 = sld [smem:[#allocation2 + $0x38]] }
 0x16e   :  { %12948 = vst [vmem:[#allocation31_spill] sm:$0xff] %v7551_v26  ;;  %12949 = vst [vmem:[#allocation32_spill] sm:$0xff] %v7560_v49  ;;  %2327 = vrot.lane.b32.xlu1 %v7551_v26, %s4920_s16  ;;  %v1366_v42 = vmul.f32 %v7556_v62, %v12947_v36  ;;  %v7567_v2 = vstv %s7475_s29  ;;  %v7570_v9 = vstv %s7477_s30  ;;  %2325 = vrot.lane.b32.xlu0 %v7560_v49, %s4920_s16  ;;  %v1398_v13 = vsel %vm72_vm5, 0.5, %v7335_v10  ;;  %v7584_v36 = vpop.permute.xlu1 %1505  ;;  %s8560_s30 = sld [smem:[#allocation2 + $0x18]]  ;;  %s9394_s29 = sld [smem:[#allocation2 + $0x3]] }
 0x16f   :  { %v7575_v40 = vstv %s7487_s6  ;;  %v1338_v28 = vadd.f32 %v1330_v51, %v7384_v45  ;;  %v1356_v47 = vadd.f32 %v1348_v21, %v7387_v41  ;;  %12950 = vst [vmem:[#allocation39_spill] sm:$0xff] %v7584_v36  ;;  %v1408_v8 = vmul.f32 %v7567_v2, %v1398_v13  ;;  %v7601_v21 = vld [vmem:[#allocation8 + $0x58] sm:$0xff]  ;;  %s8562_s6 = sld [smem:[#allocation2 + $0x33]] }
 0x170   :  { %v1374_v4 = vadd.f32 %v1366_v42, %v7394_v24  ;;  %v1426_v35 = vmul.f32 %v7570_v9, %v1398_v13  ;;  %v1444_v25 = vmul.f32 %v7575_v40, %v1398_v13  ;;  %v1331_v45 = vmul.f32 %v7529_v16, %v12951_v31  ;;  %v7599_v24 = vld [vmem:[#allocation8 + $0x50] sm:$0xff]  ;;  %12953 = vst [vmem:[#allocation34_spill] sm:$0xff] %v7601_v21 }
 0x171   :  { %v1349_v41 = vmul.f32 %v7532_v33, %v12951_v31  ;;  %v1367_v10 = vmul.f32 %v7556_v62, %v12951_v31  ;;  %v1399_v51 = vsel %vm72_vm5, 0.5, %v7344_v30  ;;  %12952 = vst [vmem:[#allocation33_spill] sm:$0xff] %v7599_v24  ;;  %v7603_v42 = vadd.f32 %v1408_v8, %v1338_v28 }
 0x172   :  { %v7605_v13 = vadd.f32 %v1426_v35, %v1356_v47  ;;  %v7607_v7 = vadd.f32 %v1444_v25, %v1374_v4  ;;  %v1409_v17 = vmul.f32 %v7567_v2, %v1399_v51  ;;  %v1339_v11 = vadd.f32 %v1331_v45, %v7400_v23  ;;  %v12954_v35 = vld [vmem:[#allocation48_spill] sm:$0xff]  ;;  %v7629_v47 = vpop.permute.xlu1 %1509 }
 0x173   :  { %v1357_v31 = vadd.f32 %v1349_v41, %v7403_v27  ;;  %v1375_v18 = vadd.f32 %v1367_v10, %v7414_v32  ;;  %v1427_v30 = vmul.f32 %v7570_v9, %v1399_v51  ;;  %v1445_v1 = vmul.f32 %v7575_v40, %v1399_v51  ;;  %v7627_v32 = vpop.permute.xlu0 %1507  ;;  %12955 = vst [vmem:[#allocation35_spill] sm:$0xff] %v7629_v47  ;;  %v7642_v10 = vld [vmem:[#allocation8 + $0x60] sm:$0xff] }
 0x174   :  { %v2299_v36 = vrot.slane %v7599_v24, 7  ;;  %v2300_v8 = vrot.slane %v7601_v21, 7  ;;  %v1332_v25 = vmul.f32 %v7529_v16, %v12954_v35  ;;  %v7619_v4 = vadd.f32 %v1409_v17, %v1339_v11  ;;  %12958 = vst [vmem:[#allocation38_spill] sm:$0xff] %v7642_v10 }
 0x175   :  { %v7621_v28 = vadd.f32 %v1427_v30, %v1357_v31  ;;  %v1350_v23 = vmul.f32 %v7532_v33, %v12954_v35  ;;  %v1368_v27 = vmul.f32 %v7556_v62, %v12954_v35  ;;  %v7631_v45 = vadd.f32 %v1445_v1, %v1375_v18 }
 0x176   :  { %v7635_v41 = vsel %vm107_vm0, %v2298_v46, %v2299_v36  ;;  %v7639_v17 = vsel %vm107_vm0, %v2299_v36, %v2300_v8  ;;  %v1340_v11 = vadd.f32 %v1332_v25, %v7417_v60  ;;  %v1400_v46 = vsel %vm72_vm5, 0.5, %v7370_v50  ;;  %v12959_v36 = vld [vmem:[#allocation49_spill] sm:$0xff] }
 0x177   :  { %12956 = vst [vmem:[#allocation36_spill] sm:$0xff] %v7635_v41  ;;  %12957 = vst [vmem:[#allocation37_spill] sm:$0xff] %v7639_v17  ;;  %2329 = vrot.lane.b32.xlu0 %v7635_v41, %s4920_s16  ;;  %2331 = vrot.lane.b32.xlu1 %v7639_v17, %s4920_s16  ;;  %v1358_v1 = vadd.f32 %v1350_v23, %v7420_v61  ;;  %v1376_v18 = vadd.f32 %v1368_v27, %v7426_v12  ;;  %v1401_v50 = vsel %vm72_vm5, 0.5, %v7381_v43  ;;  %v7667_v23 = vld [vmem:[#allocation8 + $0x68] sm:$0xff]  ;;  %v7680_v47 = vpop.permute.xlu0 %1511 }
 0x178   :  { %v1333_v51 = vmul.f32 %v7529_v16, %v12959_v36  ;;  %v1410_v60 = vmul.f32 %v7567_v2, %v1400_v46  ;;  %v1428_v31 = vmul.f32 %v7570_v9, %v1400_v46  ;;  %v1446_v30 = vmul.f32 %v7575_v40, %v1400_v46  ;;  %12960 = vst [vmem:[#allocation43_spill] sm:$0xff] %v7667_v23 }
 0x179   :  { %v1351_v35 = vmul.f32 %v7532_v33, %v12959_v36  ;;  %v1369_v61 = vmul.f32 %v7556_v62, %v12959_v36  ;;  %v2301_v25 = vrot.slane %v7642_v10, 7  ;;  %v1447_v43 = vmul.f32 %v7575_v40, %v1401_v50  ;;  %12961 = vst [vmem:[#allocation46_spill] sm:$0xff] %v7680_v47  ;;  %v7682_v10 = vpop.permute.xlu1 %1513 }
 0x17a   :  { %v1341_v12 = vadd.f32 %v1333_v51, %v7440_v39  ;;  %v7669_v27 = vadd.f32 %v1410_v60, %v1340_v11  ;;  %v7671_v21 = vadd.f32 %v1428_v31, %v1358_v1  ;;  %v7673_v46 = vadd.f32 %v1446_v30, %v1376_v18  ;;  %12962 = vst [vmem:[#allocation53_spill] sm:$0xff] %v7682_v10  ;;  %v12964_v18 = vld [vmem:[#allocation57_spill] sm:$0xff] }
 0x17b   :  { %v1359_v24 = vadd.f32 %v1351_v35, %v7446_v55  ;;  %v1377_v36 = vadd.f32 %v1369_v61, %v7449_v3  ;;  %v1411_v39 = vmul.f32 %v7567_v2, %v1401_v50  ;;  %v1429_v51 = vmul.f32 %v7570_v9, %v1401_v50 }
 0x17c   :  { %v7686_v11 = vsel %vm107_vm0, %v2300_v8, %v2301_v25  ;;  %v2302_v1 = vrot.slane %v7667_v23, 7  ;;  %v1334_v55 = vmul.f32 %v7529_v16, %v12964_v18  ;;  %v1352_v3 = vmul.f32 %v7532_v33, %v12964_v18 }
 0x17d   :  { %12963 = vst [vmem:[#allocation42_spill] sm:$0xff] %v7686_v11  ;;  %v7693_v60 = vadd.f32 %v1411_v39, %v1341_v12  ;;  %v7695_v31 = vadd.f32 %v1429_v51, %v1359_v24  ;;  %v7697_v30 = vadd.f32 %v1447_v43, %v1377_v36  ;;  %2333 = vrot.lane.b32.xlu0 %v7686_v11, %s4920_s16  ;;  %v1402_v24 = vsel %vm72_vm5, 0.5, %v7411_v19  ;;  %v12966_v51 = vld [vmem:[#allocation61_spill] sm:$0xff]  ;;  %v7738_v23 = vpop.permute.xlu1 %1633 }
 0x17e   :  { %v1370_v8 = vmul.f32 %v7556_v62, %v12964_v18  ;;  %v7705_v35 = vsel %vm107_vm0, %v2301_v25, %v2302_v1  ;;  %v1342_v61 = vadd.f32 %v1334_v55, %v7466_v58  ;;  %v1360_v50 = vadd.f32 %v1352_v3, %v7469_v48 }
 0x17f   :  { %12965 = vst [vmem:[#allocation44_spill] sm:$0xff] %v7705_v35  ;;  %2335 = vrot.lane.b32.xlu1 %v7705_v35, %s4920_s16  ;;  %v1412_v36 = vmul.f32 %v7567_v2, %v1402_v24  ;;  %v1430_v39 = vmul.f32 %v7570_v9, %v1402_v24  ;;  %v1448_v25 = vmul.f32 %v7575_v40, %v1402_v24  ;;  %v1403_v43 = vsel %vm72_vm5, 0.5, %v7423_v5  ;;  %v7736_v24 = vpop.permute.xlu0 %1631 }
 0x180   :  { %v1378_v12 = vadd.f32 %v1370_v8, %v7472_v29  ;;  %v1335_v58 = vmul.f32 %v7529_v16, %v12966_v51  ;;  %v1353_v48 = vmul.f32 %v7532_v33, %v12966_v51  ;;  %v1371_v19 = vmul.f32 %v7556_v62, %v12966_v51  ;;  %v7727_v29 = vld [vmem:[#allocation8 + $0x70] sm:$0xff] }
 0x181   :  { %v7729_v18 = vadd.f32 %v1412_v36, %v1342_v61  ;;  %v7731_v55 = vadd.f32 %v1430_v39, %v1360_v50  ;;  %v1413_v8 = vmul.f32 %v7567_v2, %v1403_v43  ;;  %v1431_v47 = vmul.f32 %v7570_v9, %v1403_v43 }
 0x182   :  { %v7733_v3 = vadd.f32 %v1448_v25, %v1378_v12  ;;  %v1343_v51 = vadd.f32 %v1335_v58, %v7490_v0  ;;  %v1361_v10 = vadd.f32 %v1353_v48, %v7502_v15  ;;  %v1379_v5 = vadd.f32 %v1371_v19, %v7505_v38  ;;  %v12967_v12 = vld [vmem:[#allocation67_spill] sm:$0xff] }
 0x183   :  { %v1449_v61 = vmul.f32 %v7575_v40, %v1403_v43  ;;  %v2303_v50 = vrot.slane %v7727_v29, 7  ;;  %v1336_v36 = vmul.f32 %v7529_v16, %v12967_v12  ;;  %v1354_v0 = vmul.f32 %v7532_v33, %v12967_v12 }
 0x184   :  { %v7756_v15 = vadd.f32 %v1413_v8, %v1343_v51  ;;  %v7758_v38 = vadd.f32 %v1431_v47, %v1361_v10  ;;  %v1372_v39 = vmul.f32 %v7556_v62, %v12967_v12  ;;  %v1404_v25 = vsel %vm72_vm5, 0.5, %v7463_v37 }
 0x185   :  { %v7765_v58 = vadd.f32 %v1449_v61, %v1379_v5  ;;  %v7769_v48 = vsel %vm107_vm0, %v2302_v1, %v2303_v50  ;;  %v12969_v19 = vrot.slane %v7496_v59, 7  ;;  %v1344_v47 = vadd.f32 %v1336_v36, %v7508_v22  ;;  %v12971_v5 = vld [vmem:[#allocation68_spill] sm:$0xff] }
 0x186   :  { %12968 = vst [vmem:[#allocation45_spill] sm:$0xff] %v7769_v48  ;;  %2337 = vrot.lane.b32.xlu0 %v7769_v48, %s4920_s16  ;;  %v1362_v37 = vadd.f32 %v1354_v0, %v7511_v54  ;;  %v1380_v10 = vadd.f32 %v1372_v39, %v7516_v56  ;;  %v1414_v1 = vmul.f32 %v7567_v2, %v1404_v25  ;;  %v1405_v8 = vsel %vm72_vm5, 0.5, %v7479_v52  ;;  %v7794_v54 = vpop.permute.xlu0 %1635  ;;  %v7796_v56 = vpop.permute.xlu1 %1637 }
 0x187   :  { %v7775_v43 = vsel %vm107_vm0, %v2303_v50, %v12969_v19  ;;  %v1432_v51 = vmul.f32 %v7570_v9, %v1404_v25  ;;  %v1450_v22 = vmul.f32 %v7575_v40, %v1404_v25  ;;  %v1337_v61 = vmul.f32 %v7529_v16, %v12971_v5 }
 0x188   :  { %12970 = vst [vmem:[#allocation47_spill] sm:$0xff] %v7775_v43  ;;  %2339 = vrot.lane.b32.xlu1 %v7775_v43, %s4920_s16  ;;  %v1355_v50 = vmul.f32 %v7532_v33, %v12971_v5  ;;  %v7798_v12 = vadd.f32 %v1414_v1, %v1344_v47  ;;  %v1373_v52 = vmul.f32 %v7556_v62, %v12971_v5  ;;  %v7817_v62 = vstv %s7744_s9  ;;  %s8716_s9 = sld [smem:[#allocation2 + $0x34]] }
 0x189   :  { %v1415_v36 = vmul.f32 %v7567_v2, %v1405_v8  ;;  %v1433_v0 = vmul.f32 %v7570_v9, %v1405_v8  ;;  %v7804_v16 = vadd.f32 %v1432_v51, %v1362_v37  ;;  %v7806_v39 = vadd.f32 %v1450_v22, %v1380_v10  ;;  %v12972_v22 = vld [vmem:[#allocation39_spill] sm:$0xff] }
 0x18a   :  { %v1345_v33 = vadd.f32 %v1337_v61, %v7535_v57  ;;  %v1363_v25 = vadd.f32 %v1355_v50, %v7538_v14  ;;  %v1381_v19 = vadd.f32 %v1373_v52, %v7541_v20  ;;  %v1451_v47 = vmul.f32 %v7575_v40, %v1405_v8  ;;  %2433 = vrot.lane.b32.xlu0 %v7560_v49, %s4921_s17  ;;  %v7849_v61 = vpop.permute.xlu0 %1639  ;;  %v7851_v50 = vpop.permute.xlu1 %1641 }
 0x18b   :  { %v7820_v2 = vstv %s7746_s10  ;;  %v7827_v57 = vstv %s7754_s13  ;;  %v1515_v14 = vsel %vm71_vm4, 0.5, %v7513_v6  ;;  %v1516_v8 = vsel %vm71_vm4, 0.5, %v7521_v53  ;;  %s8730_s10 = sld [smem:[#allocation2 + $0x4f]]  ;;  %s8744_s13 = sld [smem:[#allocation2 + $0x1a]] }
 0x18c   :  { %2435 = vrot.lane.b32.xlu1 %v7551_v26, %s4921_s17  ;;  %v7822_v9 = vadd.f32 %v1415_v36, %v1345_v33  ;;  %v7824_v37 = vadd.f32 %v1433_v0, %v1363_v25  ;;  %v7832_v20 = vadd.f32 %v1451_v47, %v1381_v19  ;;  %v1525_v40 = vmul.f32 %v7817_v62, %v1515_v14 }
 0x18d   :  { %v1543_v10 = vmul.f32 %v7820_v2, %v1515_v14  ;;  %v1561_v1 = vmul.f32 %v7827_v57, %v1515_v14  ;;  %v1517_v51 = vsel %vm71_vm4, 0.5, %v7582_v44  ;;  %v1518_v6 = vsel %vm71_vm4, 0.5, %v12972_v22 }
 0x18e   :  { %v1519_v5 = vsel %vm71_vm4, 0.5, %v7627_v32  ;;  %v7854_v52 = vadd.f32 %v1525_v40, %v7603_v42  ;;  %v1526_v36 = vmul.f32 %v7817_v62, %v1516_v8  ;;  %2437 = vrot.lane.b32.xlu0 %v7635_v41, %s4921_s17  ;;  %v1544_v32 = vmul.f32 %v7820_v2, %v1516_v8 }
 0x18f   :  { %v7857_v53 = vadd.f32 %v1543_v10, %v7605_v13  ;;  %v7860_v44 = vadd.f32 %v1561_v1, %v7607_v7  ;;  %v1562_v0 = vmul.f32 %v7827_v57, %v1516_v8  ;;  %v1527_v42 = vmul.f32 %v7817_v62, %v1517_v51  ;;  %v7919_v8 = vpop.permute.xlu0 %1643 }
 0x190   :  { %2439 = vrot.lane.b32.xlu1 %v7639_v17, %s4921_s17  ;;  %v1545_v13 = vmul.f32 %v7820_v2, %v1517_v51  ;;  %v7874_v7 = vadd.f32 %v1526_v36, %v7619_v4  ;;  %v1563_v33 = vmul.f32 %v7827_v57, %v1517_v51  ;;  %v1528_v25 = vmul.f32 %v7817_v62, %v1518_v6  ;;  %v7921_v51 = vpop.permute.xlu1 %1645 }
 0x191   :  { %v1546_v19 = vmul.f32 %v7820_v2, %v1518_v6  ;;  %v7880_v47 = vadd.f32 %v1544_v32, %v7621_v28  ;;  %v7883_v14 = vadd.f32 %v1562_v0, %v7631_v45  ;;  %v7886_v40 = vadd.f32 %v1527_v42, %v7669_v27 }
 0x192   :  { %v7889_v10 = vadd.f32 %v1545_v13, %v7671_v21  ;;  %v7894_v4 = vadd.f32 %v1563_v33, %v7673_v46  ;;  %v7897_v1 = vadd.f32 %v1528_v25, %v7693_v60  ;;  %v1564_v45 = vmul.f32 %v7827_v57, %v1518_v6  ;;  %2441 = vrot.lane.b32.xlu0 %v7686_v11, %s4921_s17  ;;  %v12973_v60 = vld [vmem:[#allocation35_spill] sm:$0xff] }
 0x193   :  { %v7900_v28 = vadd.f32 %v1546_v19, %v7695_v31  ;;  %v1529_v21 = vmul.f32 %v7817_v62, %v1519_v5  ;;  %v1547_v27 = vmul.f32 %v7820_v2, %v1519_v5  ;;  %v1565_v46 = vmul.f32 %v7827_v57, %v1519_v5  ;;  %v12975_v19 = vld [vmem:[#allocation53_spill] sm:$0xff] }
 0x194   :  { %2443 = vrot.lane.b32.xlu1 %v7705_v35, %s4921_s17  ;;  %v1520_v31 = vsel %vm71_vm4, 0.5, %v12973_v60  ;;  %v7924_v22 = vadd.f32 %v1564_v45, %v7697_v30  ;;  %v12974_v30 = vld [vmem:[#allocation46_spill] sm:$0xff]  ;;  %v7963_v45 = vstv %s7871_s14  ;;  %s8746_s14 = sld [smem:[#allocation2 + $0x35]] }
 0x195   :  { %v1530_v6 = vmul.f32 %v7817_v62, %v1520_v31  ;;  %v1548_v36 = vmul.f32 %v7820_v2, %v1520_v31  ;;  %v1566_v5 = vmul.f32 %v7827_v57, %v1520_v31  ;;  %v7932_v32 = vadd.f32 %v1529_v21, %v7729_v18 }
 0x196   :  { %v7935_v0 = vadd.f32 %v1547_v27, %v7731_v55  ;;  %v7938_v42 = vadd.f32 %v1565_v46, %v7733_v3  ;;  %v1521_v13 = vsel %vm71_vm4, 0.5, %v12974_v30  ;;  %2445 = vrot.lane.b32.xlu0 %v7769_v48, %s4921_s17 }
 0x197   :  { %v7944_v33 = vadd.f32 %v1530_v6, %v7756_v15  ;;  %v7947_v25 = vadd.f32 %v1548_v36, %v7758_v38  ;;  %v7950_v18 = vadd.f32 %v1566_v5, %v7765_v58  ;;  %v1531_v55 = vmul.f32 %v7817_v62, %v1521_v13  ;;  %v12976_v6 = vld [vmem:[#allocation78_spill] sm:$0xff]  ;;  %v7982_v5 = vpop.permute.xlu0 %1709 }
 0x198   :  { %2447 = vrot.lane.b32.xlu1 %v7775_v43, %s4921_s17  ;;  %v1549_v3 = vmul.f32 %v7820_v2, %v1521_v13  ;;  %v1567_v15 = vmul.f32 %v7827_v57, %v1521_v13  ;;  %v1522_v38 = vsel %vm71_vm4, 0.5, %v12975_v19  ;;  %v7980_v36 = vstv %s7891_s3  ;;  %v12978_v13 = vld [vmem:[#allocation15_spill] sm:$0xff]  ;;  %s8762_s3 = sld [smem:[#allocation2 + $0x50]] }
 0x199   :  { %v7966_v58 = vadd.f32 %v1531_v55, %v7798_v12  ;;  %v1532_v21 = vmul.f32 %v7817_v62, %v1522_v38  ;;  %v1550_v27 = vmul.f32 %v7820_v2, %v1522_v38  ;;  %v1568_v46 = vmul.f32 %v7827_v57, %v1522_v38  ;;  %v7984_v62 = vpop.permute.xlu1 %1711  ;;  %v12979_v43 = vld [vmem:[#allocation79_spill] sm:$0xff] }
 0x19a   :  { %v7972_v60 = vadd.f32 %v1549_v3, %v7804_v16  ;;  %v7975_v31 = vadd.f32 %v1567_v15, %v7806_v39  ;;  %v1579_v12 = vmul.f32 %v7963_v45, %v12976_v6  ;;  %v12977_v39 = vld [vmem:[#allocation17_spill] sm:$0xff]  ;;  %v1597_v30 = vmul.f32 %v7980_v36, %v12976_v6 }
 0x19b   :  { %v7987_v2 = vadd.f32 %v1532_v21, %v7822_v9  ;;  %v7990_v57 = vadd.f32 %v1550_v27, %v7824_v37  ;;  %v7993_v16 = vadd.f32 %v1568_v46, %v7832_v20  ;;  %2511 = vrot.lane.b32.xlu0 %v12977_v39, %s4920_s16  ;;  %v8002_v55 = vstv %s7905_s15  ;;  %v8043_v11 = vpop.permute.xlu0 %1713  ;;  %s8764_s15 = sld [smem:[#allocation6]] }
 0x19c   :  { %2513 = vrot.lane.b32.xlu1 %v12978_v13, %s4920_s16  ;;  %v8005_v3 = vstv %s7915_s18  ;;  %v8008_v9 = vstv %s7917_s19  ;;  %v1587_v37 = vadd.f32 %v1579_v12, %v7854_v52  ;;  %v1615_v20 = vmul.f32 %v8002_v55, %v12976_v6  ;;  %s8776_s18 = sld [smem:[#allocation6 + $0x1]]  ;;  %s8778_s19 = sld [smem:[#allocation6 + $0x2]] }
 0x19d   :  { %v8014_v15 = vstv %s7929_s20  ;;  %v1605_v19 = vadd.f32 %v1597_v30, %v7857_v53  ;;  %v1647_v38 = vsel %vm72_vm5, 0.5, %v7736_v24  ;;  %v1580_v52 = vmul.f32 %v7963_v45, %v12979_v43  ;;  %v12980_v30 = vld [vmem:[#allocation33_spill] sm:$0xff]  ;;  %s9810_s20 = sld [smem:[#allocation2 + $0x3c]] }
 0x19e   :  { %v1657_v21 = vmul.f32 %v8005_v3, %v1647_v38  ;;  %v1675_v27 = vmul.f32 %v8008_v9, %v1647_v38  ;;  %v1693_v46 = vmul.f32 %v8014_v15, %v1647_v38  ;;  %v1623_v12 = vadd.f32 %v1615_v20, %v7860_v44  ;;  %v12981_v20 = vld [vmem:[#allocation34_spill] sm:$0xff] }
 0x19f   :  { %v1598_v6 = vmul.f32 %v7980_v36, %v12979_v43  ;;  %v1616_v53 = vmul.f32 %v8002_v55, %v12979_v43  ;;  %v1648_v24 = vsel %vm72_vm5, 0.5, %v7738_v23  ;;  %2515 = vrot.lane.b32.xlu0 %v12980_v30, %s4920_s16  ;;  %v1588_v35 = vadd.f32 %v1580_v52, %v7874_v7  ;;  %v8045_v43 = vpop.permute.xlu1 %1715 }
 0x1a0   :  { %v8035_v48 = vadd.f32 %v1657_v21, %v1587_v37  ;;  %v8037_v38 = vadd.f32 %v1675_v27, %v1605_v19  ;;  %v1658_v44 = vmul.f32 %v8005_v3, %v1648_v24  ;;  %2517 = vrot.lane.b32.xlu1 %v12981_v20, %s4920_s16  ;;  %v8047_v17 = vadd.f32 %v1693_v46, %v1623_v12  ;;  %v12982_v27 = vld [vmem:[#allocation86_spill] sm:$0xff] }
 0x1a1   :  { %v1606_v23 = vadd.f32 %v1598_v6, %v7880_v47  ;;  %v1624_v37 = vadd.f32 %v1616_v53, %v7883_v14  ;;  %v1676_v19 = vmul.f32 %v8008_v9, %v1648_v24  ;;  %v1694_v7 = vmul.f32 %v8014_v15, %v1648_v24  ;;  %v12983_v14 = vld [vmem:[#allocation87_spill] sm:$0xff]  ;;  %v12984_v12 = vld [vmem:[#allocation38_spill] sm:$0xff] }
 0x1a2   :  { %v8052_v21 = vadd.f32 %v1658_v44, %v1588_v35  ;;  %v1581_v52 = vmul.f32 %v7963_v45, %v12982_v27  ;;  %v1599_v41 = vmul.f32 %v7980_v36, %v12982_v27  ;;  %v1617_v46 = vmul.f32 %v8002_v55, %v12982_v27 }
 0x1a3   :  { %v8059_v26 = vadd.f32 %v1676_v19, %v1606_v23  ;;  %v1649_v47 = vsel %vm72_vm5, 0.5, %v7794_v54  ;;  %v1582_v35 = vmul.f32 %v7963_v45, %v12983_v14  ;;  %2519 = vrot.lane.b32.xlu0 %v12984_v12, %s4920_s16  ;;  %v8070_v6 = vadd.f32 %v1694_v7, %v1624_v37  ;;  %v12985_v23 = vld [vmem:[#allocation43_spill] sm:$0xff]  ;;  %v8090_v7 = vpop.permute.xlu0 %1717 }
 0x1a4   :  { %v1589_v53 = vadd.f32 %v1581_v52, %v7886_v40  ;;  %v1607_v24 = vadd.f32 %v1599_v41, %v7889_v10  ;;  %v1659_v44 = vmul.f32 %v8005_v3, %v1649_v47  ;;  %2521 = vrot.lane.b32.xlu1 %v12985_v23, %s4920_s16  ;;  %v1625_v19 = vadd.f32 %v1617_v46, %v7894_v4  ;;  %v8092_v4 = vpop.permute.xlu1 %1719 }
 0x1a5   :  { %v1677_v54 = vmul.f32 %v8008_v9, %v1649_v47  ;;  %v1695_v27 = vmul.f32 %v8014_v15, %v1649_v47  ;;  %v1600_v49 = vmul.f32 %v7980_v36, %v12983_v14  ;;  %v1618_v40 = vmul.f32 %v8002_v55, %v12983_v14 }
 0x1a6   :  { %v8082_v37 = vadd.f32 %v1659_v44, %v1589_v53  ;;  %v1590_v41 = vadd.f32 %v1582_v35, %v7897_v1  ;;  %v1650_v10 = vsel %vm72_vm5, 0.5, %v7796_v56  ;;  %v12986_v35 = vld [vmem:[#allocation92_spill] sm:$0xff] }
 0x1a7   :  { %v8094_v52 = vadd.f32 %v1677_v54, %v1607_v24  ;;  %v8096_v46 = vadd.f32 %v1695_v27, %v1625_v19  ;;  %v1608_v47 = vadd.f32 %v1600_v49, %v7900_v28  ;;  %v1660_v53 = vmul.f32 %v8005_v3, %v1650_v10  ;;  %2523 = vrot.lane.b32.xlu0 %v7727_v29, %s4920_s16 }
 0x1a8   :  { %v1626_v1 = vadd.f32 %v1618_v40, %v7924_v22  ;;  %v1678_v14 = vmul.f32 %v8008_v9, %v1650_v10  ;;  %v1696_v56 = vmul.f32 %v8014_v15, %v1650_v10  ;;  %v1583_v44 = vmul.f32 %v7963_v45, %v12986_v35  ;;  %2525 = vrot.lane.b32.xlu1 %v7496_v59, %s4920_s16 }
 0x1a9   :  { %v8109_v24 = vadd.f32 %v1660_v53, %v1590_v41  ;;  %v1601_v49 = vmul.f32 %v7980_v36, %v12986_v35  ;;  %v1619_v28 = vmul.f32 %v8002_v55, %v12986_v35  ;;  %v1651_v22 = vsel %vm72_vm5, 0.5, %v7849_v61 }
 0x1aa   :  { %v8118_v19 = vadd.f32 %v1678_v14, %v1608_v47  ;;  %v8120_v54 = vadd.f32 %v1696_v56, %v1626_v1  ;;  %v1591_v27 = vadd.f32 %v1583_v44, %v7932_v32  ;;  %v1661_v40 = vmul.f32 %v8005_v3, %v1651_v22  ;;  %v12987_v47 = vld [vmem:[#allocation93_spill] sm:$0xff]  ;;  %v8144_v14 = vpop.permute.xlu1 %1723 }
 0x1ab   :  { %v1609_v41 = vadd.f32 %v1601_v49, %v7935_v0  ;;  %v1627_v10 = vadd.f32 %v1619_v28, %v7938_v42  ;;  %v1679_v53 = vmul.f32 %v8008_v9, %v1651_v22  ;;  %v1697_v35 = vmul.f32 %v8014_v15, %v1651_v22  ;;  %2643 = vrot.lane.b32.xlu0 %v12977_v39, %s4921_s17  ;;  %v8142_v42 = vpop.permute.xlu0 %1721  ;;  %v12988_v28 = vld [vmem:[#allocation101_spill] sm:$0xff] }
 0x1ac   :  { %v8132_v61 = vadd.f32 %v1661_v40, %v1591_v27  ;;  %v1584_v32 = vmul.f32 %v7963_v45, %v12987_v47  ;;  %v1602_v1 = vmul.f32 %v7980_v36, %v12987_v47  ;;  %v1620_v0 = vmul.f32 %v8002_v55, %v12987_v47  ;;  %2645 = vrot.lane.b32.xlu1 %v12978_v13, %s4921_s17 }
 0x1ad   :  { %v8146_v56 = vadd.f32 %v1679_v53, %v1609_v41  ;;  %v8148_v44 = vadd.f32 %v1697_v35, %v1627_v10  ;;  %v1652_v49 = vsel %vm72_vm5, 0.5, %v7851_v50  ;;  %v1585_v22 = vmul.f32 %v7963_v45, %v12988_v28  ;;  %v12989_v35 = vld [vmem:[#allocation102_spill] sm:$0xff] }
 0x1ae   :  { %v1592_v27 = vadd.f32 %v1584_v32, %v7944_v33  ;;  %v1610_v40 = vadd.f32 %v1602_v1, %v7947_v25  ;;  %v1628_v47 = vadd.f32 %v1620_v0, %v7950_v18  ;;  %v1662_v34 = vmul.f32 %v8005_v3, %v1652_v49 }
 0x1af   :  { %v1680_v41 = vmul.f32 %v8008_v9, %v1652_v49  ;;  %v1698_v10 = vmul.f32 %v8014_v15, %v1652_v49  ;;  %v1603_v50 = vmul.f32 %v7980_v36, %v12988_v28  ;;  %v1621_v33 = vmul.f32 %v8002_v55, %v12988_v28  ;;  %2647 = vrot.lane.b32.xlu0 %v12980_v30, %s4921_s17 }
 0x1b0   :  { %v8171_v25 = vadd.f32 %v1662_v34, %v1592_v27  ;;  %v1593_v18 = vadd.f32 %v1585_v22, %v7966_v58  ;;  %v1653_v53 = vsel %vm72_vm5, 0.5, %v7919_v8  ;;  %v1586_v32 = vmul.f32 %v7963_v45, %v12989_v35  ;;  %2649 = vrot.lane.b32.xlu1 %v12981_v20, %s4921_s17  ;;  %v8192_v22 = vpop.permute.xlu0 %1841  ;;  %v8194_v27 = vpop.permute.xlu1 %1843 }
 0x1b1   :  { %v8181_v1 = vadd.f32 %v1680_v41, %v1610_v40  ;;  %v8183_v0 = vadd.f32 %v1698_v10, %v1628_v47  ;;  %v1611_v34 = vadd.f32 %v1603_v50, %v7972_v60  ;;  %v1629_v49 = vadd.f32 %v1621_v33, %v7975_v31 }
 0x1b2   :  { %v1663_v58 = vmul.f32 %v8005_v3, %v1653_v53  ;;  %v1681_v28 = vmul.f32 %v8008_v9, %v1653_v53  ;;  %v1699_v8 = vmul.f32 %v8014_v15, %v1653_v53  ;;  %v1604_v45 = vmul.f32 %v7980_v36, %v12989_v35 }
 0x1b3   :  { %v1622_v60 = vmul.f32 %v8002_v55, %v12989_v35  ;;  %v1594_v31 = vadd.f32 %v1586_v32, %v7987_v2  ;;  %v1654_v40 = vsel %vm72_vm5, 0.5, %v7921_v51  ;;  %v8203_v47 = vstv %s8130_s21  ;;  %2651 = vrot.lane.b32.xlu0 %v12984_v12, %s4921_s17  ;;  %s9950_s21 = sld [smem:[#allocation2 + $0x7]] }
 0x1b4   :  { %v8207_v36 = vadd.f32 %v1663_v58, %v1593_v18  ;;  %v8209_v41 = vadd.f32 %v1681_v28, %v1611_v34  ;;  %v8211_v10 = vadd.f32 %v1699_v8, %v1629_v49  ;;  %v1612_v50 = vadd.f32 %v1604_v45, %v7990_v57  ;;  %2653 = vrot.lane.b32.xlu1 %v12985_v23, %s4921_s17  ;;  %v8249_v58 = vpop.permute.xlu1 %1847 }
 0x1b5   :  { %v1630_v2 = vadd.f32 %v1622_v60, %v7993_v16  ;;  %v1664_v51 = vmul.f32 %v8005_v3, %v1654_v40  ;;  %v1682_v55 = vmul.f32 %v8008_v9, %v1654_v40  ;;  %v1700_v33 = vmul.f32 %v8014_v15, %v1654_v40 }
 0x1b6   :  { %v8221_v53 = vstv %s8159_s22  ;;  %v8224_v18 = vstv %s8161_s23  ;;  %v1725_v35 = vsel %vm71_vm4, 0.5, %v7982_v5  ;;  %v1726_v57 = vsel %vm71_vm4, 0.5, %v7984_v62  ;;  %v8247_v62 = vpop.permute.xlu0 %1845  ;;  %s9028_s22 = sld [smem:[#allocation2]]  ;;  %s9070_s23 = sld [smem:[#allocation2 + $0x1b]] }
 0x1b7   :  { %v8232_v32 = vadd.f32 %v1664_v51, %v1594_v31  ;;  %v8234_v16 = vadd.f32 %v1682_v55, %v1612_v50  ;;  %v8236_v3 = vadd.f32 %v1700_v33, %v1630_v2  ;;  %v1735_v9 = vmul.f32 %v8203_v47, %v1725_v35  ;;  %2655 = vrot.lane.b32.xlu0 %v7727_v29, %s4921_s17 }
 0x1b8   :  { %v1753_v15 = vmul.f32 %v8221_v53, %v1725_v35  ;;  %v1771_v34 = vmul.f32 %v8224_v18, %v1725_v35  ;;  %v1736_v5 = vmul.f32 %v8203_v47, %v1726_v57  ;;  %v1754_v49 = vmul.f32 %v8221_v53, %v1726_v57  ;;  %2657 = vrot.lane.b32.xlu1 %v7496_v59, %s4921_s17 }
 0x1b9   :  { %v8252_v28 = vadd.f32 %v1735_v9, %v8035_v48  ;;  %v1772_v8 = vmul.f32 %v8224_v18, %v1726_v57  ;;  %v1727_v45 = vsel %vm71_vm4, 0.5, %v8043_v11  ;;  %v1728_v60 = vsel %vm71_vm4, 0.5, %v8045_v43 }
 0x1ba   :  { %v8262_v31 = vadd.f32 %v1753_v15, %v8037_v38  ;;  %v8265_v59 = vadd.f32 %v1771_v34, %v8047_v17  ;;  %v8268_v40 = vadd.f32 %v1736_v5, %v8052_v21  ;;  %v8271_v48 = vadd.f32 %v1754_v49, %v8059_v26  ;;  %v8309_v57 = vpop.permute.xlu0 %1849 }
 0x1bb   :  { %v8274_v50 = vadd.f32 %v1772_v8, %v8070_v6  ;;  %v1737_v11 = vmul.f32 %v8203_v47, %v1727_v45  ;;  %v1755_v2 = vmul.f32 %v8221_v53, %v1727_v45  ;;  %v1773_v43 = vmul.f32 %v8224_v18, %v1727_v45 }
 0x1bc   :  { %v1738_v38 = vmul.f32 %v8203_v47, %v1728_v60  ;;  %v1756_v17 = vmul.f32 %v8221_v53, %v1728_v60  ;;  %v1774_v51 = vmul.f32 %v8224_v18, %v1728_v60  ;;  %v1729_v26 = vsel %vm71_vm4, 0.5, %v8090_v7 }
 0x1bd   :  { %v8286_v21 = vadd.f32 %v1737_v11, %v8082_v37  ;;  %v8289_v6 = vadd.f32 %v1755_v2, %v8094_v52  ;;  %v8292_v55 = vadd.f32 %v1773_v43, %v8096_v46  ;;  %v1739_v33 = vmul.f32 %v8203_v47, %v1729_v26  ;;  %v8311_v46 = vpop.permute.xlu1 %1851 }
 0x1be   :  { %v8300_v35 = vadd.f32 %v1738_v38, %v8109_v24  ;;  %v8303_v7 = vadd.f32 %v1756_v17, %v8118_v19  ;;  %v8306_v37 = vadd.f32 %v1774_v51, %v8120_v54  ;;  %v1757_v52 = vmul.f32 %v8221_v53, %v1729_v26  ;;  %v13041_v51 = vld [vmem:[#allocation47_spill] sm:$0xff] }
 0x1bf   :  { %v8314_v9 = vadd.f32 %v1739_v33, %v8132_v61  ;;  %v1775_v15 = vmul.f32 %v8224_v18, %v1729_v26  ;;  %v1730_v24 = vsel %vm71_vm4, 0.5, %v8092_v4  ;;  %v1731_v19 = vsel %vm71_vm4, 0.5, %v8142_v42  ;;  %v4798_v26 = vld [vmem:[#allocation8 + $0x100] sm:$0xff] }
 0x1c0   :  { %v8328_v54 = vadd.f32 %v1757_v52, %v8146_v56  ;;  %v1740_v61 = vmul.f32 %v8203_v47, %v1730_v24  ;;  %v1758_v34 = vmul.f32 %v8221_v53, %v1730_v24  ;;  %v1776_v5 = vmul.f32 %v8224_v18, %v1730_v24 }
 0x1c1   :  { %v8338_v4 = vadd.f32 %v1775_v15, %v8148_v44  ;;  %v1741_v42 = vmul.f32 %v8203_v47, %v1731_v19  ;;  %v1759_v49 = vmul.f32 %v8221_v53, %v1731_v19  ;;  %v1777_v56 = vmul.f32 %v8224_v18, %v1731_v19  ;;  %v8371_v17 = vpop.permute.xlu1 %1855 }
 0x1c2   :  { %v8344_v8 = vadd.f32 %v1740_v61, %v8171_v25  ;;  %v8347_v45 = vadd.f32 %v1758_v34, %v8181_v1  ;;  %v8350_v60 = vadd.f32 %v1776_v5, %v8183_v0  ;;  %v1732_v44 = vsel %vm71_vm4, 0.5, %v8144_v14 }
 0x1c3   :  { %v8356_v11 = vadd.f32 %v1741_v42, %v8207_v36  ;;  %v8359_v2 = vadd.f32 %v1759_v49, %v8209_v41  ;;  %v8362_v25 = vadd.f32 %v1777_v56, %v8211_v10  ;;  %v1742_v1 = vmul.f32 %v8203_v47, %v1732_v44  ;;  %v8369_v36 = vpop.permute.xlu0 %1853  ;;  %v4799_v42 = vld [vmem:[#allocation8 + $0x108] sm:$0xff] }
 0x1c4   :  { %v1760_v43 = vmul.f32 %v8221_v53, %v1732_v44  ;;  %v1778_v0 = vmul.f32 %v8224_v18, %v1732_v44  ;;  %v12598_v38 = vrot.slane %v12977_v39, 1  ;;  %v2722_v14 = vrot.slane %v12978_v13, 1 }
 0x1c5   :  { %v8374_v41 = vadd.f32 %v1742_v1, %v8232_v32  ;;  %v2723_v47 = vrot.slane %v12980_v30, 1  ;;  %v8378_v10 = vstv %s8295_s24  ;;  %v8381_v53 = vstv %s8297_s25  ;;  %s9082_s24 = sld [smem:[#allocation2 + $0x36]]  ;;  %s9093_s25 = sld [smem:[#allocation2 + $0x1]] }
 0x1c6   :  { %v8384_v18 = vadd.f32 %v1760_v43, %v8234_v16  ;;  %v8387_v13 = vadd.f32 %v1778_v0, %v8236_v3  ;;  %v8393_v32 = vsel %vm532_vm2, %v12598_v38, %v2722_v14  ;;  %v1789_v30 = vmul.f32 %v4798_v26, %v8378_v10 }
 0x1c7   :  { %12991 = vst [vmem:[#allocation50_spill] sm:$0xff] %v8393_v32  ;;  %2749 = vrot.lane.b32.xlu0 %v8393_v32, %s4920_s16  ;;  %v8400_v33 = vsel %vm532_vm2, %v2722_v14, %v2723_v47  ;;  %v1807_v16 = vmul.f32 %v4798_v26, %v8381_v53  ;;  %v8404_v3 = vstv %s8323_s26  ;;  %v8407_v52 = vstv %s8325_s0  ;;  %s9095_s26 = sld [smem:[#allocation2 + $0x1c]]  ;;  %s9102_s0 = sld [smem:[#allocation2 + $0x37]] }
 0x1c8   :  { %12992 = vst [vmem:[#allocation51_spill] sm:$0xff] %v8400_v33  ;;  %2751 = vrot.lane.b32.xlu1 %v8400_v33, %s4920_s16  ;;  %v1825_v15 = vmul.f32 %v4798_v26, %v8404_v3  ;;  %v8413_v24 = vstv %s8333_s1  ;;  %v8416_v19 = vstv %s8335_s27  ;;  %v1797_v61 = vadd.f32 %v1789_v30, %v8252_v28  ;;  %v8429_v28 = vpop.permute.xlu0 %1947  ;;  %s9245_s1 = sld [smem:[#allocation2 + $0x2]]  ;;  %s9255_s27 = sld [smem:[#allocation2 + $0x1d]] }
 0x1c9   :  { %v1815_v34 = vadd.f32 %v1807_v16, %v8262_v31  ;;  %v1857_v5 = vsel %vm72_vm5, 0.5, %v8192_v22  ;;  %v1790_v49 = vmul.f32 %v4799_v42, %v8378_v10  ;;  %v1808_v56 = vmul.f32 %v4799_v42, %v8381_v53  ;;  %v8431_v31 = vpop.permute.xlu1 %1949 }
 0x1ca   :  { %v1833_v44 = vadd.f32 %v1825_v15, %v8265_v59  ;;  %v1867_v1 = vmul.f32 %v8407_v52, %v1857_v5  ;;  %v1885_v43 = vmul.f32 %v8413_v24, %v1857_v5  ;;  %v1903_v0 = vmul.f32 %v8416_v19, %v1857_v5 }
 0x1cb   :  { %v1826_v14 = vmul.f32 %v4799_v42, %v8404_v3  ;;  %v1798_v22 = vadd.f32 %v1790_v49, %v8268_v40  ;;  %v1816_v26 = vadd.f32 %v1808_v56, %v8271_v48  ;;  %v1858_v59 = vsel %vm72_vm5, 0.5, %v8194_v27 }
 0x1cc   :  { %v8439_v30 = vadd.f32 %v1867_v1, %v1797_v61  ;;  %v8441_v16 = vadd.f32 %v1885_v43, %v1815_v34  ;;  %v8443_v15 = vadd.f32 %v1903_v0, %v1833_v44  ;;  %v1868_v5 = vmul.f32 %v8407_v52, %v1858_v59  ;;  %v4800_v61 = vld [vmem:[#allocation8 + $0x110] sm:$0xff] }
 0x1cd   :  { %v1834_v38 = vadd.f32 %v1826_v14, %v8274_v50  ;;  %v1886_v42 = vmul.f32 %v8413_v24, %v1858_v59  ;;  %v1904_v40 = vmul.f32 %v8416_v19, %v1858_v59  ;;  %v2724_v48 = vrot.slane %v12981_v20, 1  ;;  %v8475_v14 = vpop.permute.xlu0 %1951 }
 0x1ce   :  { %v8450_v49 = vadd.f32 %v1868_v5, %v1798_v22  ;;  %v2725_v27 = vrot.slane %v12984_v12, 1  ;;  %v1791_v34 = vmul.f32 %v4800_v61, %v8378_v10  ;;  %v1809_v56 = vmul.f32 %v4800_v61, %v8381_v53 }
 0x1cf   :  { %v8455_v44 = vadd.f32 %v1886_v42, %v1816_v26  ;;  %v8457_v1 = vadd.f32 %v1904_v40, %v1834_v38  ;;  %v8461_v50 = vsel %vm532_vm2, %v2723_v47, %v2724_v48  ;;  %v1827_v43 = vmul.f32 %v4800_v61, %v8404_v3  ;;  %v8477_v47 = vpop.permute.xlu1 %1953 }
 0x1d0   :  { %12993 = vst [vmem:[#allocation54_spill] sm:$0xff] %v8461_v50  ;;  %2753 = vrot.lane.b32.xlu0 %v8461_v50, %s4920_s16  ;;  %v8468_v20 = vsel %vm532_vm2, %v2724_v48, %v2725_v27  ;;  %v1799_v12 = vadd.f32 %v1791_v34, %v8286_v21  ;;  %v1817_v0 = vadd.f32 %v1809_v56, %v8289_v6  ;;  %v1859_v38 = vsel %vm72_vm5, 0.5, %v8247_v62  ;;  %v4801_v6 = vld [vmem:[#allocation8 + $0x118] sm:$0xff] }
 0x1d1   :  { %12994 = vst [vmem:[#allocation55_spill] sm:$0xff] %v8468_v20  ;;  %12995 = vst [vmem:[#allocation56_spill] sm:$0xff] %v8477_v47  ;;  %2755 = vrot.lane.b32.xlu1 %v8468_v20, %s4920_s16  ;;  %v1835_v22 = vadd.f32 %v1827_v43, %v8292_v55  ;;  %v1869_v26 = vmul.f32 %v8407_v52, %v1859_v38  ;;  %v1887_v59 = vmul.f32 %v8413_v24, %v1859_v38 }
 0x1d2   :  { %v1905_v21 = vmul.f32 %v8416_v19, %v1859_v38  ;;  %v1792_v5 = vmul.f32 %v4801_v6, %v8378_v10  ;;  %v1810_v62 = vmul.f32 %v4801_v6, %v8381_v53  ;;  %v1828_v42 = vmul.f32 %v4801_v6, %v8404_v3 }
 0x1d3   :  { %v1860_v40 = vsel %vm72_vm5, 0.5, %v8249_v58  ;;  %v8491_v48 = vadd.f32 %v1869_v26, %v1799_v12  ;;  %v8493_v55 = vadd.f32 %v1887_v59, %v1817_v0  ;;  %v2726_v58 = vrot.slane %v12985_v23, 1  ;;  %v4802_v0 = vld [vmem:[#allocation8 + $0x120] sm:$0xff] }
 0x1d4   :  { %v8495_v61 = vadd.f32 %v1905_v21, %v1835_v22  ;;  %v1870_v34 = vmul.f32 %v8407_v52, %v1860_v40  ;;  %v1800_v56 = vadd.f32 %v1792_v5, %v8300_v35  ;;  %v1818_v43 = vadd.f32 %v1810_v62, %v8303_v7  ;;  %v8514_v21 = vpop.permute.xlu1 %1957 }
 0x1d5   :  { %v1836_v38 = vadd.f32 %v1828_v42, %v8306_v37  ;;  %v1888_v6 = vmul.f32 %v8413_v24, %v1860_v40  ;;  %v1906_v47 = vmul.f32 %v8416_v19, %v1860_v40  ;;  %v2727_v12 = vrot.slane %v7727_v29, 1  ;;  %v8512_v37 = vpop.permute.xlu0 %1955  ;;  %v4803_v40 = vld [vmem:[#allocation8 + $0x128] sm:$0xff] }
 0x1d6   :  { %v1793_v22 = vmul.f32 %v4802_v0, %v8378_v10  ;;  %v8506_v26 = vadd.f32 %v1870_v34, %v1800_v56  ;;  %v1811_v35 = vmul.f32 %v4802_v0, %v8381_v53  ;;  %v1829_v7 = vmul.f32 %v4802_v0, %v8404_v3 }
 0x1d7   :  { %v8508_v59 = vadd.f32 %v1888_v6, %v1818_v43  ;;  %v8516_v5 = vadd.f32 %v1906_v47, %v1836_v38  ;;  %v8520_v29 = vsel %vm532_vm2, %v2725_v27, %v2726_v58  ;;  %v8524_v23 = vsel %vm532_vm2, %v2726_v58, %v2727_v12 }
 0x1d8   :  { %12996 = vst [vmem:[#allocation58_spill] sm:$0xff] %v8520_v29  ;;  %12997 = vst [vmem:[#allocation59_spill] sm:$0xff] %v8524_v23  ;;  %v1801_v62 = vadd.f32 %v1793_v22, %v8314_v9  ;;  %2757 = vrot.lane.b32.xlu0 %v8520_v29, %s4920_s16  ;;  %2759 = vrot.lane.b32.xlu1 %v8524_v23, %s4920_s16  ;;  %v1819_v42 = vadd.f32 %v1811_v35, %v8328_v54  ;;  %v1861_v27 = vsel %vm72_vm5, 0.5, %v8309_v57  ;;  %v4804_v57 = vld [vmem:[#allocation8 + $0x78] sm:$0xff] }
 0x1d9   :  { %v1837_v47 = vadd.f32 %v1829_v7, %v8338_v4  ;;  %v1794_v34 = vmul.f32 %v4803_v40, %v8378_v10  ;;  %v1871_v56 = vmul.f32 %v8407_v52, %v1861_v27  ;;  %v1889_v9 = vmul.f32 %v8413_v24, %v1861_v27 }
 0x1da   :  { %v1907_v43 = vmul.f32 %v8416_v19, %v1861_v27  ;;  %v1812_v38 = vmul.f32 %v4803_v40, %v8381_v53  ;;  %v1830_v6 = vmul.f32 %v4803_v40, %v8404_v3  ;;  %v1862_v4 = vsel %vm72_vm5, 0.5, %v8311_v46  ;;  %v4604_v27 = vld [vmem:[%s12486_s4 + $0x4] ss:$0 sm:$0xff] }
 0x1db   :  { %v1802_v54 = vadd.f32 %v1794_v34, %v8344_v8  ;;  %v2728_v58 = vrot.slane %v4804_v57, 1  ;;  %v8546_v0 = vadd.f32 %v1871_v56, %v1801_v62  ;;  %v8548_v22 = vadd.f32 %v1889_v9, %v1819_v42  ;;  %v8564_v62 = vpop.permute.xlu0 %1959  ;;  %v8566_v42 = vpop.permute.xlu1 %1961  ;;  %v4805_v56 = vld [vmem:[#allocation8 + $0x130] sm:$0xff] }
 0x1dc   :  { %v8550_v35 = vadd.f32 %v1907_v43, %v1837_v47  ;;  %v1820_v7 = vadd.f32 %v1812_v38, %v8347_v45  ;;  %v1838_v8 = vadd.f32 %v1830_v6, %v8350_v60  ;;  %v1872_v40 = vmul.f32 %v8407_v52, %v1862_v4 }
 0x1dd   :  { %v1890_v46 = vmul.f32 %v8413_v24, %v1862_v4  ;;  %v1908_v34 = vmul.f32 %v8416_v19, %v1862_v4  ;;  %v8570_v45 = vsel %vm532_vm2, %v2727_v12, %v2728_v58  ;;  %v12999_v60 = vrot.slane %v12977_v39, 1 }
 0x1de   :  { %12998 = vst [vmem:[#allocation60_spill] sm:$0xff] %v8570_v45  ;;  %v1795_v9 = vmul.f32 %v4805_v56, %v8378_v10  ;;  %v1813_v43 = vmul.f32 %v4805_v56, %v8381_v53  ;;  %v8580_v38 = vadd.f32 %v1872_v40, %v1802_v54  ;;  %2761 = vrot.lane.b32.xlu0 %v8570_v45, %s4920_s16 }
 0x1df   :  { %v2736_v47 = vsel %vm532_vm2, %v2728_v58, %v12999_v60  ;;  %v8582_v6 = vadd.f32 %v1890_v46, %v1820_v7  ;;  %v8584_v4 = vadd.f32 %v1908_v34, %v1838_v8  ;;  %v1831_v57 = vmul.f32 %v4805_v56, %v8404_v3  ;;  %v4806_v46 = vld [vmem:[#allocation8 + $0x138] sm:$0xff] }
 0x1e0   :  { %v8590_v12 = vsel %vm88_vm3, %v4604_v27, %v2736_v47  ;;  %v1803_v58 = vadd.f32 %v1795_v9, %v8356_v11  ;;  %v1821_v54 = vadd.f32 %v1813_v43, %v8359_v2  ;;  %v1863_v7 = vsel %vm72_vm5, 0.5, %v8369_v36 }
 0x1e1   :  { %13001 = vst [vmem:[#allocation62_spill] sm:$0xff] %v8590_v12  ;;  %2763 = vrot.lane.b32.xlu1 %v8590_v12, %s4920_s16  ;;  %v1873_v8 = vmul.f32 %v8407_v52, %v1863_v7  ;;  %v1891_v40 = vmul.f32 %v8413_v24, %v1863_v7  ;;  %v1909_v27 = vmul.f32 %v8416_v19, %v1863_v7  ;;  %v1864_v2 = vsel %vm72_vm5, 0.5, %v8371_v17 }
 0x1e2   :  { %v1796_v34 = vmul.f32 %v4806_v46, %v8378_v10  ;;  %v1839_v60 = vadd.f32 %v1831_v57, %v8362_v25  ;;  %v1814_v47 = vmul.f32 %v4806_v46, %v8381_v53  ;;  %v1832_v11 = vmul.f32 %v4806_v46, %v8404_v3  ;;  %2881 = vrot.lane.b32.xlu0 %v8393_v32, %s4921_s17  ;;  %v8618_v25 = vpop.permute.xlu0 %2079  ;;  %v8620_v53 = vpop.permute.xlu1 %2081 }
 0x1e3   :  { %v8610_v36 = vadd.f32 %v1873_v8, %v1803_v58  ;;  %v8612_v56 = vadd.f32 %v1891_v40, %v1821_v54  ;;  %v1874_v10 = vmul.f32 %v8407_v52, %v1864_v2  ;;  %v1892_v57 = vmul.f32 %v8413_v24, %v1864_v2 }
 0x1e4   :  { %v1804_v9 = vadd.f32 %v1796_v34, %v8374_v41  ;;  %v8622_v3 = vadd.f32 %v1909_v27, %v1839_v60  ;;  %v1822_v17 = vadd.f32 %v1814_v47, %v8384_v18  ;;  %v1840_v43 = vadd.f32 %v1832_v11, %v8387_v13 }
 0x1e5   :  { %2883 = vrot.lane.b32.xlu1 %v8400_v33, %s4921_s17  ;;  %v1910_v52 = vmul.f32 %v8416_v19, %v1864_v2  ;;  %v8633_v58 = vstv %s8560_s30  ;;  %v8636_v54 = vstv %s8562_s6  ;;  %v8641_v8 = vstv %s8578_s7  ;;  %s9402_s30 = sld [smem:[#allocation2 + $0x1e]]  ;;  %s9416_s6 = sld [smem:[#allocation2 + $0x39]] }
 0x1e6   :  { %v8629_v41 = vadd.f32 %v1874_v10, %v1804_v9  ;;  %v8638_v7 = vadd.f32 %v1892_v57, %v1822_v17  ;;  %v1963_v18 = vsel %vm71_vm4, 0.5, %v8429_v28  ;;  %v1964_v13 = vsel %vm71_vm4, 0.5, %v8431_v31  ;;  %2885 = vrot.lane.b32.xlu0 %v8461_v50, %s4921_s17  ;;  %v8674_v9 = vpop.permute.xlu0 %2083  ;;  %v8676_v10 = vpop.permute.xlu1 %2085  ;;  %v13002_v57 = vld [vmem:[#allocation56_spill] sm:$0xff]  ;;  %s9542_s7 = sld [smem:[#allocation2 + $0x4]] }
 0x1e7   :  { %v8649_v24 = vadd.f32 %v1910_v52, %v1840_v43  ;;  %v1973_v19 = vmul.f32 %v8633_v58, %v1963_v18  ;;  %v1991_v40 = vmul.f32 %v8636_v54, %v1963_v18  ;;  %v2009_v27 = vmul.f32 %v8641_v8, %v1963_v18 }
 0x1e8   :  { %v1974_v46 = vmul.f32 %v8633_v58, %v1964_v13  ;;  %v1992_v34 = vmul.f32 %v8636_v54, %v1964_v13  ;;  %v2010_v28 = vmul.f32 %v8641_v8, %v1964_v13  ;;  %v1965_v31 = vsel %vm71_vm4, 0.5, %v8475_v14 }
 0x1e9   :  { %2887 = vrot.lane.b32.xlu1 %v8468_v20, %s4921_s17  ;;  %v8665_v60 = vadd.f32 %v1973_v19, %v8439_v30  ;;  %v8668_v47 = vadd.f32 %v1991_v40, %v8441_v16  ;;  %v8671_v11 = vadd.f32 %v2009_v27, %v8443_v15  ;;  %v1975_v2 = vmul.f32 %v8633_v58, %v1965_v31 }
 0x1ea   :  { %v8679_v17 = vadd.f32 %v1974_v46, %v8450_v49  ;;  %v8682_v14 = vadd.f32 %v1992_v34, %v8455_v44  ;;  %v8685_v30 = vadd.f32 %v2010_v28, %v8457_v1  ;;  %v1993_v16 = vmul.f32 %v8636_v54, %v1965_v31  ;;  %2889 = vrot.lane.b32.xlu0 %v8520_v29, %s4921_s17 }
 0x1eb   :  { %v8689_v15 = vadd.f32 %v1975_v2, %v8491_v48  ;;  %v2011_v43 = vmul.f32 %v8641_v8, %v1965_v31  ;;  %v1966_v52 = vsel %vm71_vm4, 0.5, %v13002_v57  ;;  %v1967_v49 = vsel %vm71_vm4, 0.5, %v8512_v37 }
 0x1ec   :  { %v8701_v44 = vadd.f32 %v1993_v16, %v8493_v55  ;;  %v1976_v1 = vmul.f32 %v8633_v58, %v1966_v52  ;;  %v1994_v48 = vmul.f32 %v8636_v54, %v1966_v52  ;;  %v2012_v18 = vmul.f32 %v8641_v8, %v1966_v52  ;;  %v8772_v52 = vld [vmem:[#allocation8 + $0xc0] sm:$0xff] }
 0x1ed   :  { %2891 = vrot.lane.b32.xlu1 %v8524_v23, %s4921_s17  ;;  %v8709_v13 = vadd.f32 %v2011_v43, %v8495_v61  ;;  %v1977_v19 = vmul.f32 %v8633_v58, %v1967_v49  ;;  %v1995_v40 = vmul.f32 %v8636_v54, %v1967_v49  ;;  %v2013_v37 = vmul.f32 %v8641_v8, %v1967_v49 }
 0x1ee   :  { %v8719_v55 = vadd.f32 %v1976_v1, %v8506_v26  ;;  %v8722_v27 = vadd.f32 %v1994_v48, %v8508_v59  ;;  %v8725_v46 = vadd.f32 %v2012_v18, %v8516_v5  ;;  %v1968_v61 = vsel %vm71_vm4, 0.5, %v8514_v21  ;;  %2893 = vrot.lane.b32.xlu0 %v8570_v45, %s4921_s17  ;;  %v8748_v21 = vpop.permute.xlu0 %2087  ;;  %v8750_v5 = vpop.permute.xlu1 %2089  ;;  %13003 = vst [vmem:[#allocation63_spill] sm:$0xff] %v8772_v52  ;;  %v8788_v48 = vld [vmem:[#allocation8 + $0xc8] sm:$0xff] }
 0x1ef   :  { %v8733_v34 = vadd.f32 %v1977_v19, %v8546_v0  ;;  %v8736_v28 = vadd.f32 %v1995_v40, %v8548_v22  ;;  %v8739_v26 = vadd.f32 %v2013_v37, %v8550_v35  ;;  %v1978_v59 = vmul.f32 %v8633_v58, %v1968_v61  ;;  %13004 = vst [vmem:[#allocation64_spill] sm:$0xff] %v8788_v48  ;;  %v13010_v45 = vld [vmem:[#allocation23_spill] sm:$0xff] }
 0x1f0   :  { %v1996_v0 = vmul.f32 %v8636_v54, %v1968_v61  ;;  %v2014_v22 = vmul.f32 %v8641_v8, %v1968_v61  ;;  %v1969_v35 = vsel %vm71_vm4, 0.5, %v8564_v62  ;;  %v1970_v31 = vsel %vm71_vm4, 0.5, %v8566_v42  ;;  %v8774_v62 = vld [vmem:[#allocation8 + $0xf8] sm:$0xff] }
 0x1f1   :  { %2895 = vrot.lane.b32.xlu1 %v8590_v12, %s4921_s17  ;;  %v8767_v2 = vadd.f32 %v1978_v59, %v8580_v38  ;;  %v1979_v16 = vmul.f32 %v8633_v58, %v1969_v35  ;;  %v1997_v43 = vmul.f32 %v8636_v54, %v1969_v35  ;;  %v2015_v57 = vmul.f32 %v8641_v8, %v1969_v35  ;;  %v13007_v59 = vld [vmem:[#allocation22_spill] sm:$0xff] }
 0x1f2   :  { %v8781_v42 = vadd.f32 %v1996_v0, %v8582_v6  ;;  %v8784_v38 = vadd.f32 %v2014_v22, %v8584_v4  ;;  %v1980_v49 = vmul.f32 %v8633_v58, %v1970_v31  ;;  %v1998_v1 = vmul.f32 %v8636_v54, %v1970_v31  ;;  %v8821_v37 = vpop.permute.xlu0 %2091  ;;  %v8823_v61 = vpop.permute.xlu1 %2093 }
 0x1f3   :  { %v8791_v18 = vadd.f32 %v1979_v16, %v8610_v36  ;;  %v8794_v19 = vadd.f32 %v1997_v43, %v8612_v56  ;;  %v8797_v6 = vadd.f32 %v2015_v57, %v8622_v3  ;;  %v2016_v4 = vmul.f32 %v8641_v8, %v1970_v31  ;;  %v4616_v36 = vld [vmem:[%s12484_s2 + $0x5] ss:$0 sm:$0xff] }
 0x1f4   :  { %v8801_v40 = vadd.f32 %v1980_v49, %v8629_v41  ;;  %v8804_v58 = vadd.f32 %v1998_v1, %v8638_v7  ;;  %v2969_v56 = vrot.slane %v8772_v52, 7  ;;  %v12599_v54 = vrot.slane %v8774_v62, 7 }
 0x1f5   :  { %v8812_v3 = vadd.f32 %v2016_v4, %v8649_v24  ;;  %v2970_v8 = vrot.slane %v8788_v48, 7  ;;  %v8816_v41 = vstv %s8714_s8  ;;  %v8819_v7 = vstv %s8716_s9  ;;  %s9548_s8 = sld [smem:[#allocation2 + $0x1f]]  ;;  %s9550_s9 = sld [smem:[#allocation2 + $0x3a]] }
 0x1f6   :  { %13005 = vst [vmem:[#allocation65_spill] sm:$0xff] %v8804_v58  ;;  %v2984_v24 = vsel %vm107_vm0, %v12599_v54, %v2969_v56  ;;  %v2027_v0 = vmul.f32 %v8816_v41, %v13007_v59  ;;  %v2045_v22 = vmul.f32 %v8819_v7, %v13007_v59  ;;  %v8834_v35 = vstv %s8730_s10  ;;  %v8890_v20 = vpop.permute.xlu0 %2325  ;;  %v8892_v50 = vpop.permute.xlu1 %2327  ;;  %s9564_s10 = sld [smem:[#allocation2 + $0x5]] }
 0x1f7   :  { %13006 = vst [vmem:[#allocation66_spill] sm:$0xff] %v8812_v3  ;;  %v8838_v31 = vsel %vm73_vm1, %v4616_v36, %v2984_v24  ;;  %v8842_v16 = vsel %vm107_vm0, %v2969_v56, %v2970_v8  ;;  %v2063_v43 = vmul.f32 %v8834_v35, %v13007_v59  ;;  %v8847_v57 = vstv %s8744_s13  ;;  %13011 = vst [vmem:[#allocation75_spill] sm:$0xff] %v8890_v20  ;;  %s9575_s13 = sld [smem:[#allocation2 + $0x20]] }
 0x1f8   :  { %13008 = vst [vmem:[#allocation70_spill] sm:$0xff] %v8838_v31  ;;  %13009 = vst [vmem:[#allocation71_spill] sm:$0xff] %v8842_v16  ;;  %2997 = vrot.lane.b32.xlu0 %v8838_v31, %s4920_s16  ;;  %2999 = vrot.lane.b32.xlu1 %v8842_v16, %s4920_s16  ;;  %v8854_v49 = vstv %s8746_s14  ;;  %v8857_v1 = vstv %s8762_s3  ;;  %v2035_v4 = vadd.f32 %v2027_v0, %v8665_v60  ;;  %v2095_v12 = vsel %vm72_vm5, 0.5, %v8618_v25  ;;  %v8886_v25 = vld [vmem:[#allocation8 + $0xd0] sm:$0xff]  ;;  %s9577_s14 = sld [smem:[#allocation2 + $0x3b]]  ;;  %s10818_s3 = sld [smem:[#allocation2 + $0xd]] }
 0x1f9   :  { %v2053_v36 = vadd.f32 %v2045_v22, %v8668_v47  ;;  %v8862_v56 = vstv %s8764_s15  ;;  %v8865_v24 = vstv %s8776_s18  ;;  %v8868_v59 = vstv %s8778_s19  ;;  %13012 = vst [vmem:[#allocation76_spill] sm:$0xff] %v8892_v50  ;;  %s9796_s18 = sld [smem:[#allocation2 + $0x6]]  ;;  %s9798_s19 = sld [smem:[#allocation2 + $0x21]] }
 0x1fa   :  { %v2071_v54 = vadd.f32 %v2063_v43, %v8671_v11  ;;  %v2028_v23 = vmul.f32 %v8816_v41, %v13010_v45  ;;  %v2046_v60 = vmul.f32 %v8819_v7, %v13010_v45  ;;  %v2064_v47 = vmul.f32 %v8834_v35, %v13010_v45  ;;  %v8888_v43 = vld [vmem:[#allocation8 + $0xd8] sm:$0xff]  ;;  %s10820_s15 = sld [smem:[#allocation2 + $0x28]] }
 0x1fb   :  { %v2105_v0 = vmul.f32 %v8847_v57, %v2095_v12  ;;  %v2123_v22 = vmul.f32 %v8854_v49, %v2095_v12  ;;  %v2141_v29 = vmul.f32 %v8857_v1, %v2095_v12  ;;  %v2096_v11 = vsel %vm72_vm5, 0.5, %v8620_v53 }
 0x1fc   :  { %v2036_v45 = vadd.f32 %v2028_v23, %v8679_v17  ;;  %v2054_v33 = vadd.f32 %v2046_v60, %v8682_v14  ;;  %v2072_v32 = vadd.f32 %v2064_v47, %v8685_v30  ;;  %v2106_v12 = vmul.f32 %v8847_v57, %v2096_v11 }
 0x1fd   :  { %v2113_v39 = vadd.f32 %v2105_v0, %v2035_v4  ;;  %v2131_v48 = vadd.f32 %v2123_v22, %v2053_v36  ;;  %v2149_v52 = vadd.f32 %v2141_v29, %v2071_v54  ;;  %v2124_v53 = vmul.f32 %v8854_v49, %v2096_v11 }
 0x1fe   :  { %v2114_v3 = vadd.f32 %v2106_v12, %v2036_v45  ;;  %v2142_v58 = vmul.f32 %v8857_v1, %v2096_v11  ;;  %v2971_v20 = vrot.slane %v8886_v25, 7  ;;  %v2972_v50 = vrot.slane %v8888_v43, 7 }
 0x1ff   :  { %v2159_v23 = vadd.f32 %v8862_v56, %v2113_v39  ;;  %v2201_v17 = vadd.f32 %v8865_v24, %v2131_v48  ;;  %v2244_v14 = vadd.f32 %v8868_v59, %v2149_v52  ;;  %v2132_v30 = vadd.f32 %v2124_v53, %v2054_v33  ;;  %v8923_v52 = vpop.permute.xlu0 %2329  ;;  %v8925_v48 = vpop.permute.xlu1 %2331  ;;  %v13016_v53 = vld [vmem:[#allocation27_spill] sm:$0xff] }
 0x200   :  { %v2150_v60 = vadd.f32 %v2142_v58, %v2072_v32  ;;  %v2160_v4 = vadd.f32 %v8862_v56, %v2114_v3  ;;  %v8908_v29 = vsel %vm107_vm0, %v2970_v8, %v2971_v20  ;;  %v8912_v54 = vsel %vm107_vm0, %v2971_v20, %v2972_v50  ;;  %v13015_v32 = vld [vmem:[#allocation26_spill] sm:$0xff] }
 0x201   :  { %13013 = vst [vmem:[#allocation72_spill] sm:$0xff] %v8908_v29  ;;  %13014 = vst [vmem:[#allocation73_spill] sm:$0xff] %v8912_v54  ;;  %4686 = vtanh.f32 %v2159_v23  ;;  %v2202_v36 = vadd.f32 %v8865_v24, %v2132_v30  ;;  %3001 = vrot.lane.b32.xlu0 %v8908_v29, %s4920_s16  ;;  %3003 = vrot.lane.b32.xlu1 %v8912_v54, %s4920_s16  ;;  %v2029_v33 = vmul.f32 %v8816_v41, %v13015_v32 }
 0x202   :  { %v2047_v39 = vmul.f32 %v8819_v7, %v13015_v32  ;;  %4688 = vtanh.f32 %v2201_v17  ;;  %v2245_v20 = vadd.f32 %v8868_v59, %v2150_v60  ;;  %v2065_v58 = vmul.f32 %v8834_v35, %v13015_v32 }
 0x203   :  { %v2097_v3 = vsel %vm72_vm5, 0.5, %v8674_v9  ;;  %4690 = vtanh.f32 %v2244_v14  ;;  %v2037_v8 = vadd.f32 %v2029_v33, %v8689_v15  ;;  %v2030_v23 = vmul.f32 %v8816_v41, %v13016_v53  ;;  %v8945_v14 = vld [vmem:[#allocation8 + $0xe0] sm:$0xff]  ;;  %v8955_v32 = vpop.permute.xlu0 %2333  ;;  %v8957_v33 = vpop.permute.xlu1 %2335 }
 0x204   :  { %v2055_v47 = vadd.f32 %v2047_v39, %v8701_v44  ;;  %v2107_v0 = vmul.f32 %v8847_v57, %v2097_v3  ;;  %4692 = vtanh.f32 %v2160_v4  ;;  %v2073_v22 = vadd.f32 %v2065_v58, %v8709_v13 }
 0x205   :  { %v2125_v11 = vmul.f32 %v8854_v49, %v2097_v3  ;;  %v2143_v45 = vmul.f32 %v8857_v1, %v2097_v3  ;;  %4694 = vtanh.f32 %v2202_v36  ;;  %v2048_v9 = vmul.f32 %v8819_v7, %v13016_v53  ;;  %v8953_v36 = vld [vmem:[#allocation8 + $0xe8] sm:$0xff] }
 0x206   :  { %v2115_v12 = vadd.f32 %v2107_v0, %v2037_v8  ;;  %4696 = vtanh.f32 %v2245_v20  ;;  %v2066_v17 = vmul.f32 %v8834_v35, %v13016_v53  ;;  %v2038_v30 = vadd.f32 %v2030_v23, %v8719_v55  ;;  %v13017_v0 = vld [vmem:[#allocation29_spill] sm:$0xff] }
 0x207   :  { %v2133_v15 = vadd.f32 %v2125_v11, %v2055_v47  ;;  %v2151_v44 = vadd.f32 %v2143_v45, %v2073_v22  ;;  %v2056_v60 = vadd.f32 %v2048_v9, %v8722_v27  ;;  %v2098_v4 = vsel %vm72_vm5, 0.5, %v8676_v10 }
 0x208   :  { %v2161_v13 = vadd.f32 %v8862_v56, %v2115_v12  ;;  %v2074_v58 = vadd.f32 %v2066_v17, %v8725_v46  ;;  %v2108_v55 = vmul.f32 %v8847_v57, %v2098_v4  ;;  %v2126_v27 = vmul.f32 %v8854_v49, %v2098_v4 }
 0x209   :  { %v2203_v39 = vadd.f32 %v8865_v24, %v2133_v15  ;;  %v2246_v20 = vadd.f32 %v8868_v59, %v2151_v44  ;;  %v2144_v3 = vmul.f32 %v8857_v1, %v2098_v4  ;;  %v2973_v10 = vrot.slane %v8945_v14, 7  ;;  %v8990_v4 = vpop.permute.xlu0 %2337 }
 0x20a   :  { %4698 = vtanh.f32 %v2161_v13  ;;  %v2116_v8 = vadd.f32 %v2108_v55, %v2038_v30  ;;  %v12620_v47 = vrot.slane %v8953_v36, 7  ;;  %v2031_v22 = vmul.f32 %v8816_v41, %v13017_v0 }
 0x20b   :  { %4700 = vtanh.f32 %v2203_v39  ;;  %v4687_v11 = vpop.eup %4686  ;;  %v2134_v45 = vadd.f32 %v2126_v27, %v2056_v60  ;;  %v2152_v46 = vadd.f32 %v2144_v3, %v2074_v58  ;;  %v8971_v12 = vsel %vm107_vm0, %v2972_v50, %v2973_v10  ;;  %v8992_v39 = vpop.permute.xlu1 %2339 }
 0x20c   :  { %4702 = vtanh.f32 %v2246_v20  ;;  %13018 = vst [vmem:[#allocation74_spill] sm:$0xff] %v8971_v12  ;;  %v4689_v53 = vpop.eup %4688  ;;  %v2175_v23 = vmul.f32 0.5, %v4687_v11  ;;  %v2162_v9 = vadd.f32 %v8862_v56, %v2116_v8  ;;  %3005 = vrot.lane.b32.xlu0 %v8971_v12, %s4920_s16  ;;  %v8980_v15 = vsel %vm107_vm0, %v2973_v10, %v12620_v47 }
 0x20d   :  { %13019 = vst [vmem:[#allocation77_spill] sm:$0xff] %v8980_v15  ;;  %v2049_v44 = vmul.f32 %v8819_v7, %v13017_v0  ;;  %v4691_v17 = vpop.eup %4690  ;;  %v2217_v13 = vmul.f32 0.5, %v4689_v53  ;;  %v2204_v50 = vadd.f32 %v8865_v24, %v2134_v45  ;;  %v2247_v30 = vadd.f32 %v8868_v59, %v2152_v46  ;;  %3007 = vrot.lane.b32.xlu1 %v8980_v15, %s4920_s16 }
 0x20e   :  { %v2067_v60 = vmul.f32 %v8834_v35, %v13017_v0  ;;  %v4693_v20 = vpop.eup %4692  ;;  %v2183_v58 = vadd.f32 0.5, %v2175_v23  ;;  %v2260_v55 = vmul.f32 0.5, %v4691_v17  ;;  %4704 = vtanh.f32 %v2162_v9 }
 0x20f   :  { %v2039_v27 = vadd.f32 %v2031_v22, %v8733_v34  ;;  %v4695_v3 = vpop.eup %4694  ;;  %v2225_v10 = vadd.f32 0.5, %v2217_v13  ;;  %v2176_v8 = vmul.f32 0.5, %v4693_v20  ;;  %4706 = vtanh.f32 %v2204_v50  ;;  %v13020_v22 = vld [vmem:[#allocation30_spill] sm:$0xff]  ;;  %v9010_v20 = vpop.permute.xlu0 %2433 }
 0x210   :  { %v2057_v11 = vadd.f32 %v2049_v44, %v8736_v28  ;;  %v4697_v45 = vpop.eup %4696  ;;  %2191 = vst [vmem:[#allocation9] sm:$0xff] %v2183_v58  ;;  %v2268_v46 = vadd.f32 0.5, %v2260_v55  ;;  %v2218_v0 = vmul.f32 0.5, %v4695_v3  ;;  %4708 = vtanh.f32 %v2247_v30  ;;  %v9012_v58 = vpop.permute.xlu1 %2435 }
 0x211   :  { %v2075_v53 = vadd.f32 %v2067_v60, %v8739_v26  ;;  %2234 = vst [vmem:[#allocation9 + $0x80] sm:$0xff] %v2225_v10  ;;  %v2184_v47 = vadd.f32 0.5, %v2176_v8  ;;  %v2261_v23 = vmul.f32 0.5, %v4697_v45  ;;  %v2099_v34 = vsel %vm72_vm5, 0.5, %v8748_v21 }
 0x212   :  { %v2032_v9 = vmul.f32 %v8816_v41, %v13020_v22  ;;  %2277 = vst [vmem:[#allocation9 + $0x100] sm:$0xff] %v2268_v46  ;;  %v2226_v17 = vadd.f32 0.5, %v2218_v0  ;;  %v2109_v28 = vmul.f32 %v8847_v57, %v2099_v34  ;;  %v2127_v44 = vmul.f32 %v8854_v49, %v2099_v34 }
 0x213   :  { %v2145_v13 = vmul.f32 %v8857_v1, %v2099_v34  ;;  %2192 = vst [vmem:[#allocation9 + $0x8] sm:$0xff] %v2184_v47  ;;  %v2269_v26 = vadd.f32 0.5, %v2261_v23  ;;  %v2050_v30 = vmul.f32 %v8819_v7, %v13020_v22  ;;  %v2068_v21 = vmul.f32 %v8834_v35, %v13020_v22  ;;  %v9019_v34 = vld [vmem:[#allocation8 + $0xf0] sm:$0xff] }
 0x214   :  { %v4699_v50 = vpop.eup %4698  ;;  %v2040_v60 = vadd.f32 %v2032_v9, %v8767_v2  ;;  %2235 = vst [vmem:[#allocation9 + $0x88] sm:$0xff] %v2226_v17  ;;  %v2117_v10 = vadd.f32 %v2109_v28, %v2039_v27  ;;  %v2135_v8 = vadd.f32 %v2127_v44, %v2057_v11  ;;  %v2100_v2 = vsel %vm72_vm5, 0.5, %v8750_v5 }
 0x215   :  { %v4701_v55 = vpop.eup %4700  ;;  %v2177_v3 = vmul.f32 0.5, %v4699_v50  ;;  %v2153_v45 = vadd.f32 %v2145_v13, %v2075_v53  ;;  %2278 = vst [vmem:[#allocation9 + $0x108] sm:$0xff] %v2269_v26  ;;  %v2058_v0 = vadd.f32 %v2050_v30, %v8781_v42  ;;  %v2076_v23 = vadd.f32 %v2068_v21, %v8784_v38 }
 0x216   :  { %v4703_v47 = vpop.eup %4702  ;;  %v2219_v46 = vmul.f32 0.5, %v4701_v55  ;;  %v2163_v17 = vadd.f32 %v8862_v56, %v2117_v10  ;;  %v2205_v27 = vadd.f32 %v8865_v24, %v2135_v8  ;;  %v2110_v28 = vmul.f32 %v8847_v57, %v2100_v2  ;;  %v9030_v55 = vpop.permute.xlu0 %2437 }
 0x217   :  { %v2185_v22 = vadd.f32 0.5, %v2177_v3  ;;  %v2262_v9 = vmul.f32 0.5, %v4703_v47  ;;  %v2248_v53 = vadd.f32 %v8868_v59, %v2153_v45  ;;  %v2128_v42 = vmul.f32 %v8854_v49, %v2100_v2  ;;  %v9032_v3 = vpop.permute.xlu1 %2439 }
 0x218   :  { %v2227_v11 = vadd.f32 0.5, %v2219_v46  ;;  %v4705_v38 = vpop.eup %4704  ;;  %4710 = vtanh.f32 %v2163_v17  ;;  %v2146_v5 = vmul.f32 %v8857_v1, %v2100_v2  ;;  %v2975_v13 = vrot.slane %v9019_v34, 7 }
 0x219   :  { %2193 = vst [vmem:[#allocation9 + $0x10] sm:$0xff] %v2185_v22  ;;  %v2270_v44 = vadd.f32 0.5, %v2262_v9  ;;  %v4707_v50 = vpop.eup %4706  ;;  %v2178_v26 = vmul.f32 0.5, %v4705_v38  ;;  %4712 = vtanh.f32 %v2205_v27  ;;  %v2118_v30 = vadd.f32 %v2110_v28, %v2040_v60 }
 0x21a   :  { %2236 = vst [vmem:[#allocation9 + $0x90] sm:$0xff] %v2227_v11  ;;  %v2136_v21 = vadd.f32 %v2128_v42, %v2058_v0  ;;  %v4709_v10 = vpop.eup %4708  ;;  %v2220_v8 = vmul.f32 0.5, %v4707_v50  ;;  %4714 = vtanh.f32 %v2248_v53  ;;  %v2154_v45 = vadd.f32 %v2146_v5, %v2076_v23  ;;  %v13025_v11 = vld [vmem:[#allocation20_spill] sm:$0xff] }
 0x21b   :  { %2279 = vst [vmem:[#allocation9 + $0x110] sm:$0xff] %v2270_v44  ;;  %v13021_v47 = vrot.slane %v8953_v36, 7  ;;  %v2186_v2 = vadd.f32 0.5, %v2178_v26  ;;  %v2263_v60 = vmul.f32 0.5, %v4709_v10  ;;  %v2164_v0 = vadd.f32 %v8862_v56, %v2118_v30 }
 0x21c   :  { %v2206_v22 = vadd.f32 %v8865_v24, %v2136_v21  ;;  %v2228_v9 = vadd.f32 0.5, %v2220_v8  ;;  %v2249_v17 = vadd.f32 %v8868_v59, %v2154_v45  ;;  %v13023_v23 = vrot.slane %v8774_v62, 7 }
 0x21d   :  { %v9038_v46 = vsel %vm107_vm0, %v13021_v47, %v2975_v13  ;;  %v2033_v53 = vmul.f32 %v8816_v41, %v13025_v11  ;;  %2194 = vst [vmem:[#allocation9 + $0x18] sm:$0xff] %v2186_v2  ;;  %v2271_v28 = vadd.f32 0.5, %v2263_v60  ;;  %4716 = vtanh.f32 %v2164_v0  ;;  %v13027_v0 = vld [vmem:[#allocation65_spill] sm:$0xff] }
 0x21e   :  { %13022 = vst [vmem:[#allocation80_spill] sm:$0xff] %v9038_v46  ;;  %3009 = vrot.lane.b32.xlu0 %v9038_v46, %s4920_s16  ;;  %v9049_v27 = vsel %vm107_vm0, %v2975_v13, %v13023_v23  ;;  %v2051_v42 = vmul.f32 %v8819_v7, %v13025_v11  ;;  %v2069_v38 = vmul.f32 %v8834_v35, %v13025_v11  ;;  %2237 = vst [vmem:[#allocation9 + $0x98] sm:$0xff] %v2228_v9  ;;  %v13026_v13 = vld [vmem:[#allocation28_spill] sm:$0xff]  ;;  %v13028_v9 = vld [vmem:[#allocation66_spill] sm:$0xff] }
 0x21f   :  { %13024 = vst [vmem:[#allocation81_spill] sm:$0xff] %v9049_v27  ;;  %3011 = vrot.lane.b32.xlu1 %v9049_v27, %s4920_s16  ;;  %4718 = vtanh.f32 %v2206_v22  ;;  %v2041_v44 = vadd.f32 %v2033_v53, %v8791_v18  ;;  %v2101_v5 = vsel %vm72_vm5, 0.5, %v8821_v37  ;;  %v2034_v50 = vmul.f32 %v8816_v41, %v13026_v13  ;;  %2280 = vst [vmem:[#allocation9 + $0x118] sm:$0xff] %v2271_v28  ;;  %v9072_v18 = vpop.permute.xlu0 %2441  ;;  %v9074_v37 = vpop.permute.xlu1 %2443 }
 0x220   :  { %4720 = vtanh.f32 %v2249_v17  ;;  %v2059_v26 = vadd.f32 %v2051_v42, %v8794_v19  ;;  %v2077_v30 = vadd.f32 %v2069_v38, %v8797_v6  ;;  %v2111_v21 = vmul.f32 %v8847_v57, %v2101_v5 }
 0x221   :  { %v2129_v41 = vmul.f32 %v8854_v49, %v2101_v5  ;;  %v2147_v10 = vmul.f32 %v8857_v1, %v2101_v5  ;;  %v2052_v19 = vmul.f32 %v8819_v7, %v13026_v13  ;;  %v2070_v6 = vmul.f32 %v8834_v35, %v13026_v13 }
 0x222   :  { %3129 = vrot.lane.b32.xlu0 %v8838_v31, %s4921_s17  ;;  %v2119_v8 = vadd.f32 %v2111_v21, %v2041_v44  ;;  %v2042_v45 = vadd.f32 %v2034_v50, %v8801_v40  ;;  %v2102_v47 = vsel %vm72_vm5, 0.5, %v8823_v61  ;;  %v9091_v2 = vstv %s9028_s22  ;;  %v4711_v7 = vpop.eup %4710  ;;  %s9952_s22 = sld [smem:[#allocation2 + $0x22]] }
 0x223   :  { %3131 = vrot.lane.b32.xlu1 %v8842_v16, %s4921_s17  ;;  %v2137_v35 = vadd.f32 %v2129_v41, %v2059_v26  ;;  %v2155_v60 = vadd.f32 %v2147_v10, %v2077_v30  ;;  %v2060_v22 = vadd.f32 %v2052_v19, %v13027_v0  ;;  %v2078_v40 = vadd.f32 %v2070_v6, %v13028_v9  ;;  %v4713_v17 = vpop.eup %4712  ;;  %v9113_v26 = vpop.permute.xlu1 %2447 }
 0x224   :  { %v2179_v23 = vmul.f32 0.5, %v4711_v7  ;;  %v2165_v61 = vadd.f32 %v8862_v56, %v2119_v8  ;;  %v2112_v11 = vmul.f32 %v8847_v57, %v2102_v47  ;;  %v2130_v53 = vmul.f32 %v8854_v49, %v2102_v47  ;;  %v4715_v28 = vpop.eup %4714  ;;  %v9111_v49 = vpop.permute.xlu0 %2445 }
 0x225   :  { %v2221_v42 = vmul.f32 0.5, %v4713_v17  ;;  %v2207_v38 = vadd.f32 %v8865_v24, %v2137_v35  ;;  %v2250_v44 = vadd.f32 %v8868_v59, %v2155_v60  ;;  %v2148_v5 = vmul.f32 %v8857_v1, %v2102_v47 }
 0x226   :  { %3133 = vrot.lane.b32.xlu0 %v8908_v29, %s4921_s17  ;;  %v2187_v13 = vadd.f32 0.5, %v2179_v23  ;;  %v2264_v50 = vmul.f32 0.5, %v4715_v28  ;;  %4722 = vtanh.f32 %v2165_v61  ;;  %v2120_v57 = vadd.f32 %v2112_v11, %v2042_v45 }
 0x227   :  { %3135 = vrot.lane.b32.xlu1 %v8912_v54, %s4921_s17  ;;  %v2229_v30 = vadd.f32 0.5, %v2221_v42  ;;  %4724 = vtanh.f32 %v2207_v38  ;;  %v2138_v21 = vadd.f32 %v2130_v53, %v2060_v22  ;;  %v2156_v41 = vadd.f32 %v2148_v5, %v2078_v40  ;;  %v4717_v10 = vpop.eup %4716  ;;  %v9145_v53 = vpop.permute.xlu1 %2513  ;;  %v13030_v38 = vld [vmem:[#allocation75_spill] sm:$0xff] }
 0x228   :  { %2195 = vst [vmem:[#allocation9 + $0x20] sm:$0xff] %v2187_v13  ;;  %v2272_v1 = vadd.f32 0.5, %v2264_v50  ;;  %4726 = vtanh.f32 %v2250_v44  ;;  %v2166_v19 = vadd.f32 %v8862_v56, %v2120_v57  ;;  %v9117_v6 = vstv %s9070_s23  ;;  %v9143_v11 = vpop.permute.xlu0 %2511  ;;  %v13031_v5 = vld [vmem:[#allocation31_spill] sm:$0xff]  ;;  %s9966_s23 = sld [smem:[#allocation2 + $0x3d]] }
 0x229   :  { %v4719_v8 = vpop.eup %4718  ;;  %2238 = vst [vmem:[#allocation9 + $0xa0] sm:$0xff] %v2229_v30  ;;  %v2180_v45 = vmul.f32 0.5, %v4717_v10  ;;  %v2208_v47 = vadd.f32 %v8865_v24, %v2138_v21  ;;  %v2251_v7 = vadd.f32 %v8868_v59, %v2156_v41  ;;  %v9124_v35 = vstv %s9082_s24  ;;  %v13029_v24 = vld [vmem:[#allocation32_spill] sm:$0xff]  ;;  %s9980_s24 = sld [smem:[#allocation2 + $0x8]] }
 0x22a   :  { %3137 = vrot.lane.b32.xlu0 %v8971_v12, %s4921_s17  ;;  %v4721_v60 = vpop.eup %4720  ;;  %2281 = vst [vmem:[#allocation9 + $0x120] sm:$0xff] %v2272_v1  ;;  %v2222_v0 = vmul.f32 0.5, %v4719_v8  ;;  %4728 = vtanh.f32 %v2166_v19  ;;  %v9127_v56 = vstv %s9093_s25  ;;  %v9130_v22 = vstv %s9095_s26  ;;  %v13032_v10 = vld [vmem:[#allocation76_spill] sm:$0xff]  ;;  %s9992_s25 = sld [smem:[#allocation2 + $0x23]]  ;;  %s9994_s26 = sld [smem:[#allocation2 + $0x3e]] }
 0x22b   :  { %3139 = vrot.lane.b32.xlu1 %v8980_v15, %s4921_s17  ;;  %v2188_v9 = vadd.f32 0.5, %v2180_v45  ;;  %v2265_v40 = vmul.f32 0.5, %v4721_v60  ;;  %4730 = vtanh.f32 %v2208_v47  ;;  %v2381_v59 = vmul.f32 %v9127_v56, %v13029_v24  ;;  %v13033_v19 = vld [vmem:[#allocation36_spill] sm:$0xff] }
 0x22c   :  { %v2230_v17 = vadd.f32 0.5, %v2222_v0  ;;  %4732 = vtanh.f32 %v2251_v7  ;;  %v2399_v23 = vmul.f32 %v9130_v22, %v13029_v24  ;;  %v9139_v61 = vstv %s9102_s0  ;;  %s11227_s0 = sld [smem:[#allocation2 + $0x46]] }
 0x22d   :  { %2196 = vst [vmem:[#allocation9 + $0x28] sm:$0xff] %v2188_v9  ;;  %v2273_v28 = vadd.f32 0.5, %v2265_v40  ;;  %v2417_v42 = vmul.f32 %v9139_v61, %v13029_v24  ;;  %v2341_v44 = vsel %vm71_vm4, 0.5, %v13030_v38  ;;  %v2382_v13 = vmul.f32 %v9127_v56, %v13031_v5  ;;  %v13034_v40 = vld [vmem:[#allocation63_spill] sm:$0xff] }
 0x22e   :  { %3141 = vrot.lane.b32.xlu0 %v9038_v46, %s4921_s17  ;;  %2239 = vst [vmem:[#allocation9 + $0xa8] sm:$0xff] %v2230_v17  ;;  %v2351_v50 = vmul.f32 %v9091_v2, %v2341_v44  ;;  %v2361_v57 = vmul.f32 %v9117_v6, %v2341_v44  ;;  %v2371_v30 = vmul.f32 %v9124_v35, %v2341_v44  ;;  %v2342_v1 = vsel %vm71_vm4, 0.5, %v13032_v10  ;;  %v9192_v10 = vpop.permute.xlu0 %2515 }
 0x22f   :  { %v2400_v21 = vmul.f32 %v9130_v22, %v13031_v5  ;;  %3143 = vrot.lane.b32.xlu1 %v9049_v27, %s4921_s17  ;;  %2282 = vst [vmem:[#allocation9 + $0x128] sm:$0xff] %v2273_v28  ;;  %v2418_v41 = vmul.f32 %v9139_v61, %v13031_v5  ;;  %v2383_v8 = vmul.f32 %v9127_v56, %v13033_v19  ;;  %v2347_v16 = vsel %vm71_vm4, 0.5, %v8990_v4 }
 0x230   :  { %v2401_v45 = vmul.f32 %v9130_v22, %v13033_v19  ;;  %v4723_v47 = vpop.eup %4722  ;;  %v9170_v7 = vadd.f32 %v2381_v59, %v2351_v50  ;;  %v9172_v60 = vadd.f32 %v2399_v23, %v2361_v57  ;;  %v9174_v0 = vadd.f32 %v2417_v42, %v2371_v30  ;;  %v13035_v50 = vld [vmem:[#allocation37_spill] sm:$0xff]  ;;  %v13036_v30 = vld [vmem:[#allocation64_spill] sm:$0xff] }
 0x231   :  { %v2352_v9 = vmul.f32 %v9091_v2, %v2342_v1  ;;  %v4725_v24 = vpop.eup %4724  ;;  %v2181_v17 = vmul.f32 0.5, %v4723_v47  ;;  %v2362_v28 = vmul.f32 %v9117_v6, %v2342_v1  ;;  %v2372_v38 = vmul.f32 %v9124_v35, %v2342_v1  ;;  %v9194_v1 = vpop.permute.xlu1 %2517 }
 0x232   :  { %3207 = vrot.lane.b32.xlu0 %v13034_v40, %s4920_s16  ;;  %v2419_v44 = vmul.f32 %v9139_v61, %v13033_v19  ;;  %v4727_v59 = vpop.eup %4726  ;;  %v2223_v5 = vmul.f32 0.5, %v4725_v24  ;;  %v2343_v42 = vsel %vm71_vm4, 0.5, %v8923_v52  ;;  %v2384_v57 = vmul.f32 %v9127_v56, %v13035_v50 }
 0x233   :  { %v9183_v23 = vadd.f32 %v2382_v13, %v2352_v9  ;;  %3209 = vrot.lane.b32.xlu1 %v13036_v30, %s4920_s16  ;;  %v2189_v47 = vadd.f32 0.5, %v2181_v17  ;;  %v2266_v19 = vmul.f32 0.5, %v4727_v59  ;;  %v9196_v27 = vadd.f32 %v2400_v21, %v2362_v28 }
 0x234   :  { %v9198_v13 = vadd.f32 %v2418_v41, %v2372_v38  ;;  %v4729_v9 = vpop.eup %4728  ;;  %v2231_v24 = vadd.f32 0.5, %v2223_v5  ;;  %v2353_v52 = vmul.f32 %v9091_v2, %v2343_v42  ;;  %v2363_v46 = vmul.f32 %v9117_v6, %v2343_v42 }
 0x235   :  { %v2373_v15 = vmul.f32 %v9124_v35, %v2343_v42  ;;  %v4731_v12 = vpop.eup %4730  ;;  %2197 = vst [vmem:[#allocation9 + $0x30] sm:$0xff] %v2189_v47  ;;  %v2274_v54 = vadd.f32 0.5, %v2266_v19  ;;  %v2182_v17 = vmul.f32 0.5, %v4729_v9  ;;  %v2402_v21 = vmul.f32 %v9130_v22, %v13035_v50 }
 0x236   :  { %3211 = vrot.lane.b32.xlu0 %v8886_v25, %s4920_s16  ;;  %v2420_v41 = vmul.f32 %v9139_v61, %v13035_v50  ;;  %v4733_v28 = vpop.eup %4732  ;;  %2240 = vst [vmem:[#allocation9 + $0xb0] sm:$0xff] %v2231_v24  ;;  %v2224_v38 = vmul.f32 0.5, %v4731_v12  ;;  %v9209_v59 = vadd.f32 %v2383_v8, %v2353_v52  ;;  %v9211_v5 = vadd.f32 %v2401_v45, %v2363_v46  ;;  %v13037_v50 = vld [vmem:[#allocation42_spill] sm:$0xff]  ;;  %v9229_v45 = vpop.permute.xlu1 %2521 }
 0x237   :  { %v9213_v42 = vadd.f32 %v2419_v44, %v2373_v15  ;;  %3213 = vrot.lane.b32.xlu1 %v8888_v43, %s4920_s16  ;;  %2283 = vst [vmem:[#allocation9 + $0x130] sm:$0xff] %v2274_v54  ;;  %v2190_v47 = vadd.f32 0.5, %v2182_v17  ;;  %v2267_v19 = vmul.f32 0.5, %v4733_v28  ;;  %v2344_v9 = vsel %vm71_vm4, 0.5, %v8925_v48  ;;  %v9227_v54 = vpop.permute.xlu0 %2519 }
 0x238   :  { %v2385_v24 = vmul.f32 %v9127_v56, %v13037_v50  ;;  %v2232_v12 = vadd.f32 0.5, %v2224_v38  ;;  %v2354_v8 = vmul.f32 %v9091_v2, %v2344_v9  ;;  %v2364_v46 = vmul.f32 %v9117_v6, %v2344_v9 }
 0x239   :  { %v2374_v15 = vmul.f32 %v9124_v35, %v2344_v9  ;;  %2198 = vst [vmem:[#allocation9 + $0x38] sm:$0xff] %v2190_v47  ;;  %v2275_v44 = vadd.f32 0.5, %v2267_v19  ;;  %v2403_v48 = vmul.f32 %v9130_v22, %v13037_v50  ;;  %v2421_v52 = vmul.f32 %v9139_v61, %v13037_v50 }
 0x23a   :  { %3215 = vrot.lane.b32.xlu0 %v8945_v14, %s4920_s16  ;;  %v2345_v17 = vsel %vm71_vm4, 0.5, %v8955_v32  ;;  %2241 = vst [vmem:[#allocation9 + $0xb8] sm:$0xff] %v2232_v12  ;;  %v9238_v28 = vadd.f32 %v2384_v57, %v2354_v8  ;;  %v9240_v38 = vadd.f32 %v2402_v21, %v2364_v46  ;;  %v13038_v32 = vld [vmem:[#allocation44_spill] sm:$0xff]  ;;  %v2346_v8 = vsel %vm71_vm4, 0.5, %v8957_v33  ;;  %v13039_v46 = vld [vmem:[#allocation45_spill] sm:$0xff] }
 0x23b   :  { %v9242_v9 = vadd.f32 %v2420_v41, %v2374_v15  ;;  %v2355_v47 = vmul.f32 %v9091_v2, %v2345_v17  ;;  %3217 = vrot.lane.b32.xlu1 %v8953_v36, %s4920_s16  ;;  %2284 = vst [vmem:[#allocation9 + $0x138] sm:$0xff] %v2275_v44  ;;  %v2365_v19 = vmul.f32 %v9117_v6, %v2345_v17 }
 0x23c   :  { %v2375_v50 = vmul.f32 %v9124_v35, %v2345_v17  ;;  %v2386_v57 = vmul.f32 %v9127_v56, %v13038_v32  ;;  %v2404_v21 = vmul.f32 %v9130_v22, %v13038_v32  ;;  %v2422_v12 = vmul.f32 %v9139_v61, %v13038_v32 }
 0x23d   :  { %v9259_v41 = vadd.f32 %v2385_v24, %v2355_v47  ;;  %v2387_v15 = vmul.f32 %v9127_v56, %v13039_v46  ;;  %v9270_v44 = vadd.f32 %v2403_v48, %v2365_v19  ;;  %v2356_v24 = vmul.f32 %v9091_v2, %v2346_v8  ;;  %v9286_v48 = vpop.permute.xlu0 %2523 }
 0x23e   :  { %3219 = vrot.lane.b32.xlu0 %v9019_v34, %s4920_s16  ;;  %v9272_v17 = vadd.f32 %v2421_v52, %v2375_v50  ;;  %v2366_v47 = vmul.f32 %v9117_v6, %v2346_v8  ;;  %v2376_v32 = vmul.f32 %v9124_v35, %v2346_v8  ;;  %v2405_v29 = vmul.f32 %v9130_v22, %v13039_v46  ;;  %v9288_v52 = vpop.permute.xlu1 %2525 }
 0x23f   :  { %v2423_v33 = vmul.f32 %v9139_v61, %v13039_v46  ;;  %3221 = vrot.lane.b32.xlu1 %v8774_v62, %s4920_s16  ;;  %13040 = vst [vmem:[#allocation82_spill] sm:$0xff] %v9286_v48  ;;  %v9290_v19 = vadd.f32 %v2386_v57, %v2356_v24  ;;  %v2357_v8 = vmul.f32 %v9091_v2, %v2347_v16 }
 0x240   :  { %v9292_v50 = vadd.f32 %v2404_v21, %v2366_v47  ;;  %v2367_v46 = vmul.f32 %v9117_v6, %v2347_v16  ;;  %v9296_v31 = vadd.f32 %v2422_v12, %v2376_v32  ;;  %v2377_v4 = vmul.f32 %v9124_v35, %v2347_v16 }
 0x241   :  { %v2388_v48 = vmul.f32 %v9127_v56, %v13041_v51  ;;  %v2406_v57 = vmul.f32 %v9130_v22, %v13041_v51  ;;  %v9305_v21 = vadd.f32 %v2387_v15, %v2357_v8  ;;  %v2424_v12 = vmul.f32 %v9139_v61, %v13041_v51 }
 0x242   :  { %3339 = vrot.lane.b32.xlu0 %v13034_v40, %s4921_s17  ;;  %v9307_v24 = vadd.f32 %v2405_v29, %v2367_v46  ;;  %v2348_v16 = vsel %vm71_vm4, 0.5, %v8992_v39  ;;  %v9314_v47 = vadd.f32 %v2423_v33, %v2377_v4  ;;  %v9322_v29 = vstv %s9245_s1  ;;  %v9344_v15 = vpop.permute.xlu1 %2645  ;;  %s11229_s1 = sld [smem:[#allocation2 + $0x11]] }
 0x243   :  { %v2358_v56 = vmul.f32 %v9091_v2, %v2348_v16  ;;  %v2368_v22 = vmul.f32 %v9117_v6, %v2348_v16  ;;  %v2378_v32 = vmul.f32 %v9124_v35, %v2348_v16  ;;  %3341 = vrot.lane.b32.xlu1 %v13036_v30, %s4921_s17  ;;  %v9325_v40 = vstv %s9255_s27  ;;  %v9342_v30 = vpop.permute.xlu0 %2643  ;;  %s10260_s27 = sld [smem:[#allocation2 + $0x24]] }
 0x244   :  { %v9328_v51 = vstv %s9257_s28  ;;  %v2449_v39 = vsel %vm72_vm5, 0.5, %v9010_v20  ;;  %v2450_v20 = vsel %vm72_vm5, 0.5, %v9012_v58  ;;  %s10262_s28 = sld [smem:[#allocation2 + $0x3f]] }
 0x245   :  { %v9333_v61 = vadd.f32 %v2388_v48, %v2358_v56  ;;  %v9335_v2 = vadd.f32 %v2406_v57, %v2368_v22  ;;  %v9337_v6 = vadd.f32 %v2424_v12, %v2378_v32  ;;  %v2459_v35 = vmul.f32 %v9322_v29, %v2449_v39 }
 0x246   :  { %3343 = vrot.lane.b32.xlu0 %v8886_v25, %s4921_s17  ;;  %v2477_v33 = vmul.f32 %v9325_v40, %v2449_v39  ;;  %v2495_v8 = vmul.f32 %v9328_v51, %v2449_v39  ;;  %v2451_v48 = vsel %vm72_vm5, 0.5, %v9030_v55  ;;  %v2460_v25 = vmul.f32 %v9322_v29, %v2450_v20  ;;  %v9408_v32 = vpop.permute.xlu1 %2649 }
 0x247   :  { %v9355_v46 = vadd.f32 %v2459_v35, %v9170_v7  ;;  %v2478_v4 = vmul.f32 %v9325_v40, %v2450_v20  ;;  %v2496_v57 = vmul.f32 %v9328_v51, %v2450_v20  ;;  %3345 = vrot.lane.b32.xlu1 %v8888_v43, %s4921_s17  ;;  %v2461_v55 = vmul.f32 %v9322_v29, %v2451_v48 }
 0x248   :  { %v9363_v12 = vadd.f32 %v2477_v33, %v9172_v60  ;;  %v9366_v58 = vadd.f32 %v2495_v8, %v9174_v0  ;;  %v2479_v7 = vmul.f32 %v9325_v40, %v2451_v48  ;;  %v9371_v16 = vadd.f32 %v2460_v25, %v9183_v23 }
 0x249   :  { %v9374_v56 = vadd.f32 %v2478_v4, %v9196_v27  ;;  %v9377_v22 = vadd.f32 %v2496_v57, %v9198_v13  ;;  %v2497_v43 = vmul.f32 %v9328_v51, %v2451_v48  ;;  %v9383_v60 = vadd.f32 %v2461_v55, %v9209_v59 }
 0x24a   :  { %3347 = vrot.lane.b32.xlu0 %v8945_v14, %s4921_s17  ;;  %v9386_v0 = vadd.f32 %v2479_v7, %v9211_v5  ;;  %v2452_v23 = vsel %vm72_vm5, 0.5, %v9032_v3  ;;  %v2453_v27 = vsel %vm72_vm5, 0.5, %v9072_v18  ;;  %v9406_v3 = vpop.permute.xlu0 %2647  ;;  %v2454_v35 = vsel %vm72_vm5, 0.5, %v9074_v37 }
 0x24b   :  { %v9397_v13 = vadd.f32 %v2497_v43, %v9213_v42  ;;  %v2462_v14 = vmul.f32 %v9322_v29, %v2452_v23  ;;  %v2480_v59 = vmul.f32 %v9325_v40, %v2452_v23  ;;  %v2498_v5 = vmul.f32 %v9328_v51, %v2452_v23  ;;  %3349 = vrot.lane.b32.xlu1 %v8953_v36, %s4921_s17 }
 0x24c   :  { %v2463_v18 = vmul.f32 %v9322_v29, %v2453_v27  ;;  %v2481_v42 = vmul.f32 %v9325_v40, %v2453_v27  ;;  %v2499_v39 = vmul.f32 %v9328_v51, %v2453_v27  ;;  %v2464_v20 = vmul.f32 %v9322_v29, %v2454_v35 }
 0x24d   :  { %v9419_v33 = vadd.f32 %v2462_v14, %v9238_v28  ;;  %v9422_v36 = vadd.f32 %v2480_v59, %v9240_v38  ;;  %v9425_v8 = vadd.f32 %v2498_v5, %v9242_v9  ;;  %v2482_v38 = vmul.f32 %v9325_v40, %v2454_v35 }
 0x24e   :  { %3351 = vrot.lane.b32.xlu0 %v9019_v34, %s4921_s17  ;;  %v9431_v48 = vadd.f32 %v2463_v18, %v9259_v41  ;;  %v9434_v37 = vadd.f32 %v2481_v42, %v9270_v44  ;;  %v9437_v28 = vadd.f32 %v2499_v39, %v9272_v17  ;;  %v9441_v25 = vadd.f32 %v2464_v20, %v9290_v19  ;;  %v9464_v7 = vpop.permute.xlu0 %2651 }
 0x24f   :  { %v2500_v9 = vmul.f32 %v9328_v51, %v2454_v35  ;;  %v2455_v4 = vsel %vm72_vm5, 0.5, %v9111_v49  ;;  %v2456_v41 = vsel %vm72_vm5, 0.5, %v9113_v26  ;;  %3353 = vrot.lane.b32.xlu1 %v8774_v62, %s4921_s17  ;;  %v9453_v44 = vadd.f32 %v2482_v38, %v9292_v50  ;;  %v9466_v50 = vpop.permute.xlu1 %2653 }
 0x250   :  { %v2465_v17 = vmul.f32 %v9322_v29, %v2455_v4  ;;  %v2483_v19 = vmul.f32 %v9325_v40, %v2455_v4  ;;  %v2501_v57 = vmul.f32 %v9328_v51, %v2455_v4  ;;  %v2466_v55 = vmul.f32 %v9322_v29, %v2456_v41 }
 0x251   :  { %v9459_v49 = vadd.f32 %v2500_v9, %v9296_v31  ;;  %v2484_v26 = vmul.f32 %v9325_v40, %v2456_v41  ;;  %v2502_v62 = vmul.f32 %v9328_v51, %v2456_v41  ;;  %v9478_v31 = vstv %s9394_s29  ;;  %s10396_s29 = sld [smem:[#allocation2 + $0xa]] }
 0x252   :  { %v9469_v43 = vadd.f32 %v2465_v17, %v9305_v21  ;;  %v9472_v23 = vadd.f32 %v2483_v19, %v9307_v24  ;;  %v9475_v27 = vadd.f32 %v2501_v57, %v9314_v47  ;;  %v9481_v29 = vadd.f32 %v2466_v55, %v9333_v61  ;;  %v9515_v38 = vpop.permute.xlu0 %2655 }
 0x253   :  { %v9484_v40 = vadd.f32 %v2484_v26, %v9335_v2  ;;  %v9487_v51 = vadd.f32 %v2502_v62, %v9337_v6  ;;  %v2554_v14 = vstv %s9402_s30  ;;  %v2572_v21 = vstv %s9416_s6  ;;  %v9517_v9 = vpop.permute.xlu1 %2657  ;;  %s10398_s30 = sld [smem:[#allocation2 + $0x25]]  ;;  %s10410_s6 = sld [smem:[#allocation2 + $0x40]] }
 0x254   :  { %v2527_v24 = vsel %vm71_vm4, 0.5, %v9143_v11  ;;  %v2528_v47 = vsel %vm71_vm4, 0.5, %v9145_v53  ;;  %v2529_v61 = vsel %vm71_vm4, 0.5, %v9192_v10  ;;  %v2531_v17 = vsel %vm71_vm4, 0.5, %v9227_v54 }
 0x255   :  { %v2537_v2 = vmul.f32 %v9478_v31, %v2527_v24  ;;  %v2555_v59 = vmul.f32 %v2554_v14, %v2527_v24  ;;  %v2573_v5 = vmul.f32 %v2572_v21, %v2527_v24  ;;  %v2538_v6 = vmul.f32 %v9478_v31, %v2528_v47 }
 0x256   :  { %v2556_v18 = vmul.f32 %v2554_v14, %v2528_v47  ;;  %v2574_v42 = vmul.f32 %v2572_v21, %v2528_v47  ;;  %v2539_v39 = vmul.f32 %v9478_v31, %v2529_v61  ;;  %v2557_v35 = vmul.f32 %v2554_v14, %v2529_v61 }
 0x257   :  { %v9504_v11 = vadd.f32 %v2537_v2, %v9355_v46  ;;  %v9507_v53 = vadd.f32 %v2555_v59, %v9363_v12  ;;  %v9510_v20 = vadd.f32 %v2573_v5, %v9366_v58  ;;  %v9513_v10 = vadd.f32 %v2538_v6, %v9371_v16  ;;  %v13042_v2 = vld [vmem:[#allocation82_spill] sm:$0xff] }
 0x258   :  { %v9520_v4 = vadd.f32 %v2556_v18, %v9374_v56  ;;  %v9523_v41 = vadd.f32 %v2574_v42, %v9377_v22  ;;  %v9526_v46 = vadd.f32 %v2539_v39, %v9383_v60  ;;  %v9529_v12 = vadd.f32 %v2557_v35, %v9386_v0 }
 0x259   :  { %v2575_v58 = vmul.f32 %v2572_v21, %v2529_v61  ;;  %v2530_v16 = vsel %vm71_vm4, 0.5, %v9194_v1  ;;  %v2532_v56 = vsel %vm71_vm4, 0.5, %v9229_v45  ;;  %v2541_v0 = vmul.f32 %v9478_v31, %v2531_v17 }
 0x25a   :  { %v2540_v22 = vmul.f32 %v9478_v31, %v2530_v16  ;;  %v2558_v60 = vmul.f32 %v2554_v14, %v2530_v16  ;;  %v2576_v19 = vmul.f32 %v2572_v21, %v2530_v16  ;;  %v2559_v1 = vmul.f32 %v2554_v14, %v2531_v17 }
 0x25b   :  { %v9545_v57 = vadd.f32 %v2575_v58, %v9397_v13  ;;  %v2577_v55 = vmul.f32 %v2572_v21, %v2531_v17  ;;  %v2542_v26 = vmul.f32 %v9478_v31, %v2532_v56  ;;  %v9562_v13 = vadd.f32 %v2541_v0, %v9431_v48 }
 0x25c   :  { %v9553_v54 = vadd.f32 %v2540_v22, %v9419_v33  ;;  %v9556_v45 = vadd.f32 %v2558_v60, %v9422_v36  ;;  %v9559_v62 = vadd.f32 %v2576_v19, %v9425_v8  ;;  %v9567_v24 = vadd.f32 %v2559_v1, %v9434_v37  ;;  %v9579_v36 = vpop.permute.xlu0 %2749  ;;  %v9581_v8 = vpop.permute.xlu1 %2751  ;;  %v4810_v1 = vld [vmem:[#allocation8 + $0x40] sm:$0xff] }
 0x25d   :  { %v9570_v47 = vadd.f32 %v2577_v55, %v9437_v28  ;;  %v9573_v33 = vadd.f32 %v2542_v26, %v9441_v25  ;;  %v2560_v61 = vmul.f32 %v2554_v14, %v2532_v56  ;;  %v2578_v48 = vmul.f32 %v2572_v21, %v2532_v56  ;;  %v9589_v25 = vld [vmem:[#allocation8 + $0xc0] sm:$0xff]  ;;  %v4808_v56 = vld [vmem:[#allocation8 + $0xc8] sm:$0xff] }
 0x25e   :  { %v2533_v37 = vsel %vm71_vm4, 0.5, %v13042_v2  ;;  %v2534_v28 = vsel %vm71_vm4, 0.5, %v9288_v52  ;;  %v12638_v59 = vrot.slane %v9589_v25, 1  ;;  %v3418_v22 = vrot.slane %v4808_v56, 1  ;;  %v4811_v56 = vld [vmem:[#allocation8 + $0x48] sm:$0xff] }
 0x25f   :  { %v9593_v5 = vadd.f32 %v2560_v61, %v9453_v44  ;;  %v2543_v6 = vmul.f32 %v9478_v31, %v2533_v37  ;;  %v2561_v18 = vmul.f32 %v2554_v14, %v2533_v37  ;;  %v2579_v42 = vmul.f32 %v2572_v21, %v2533_v37 }
 0x260   :  { %v9597_v39 = vadd.f32 %v2578_v48, %v9459_v49  ;;  %v2544_v35 = vmul.f32 %v9478_v31, %v2534_v28  ;;  %v2562_v52 = vmul.f32 %v2554_v14, %v2534_v28  ;;  %v2580_v58 = vmul.f32 %v2572_v21, %v2534_v28  ;;  %v9633_v19 = vpop.permute.xlu0 %2753 }
 0x261   :  { %v9601_v16 = vadd.f32 %v2543_v6, %v9469_v43  ;;  %v9604_v44 = vadd.f32 %v2561_v18, %v9472_v23  ;;  %v9607_v17 = vadd.f32 %v2579_v42, %v9475_v27  ;;  %v4809_v43 = vld [vmem:[#allocation8 + $0xd0] sm:$0xff]  ;;  %v9622_v27 = vsel %vm532_vm2, %v12638_v59, %v3418_v22 }
 0x262   :  { %v9610_v49 = vadd.f32 %v2544_v35, %v9481_v29  ;;  %v9613_v60 = vadd.f32 %v2562_v52, %v9484_v40  ;;  %v9616_v31 = vadd.f32 %v2580_v58, %v9487_v51  ;;  %v3419_v14 = vrot.slane %v4809_v43, 1  ;;  %13044 = vst [vmem:[#allocation83_spill] sm:$0xff] %v9622_v27  ;;  %v9635_v51 = vpop.permute.xlu1 %2755  ;;  %3445 = vrot.lane.b32.xlu0 %v9622_v27, %s4920_s16 }
 0x263   :  { %v9625_v21 = vstv %s9542_s7  ;;  %v9628_v29 = vstv %s9548_s8  ;;  %v9631_v40 = vstv %s9550_s9  ;;  %13045 = vst [vmem:[#allocation84_spill] sm:$0xff] %v9635_v51  ;;  %v9649_v48 = vstv %s9564_s10  ;;  %v4816_v51 = vld [vmem:[#allocation8 + $0xe8] sm:$0xff]  ;;  %s10426_s7 = sld [smem:[#allocation2 + $0xb]]  ;;  %s10440_s8 = sld [smem:[#allocation2 + $0x26]] }
 0x264   :  { %v9641_v0 = vsel %vm532_vm2, %v3418_v22, %v3419_v14  ;;  %v2591_v55 = vmul.f32 %v4810_v1, %v9625_v21  ;;  %v2609_v26 = vmul.f32 %v4810_v1, %v9628_v29  ;;  %v2627_v61 = vmul.f32 %v4810_v1, %v9631_v40  ;;  %v9680_v59 = vpop.permute.xlu0 %2757  ;;  %s10442_s9 = sld [smem:[#allocation2 + $0x41]]  ;;  %s10658_s10 = sld [smem:[#allocation2 + $0xc]] }
 0x265   :  { %13046 = vst [vmem:[#allocation85_spill] sm:$0xff] %v9641_v0  ;;  %3447 = vrot.lane.b32.xlu1 %v9641_v0, %s4920_s16  ;;  %v9652_v2 = vstv %s9575_s13  ;;  %v9655_v37 = vstv %s9577_s14  ;;  %v2659_v28 = vsel %vm72_vm5, 0.5, %v9342_v30  ;;  %v2592_v22 = vmul.f32 %v4811_v56, %v9625_v21  ;;  %13047 = vst [vmem:[#allocation88_spill] sm:$0xff] %v9680_v59  ;;  %s10668_s13 = sld [smem:[#allocation2 + $0x27]]  ;;  %s10670_s14 = sld [smem:[#allocation2 + $0x42]] }
 0x266   :  { %v2599_v6 = vadd.f32 %v2591_v55, %v9504_v11  ;;  %v2617_v18 = vadd.f32 %v2609_v26, %v9507_v53  ;;  %v2635_v42 = vadd.f32 %v2627_v61, %v9510_v20  ;;  %v2669_v35 = vmul.f32 %v9649_v48, %v2659_v28  ;;  %v4812_v53 = vld [vmem:[#allocation8 + $0xd8] sm:$0xff] }
 0x267   :  { %v2687_v52 = vmul.f32 %v9652_v2, %v2659_v28  ;;  %v2705_v58 = vmul.f32 %v9655_v37, %v2659_v28  ;;  %v2610_v43 = vmul.f32 %v4811_v56, %v9628_v29  ;;  %v2628_v30 = vmul.f32 %v4811_v56, %v9631_v40 }
 0x268   :  { %v9668_v1 = vadd.f32 %v2669_v35, %v2599_v6  ;;  %v2660_v11 = vsel %vm72_vm5, 0.5, %v9344_v15  ;;  %v3420_v20 = vrot.slane %v4812_v53, 1  ;;  %v2600_v61 = vadd.f32 %v2592_v22, %v9513_v10  ;;  %v9682_v6 = vpop.permute.xlu1 %2759 }
 0x269   :  { %v9674_v55 = vadd.f32 %v2687_v52, %v2617_v18  ;;  %v9676_v26 = vadd.f32 %v2705_v58, %v2635_v42  ;;  %v2618_v28 = vadd.f32 %v2610_v43, %v9520_v4  ;;  %13048 = vst [vmem:[#allocation89_spill] sm:$0xff] %v9682_v6  ;;  %v2636_v35 = vadd.f32 %v2628_v30, %v9523_v41  ;;  %v4813_v42 = vld [vmem:[#allocation8 + $0xe0] sm:$0xff]  ;;  %v4814_v52 = vld [vmem:[#allocation8 + $0x50] sm:$0xff] }
 0x26a   :  { %v2670_v56 = vmul.f32 %v9649_v48, %v2660_v11  ;;  %v2688_v15 = vmul.f32 %v9652_v2, %v2660_v11  ;;  %v2706_v53 = vmul.f32 %v9655_v37, %v2660_v11  ;;  %v9690_v18 = vsel %vm532_vm2, %v3419_v14, %v3420_v20 }
 0x26b   :  { %13049 = vst [vmem:[#allocation90_spill] sm:$0xff] %v9690_v18  ;;  %v3421_v10 = vrot.slane %v4813_v42, 1  ;;  %v2593_v4 = vmul.f32 %v4814_v52, %v9625_v21  ;;  %v2611_v58 = vmul.f32 %v4814_v52, %v9628_v29  ;;  %3449 = vrot.lane.b32.xlu0 %v9690_v18, %s4920_s16  ;;  %v2629_v30 = vmul.f32 %v4814_v52, %v9631_v40  ;;  %v9724_v52 = vpop.permute.xlu0 %2761 }
 0x26c   :  { %v9694_v22 = vadd.f32 %v2670_v56, %v2600_v61  ;;  %v9696_v41 = vadd.f32 %v2688_v15, %v2618_v28  ;;  %v9698_v43 = vadd.f32 %v2706_v53, %v2636_v35  ;;  %v2661_v61 = vsel %vm72_vm5, 0.5, %v9406_v3  ;;  %v4815_v15 = vld [vmem:[#allocation8 + $0x58] sm:$0xff]  ;;  %13051 = vst [vmem:[#allocation94_spill] sm:$0xff] %v9724_v52 }
 0x26d   :  { %v9705_v14 = vsel %vm532_vm2, %v3420_v20, %v3421_v10  ;;  %v2601_v11 = vadd.f32 %v2593_v4, %v9526_v46  ;;  %v2619_v42 = vadd.f32 %v2611_v58, %v9529_v12  ;;  %v2637_v28 = vadd.f32 %v2629_v30, %v9545_v57  ;;  %v9726_v57 = vpop.permute.xlu1 %2763 }
 0x26e   :  { %13050 = vst [vmem:[#allocation91_spill] sm:$0xff] %v9705_v14  ;;  %3451 = vrot.lane.b32.xlu1 %v9705_v14, %s4920_s16  ;;  %v2671_v35 = vmul.f32 %v9649_v48, %v2661_v61  ;;  %v2689_v56 = vmul.f32 %v9652_v2, %v2661_v61  ;;  %v2707_v20 = vmul.f32 %v9655_v37, %v2661_v61  ;;  %v2662_v3 = vsel %vm72_vm5, 0.5, %v9408_v32 }
 0x26f   :  { %v2594_v46 = vmul.f32 %v4815_v15, %v9625_v21  ;;  %v2612_v12 = vmul.f32 %v4815_v15, %v9628_v29  ;;  %v2630_v53 = vmul.f32 %v4815_v15, %v9631_v40  ;;  %13052 = vst [vmem:[#allocation95_spill] sm:$0xff] %v9726_v57  ;;  %v2672_v61 = vmul.f32 %v9649_v48, %v2662_v3 }
 0x270   :  { %v9728_v4 = vadd.f32 %v2671_v35, %v2601_v11  ;;  %v9730_v58 = vadd.f32 %v2689_v56, %v2619_v42  ;;  %v9732_v30 = vadd.f32 %v2707_v20, %v2637_v28  ;;  %v2690_v32 = vmul.f32 %v9652_v2, %v2662_v3  ;;  %v4817_v42 = vld [vmem:[#allocation8 + $0x60] sm:$0xff] }
 0x271   :  { %v2602_v6 = vadd.f32 %v2594_v46, %v9553_v54  ;;  %v2620_v15 = vadd.f32 %v2612_v12, %v9556_v45  ;;  %v2638_v59 = vadd.f32 %v2630_v53, %v9559_v62  ;;  %v2708_v52 = vmul.f32 %v9655_v37, %v2662_v3  ;;  %v4818_v46 = vld [vmem:[#allocation8 + $0x68] sm:$0xff]  ;;  %v9769_v53 = vpop.permute.xlu0 %2881 }
 0x272   :  { %v3422_v57 = vrot.slane %v4816_v51, 1  ;;  %v3423_v11 = vrot.slane %v9019_v34, 1  ;;  %v2595_v28 = vmul.f32 %v4817_v42, %v9625_v21  ;;  %v2613_v54 = vmul.f32 %v4817_v42, %v9628_v29 }
 0x273   :  { %v9742_v35 = vadd.f32 %v2672_v61, %v2602_v6  ;;  %v9744_v56 = vadd.f32 %v2690_v32, %v2620_v15  ;;  %v2631_v45 = vmul.f32 %v4817_v42, %v9631_v40  ;;  %v9748_v62 = vadd.f32 %v2708_v52, %v2638_v59  ;;  %v4819_v15 = vld [vmem:[#allocation8 + $0xf8] sm:$0xff] }
 0x274   :  { %v9752_v20 = vsel %vm532_vm2, %v3421_v10, %v3422_v57  ;;  %v9756_v34 = vsel %vm532_vm2, %v3422_v57, %v3423_v11  ;;  %v2603_v51 = vadd.f32 %v2595_v28, %v9562_v13  ;;  %v2621_v6 = vadd.f32 %v2613_v54, %v9567_v24  ;;  %v9771_v13 = vpop.permute.xlu1 %2883 }
 0x275   :  { %13053 = vst [vmem:[#allocation96_spill] sm:$0xff] %v9752_v20  ;;  %13054 = vst [vmem:[#allocation97_spill] sm:$0xff] %v9756_v34  ;;  %3453 = vrot.lane.b32.xlu0 %v9752_v20, %s4920_s16  ;;  %3455 = vrot.lane.b32.xlu1 %v9756_v34, %s4920_s16  ;;  %v2639_v59 = vadd.f32 %v2631_v45, %v9570_v47  ;;  %v2663_v10 = vsel %vm72_vm5, 0.5, %v9464_v7  ;;  %v2596_v12 = vmul.f32 %v4818_v46, %v9625_v21 }
 0x276   :  { %v2673_v3 = vmul.f32 %v9649_v48, %v2663_v10  ;;  %v2691_v52 = vmul.f32 %v9652_v2, %v2663_v10  ;;  %v2709_v57 = vmul.f32 %v9655_v37, %v2663_v10  ;;  %v2614_v24 = vmul.f32 %v4818_v46, %v9628_v29  ;;  %v4635_v10 = vld [vmem:[%s12486_s4 + $0x5] ss:$0 sm:$0xff] }
 0x277   :  { %v2632_v47 = vmul.f32 %v4818_v46, %v9631_v40  ;;  %v2604_v61 = vadd.f32 %v2596_v12, %v9573_v33  ;;  %v2664_v7 = vsel %vm72_vm5, 0.5, %v9466_v50  ;;  %v3424_v32 = vrot.slane %v4819_v15, 1 }
 0x278   :  { %v9782_v42 = vadd.f32 %v2673_v3, %v2603_v51  ;;  %v9784_v28 = vadd.f32 %v2691_v52, %v2621_v6  ;;  %v9786_v54 = vadd.f32 %v2709_v57, %v2639_v59  ;;  %v2622_v45 = vadd.f32 %v2614_v24, %v9593_v5 }
 0x279   :  { %v2640_v33 = vadd.f32 %v2632_v47, %v9597_v39  ;;  %v2674_v46 = vmul.f32 %v9649_v48, %v2664_v7  ;;  %v2692_v50 = vmul.f32 %v9652_v2, %v2664_v7  ;;  %v2710_v12 = vmul.f32 %v9655_v37, %v2664_v7  ;;  %v4820_v39 = vld [vmem:[#allocation8 + $0x70] sm:$0xff]  ;;  %v9824_v47 = vpop.permute.xlu0 %2885  ;;  %v9826_v7 = vpop.permute.xlu1 %2887 }
 0x27a   :  { %v9802_v51 = vsel %vm532_vm2, %v3423_v11, %v3424_v32  ;;  %v13056_v5 = vrot.slane %v9589_v25, 1  ;;  %v2597_v59 = vmul.f32 %v4820_v39, %v9625_v21  ;;  %v2615_v3 = vmul.f32 %v4820_v39, %v9628_v29 }
 0x27b   :  { %13055 = vst [vmem:[#allocation98_spill] sm:$0xff] %v9802_v51  ;;  %v9812_v52 = vadd.f32 %v2674_v46, %v2604_v61  ;;  %v9814_v57 = vadd.f32 %v2692_v50, %v2622_v45  ;;  %v9816_v24 = vadd.f32 %v2710_v12, %v2640_v33  ;;  %3457 = vrot.lane.b32.xlu0 %v9802_v51, %s4920_s16  ;;  %v2665_v45 = vsel %vm72_vm5, 0.5, %v9515_v38  ;;  %v4821_v50 = vld [vmem:[#allocation8 + $0x78] sm:$0xff] }
 0x27c   :  { %v3432_v6 = vsel %vm532_vm2, %v3424_v32, %v13056_v5  ;;  %v2633_v61 = vmul.f32 %v4820_v39, %v9631_v40  ;;  %v2605_v15 = vadd.f32 %v2597_v59, %v9601_v16  ;;  %v2623_v32 = vadd.f32 %v2615_v3, %v9604_v44 }
 0x27d   :  { %v9822_v11 = vsel %vm88_vm3, %v4635_v10, %v3432_v6  ;;  %v2675_v10 = vmul.f32 %v9649_v48, %v2665_v45  ;;  %v2693_v33 = vmul.f32 %v9652_v2, %v2665_v45  ;;  %v2711_v46 = vmul.f32 %v9655_v37, %v2665_v45 }
 0x27e   :  { %13058 = vst [vmem:[#allocation99_spill] sm:$0xff] %v9822_v11  ;;  %3459 = vrot.lane.b32.xlu1 %v9822_v11, %s4920_s16  ;;  %v2598_v12 = vmul.f32 %v4821_v50, %v9625_v21  ;;  %v2641_v5 = vadd.f32 %v2633_v61, %v9607_v17  ;;  %v2616_v16 = vmul.f32 %v4821_v50, %v9628_v29  ;;  %v2666_v38 = vsel %vm72_vm5, 0.5, %v9517_v9 }
 0x27f   :  { %v2634_v44 = vmul.f32 %v4821_v50, %v9631_v40  ;;  %v9846_v6 = vadd.f32 %v2675_v10, %v2605_v15  ;;  %v9848_v39 = vadd.f32 %v2693_v33, %v2623_v32  ;;  %v2676_v21 = vmul.f32 %v9649_v48, %v2666_v38  ;;  %3577 = vrot.lane.b32.xlu0 %v9622_v27, %s4921_s17  ;;  %v9870_v15 = vpop.permute.xlu0 %2889  ;;  %v9872_v32 = vpop.permute.xlu1 %2891  ;;  %v10112_v27 = vld [vmem:[#allocation8 + $0x158] sm:$0xff] }
 0x280   :  { %v2606_v59 = vadd.f32 %v2598_v12, %v9610_v49  ;;  %v9854_v17 = vadd.f32 %v2711_v46, %v2641_v5  ;;  %v2624_v29 = vadd.f32 %v2616_v16, %v9613_v60  ;;  %v2694_v9 = vmul.f32 %v9652_v2, %v2666_v38  ;;  %13071 = vst [vmem:[#allocation106_spill] sm:$0xff] %v10112_v27 }
 0x281   :  { %v2642_v40 = vadd.f32 %v2634_v44, %v9616_v31  ;;  %v2712_v49 = vmul.f32 %v9655_v37, %v2666_v38  ;;  %v9865_v61 = vstv %s9796_s18  ;;  %v9868_v48 = vstv %s9798_s19  ;;  %s10826_s18 = sld [smem:[#allocation2 + $0x43]]  ;;  %s10828_s19 = sld [smem:[#allocation2 + $0xe]] }
 0x282   :  { %3579 = vrot.lane.b32.xlu1 %v9641_v0, %s4921_s17  ;;  %v9861_v3 = vadd.f32 %v2676_v21, %v2606_v59  ;;  %v9874_v60 = vadd.f32 %v2694_v9, %v2624_v29  ;;  %v9877_v31 = vstv %s9810_s20  ;;  %v2765_v2 = vsel %vm71_vm4, 0.5, %v9579_v36  ;;  %s10838_s20 = sld [smem:[#allocation2 + $0x29]] }
 0x283   :  { %v2766_v37 = vsel %vm71_vm4, 0.5, %v9581_v8  ;;  %v9885_v45 = vadd.f32 %v2712_v49, %v2642_v40  ;;  %v2775_v10 = vmul.f32 %v9865_v61, %v2765_v2  ;;  %v2793_v33 = vmul.f32 %v9868_v48, %v2765_v2  ;;  %3581 = vrot.lane.b32.xlu0 %v9690_v18, %s4921_s17  ;;  %v9934_v9 = vpop.permute.xlu1 %2895 }
 0x284   :  { %v2811_v46 = vmul.f32 %v9877_v31, %v2765_v2  ;;  %v2776_v50 = vmul.f32 %v9865_v61, %v2766_v37  ;;  %v2794_v12 = vmul.f32 %v9868_v48, %v2766_v37  ;;  %v2812_v36 = vmul.f32 %v9877_v31, %v2766_v37 }
 0x285   :  { %v2767_v8 = vsel %vm71_vm4, 0.5, %v9633_v19  ;;  %v9901_v5 = vadd.f32 %v2775_v10, %v9668_v1  ;;  %v9904_v16 = vadd.f32 %v2793_v33, %v9674_v55 }
 0x286   :  { %3583 = vrot.lane.b32.xlu1 %v9705_v14, %s4921_s17  ;;  %v9907_v44 = vadd.f32 %v2811_v46, %v9676_v26  ;;  %v2777_v38 = vmul.f32 %v9865_v61, %v2767_v8  ;;  %v9911_v59 = vadd.f32 %v2776_v50, %v9694_v22  ;;  %v9914_v21 = vadd.f32 %v2794_v12, %v9696_v41  ;;  %v13059_v26 = vld [vmem:[#allocation84_spill] sm:$0xff] }
 0x287   :  { %v9917_v29 = vadd.f32 %v2812_v36, %v9698_v43  ;;  %v2795_v19 = vmul.f32 %v9868_v48, %v2767_v8  ;;  %v2813_v55 = vmul.f32 %v9877_v31, %v2767_v8  ;;  %v2768_v40 = vsel %vm71_vm4, 0.5, %v13059_v26  ;;  %3585 = vrot.lane.b32.xlu0 %v9752_v20, %s4921_s17  ;;  %v13060_v22 = vld [vmem:[#allocation88_spill] sm:$0xff]  ;;  %v9932_v43 = vpop.permute.xlu0 %2893  ;;  %v13070_v20 = vld [vmem:[#allocation51_spill] sm:$0xff] }
 0x288   :  { %v9921_v1 = vadd.f32 %v2777_v38, %v9728_v4  ;;  %v2769_v41 = vsel %vm71_vm4, 0.5, %v13060_v22  ;;  %v2778_v49 = vmul.f32 %v9865_v61, %v2768_v40  ;;  %v2796_v2 = vmul.f32 %v9868_v48, %v2768_v40 }
 0x289   :  { %v9937_v4 = vadd.f32 %v2795_v19, %v9730_v58  ;;  %v2814_v37 = vmul.f32 %v9877_v31, %v2768_v40  ;;  %v9945_v10 = vadd.f32 %v2813_v55, %v9732_v30  ;;  %v2779_v33 = vmul.f32 %v9865_v61, %v2769_v41  ;;  %v13061_v30 = vld [vmem:[#allocation89_spill] sm:$0xff] }
 0x28a   :  { %3587 = vrot.lane.b32.xlu1 %v9756_v34, %s4921_s17  ;;  %v2797_v46 = vmul.f32 %v9868_v48, %v2769_v41  ;;  %v2815_v50 = vmul.f32 %v9877_v31, %v2769_v41  ;;  %v9955_v58 = vadd.f32 %v2778_v49, %v9742_v35  ;;  %v9958_v12 = vadd.f32 %v2796_v2, %v9744_v56  ;;  %v10002_v2 = vld [vmem:[#allocation8 + $0x140] sm:$0xff] }
 0x28b   :  { %v9961_v36 = vadd.f32 %v2814_v37, %v9748_v62  ;;  %v2770_v8 = vsel %vm71_vm4, 0.5, %v13061_v30  ;;  %v9969_v38 = vadd.f32 %v2779_v33, %v9782_v42  ;;  %3589 = vrot.lane.b32.xlu0 %v9802_v51, %s4921_s17  ;;  %v13062_v42 = vld [vmem:[#allocation94_spill] sm:$0xff]  ;;  %13064 = vst [vmem:[#allocation100_spill] sm:$0xff] %v10002_v2  ;;  %v10004_v37 = vld [vmem:[#allocation8 + $0x178] sm:$0xff]  ;;  %v10006_v33 = vpop.permute.xlu0 %2997  ;;  %v2897_v34 = vsel %vm72_vm5, 0.5, %v9769_v53 }
 0x28c   :  { %v9972_v19 = vadd.f32 %v2797_v46, %v9784_v28  ;;  %v9975_v35 = vadd.f32 %v2815_v50, %v9786_v54  ;;  %v2780_v56 = vmul.f32 %v9865_v61, %v2770_v8  ;;  %v2798_v62 = vmul.f32 %v9868_v48, %v2770_v8  ;;  %v13063_v54 = vld [vmem:[#allocation95_spill] sm:$0xff]  ;;  %v10008_v46 = vpop.permute.xlu1 %2999 }
 0x28d   :  { %v2816_v55 = vmul.f32 %v9877_v31, %v2770_v8  ;;  %v2771_v28 = vsel %vm71_vm4, 0.5, %v13062_v42  ;;  %v2772_v26 = vsel %vm71_vm4, 0.5, %v13063_v54  ;;  %v13066_v54 = vld [vmem:[#allocation50_spill] sm:$0xff]  ;;  %v2898_v53 = vsel %vm72_vm5, 0.5, %v9771_v13 }
 0x28e   :  { %3591 = vrot.lane.b32.xlu1 %v9822_v11, %s4921_s17  ;;  %v9997_v40 = vadd.f32 %v2780_v56, %v9812_v52  ;;  %v2781_v22 = vmul.f32 %v9865_v61, %v2771_v28  ;;  %v2799_v41 = vmul.f32 %v9868_v48, %v2771_v28  ;;  %v2817_v49 = vmul.f32 %v9877_v31, %v2771_v28  ;;  %v10018_v56 = vld [vmem:[#allocation8 + $0x148] sm:$0xff]  ;;  %v10091_v11 = vld [vmem:[#allocation8 + $0x150] sm:$0xff] }
 0x28f   :  { %v10011_v50 = vadd.f32 %v2798_v62, %v9814_v57  ;;  %v10014_v52 = vadd.f32 %v2816_v55, %v9816_v24  ;;  %v2782_v30 = vmul.f32 %v9865_v61, %v2772_v26  ;;  %v2800_v8 = vmul.f32 %v9868_v48, %v2772_v26  ;;  %13065 = vst [vmem:[#allocation103_spill] sm:$0xff] %v10018_v56 }
 0x290   :  { %v10021_v42 = vadd.f32 %v2781_v22, %v9846_v6  ;;  %v10024_v28 = vadd.f32 %v2799_v41, %v9848_v39  ;;  %v10027_v57 = vadd.f32 %v2817_v49, %v9854_v17  ;;  %v2818_v24 = vmul.f32 %v9877_v31, %v2772_v26  ;;  %v4647_v6 = vld [vmem:[%s12484_s2 + $0x6] ss:$0 sm:$0xff]  ;;  %13069 = vst [vmem:[#allocation113_spill] sm:$0xff] %v10091_v11  ;;  %s10234_s2 = sld [smem:[#allocation2 + $0x9]] }
 0x291   :  { %v10031_v62 = vadd.f32 %v2782_v30, %v9861_v3  ;;  %v10034_v61 = vadd.f32 %v2800_v8, %v9874_v60  ;;  %v3665_v48 = vrot.slane %v10002_v2, 7  ;;  %v12639_v39 = vrot.slane %v10004_v37, 7 }
 0x292   :  { %v10042_v17 = vadd.f32 %v2818_v24, %v9885_v45  ;;  %v3666_v31 = vrot.slane %v10018_v56, 7  ;;  %v10046_v3 = vstv %s9950_s21  ;;  %v10049_v55 = vstv %s9952_s22  ;;  %v10075_v24 = vpop.permute.xlu0 %3001  ;;  %s10840_s21 = sld [smem:[#allocation2 + $0x44]]  ;;  %s11054_s22 = sld [smem:[#allocation2 + $0xf]] }
 0x293   :  { %v3680_v60 = vsel %vm107_vm0, %v12639_v39, %v3665_v48  ;;  %v2829_v26 = vmul.f32 %v10046_v3, %v13066_v54  ;;  %v2847_v45 = vmul.f32 %v10049_v55, %v13066_v54  ;;  %v10060_v22 = vstv %s9966_s23  ;;  %v10077_v39 = vpop.permute.xlu1 %3003  ;;  %s11071_s23 = sld [smem:[#allocation2 + $0x2a]] }
 0x294   :  { %v10064_v41 = vsel %vm73_vm1, %v4647_v6, %v3680_v60  ;;  %v10068_v49 = vsel %vm107_vm0, %v3665_v48, %v3666_v31  ;;  %v2865_v30 = vmul.f32 %v10060_v22, %v13066_v54  ;;  %v10073_v8 = vstv %s9980_s24  ;;  %s12116_s24 = sld [smem:[#allocation2 + $0x33]] }
 0x295   :  { %13067 = vst [vmem:[#allocation104_spill] sm:$0xff] %v10064_v41  ;;  %13068 = vst [vmem:[#allocation105_spill] sm:$0xff] %v10068_v49  ;;  %3693 = vrot.lane.b32.xlu0 %v10064_v41, %s4920_s16  ;;  %3695 = vrot.lane.b32.xlu1 %v10068_v49, %s4920_s16  ;;  %v10084_v6 = vstv %s9992_s25  ;;  %v10087_v60 = vstv %s9994_s26  ;;  %v2837_v48 = vadd.f32 %v2829_v26, %v9901_v5  ;;  %s11080_s26 = sld [smem:[#allocation2 + $0x45]]  ;;  %s12118_s25 = sld [smem:[#allocation2 + $0x4e]] }
 0x296   :  { %v2855_v54 = vadd.f32 %v2847_v45, %v9904_v16  ;;  %v2873_v51 = vadd.f32 %v2865_v30, %v9907_v44  ;;  %v2830_v14 = vmul.f32 %v10046_v3, %v13070_v20  ;;  %v2848_v18 = vmul.f32 %v10049_v55, %v13070_v20 }
 0x297   :  { %v2907_v0 = vmul.f32 %v10073_v8, %v2897_v34  ;;  %v2925_v5 = vmul.f32 %v10084_v6, %v2897_v34  ;;  %v2943_v16 = vmul.f32 %v10087_v60, %v2897_v34  ;;  %v2866_v26 = vmul.f32 %v10060_v22, %v13070_v20 }
 0x298   :  { %v2838_v44 = vadd.f32 %v2830_v14, %v9911_v59  ;;  %v2856_v45 = vadd.f32 %v2848_v18, %v9914_v21  ;;  %v3667_v30 = vrot.slane %v10091_v11, 7  ;;  %v2908_v14 = vmul.f32 %v10073_v8, %v2898_v53  ;;  %v10128_v21 = vpop.permute.xlu0 %3005 }
 0x299   :  { %v10114_v25 = vadd.f32 %v2907_v0, %v2837_v48  ;;  %v10116_v56 = vadd.f32 %v2925_v5, %v2855_v54  ;;  %v10118_v34 = vadd.f32 %v2943_v16, %v2873_v51  ;;  %v2874_v20 = vadd.f32 %v2866_v26, %v9917_v29  ;;  %13073 = vst [vmem:[#allocation109_spill] sm:$0xff] %v10128_v21  ;;  %v10130_v0 = vpop.permute.xlu1 %3007  ;;  %v13075_v29 = vld [vmem:[#allocation54_spill] sm:$0xff] }
 0x29a   :  { %v2926_v18 = vmul.f32 %v10084_v6, %v2898_v53  ;;  %v2944_v59 = vmul.f32 %v10087_v60, %v2898_v53  ;;  %v10126_v13 = vsel %vm107_vm0, %v3666_v31, %v3667_v30  ;;  %13074 = vst [vmem:[#allocation108_spill] sm:$0xff] %v10130_v0  ;;  %v3668_v51 = vrot.slane %v10112_v27, 7  ;;  %v10150_v27 = vld [vmem:[#allocation8 + $0x160] sm:$0xff] }
 0x29b   :  { %13072 = vst [vmem:[#allocation107_spill] sm:$0xff] %v10126_v13  ;;  %3697 = vrot.lane.b32.xlu0 %v10126_v13, %s4920_s16  ;;  %v2831_v48 = vmul.f32 %v10046_v3, %v13075_v29  ;;  %v2849_v54 = vmul.f32 %v10049_v55, %v13075_v29  ;;  %v2867_v5 = vmul.f32 %v10060_v22, %v13075_v29  ;;  %v2899_v53 = vsel %vm72_vm5, 0.5, %v9824_v47 }
 0x29c   :  { %v10141_v31 = vadd.f32 %v2908_v14, %v2838_v44  ;;  %v10143_v16 = vadd.f32 %v2926_v18, %v2856_v45  ;;  %v10145_v26 = vadd.f32 %v2944_v59, %v2874_v20  ;;  %13077 = vst [vmem:[#allocation111_spill] sm:$0xff] %v10150_v27  ;;  %v10154_v11 = vsel %vm107_vm0, %v3667_v30, %v3668_v51  ;;  %v13079_v14 = vld [vmem:[#allocation55_spill] sm:$0xff]  ;;  %v10183_v0 = vpop.permute.xlu0 %3009 }
 0x29d   :  { %13078 = vst [vmem:[#allocation117_spill] sm:$0xff] %v10154_v11  ;;  %v2839_v2 = vadd.f32 %v2831_v48, %v9921_v1  ;;  %v2857_v29 = vadd.f32 %v2849_v54, %v9937_v4  ;;  %v2875_v44 = vadd.f32 %v2867_v5, %v9945_v10  ;;  %3699 = vrot.lane.b32.xlu1 %v10154_v11, %s4920_s16  ;;  %v2900_v4 = vsel %vm72_vm5, 0.5, %v9826_v7  ;;  %v10174_v59 = vld [vmem:[#allocation8 + $0x168] sm:$0xff]  ;;  %v10185_v21 = vpop.permute.xlu1 %3011 }
 0x29e   :  { %13076 = vst [vmem:[#allocation110_spill] sm:$0xff] %v10145_v26  ;;  %v2909_v45 = vmul.f32 %v10073_v8, %v2899_v53  ;;  %v2927_v20 = vmul.f32 %v10084_v6, %v2899_v53  ;;  %v2945_v47 = vmul.f32 %v10087_v60, %v2899_v53  ;;  %v2832_v18 = vmul.f32 %v10046_v3, %v13079_v14 }
 0x29f   :  { %v2850_v30 = vmul.f32 %v10049_v55, %v13079_v14  ;;  %v2868_v1 = vmul.f32 %v10060_v22, %v13079_v14  ;;  %v3669_v10 = vrot.slane %v10150_v27, 7  ;;  %13080 = vst [vmem:[#allocation118_spill] sm:$0xff] %v10174_v59  ;;  %v2910_v27 = vmul.f32 %v10073_v8, %v2900_v4 }
 0x2a0   :  { %v10176_v48 = vadd.f32 %v2909_v45, %v2839_v2  ;;  %v10178_v54 = vadd.f32 %v2927_v20, %v2857_v29  ;;  %v10180_v5 = vadd.f32 %v2945_v47, %v2875_v44  ;;  %v2840_v53 = vadd.f32 %v2832_v18, %v9955_v58  ;;  %v13082_v44 = vld [vmem:[#allocation58_spill] sm:$0xff] }
 0x2a1   :  { %v2858_v14 = vadd.f32 %v2850_v30, %v9958_v12  ;;  %v2876_v7 = vadd.f32 %v2868_v1, %v9961_v36  ;;  %v2928_v26 = vmul.f32 %v10084_v6, %v2900_v4  ;;  %v2946_v2 = vmul.f32 %v10087_v60, %v2900_v4  ;;  %v10219_v30 = vld [vmem:[#allocation8 + $0x170] sm:$0xff] }
 0x2a2   :  { %v10194_v29 = vsel %vm107_vm0, %v3668_v51, %v3669_v10  ;;  %v3670_v58 = vrot.slane %v10174_v59, 7  ;;  %v2833_v45 = vmul.f32 %v10046_v3, %v13082_v44  ;;  %v10199_v20 = vadd.f32 %v2910_v27, %v2840_v53 }
 0x2a3   :  { %13081 = vst [vmem:[#allocation121_spill] sm:$0xff] %v10194_v29  ;;  %v10201_v12 = vadd.f32 %v2928_v26, %v2858_v14  ;;  %3701 = vrot.lane.b32.xlu0 %v10194_v29, %s4920_s16  ;;  %v2851_v36 = vmul.f32 %v10049_v55, %v13082_v44  ;;  %v2869_v47 = vmul.f32 %v10060_v22, %v13082_v44  ;;  %v2901_v26 = vsel %vm72_vm5, 0.5, %v9870_v15  ;;  %v13105_v23 = vld [vmem:[#allocation111_spill] sm:$0xff] }
 0x2a4   :  { %v10209_v51 = vadd.f32 %v2946_v2, %v2876_v7  ;;  %v10213_v18 = vsel %vm107_vm0, %v3669_v10, %v3670_v58  ;;  %v2841_v27 = vadd.f32 %v2833_v45, %v9969_v38  ;;  %v2911_v53 = vmul.f32 %v10073_v8, %v2901_v26  ;;  %v13084_v38 = vld [vmem:[#allocation59_spill] sm:$0xff] }
 0x2a5   :  { %13083 = vst [vmem:[#allocation112_spill] sm:$0xff] %v10213_v18  ;;  %3703 = vrot.lane.b32.xlu1 %v10213_v18, %s4920_s16  ;;  %v2859_v1 = vadd.f32 %v2851_v36, %v9972_v19  ;;  %v2877_v4 = vadd.f32 %v2869_v47, %v9975_v35  ;;  %v2929_v10 = vmul.f32 %v10084_v6, %v2901_v26  ;;  %v10236_v19 = vpop.permute.xlu0 %3129  ;;  %v10238_v35 = vpop.permute.xlu1 %3131  ;;  %v2902_v36 = vsel %vm72_vm5, 0.5, %v9872_v32 }
 0x2a6   :  { %v2947_v14 = vmul.f32 %v10087_v60, %v2901_v26  ;;  %v2834_v7 = vmul.f32 %v10046_v3, %v13084_v38  ;;  %v2852_v15 = vmul.f32 %v10049_v55, %v13084_v38  ;;  %v2870_v2 = vmul.f32 %v10060_v22, %v13084_v38  ;;  %13085 = vst [vmem:[#allocation114_spill] sm:$0xff] %v10236_v19 }
 0x2a7   :  { %13086 = vst [vmem:[#allocation115_spill] sm:$0xff] %v10238_v35  ;;  %v10240_v44 = vadd.f32 %v2911_v53, %v2841_v27  ;;  %v10242_v45 = vadd.f32 %v2929_v10, %v2859_v1  ;;  %v3671_v47 = vrot.slane %v10219_v30, 7  ;;  %v2912_v35 = vmul.f32 %v10073_v8, %v2902_v36 }
 0x2a8   :  { %v10248_v26 = vadd.f32 %v2947_v14, %v2877_v4  ;;  %v2842_v38 = vadd.f32 %v2834_v7, %v9997_v40  ;;  %v2860_v59 = vadd.f32 %v2852_v15, %v10011_v50  ;;  %v2878_v19 = vadd.f32 %v2870_v2, %v10014_v52  ;;  %v13090_v50 = vld [vmem:[#allocation60_spill] sm:$0xff] }
 0x2a9   :  { %v2930_v27 = vmul.f32 %v10084_v6, %v2902_v36  ;;  %v2948_v1 = vmul.f32 %v10087_v60, %v2902_v36  ;;  %v10258_v53 = vsel %vm107_vm0, %v3670_v58, %v3671_v47  ;;  %v13088_v32 = vrot.slane %v10004_v37, 7 }
 0x2aa   :  { %13087 = vst [vmem:[#allocation116_spill] sm:$0xff] %v10258_v53  ;;  %3705 = vrot.lane.b32.xlu0 %v10258_v53, %s4920_s16  ;;  %v2835_v52 = vmul.f32 %v10046_v3, %v13090_v50  ;;  %v2853_v58 = vmul.f32 %v10049_v55, %v13090_v50  ;;  %v2871_v4 = vmul.f32 %v10060_v22, %v13090_v50  ;;  %v2903_v15 = vsel %vm72_vm5, 0.5, %v9932_v43 }
 0x2ab   :  { %v10270_v40 = vsel %vm107_vm0, %v3671_v47, %v13088_v32  ;;  %v10278_v10 = vadd.f32 %v2912_v35, %v2842_v38  ;;  %v10280_v14 = vadd.f32 %v2930_v27, %v2860_v59  ;;  %v10282_v7 = vadd.f32 %v2948_v1, %v2878_v19  ;;  %v10293_v59 = vpop.permute.xlu0 %3133  ;;  %v10295_v19 = vpop.permute.xlu1 %3135  ;;  %v13091_v1 = vld [vmem:[#allocation62_spill] sm:$0xff] }
 0x2ac   :  { %13089 = vst [vmem:[#allocation119_spill] sm:$0xff] %v10270_v40  ;;  %3707 = vrot.lane.b32.xlu1 %v10270_v40, %s4920_s16  ;;  %v2843_v2 = vadd.f32 %v2835_v52, %v10021_v42  ;;  %v2861_v36 = vadd.f32 %v2853_v58, %v10024_v28  ;;  %v2879_v47 = vadd.f32 %v2871_v4, %v10027_v57  ;;  %v2904_v57 = vsel %vm72_vm5, 0.5, %v9934_v9 }
 0x2ad   :  { %v2913_v35 = vmul.f32 %v10073_v8, %v2903_v15  ;;  %v2931_v38 = vmul.f32 %v10084_v6, %v2903_v15  ;;  %v2949_v27 = vmul.f32 %v10087_v60, %v2903_v15  ;;  %v2836_v32 = vmul.f32 %v10046_v3, %v13091_v1 }
 0x2ae   :  { %v2854_v43 = vmul.f32 %v10049_v55, %v13091_v1  ;;  %v2872_v28 = vmul.f32 %v10060_v22, %v13091_v1  ;;  %3825 = vrot.lane.b32.xlu0 %v10064_v41, %s4921_s17  ;;  %v10313_v50 = vstv %s10234_s2  ;;  %v2914_v9 = vmul.f32 %v10073_v8, %v2904_v57  ;;  %s11237_s2 = sld [smem:[#allocation2 + $0x2c]] }
 0x2af   :  { %v10303_v42 = vadd.f32 %v2913_v35, %v2843_v2  ;;  %v10315_v3 = vadd.f32 %v2931_v38, %v2861_v36  ;;  %v10317_v52 = vadd.f32 %v2949_v27, %v2879_v47  ;;  %v2844_v55 = vadd.f32 %v2836_v32, %v10031_v62  ;;  %v10350_v35 = vpop.permute.xlu1 %3139 }
 0x2b0   :  { %v2862_v58 = vadd.f32 %v2854_v43, %v10034_v61  ;;  %3827 = vrot.lane.b32.xlu1 %v10068_v49, %s4921_s17  ;;  %v2880_v22 = vadd.f32 %v2872_v28, %v10042_v17  ;;  %v2932_v4 = vmul.f32 %v10084_v6, %v2904_v57  ;;  %v2950_v15 = vmul.f32 %v10087_v60, %v2904_v57  ;;  %v10348_v60 = vpop.permute.xlu0 %3137 }
 0x2b1   :  { %v10328_v2 = vstv %s10260_s27  ;;  %v10331_v36 = vstv %s10262_s28  ;;  %v3013_v62 = vsel %vm71_vm4, 0.5, %v10006_v33  ;;  %v3014_v61 = vsel %vm71_vm4, 0.5, %v10008_v46  ;;  %s11253_s27 = sld [smem:[#allocation2 + $0x47]]  ;;  %s11461_s28 = sld [smem:[#allocation2 + $0x2d]] }
 0x2b2   :  { %v10339_v47 = vadd.f32 %v2914_v9, %v2844_v55  ;;  %v10341_v17 = vadd.f32 %v2932_v4, %v2862_v58  ;;  %v10343_v8 = vadd.f32 %v2950_v15, %v2880_v22  ;;  %v3023_v6 = vmul.f32 %v10313_v50, %v3013_v62  ;;  %3829 = vrot.lane.b32.xlu0 %v10126_v13, %s4921_s17  ;;  %v13092_v22 = vld [vmem:[#allocation110_spill] sm:$0xff] }
 0x2b3   :  { %v3041_v33 = vmul.f32 %v10328_v2, %v3013_v62  ;;  %v3059_v38 = vmul.f32 %v10331_v36, %v3013_v62  ;;  %v3024_v46 = vmul.f32 %v10313_v50, %v3014_v61  ;;  %v3042_v27 = vmul.f32 %v10328_v2, %v3014_v61 }
 0x2b4   :  { %3831 = vrot.lane.b32.xlu1 %v10154_v11, %s4921_s17  ;;  %v10359_v1 = vadd.f32 %v3023_v6, %v10114_v25  ;;  %v3060_v32 = vmul.f32 %v10331_v36, %v3014_v61  ;;  %v3015_v43 = vsel %vm71_vm4, 0.5, %v10075_v24  ;;  %v3016_v28 = vsel %vm71_vm4, 0.5, %v10077_v39  ;;  %v13103_v11 = vld [vmem:[#allocation72_spill] sm:$0xff] }
 0x2b5   :  { %v10369_v57 = vadd.f32 %v3041_v33, %v10116_v56  ;;  %v10372_v55 = vadd.f32 %v3059_v38, %v10118_v34  ;;  %v10375_v58 = vadd.f32 %v3024_v46, %v10141_v31  ;;  %v10378_v25 = vadd.f32 %v3042_v27, %v10143_v16  ;;  %v13093_v16 = vld [vmem:[#allocation109_spill] sm:$0xff]  ;;  %v10412_v38 = vpop.permute.xlu0 %3141  ;;  %v10414_v46 = vpop.permute.xlu1 %3143 }
 0x2b6   :  { %v10381_v9 = vadd.f32 %v3060_v32, %v13092_v22  ;;  %v3025_v24 = vmul.f32 %v10313_v50, %v3015_v43  ;;  %v3043_v4 = vmul.f32 %v10328_v2, %v3015_v43  ;;  %v3061_v39 = vmul.f32 %v10331_v36, %v3015_v43  ;;  %3833 = vrot.lane.b32.xlu0 %v10194_v29, %s4921_s17 }
 0x2b7   :  { %v3026_v56 = vmul.f32 %v10313_v50, %v3016_v28  ;;  %v3044_v34 = vmul.f32 %v10328_v2, %v3016_v28  ;;  %v3062_v31 = vmul.f32 %v10331_v36, %v3016_v28  ;;  %v3017_v15 = vsel %vm71_vm4, 0.5, %v13093_v16  ;;  %v13094_v28 = vld [vmem:[#allocation108_spill] sm:$0xff] }
 0x2b8   :  { %3835 = vrot.lane.b32.xlu1 %v10213_v18, %s4921_s17  ;;  %v10401_v62 = vadd.f32 %v3025_v24, %v10176_v48  ;;  %v10404_v61 = vadd.f32 %v3043_v4, %v10178_v54  ;;  %v10407_v6 = vadd.f32 %v3061_v39, %v10180_v5  ;;  %v3027_v33 = vmul.f32 %v10313_v50, %v3017_v15  ;;  %v13102_v18 = vld [vmem:[#allocation115_spill] sm:$0xff] }
 0x2b9   :  { %v10417_v27 = vadd.f32 %v3026_v56, %v10199_v20  ;;  %v10420_v48 = vadd.f32 %v3044_v34, %v10201_v12  ;;  %v10423_v54 = vadd.f32 %v3062_v31, %v10209_v51  ;;  %v3045_v5 = vmul.f32 %v10328_v2, %v3017_v15 }
 0x2ba   :  { %v10429_v32 = vadd.f32 %v3027_v33, %v10240_v44  ;;  %v3063_v43 = vmul.f32 %v10331_v36, %v3017_v15  ;;  %v3018_v20 = vsel %vm71_vm4, 0.5, %v13094_v28  ;;  %3837 = vrot.lane.b32.xlu0 %v10258_v53, %s4921_s17  ;;  %v3019_v12 = vsel %vm71_vm4, 0.5, %v10183_v0  ;;  %v13095_v33 = vld [vmem:[#allocation100_spill] sm:$0xff]  ;;  %v13097_v28 = vld [vmem:[#allocation70_spill] sm:$0xff] }
 0x2bb   :  { %v10445_v51 = vadd.f32 %v3045_v5, %v10242_v45  ;;  %v3028_v44 = vmul.f32 %v10313_v50, %v3018_v20  ;;  %v3046_v22 = vmul.f32 %v10328_v2, %v3018_v20  ;;  %v3064_v24 = vmul.f32 %v10331_v36, %v3018_v20  ;;  %v13096_v5 = vld [vmem:[#allocation103_spill] sm:$0xff] }
 0x2bc   :  { %3839 = vrot.lane.b32.xlu1 %v10270_v40, %s4921_s17  ;;  %v10453_v4 = vadd.f32 %v3063_v43, %v10248_v26  ;;  %v3029_v0 = vmul.f32 %v10313_v50, %v3019_v12  ;;  %v3047_v39 = vmul.f32 %v10328_v2, %v3019_v12  ;;  %v3065_v45 = vmul.f32 %v10331_v36, %v3019_v12  ;;  %v13101_v40 = vld [vmem:[#allocation106_spill] sm:$0xff] }
 0x2bd   :  { %v10459_v56 = vadd.f32 %v3028_v44, %v10278_v10  ;;  %v10462_v34 = vadd.f32 %v3046_v22, %v10280_v14  ;;  %v10465_v31 = vadd.f32 %v3064_v24, %v10282_v7  ;;  %v3020_v26 = vsel %vm71_vm4, 0.5, %v10185_v21  ;;  %v10482_v7 = vpop.permute.xlu0 %3207  ;;  %v10484_v21 = vpop.permute.xlu1 %3209 }
 0x2be   :  { %v10471_v16 = vadd.f32 %v3029_v0, %v10303_v42  ;;  %v10474_v15 = vadd.f32 %v3047_v39, %v10315_v3  ;;  %v10477_v10 = vadd.f32 %v3065_v45, %v10317_v52  ;;  %v3030_v14 = vmul.f32 %v10313_v50, %v3020_v26  ;;  %3903 = vrot.lane.b32.xlu0 %v13095_v33, %s4920_s16 }
 0x2bf   :  { %v3048_v42 = vmul.f32 %v10328_v2, %v3020_v26  ;;  %v3066_v3 = vmul.f32 %v10331_v36, %v3020_v26  ;;  %v10491_v52 = vstv %s10396_s29  ;;  %v10494_v50 = vstv %s10398_s30  ;;  %v13098_v26 = vld [vmem:[#allocation113_spill] sm:$0xff]  ;;  %s11463_s29 = sld [smem:[#allocation2 + $0x48]]  ;;  %s11573_s30 = sld [smem:[#allocation2 + $0x13]] }
 0x2c0   :  { %3905 = vrot.lane.b32.xlu1 %v13096_v5, %s4920_s16  ;;  %v10497_v43 = vadd.f32 %v3030_v14, %v10339_v47  ;;  %v3077_v20 = vmul.f32 %v10491_v52, %v13097_v28  ;;  %v3095_v12 = vmul.f32 %v10494_v50, %v13097_v28  ;;  %v10504_v44 = vstv %s10410_s6  ;;  %s11575_s6 = sld [smem:[#allocation2 + $0x2e]] }
 0x2c1   :  { %v10507_v2 = vadd.f32 %v3048_v42, %v10341_v17  ;;  %v10510_v36 = vadd.f32 %v3066_v3, %v10343_v8  ;;  %v3113_v22 = vmul.f32 %v10504_v44, %v13097_v28  ;;  %v10515_v24 = vstv %s10426_s7  ;;  %v13099_v8 = vld [vmem:[#allocation114_spill] sm:$0xff]  ;;  %v13100_v42 = vld [vmem:[#allocation71_spill] sm:$0xff]  ;;  %s11587_s7 = sld [smem:[#allocation2 + $0x49]] }
 0x2c2   :  { %v10518_v47 = vstv %s10440_s8  ;;  %v10521_v0 = vstv %s10442_s9  ;;  %v3085_v39 = vadd.f32 %v3077_v20, %v10359_v1  ;;  %v3103_v45 = vadd.f32 %v3095_v12, %v10369_v57  ;;  %3907 = vrot.lane.b32.xlu0 %v13098_v26, %s4920_s16  ;;  %v10542_v12 = vpop.permute.xlu0 %3211  ;;  %s11599_s8 = sld [smem:[#allocation2 + $0x14]]  ;;  %s11614_s9 = sld [smem:[#allocation2 + $0x2f]] }
 0x2c3   :  { %v3121_v17 = vadd.f32 %v3113_v22, %v10372_v55  ;;  %v3145_v14 = vsel %vm72_vm5, 0.5, %v13099_v8  ;;  %v3078_v3 = vmul.f32 %v10491_v52, %v13100_v42  ;;  %v3096_v28 = vmul.f32 %v10494_v50, %v13100_v42  ;;  %v10544_v22 = vpop.permute.xlu1 %3213 }
 0x2c4   :  { %3909 = vrot.lane.b32.xlu1 %v13101_v40, %s4920_s16  ;;  %v3155_v1 = vmul.f32 %v10515_v24, %v3145_v14  ;;  %v3173_v57 = vmul.f32 %v10518_v47, %v3145_v14  ;;  %v3191_v20 = vmul.f32 %v10521_v0, %v3145_v14  ;;  %v3114_v55 = vmul.f32 %v10504_v44, %v13100_v42 }
 0x2c5   :  { %v3086_v8 = vadd.f32 %v3078_v3, %v10375_v58  ;;  %v3104_v53 = vadd.f32 %v3096_v28, %v10378_v25  ;;  %v3146_v29 = vsel %vm72_vm5, 0.5, %v13102_v18  ;;  %v3079_v13 = vmul.f32 %v10491_v52, %v13103_v11  ;;  %v13107_v28 = vld [vmem:[#allocation73_spill] sm:$0xff] }
 0x2c6   :  { %v10553_v49 = vadd.f32 %v3155_v1, %v3085_v39  ;;  %v10555_v14 = vadd.f32 %v3173_v57, %v3103_v45  ;;  %v10557_v42 = vadd.f32 %v3191_v20, %v3121_v17  ;;  %v3122_v41 = vadd.f32 %v3114_v55, %v10381_v9  ;;  %3911 = vrot.lane.b32.xlu0 %v13105_v23, %s4920_s16  ;;  %v13106_v39 = vld [vmem:[#allocation118_spill] sm:$0xff] }
 0x2c7   :  { %v3156_v58 = vmul.f32 %v10515_v24, %v3146_v29  ;;  %v3174_v25 = vmul.f32 %v10518_v47, %v3146_v29  ;;  %v3192_v18 = vmul.f32 %v10521_v0, %v3146_v29  ;;  %v3097_v3 = vmul.f32 %v10494_v50, %v13103_v11 }
 0x2c8   :  { %13104 = vst [vmem:[#allocation120_spill] sm:$0xff] %v10557_v42  ;;  %3913 = vrot.lane.b32.xlu1 %v13106_v39, %s4920_s16  ;;  %v3115_v45 = vmul.f32 %v10504_v44, %v13103_v11  ;;  %v3087_v9 = vadd.f32 %v3079_v13, %v10401_v62  ;;  %v3147_v17 = vsel %vm72_vm5, 0.5, %v10293_v59  ;;  %v3080_v1 = vmul.f32 %v10491_v52, %v13107_v28  ;;  %v10590_v59 = vpop.permute.xlu0 %3215 }
 0x2c9   :  { %v10577_v57 = vadd.f32 %v3156_v58, %v3086_v8  ;;  %v10579_v29 = vadd.f32 %v3174_v25, %v3104_v53  ;;  %v10581_v20 = vadd.f32 %v3192_v18, %v3122_v41  ;;  %v3105_v55 = vadd.f32 %v3097_v3, %v10404_v61  ;;  %v10592_v8 = vpop.permute.xlu1 %3217 }
 0x2ca   :  { %v3123_v42 = vadd.f32 %v3115_v45, %v10407_v6  ;;  %v3157_v11 = vmul.f32 %v10515_v24, %v3147_v17  ;;  %v3175_v13 = vmul.f32 %v10518_v47, %v3147_v17  ;;  %v3193_v62 = vmul.f32 %v10521_v0, %v3147_v17  ;;  %3915 = vrot.lane.b32.xlu0 %v10219_v30, %s4920_s16 }
 0x2cb   :  { %v3098_v41 = vmul.f32 %v10494_v50, %v13107_v28  ;;  %v3116_v53 = vmul.f32 %v10504_v44, %v13107_v28  ;;  %v3088_v61 = vadd.f32 %v3080_v1, %v10417_v27  ;;  %v3148_v6 = vsel %vm72_vm5, 0.5, %v10295_v19  ;;  %v13108_v1 = vld [vmem:[#allocation74_spill] sm:$0xff] }
 0x2cc   :  { %3917 = vrot.lane.b32.xlu1 %v10004_v37, %s4920_s16  ;;  %v10604_v58 = vadd.f32 %v3157_v11, %v3087_v9  ;;  %v10606_v25 = vadd.f32 %v3175_v13, %v3105_v55  ;;  %v10608_v18 = vadd.f32 %v3193_v62, %v3123_v42  ;;  %v3158_v3 = vmul.f32 %v10515_v24, %v3148_v6  ;;  %v13109_v13 = vld [vmem:[#allocation77_spill] sm:$0xff] }
 0x2cd   :  { %v3106_v45 = vadd.f32 %v3098_v41, %v10420_v48  ;;  %v3124_v17 = vadd.f32 %v3116_v53, %v10423_v54  ;;  %v3176_v27 = vmul.f32 %v10518_v47, %v3148_v6  ;;  %v3194_v28 = vmul.f32 %v10521_v0, %v3148_v6 }
 0x2ce   :  { %v10615_v19 = vadd.f32 %v3158_v3, %v3088_v61  ;;  %v3081_v9 = vmul.f32 %v10491_v52, %v13108_v1  ;;  %v3099_v55 = vmul.f32 %v10494_v50, %v13108_v1  ;;  %v3117_v42 = vmul.f32 %v10504_v44, %v13108_v1  ;;  %4035 = vrot.lane.b32.xlu0 %v13095_v33, %s4921_s17  ;;  %v10640_v3 = vpop.permute.xlu0 %3219  ;;  %v13110_v1 = vld [vmem:[#allocation80_spill] sm:$0xff] }
 0x2cf   :  { %v10625_v48 = vadd.f32 %v3176_v27, %v3106_v45  ;;  %v10627_v54 = vadd.f32 %v3194_v28, %v3124_v17  ;;  %v3149_v11 = vsel %vm72_vm5, 0.5, %v10348_v60  ;;  %v3082_v62 = vmul.f32 %v10491_v52, %v13109_v13  ;;  %v10642_v45 = vpop.permute.xlu1 %3221 }
 0x2d0   :  { %4037 = vrot.lane.b32.xlu1 %v13096_v5, %s4921_s17  ;;  %v3089_v41 = vadd.f32 %v3081_v9, %v10429_v32  ;;  %v3107_v53 = vadd.f32 %v3099_v55, %v10445_v51  ;;  %v3125_v61 = vadd.f32 %v3117_v42, %v10453_v4  ;;  %v3159_v6 = vmul.f32 %v10515_v24, %v3149_v11 }
 0x2d1   :  { %v3177_v60 = vmul.f32 %v10518_v47, %v3149_v11  ;;  %v3195_v17 = vmul.f32 %v10521_v0, %v3149_v11  ;;  %v3100_v27 = vmul.f32 %v10494_v50, %v13109_v13  ;;  %v3118_v32 = vmul.f32 %v10504_v44, %v13109_v13 }
 0x2d2   :  { %v10650_v28 = vadd.f32 %v3159_v6, %v3089_v41  ;;  %v3090_v51 = vadd.f32 %v3082_v62, %v10459_v56  ;;  %v3150_v4 = vsel %vm72_vm5, 0.5, %v10350_v35  ;;  %v3083_v9 = vmul.f32 %v10491_v52, %v13110_v1  ;;  %4039 = vrot.lane.b32.xlu0 %v13098_v26, %s4921_s17 }
 0x2d3   :  { %v10662_v55 = vadd.f32 %v3177_v60, %v3107_v53  ;;  %v10664_v42 = vadd.f32 %v3195_v17, %v3125_v61  ;;  %v3108_v11 = vadd.f32 %v3100_v27, %v10462_v34  ;;  %v3126_v56 = vadd.f32 %v3118_v32, %v10465_v31  ;;  %v13111_v61 = vld [vmem:[#allocation81_spill] sm:$0xff] }
 0x2d4   :  { %4041 = vrot.lane.b32.xlu1 %v13101_v40, %s4921_s17  ;;  %v3160_v35 = vmul.f32 %v10515_v24, %v3150_v4  ;;  %v3178_v13 = vmul.f32 %v10518_v47, %v3150_v4  ;;  %v3196_v62 = vmul.f32 %v10521_v0, %v3150_v4  ;;  %v3101_v41 = vmul.f32 %v10494_v50, %v13110_v1  ;;  %v10696_v4 = vpop.permute.xlu0 %3339 }
 0x2d5   :  { %v3119_v34 = vmul.f32 %v10504_v44, %v13110_v1  ;;  %v3091_v31 = vadd.f32 %v3083_v9, %v10471_v16  ;;  %v3151_v53 = vsel %vm72_vm5, 0.5, %v10412_v38  ;;  %v3084_v6 = vmul.f32 %v10491_v52, %v13111_v61  ;;  %v10698_v16 = vpop.permute.xlu1 %3341 }
 0x2d6   :  { %v10687_v60 = vadd.f32 %v3160_v35, %v3090_v51  ;;  %v10689_v17 = vadd.f32 %v3178_v13, %v3108_v11  ;;  %v10691_v27 = vadd.f32 %v3196_v62, %v3126_v56  ;;  %v3109_v32 = vadd.f32 %v3101_v41, %v10474_v15  ;;  %4043 = vrot.lane.b32.xlu0 %v13105_v23, %s4921_s17 }
 0x2d7   :  { %v3127_v38 = vadd.f32 %v3119_v34, %v10477_v10  ;;  %v3161_v1 = vmul.f32 %v10515_v24, %v3151_v53  ;;  %v3179_v52 = vmul.f32 %v10518_v47, %v3151_v53  ;;  %v3197_v51 = vmul.f32 %v10521_v0, %v3151_v53 }
 0x2d8   :  { %4045 = vrot.lane.b32.xlu1 %v13106_v39, %s4921_s17  ;;  %v3102_v15 = vmul.f32 %v10494_v50, %v13111_v61  ;;  %v3120_v9 = vmul.f32 %v10504_v44, %v13111_v61  ;;  %v3092_v10 = vadd.f32 %v3084_v6, %v10497_v43  ;;  %v3152_v11 = vsel %vm72_vm5, 0.5, %v10414_v46 }
 0x2d9   :  { %v10714_v56 = vadd.f32 %v3161_v1, %v3091_v31  ;;  %v10716_v35 = vadd.f32 %v3179_v52, %v3109_v32  ;;  %v10718_v13 = vadd.f32 %v3197_v51, %v3127_v38  ;;  %v3162_v62 = vmul.f32 %v10515_v24, %v3152_v11  ;;  %v10752_v61 = vpop.permute.xlu1 %3345 }
 0x2da   :  { %v3110_v50 = vadd.f32 %v3102_v15, %v10507_v2  ;;  %v3128_v41 = vadd.f32 %v3120_v9, %v10510_v36  ;;  %v3180_v44 = vmul.f32 %v10518_v47, %v3152_v11  ;;  %v3198_v43 = vmul.f32 %v10521_v0, %v3152_v11  ;;  %4047 = vrot.lane.b32.xlu0 %v10219_v30, %s4921_s17  ;;  %v10750_v0 = vpop.permute.xlu0 %3343  ;;  %v13112_v9 = vld [vmem:[#allocation120_spill] sm:$0xff] }
 0x2db   :  { %v10727_v46 = vadd.f32 %v3162_v62, %v3092_v10  ;;  %v10730_v34 = vstv %s10658_s10  ;;  %v10733_v31 = vstv %s10668_s13  ;;  %v10736_v53 = vstv %s10670_s14  ;;  %s11616_s10 = sld [smem:[#allocation2 + $0x4a]]  ;;  %s11807_s13 = sld [smem:[#allocation2 + $0x15]] }
 0x2dc   :  { %4049 = vrot.lane.b32.xlu1 %v10004_v37, %s4921_s17  ;;  %v10740_v2 = vadd.f32 %v3180_v44, %v3110_v50  ;;  %v10742_v36 = vadd.f32 %v3198_v43, %v3128_v41  ;;  %v3223_v24 = vsel %vm71_vm4, 0.5, %v10482_v7  ;;  %v3224_v47 = vsel %vm71_vm4, 0.5, %v10484_v21  ;;  %s11814_s14 = sld [smem:[#allocation2 + $0x30]] }
 0x2dd   :  { %v3233_v6 = vmul.f32 %v10730_v34, %v3223_v24  ;;  %v3251_v37 = vmul.f32 %v10733_v31, %v3223_v24  ;;  %v3269_v32 = vmul.f32 %v10736_v53, %v3223_v24  ;;  %v3234_v38 = vmul.f32 %v10730_v34, %v3224_v47 }
 0x2de   :  { %v3252_v1 = vmul.f32 %v10733_v31, %v3224_v47  ;;  %v3270_v7 = vmul.f32 %v10736_v53, %v3224_v47  ;;  %v3225_v21 = vsel %vm71_vm4, 0.5, %v10542_v12  ;;  %v3226_v52 = vsel %vm71_vm4, 0.5, %v10544_v22  ;;  %v10802_v24 = vpop.permute.xlu0 %3347  ;;  %v10804_v47 = vpop.permute.xlu1 %3349 }
 0x2df   :  { %v10767_v51 = vadd.f32 %v3233_v6, %v10553_v49  ;;  %v10770_v15 = vadd.f32 %v3251_v37, %v10555_v14  ;;  %v10773_v10 = vadd.f32 %v3269_v32, %v13112_v9  ;;  %v10776_v11 = vadd.f32 %v3234_v38, %v10577_v57 }
 0x2e0   :  { %v10779_v62 = vadd.f32 %v3252_v1, %v10579_v29  ;;  %v10782_v12 = vadd.f32 %v3270_v7, %v10581_v20  ;;  %v3235_v22 = vmul.f32 %v10730_v34, %v3225_v21  ;;  %v3253_v49 = vmul.f32 %v10733_v31, %v3225_v21 }
 0x2e1   :  { %v3271_v50 = vmul.f32 %v10736_v53, %v3225_v21  ;;  %v3236_v14 = vmul.f32 %v10730_v34, %v3226_v52  ;;  %v3254_v41 = vmul.f32 %v10733_v31, %v3226_v52  ;;  %v3272_v44 = vmul.f32 %v10736_v53, %v3226_v52 }
 0x2e2   :  { %v10791_v57 = vadd.f32 %v3235_v22, %v10604_v58  ;;  %v10794_v29 = vadd.f32 %v3253_v49, %v10606_v25  ;;  %v3227_v20 = vsel %vm71_vm4, 0.5, %v10590_v59  ;;  %v3228_v43 = vsel %vm71_vm4, 0.5, %v10592_v8  ;;  %v10866_v49 = vpop.permute.xlu0 %3351 }
 0x2e3   :  { %v10807_v6 = vadd.f32 %v3271_v50, %v10608_v18  ;;  %v10810_v58 = vadd.f32 %v3236_v14, %v10615_v19  ;;  %v10813_v25 = vadd.f32 %v3254_v41, %v10625_v48  ;;  %v10816_v37 = vadd.f32 %v3272_v44, %v10627_v54 }
 0x2e4   :  { %v3237_v59 = vmul.f32 %v10730_v34, %v3227_v20  ;;  %v3255_v8 = vmul.f32 %v10733_v31, %v3227_v20  ;;  %v3273_v18 = vmul.f32 %v10736_v53, %v3227_v20  ;;  %v3238_v32 = vmul.f32 %v10730_v34, %v3228_v43 }
 0x2e5   :  { %v3256_v19 = vmul.f32 %v10733_v31, %v3228_v43  ;;  %v3274_v48 = vmul.f32 %v10736_v53, %v3228_v43  ;;  %v3229_v54 = vsel %vm71_vm4, 0.5, %v10640_v3  ;;  %v3230_v38 = vsel %vm71_vm4, 0.5, %v10642_v45 }
 0x2e6   :  { %v10843_v1 = vadd.f32 %v3237_v59, %v10650_v28  ;;  %v10846_v7 = vadd.f32 %v3255_v8, %v10662_v55  ;;  %v10849_v21 = vadd.f32 %v3273_v18, %v10664_v42  ;;  %v10852_v52 = vadd.f32 %v3238_v32, %v10687_v60 }
 0x2e7   :  { %v10855_v3 = vadd.f32 %v3256_v19, %v10689_v17  ;;  %v10858_v45 = vadd.f32 %v3274_v48, %v10691_v27  ;;  %v3239_v9 = vmul.f32 %v10730_v34, %v3229_v54  ;;  %v3257_v28 = vmul.f32 %v10733_v31, %v3229_v54  ;;  %v10868_v17 = vpop.permute.xlu1 %3353 }
 0x2e8   :  { %v3275_v22 = vmul.f32 %v10736_v53, %v3229_v54  ;;  %v3240_v55 = vmul.f32 %v10730_v34, %v3230_v38  ;;  %v3258_v42 = vmul.f32 %v10733_v31, %v3230_v38  ;;  %v3276_v60 = vmul.f32 %v10736_v53, %v3230_v38  ;;  %v4823_v38 = vld [vmem:[#allocation8 + $0xc8] sm:$0xff] }
 0x2e9   :  { %v10871_v27 = vadd.f32 %v3239_v9, %v10714_v56  ;;  %v10874_v50 = vadd.f32 %v3257_v28, %v10716_v35  ;;  %v12685_v14 = vrot.slane %v13095_v33, 1  ;;  %v4114_v34 = vrot.slane %v13096_v5, 1  ;;  %v10932_v28 = vpop.permute.xlu0 %3445 }
 0x2ea   :  { %v10879_v31 = vadd.f32 %v3275_v22, %v10718_v13  ;;  %v10882_v53 = vadd.f32 %v3240_v55, %v10727_v46  ;;  %v10885_v56 = vadd.f32 %v3258_v42, %v10740_v2  ;;  %v10888_v41 = vadd.f32 %v3276_v60, %v10742_v36  ;;  %v4822_v46 = vld [vmem:[#allocation8 + $0xc0] sm:$0xff] }
 0x2eb   :  { %v10894_v44 = vsel %vm532_vm2, %v12685_v14, %v4114_v34  ;;  %v4115_v5 = vrot.slane %v13098_v26, 1  ;;  %v10898_v13 = vstv %s10818_s3  ;;  %v10901_v20 = vstv %s10820_s15  ;;  %v10934_v22 = vpop.permute.xlu1 %3447  ;;  %s11816_s3 = sld [smem:[#allocation2 + $0x4b]]  ;;  %s11916_s15 = sld [smem:[#allocation2 + $0x16]] }
 0x2ec   :  { %4141 = vrot.lane.b32.xlu0 %v10894_v44, %s4920_s16  ;;  %v3287_v2 = vmul.f32 %v4822_v46, %v10898_v13  ;;  %v3305_v36 = vmul.f32 %v4822_v46, %v10901_v20  ;;  %v10908_v43 = vstv %s10826_s18  ;;  %v10911_v59 = vstv %s10828_s19  ;;  %s11918_s18 = sld [smem:[#allocation2 + $0x31]]  ;;  %s11940_s19 = sld [smem:[#allocation2 + $0x4c]] }
 0x2ed   :  { %v10915_v8 = vsel %vm532_vm2, %v4114_v34, %v4115_v5  ;;  %v3323_v26 = vmul.f32 %v4822_v46, %v10908_v43  ;;  %v10919_v18 = vstv %s10838_s20  ;;  %v10922_v32 = vstv %s10840_s21  ;;  %s11942_s20 = sld [smem:[#allocation2 + $0x17]]  ;;  %s11948_s21 = sld [smem:[#allocation2 + $0x32]] }
 0x2ee   :  { %4143 = vrot.lane.b32.xlu1 %v10915_v8, %s4920_s16  ;;  %v3295_v19 = vadd.f32 %v3287_v2, %v10767_v51  ;;  %v3313_v48 = vadd.f32 %v3305_v36, %v10770_v15  ;;  %v3355_v54 = vsel %vm72_vm5, 0.5, %v10696_v4  ;;  %v3288_v9 = vmul.f32 %v4823_v38, %v10898_v13 }
 0x2ef   :  { %v3331_v55 = vadd.f32 %v3323_v26, %v10773_v10  ;;  %v3365_v42 = vmul.f32 %v10911_v59, %v3355_v54  ;;  %v3383_v60 = vmul.f32 %v10919_v18, %v3355_v54  ;;  %v3401_v51 = vmul.f32 %v10922_v32, %v3355_v54 }
 0x2f0   :  { %v3306_v15 = vmul.f32 %v4823_v38, %v10901_v20  ;;  %v3324_v34 = vmul.f32 %v4823_v38, %v10908_v43  ;;  %v3296_v4 = vadd.f32 %v3288_v9, %v10776_v11  ;;  %v3356_v46 = vsel %vm72_vm5, 0.5, %v10698_v16 }
 0x2f1   :  { %v10946_v2 = vadd.f32 %v3365_v42, %v3295_v19  ;;  %v10948_v36 = vadd.f32 %v3383_v60, %v3313_v48  ;;  %v10950_v10 = vadd.f32 %v3401_v51, %v3331_v55  ;;  %v3366_v26 = vmul.f32 %v10911_v59, %v3356_v46  ;;  %v4824_v48 = vld [vmem:[#allocation8 + $0xd0] sm:$0xff]  ;;  %v10968_v51 = vpop.permute.xlu0 %3449 }
 0x2f2   :  { %v3314_v54 = vadd.f32 %v3306_v15, %v10779_v62  ;;  %v3332_v14 = vadd.f32 %v3324_v34, %v10782_v12  ;;  %v3384_v38 = vmul.f32 %v10919_v18, %v3356_v46  ;;  %v3402_v11 = vmul.f32 %v10922_v32, %v3356_v46  ;;  %v10970_v15 = vpop.permute.xlu1 %3451 }
 0x2f3   :  { %v10957_v9 = vadd.f32 %v3366_v26, %v3296_v4  ;;  %v4116_v16 = vrot.slane %v13101_v40, 1  ;;  %v4117_v19 = vrot.slane %v13105_v23, 1  ;;  %v3289_v55 = vmul.f32 %v4824_v48, %v10898_v13  ;;  %13114 = vst [vmem:[#allocation122_spill] sm:$0xff] %v10970_v15 }
 0x2f4   :  { %v10962_v42 = vadd.f32 %v3384_v38, %v3314_v54  ;;  %v10964_v60 = vadd.f32 %v3402_v11, %v3332_v14  ;;  %v3307_v62 = vmul.f32 %v4824_v48, %v10901_v20  ;;  %v3325_v12 = vmul.f32 %v4824_v48, %v10908_v43  ;;  %v4825_v54 = vld [vmem:[#allocation8 + $0xd8] sm:$0xff] }
 0x2f5   :  { %v10974_v40 = vsel %vm532_vm2, %v4115_v5, %v4116_v16  ;;  %v10978_v23 = vsel %vm532_vm2, %v4116_v16, %v4117_v19  ;;  %v3297_v34 = vadd.f32 %v3289_v55, %v10791_v57  ;;  %v3357_v14 = vsel %vm72_vm5, 0.5, %v10750_v0 }
 0x2f6   :  { %4145 = vrot.lane.b32.xlu0 %v10974_v40, %s4920_s16  ;;  %4147 = vrot.lane.b32.xlu1 %v10978_v23, %s4920_s16  ;;  %v3315_v4 = vadd.f32 %v3307_v62, %v10794_v29  ;;  %v3333_v5 = vadd.f32 %v3325_v12, %v10807_v6  ;;  %v3367_v46 = vmul.f32 %v10911_v59, %v3357_v14  ;;  %v3358_v57 = vsel %vm72_vm5, 0.5, %v10752_v61 }
 0x2f7   :  { %v3385_v26 = vmul.f32 %v10919_v18, %v3357_v14  ;;  %v3403_v0 = vmul.f32 %v10922_v32, %v3357_v14  ;;  %v3290_v38 = vmul.f32 %v4825_v54, %v10898_v13  ;;  %v3308_v11 = vmul.f32 %v4825_v54, %v10901_v20 }
 0x2f8   :  { %v10998_v16 = vadd.f32 %v3367_v46, %v3297_v34  ;;  %v3326_v29 = vmul.f32 %v4825_v54, %v10908_v43  ;;  %v3368_v6 = vmul.f32 %v10911_v59, %v3358_v57  ;;  %v3386_v48 = vmul.f32 %v10919_v18, %v3358_v57  ;;  %v11013_v54 = vpop.permute.xlu0 %3453 }
 0x2f9   :  { %v11003_v55 = vadd.f32 %v3385_v26, %v3315_v4  ;;  %v11005_v61 = vadd.f32 %v3403_v0, %v3333_v5  ;;  %v3298_v62 = vadd.f32 %v3290_v38, %v10810_v58  ;;  %v3316_v12 = vadd.f32 %v3308_v11, %v10813_v25  ;;  %v4826_v26 = vld [vmem:[#allocation8 + $0xe0] sm:$0xff]  ;;  %v4827_v38 = vld [vmem:[#allocation8 + $0xe8] sm:$0xff] }
 0x2fa   :  { %13115 = vst [vmem:[#allocation123_spill] sm:$0xff] %v10998_v16  ;;  %v3334_v14 = vadd.f32 %v3326_v29, %v10816_v37  ;;  %v3404_v15 = vmul.f32 %v10922_v32, %v3358_v57  ;;  %v4118_v34 = vrot.slane %v13106_v39, 1  ;;  %v4119_v46 = vrot.slane %v10219_v30, 1  ;;  %v11015_v16 = vpop.permute.xlu1 %3455 }
 0x2fb   :  { %v11017_v4 = vadd.f32 %v3368_v6, %v3298_v62  ;;  %v11019_v5 = vadd.f32 %v3386_v48, %v3316_v12  ;;  %v3291_v58 = vmul.f32 %v4826_v26, %v10898_v13  ;;  %v3309_v25 = vmul.f32 %v4826_v26, %v10901_v20 }
 0x2fc   :  { %v11023_v37 = vadd.f32 %v3404_v15, %v3334_v14  ;;  %v11027_v39 = vsel %vm532_vm2, %v4117_v19, %v4118_v34  ;;  %v11031_v30 = vsel %vm532_vm2, %v4118_v34, %v4119_v46  ;;  %v3327_v57 = vmul.f32 %v4826_v26, %v10908_v43 }
 0x2fd   :  { %4149 = vrot.lane.b32.xlu0 %v11027_v39, %s4920_s16  ;;  %4151 = vrot.lane.b32.xlu1 %v11031_v30, %s4920_s16  ;;  %v3299_v0 = vadd.f32 %v3291_v58, %v10843_v1  ;;  %v3317_v15 = vadd.f32 %v3309_v25, %v10846_v7  ;;  %v3359_v19 = vsel %vm72_vm5, 0.5, %v10802_v24  ;;  %v3292_v11 = vmul.f32 %v4827_v38, %v10898_v13  ;;  %v11063_v58 = vpop.permute.xlu0 %3457 }
 0x2fe   :  { %v3335_v29 = vadd.f32 %v3327_v57, %v10849_v21  ;;  %v3369_v6 = vmul.f32 %v10911_v59, %v3359_v19  ;;  %v3387_v48 = vmul.f32 %v10919_v18, %v3359_v19  ;;  %v3405_v62 = vmul.f32 %v10922_v32, %v3359_v19  ;;  %v11065_v25 = vpop.permute.xlu1 %3459 }
 0x2ff   :  { %v3310_v12 = vmul.f32 %v4827_v38, %v10901_v20  ;;  %v3328_v1 = vmul.f32 %v4827_v38, %v10908_v43  ;;  %v3300_v7 = vadd.f32 %v3292_v11, %v10852_v52  ;;  %v3360_v24 = vsel %vm72_vm5, 0.5, %v10804_v47  ;;  %v4666_v11 = vld [vmem:[%s12486_s4 + $0x6] ss:$0 sm:$0xff]  ;;  %s11193_s4 = sld [smem:[#allocation2 + $0x10]] }
 0x300   :  { %v11056_v14 = vadd.f32 %v3369_v6, %v3299_v0  ;;  %v11058_v21 = vadd.f32 %v3387_v48, %v3317_v15  ;;  %v11060_v34 = vadd.f32 %v3405_v62, %v3335_v29  ;;  %v3370_v26 = vmul.f32 %v10911_v59, %v3360_v24  ;;  %v4828_v15 = vld [vmem:[#allocation8 + $0x178] sm:$0xff]  ;;  %v4829_v29 = vld [vmem:[#allocation8 + $0xf0] sm:$0xff] }
 0x301   :  { %v3318_v52 = vadd.f32 %v3310_v12, %v10855_v3  ;;  %v3336_v57 = vadd.f32 %v3328_v1, %v10858_v45  ;;  %v3388_v47 = vmul.f32 %v10919_v18, %v3360_v24  ;;  %v3406_v19 = vmul.f32 %v10922_v32, %v3360_v24 }
 0x302   :  { %v11073_v0 = vadd.f32 %v3370_v26, %v3300_v7  ;;  %v4120_v38 = vrot.slane %v4828_v15, 1  ;;  %v3293_v6 = vmul.f32 %v4829_v29, %v10898_v13  ;;  %v3311_v3 = vmul.f32 %v4829_v29, %v10901_v20 }
 0x303   :  { %v11082_v45 = vadd.f32 %v3388_v47, %v3318_v52  ;;  %v11084_v48 = vadd.f32 %v3406_v19, %v3336_v57  ;;  %v3329_v62 = vmul.f32 %v4829_v29, %v10908_v43  ;;  %v3361_v12 = vsel %vm72_vm5, 0.5, %v10866_v49 }
 0x304   :  { %v11092_v1 = vsel %vm532_vm2, %v4119_v46, %v4120_v38  ;;  %v13116_v7 = vrot.slane %v13095_v33, 1  ;;  %v3301_v26 = vadd.f32 %v3293_v6, %v10871_v27  ;;  %v3319_v52 = vadd.f32 %v3311_v3, %v10874_v50  ;;  %v4830_v50 = vld [vmem:[#allocation8 + $0xf8] sm:$0xff] }
 0x305   :  { %4153 = vrot.lane.b32.xlu0 %v11092_v1, %s4920_s16  ;;  %v3337_v46 = vadd.f32 %v3329_v62, %v10879_v31  ;;  %v3371_v47 = vmul.f32 %v10911_v59, %v3361_v12  ;;  %v3389_v33 = vmul.f32 %v10919_v18, %v3361_v12  ;;  %v3407_v27 = vmul.f32 %v10922_v32, %v3361_v12  ;;  %v11117_v31 = vpop.permute.xlu1 %3579 }
 0x306   :  { %v4128_v24 = vsel %vm532_vm2, %v4120_v38, %v13116_v7  ;;  %v3294_v35 = vmul.f32 %v4830_v50, %v10898_v13  ;;  %v3312_v19 = vmul.f32 %v4830_v50, %v10901_v20  ;;  %v3330_v15 = vmul.f32 %v4830_v50, %v10908_v43  ;;  %v11115_v38 = vpop.permute.xlu0 %3577 }
 0x307   :  { %v11104_v49 = vsel %vm88_vm3, %v4666_v11, %v4128_v24  ;;  %v11119_v11 = vadd.f32 %v3371_v47, %v3301_v26  ;;  %v11121_v29 = vadd.f32 %v3389_v33, %v3319_v52  ;;  %v3362_v6 = vsel %vm72_vm5, 0.5, %v10868_v17 }
 0x308   :  { %4155 = vrot.lane.b32.xlu1 %v11104_v49, %s4920_s16  ;;  %v11127_v3 = vstv %s11054_s22  ;;  %v11129_v13 = vadd.f32 %v3407_v27, %v3337_v46  ;;  %v3302_v20 = vadd.f32 %v3294_v35, %v10882_v53  ;;  %v3320_v43 = vadd.f32 %v3312_v19, %v10885_v56  ;;  %s11195_s16 = sld [smem:[#allocation2 + $0x2b]]  ;;  %s11950_s22 = sld [smem:[#allocation2 + $0x4d]] }
 0x309   :  { %v3338_v62 = vadd.f32 %v3330_v15, %v10888_v41  ;;  %v3372_v12 = vmul.f32 %v10911_v59, %v3362_v6  ;;  %v3390_v7 = vmul.f32 %v10919_v18, %v3362_v6  ;;  %v3408_v24 = vmul.f32 %v10922_v32, %v3362_v6  ;;  %4273 = vrot.lane.b32.xlu0 %v10894_v44, %s4921_s17  ;;  %v11169_v33 = vpop.permute.xlu1 %3583 }
 0x30a   :  { %v11140_v17 = vstv %s11071_s23  ;;  %v11145_v26 = vstv %s11080_s26  ;;  %v3461_v53 = vsel %vm71_vm4, 0.5, %v10932_v28  ;;  %v3462_v56 = vsel %vm71_vm4, 0.5, %v10934_v22  ;;  %v11167_v47 = vpop.permute.xlu0 %3581  ;;  %s12107_s23 = sld [smem:[#allocation2 + $0x18]]  ;;  %s12212_s26 = sld [smem:[#allocation2 + $0x19]] }
 0x30b   :  { %v3463_v41 = vsel %vm71_vm4, 0.5, %v10968_v51  ;;  %v11156_v59 = vadd.f32 %v3372_v12, %v3302_v20  ;;  %v11158_v18 = vadd.f32 %v3390_v7, %v3320_v43  ;;  %v11160_v32 = vadd.f32 %v3408_v24, %v3338_v62 }
 0x30c   :  { %4275 = vrot.lane.b32.xlu1 %v10915_v8, %s4921_s17  ;;  %v3471_v52 = vmul.f32 %v11127_v3, %v3461_v53  ;;  %v3489_v57 = vmul.f32 %v11140_v17, %v3461_v53  ;;  %v3507_v28 = vmul.f32 %v11145_v26, %v3461_v53  ;;  %v3472_v46 = vmul.f32 %v11127_v3, %v3462_v56 }
 0x30d   :  { %v3490_v22 = vmul.f32 %v11140_v17, %v3462_v56  ;;  %v3508_v27 = vmul.f32 %v11145_v26, %v3462_v56  ;;  %4277 = vrot.lane.b32.xlu0 %v10974_v40, %s4921_s17  ;;  %v3473_v50 = vmul.f32 %v11127_v3, %v3463_v41  ;;  %v3491_v35 = vmul.f32 %v11140_v17, %v3463_v41 }
 0x30e   :  { %v11172_v51 = vadd.f32 %v3471_v52, %v10946_v2  ;;  %v11180_v19 = vadd.f32 %v3489_v57, %v10948_v36  ;;  %v11183_v15 = vadd.f32 %v3507_v28, %v10950_v10  ;;  %v11186_v6 = vadd.f32 %v3472_v46, %v10957_v9  ;;  %v13118_v36 = vld [vmem:[#allocation123_spill] sm:$0xff]  ;;  %v11241_v52 = vpop.permute.xlu1 %3587 }
 0x30f   :  { %v11189_v2 = vadd.f32 %v3490_v22, %v10962_v42  ;;  %v11198_v20 = vadd.f32 %v3508_v27, %v10964_v60  ;;  %v11201_v43 = vadd.f32 %v3473_v50, %v13118_v36  ;;  %v11204_v10 = vadd.f32 %v3491_v35, %v11003_v55  ;;  %v13119_v42 = vld [vmem:[#allocation122_spill] sm:$0xff] }
 0x310   :  { %4279 = vrot.lane.b32.xlu1 %v10978_v23, %s4921_s17  ;;  %v3509_v9 = vmul.f32 %v11145_v26, %v3463_v41  ;;  %v3464_v62 = vsel %vm71_vm4, 0.5, %v13119_v42  ;;  %v3465_v12 = vsel %vm71_vm4, 0.5, %v11013_v54  ;;  %v3466_v60 = vsel %vm71_vm4, 0.5, %v11015_v16  ;;  %v11239_v41 = vpop.permute.xlu0 %3585 }
 0x311   :  { %v3467_v7 = vsel %vm71_vm4, 0.5, %v11063_v58  ;;  %v3474_v24 = vmul.f32 %v11127_v3, %v3464_v62  ;;  %v3492_v53 = vmul.f32 %v11140_v17, %v3464_v62  ;;  %v3510_v56 = vmul.f32 %v11145_v26, %v3464_v62  ;;  %4281 = vrot.lane.b32.xlu0 %v11027_v39, %s4921_s17 }
 0x312   :  { %v11220_v55 = vadd.f32 %v3509_v9, %v11005_v61  ;;  %v3475_v16 = vmul.f32 %v11127_v3, %v3465_v12  ;;  %v3493_v61 = vmul.f32 %v11140_v17, %v3465_v12  ;;  %v3511_v54 = vmul.f32 %v11145_v26, %v3465_v12 }
 0x313   :  { %v3476_v58 = vmul.f32 %v11127_v3, %v3466_v60  ;;  %v11244_v57 = vadd.f32 %v3474_v24, %v11017_v4  ;;  %v11247_v28 = vadd.f32 %v3492_v53, %v11019_v5  ;;  %v11250_v46 = vadd.f32 %v3510_v56, %v11023_v37  ;;  %v13120_v24 = vld [vmem:[#allocation83_spill] sm:$0xff] }
 0x314   :  { %4283 = vrot.lane.b32.xlu1 %v11031_v30, %s4921_s17  ;;  %v3494_v22 = vmul.f32 %v11140_v17, %v3466_v60  ;;  %v11256_v27 = vadd.f32 %v3475_v16, %v11056_v14  ;;  %v11259_v50 = vadd.f32 %v3493_v61, %v11058_v21  ;;  %v11262_v4 = vadd.f32 %v3511_v54, %v11060_v34  ;;  %v11304_v53 = vpop.permute.xlu0 %3589 }
 0x315   :  { %v11265_v5 = vadd.f32 %v3476_v58, %v11073_v0  ;;  %v3512_v35 = vmul.f32 %v11145_v26, %v3466_v60  ;;  %4285 = vrot.lane.b32.xlu0 %v11092_v1, %s4921_s17  ;;  %v3477_v14 = vmul.f32 %v11127_v3, %v3467_v7  ;;  %v3495_v36 = vmul.f32 %v11140_v17, %v3467_v7 }
 0x316   :  { %v11268_v37 = vadd.f32 %v3494_v22, %v11082_v45  ;;  %v3513_v21 = vmul.f32 %v11145_v26, %v3467_v7  ;;  %v3468_v34 = vsel %vm71_vm4, 0.5, %v11065_v25  ;;  %v11282_v0 = vstv %s11193_s4  ;;  %s12219_s4 = sld [smem:[#allocation2 + $0x34]] }
 0x317   :  { %v11285_v45 = vstv %s11195_s16  ;;  %v11288_v9 = vadd.f32 %v3512_v35, %v11084_v48  ;;  %v11291_v42 = vadd.f32 %v3477_v14, %v11119_v11  ;;  %v11294_v62 = vadd.f32 %v3495_v36, %v11121_v29  ;;  %v11306_v11 = vpop.permute.xlu1 %3591  ;;  %v13121_v36 = vld [vmem:[#allocation85_spill] sm:$0xff]  ;;  %s12221_s16 = sld [smem:[#allocation2 + $0x4f]] }
 0x318   :  { %4287 = vrot.lane.b32.xlu1 %v11104_v49, %s4921_s17  ;;  %v3478_v12 = vmul.f32 %v11127_v3, %v3468_v34  ;;  %v11298_v25 = vadd.f32 %v3513_v21, %v11129_v13  ;;  %v3496_v60 = vmul.f32 %v11140_v17, %v3468_v34  ;;  %v3514_v7 = vmul.f32 %v11145_v26, %v3468_v34  ;;  %s11434_s17 = sld [smem:[#allocation2 + $0x12]] }
 0x319   :  { %v3525_v48 = vmul.f32 %v11282_v0, %v13120_v24  ;;  %v3543_v3 = vmul.f32 %v11285_v45, %v13120_v24  ;;  %v11314_v56 = vstv %s11227_s0  ;;  %v11317_v13 = vstv %s11229_s1  ;;  %s12229_s0 = sld [smem:[#allocation2 + $0x1a]]  ;;  %s12231_s1 = sld [smem:[#allocation2 + $0x35]] }
 0x31a   :  { %v11309_v29 = vadd.f32 %v3478_v12, %v11156_v59  ;;  %v11320_v17 = vadd.f32 %v3496_v60, %v11158_v18  ;;  %v11323_v26 = vadd.f32 %v3514_v7, %v11160_v32  ;;  %v3561_v16 = vmul.f32 %v11314_v56, %v13120_v24  ;;  %v11358_v7 = vpop.permute.xlu0 %3693 }
 0x31b   :  { %v11328_v61 = vstv %s11237_s2  ;;  %v11331_v59 = vstv %s11253_s27  ;;  %v3533_v54 = vadd.f32 %v3525_v48, %v11172_v51  ;;  %v3551_v58 = vadd.f32 %v3543_v3, %v11180_v19  ;;  %v11360_v24 = vpop.permute.xlu1 %3695  ;;  %s12244_s2 = sld [smem:[#allocation2 + $0x50]] }
 0x31c   :  { %v3593_v22 = vsel %vm72_vm5, 0.5, %v11115_v38  ;;  %v3569_v18 = vadd.f32 %v3561_v16, %v11183_v15  ;;  %v3526_v21 = vmul.f32 %v11282_v0, %v13121_v36  ;;  %v3544_v51 = vmul.f32 %v11285_v45, %v13121_v36  ;;  %s12246_s27 = sld [smem:[#allocation6]] }
 0x31d   :  { %v3603_v32 = vmul.f32 %v11317_v13, %v3593_v22  ;;  %v3621_v35 = vmul.f32 %v11328_v61, %v3593_v22  ;;  %v3639_v14 = vmul.f32 %v11331_v59, %v3593_v22  ;;  %v3562_v19 = vmul.f32 %v11314_v56, %v13121_v36 }
 0x31e   :  { %v3594_v38 = vsel %vm72_vm5, 0.5, %v11117_v31  ;;  %v3534_v48 = vadd.f32 %v3526_v21, %v11186_v6  ;;  %v3552_v3 = vadd.f32 %v3544_v51, %v11189_v2  ;;  %v3595_v2 = vsel %vm72_vm5, 0.5, %v11167_v47 }
 0x31f   :  { %v11351_v15 = vadd.f32 %v3603_v32, %v3533_v54  ;;  %v11353_v34 = vadd.f32 %v3621_v35, %v3551_v58  ;;  %v11355_v12 = vadd.f32 %v3639_v14, %v3569_v18  ;;  %v3604_v60 = vmul.f32 %v11317_v13, %v3594_v38  ;;  %v13122_v58 = vld [vmem:[#allocation90_spill] sm:$0xff] }
 0x320   :  { %v3570_v16 = vadd.f32 %v3562_v19, %v11198_v20  ;;  %v3622_v31 = vmul.f32 %v11328_v61, %v3594_v38  ;;  %v3640_v54 = vmul.f32 %v11331_v59, %v3594_v38  ;;  %v3527_v22 = vmul.f32 %v11282_v0, %v13122_v58  ;;  %v13123_v20 = vld [vmem:[#allocation91_spill] sm:$0xff] }
 0x321   :  { %v3545_v18 = vmul.f32 %v11285_v45, %v13122_v58  ;;  %v3563_v32 = vmul.f32 %v11314_v56, %v13122_v58  ;;  %v11373_v35 = vadd.f32 %v3604_v60, %v3534_v48  ;;  %v3528_v14 = vmul.f32 %v11282_v0, %v13123_v20 }
 0x322   :  { %v11375_v6 = vadd.f32 %v3622_v31, %v3552_v3  ;;  %v11382_v36 = vadd.f32 %v3640_v54, %v3570_v16  ;;  %v3535_v21 = vadd.f32 %v3527_v22, %v11201_v43  ;;  %v3605_v38 = vmul.f32 %v11317_v13, %v3595_v2  ;;  %v11400_v31 = vpop.permute.xlu0 %3697  ;;  %v11402_v54 = vpop.permute.xlu1 %3699 }
 0x323   :  { %v3553_v51 = vadd.f32 %v3545_v18, %v11204_v10  ;;  %v3571_v19 = vadd.f32 %v3563_v32, %v11220_v55  ;;  %v3623_v60 = vmul.f32 %v11328_v61, %v3595_v2  ;;  %v3641_v48 = vmul.f32 %v11331_v59, %v3595_v2  ;;  %v13124_v10 = vld [vmem:[#allocation96_spill] sm:$0xff] }
 0x324   :  { %v3546_v47 = vmul.f32 %v11285_v45, %v13123_v20  ;;  %v3564_v3 = vmul.f32 %v11314_v56, %v13123_v20  ;;  %v3536_v16 = vadd.f32 %v3528_v14, %v11244_v57  ;;  %v3596_v43 = vsel %vm72_vm5, 0.5, %v11169_v33 }
 0x325   :  { %v3529_v55 = vmul.f32 %v11282_v0, %v13124_v10  ;;  %v11404_v58 = vadd.f32 %v3605_v38, %v3535_v21  ;;  %v11406_v22 = vadd.f32 %v3623_v60, %v3553_v51  ;;  %v11408_v18 = vadd.f32 %v3641_v48, %v3571_v19 }
 0x326   :  { %v3554_v32 = vadd.f32 %v3546_v47, %v11247_v28  ;;  %v3572_v57 = vadd.f32 %v3564_v3, %v11250_v46  ;;  %v3606_v2 = vmul.f32 %v11317_v13, %v3596_v43  ;;  %v3624_v33 = vmul.f32 %v11328_v61, %v3596_v43 }
 0x327   :  { %v3642_v20 = vmul.f32 %v11331_v59, %v3596_v43  ;;  %v3547_v14 = vmul.f32 %v11285_v45, %v13124_v10  ;;  %v3565_v21 = vmul.f32 %v11314_v56, %v13124_v10  ;;  %v3537_v51 = vadd.f32 %v3529_v55, %v11256_v27 }
 0x328   :  { %v3597_v28 = vsel %vm72_vm5, 0.5, %v11239_v41  ;;  %v11423_v19 = vadd.f32 %v3606_v2, %v3536_v16  ;;  %v11425_v46 = vadd.f32 %v3624_v33, %v3554_v32  ;;  %v13125_v41 = vld [vmem:[#allocation97_spill] sm:$0xff]  ;;  %v3598_v2 = vsel %vm72_vm5, 0.5, %v11241_v52  ;;  %v13126_v33 = vld [vmem:[#allocation98_spill] sm:$0xff] }
 0x329   :  { %v11427_v38 = vadd.f32 %v3642_v20, %v3572_v57  ;;  %v3607_v60 = vmul.f32 %v11317_v13, %v3597_v28  ;;  %v3555_v48 = vadd.f32 %v3547_v14, %v11259_v50  ;;  %v3573_v47 = vadd.f32 %v3565_v21, %v11262_v4  ;;  %v11444_v50 = vpop.permute.xlu0 %3701  ;;  %v11446_v4 = vpop.permute.xlu1 %3703 }
 0x32a   :  { %v3625_v3 = vmul.f32 %v11328_v61, %v3597_v28  ;;  %v3643_v27 = vmul.f32 %v11331_v59, %v3597_v28  ;;  %v3530_v16 = vmul.f32 %v11282_v0, %v13125_v41  ;;  %v3548_v10 = vmul.f32 %v11285_v45, %v13125_v41 }
 0x32b   :  { %v11436_v43 = vadd.f32 %v3607_v60, %v3537_v51  ;;  %v3566_v55 = vmul.f32 %v11314_v56, %v13125_v41  ;;  %v3531_v20 = vmul.f32 %v11282_v0, %v13126_v33  ;;  %v3608_v28 = vmul.f32 %v11317_v13, %v3598_v2 }
 0x32c   :  { %v11448_v32 = vadd.f32 %v3625_v3, %v3555_v48  ;;  %v11450_v57 = vadd.f32 %v3643_v27, %v3573_v47  ;;  %v3538_v14 = vadd.f32 %v3530_v16, %v11265_v5  ;;  %v3556_v21 = vadd.f32 %v3548_v10, %v11268_v37  ;;  %v13127_v3 = vld [vmem:[#allocation99_spill] sm:$0xff] }
 0x32d   :  { %v3574_v51 = vadd.f32 %v3566_v55, %v11288_v9  ;;  %v3626_v60 = vmul.f32 %v11328_v61, %v3598_v2  ;;  %v3644_v48 = vmul.f32 %v11331_v59, %v3598_v2  ;;  %v3549_v52 = vmul.f32 %v11285_v45, %v13126_v33 }
 0x32e   :  { %v3567_v5 = vmul.f32 %v11314_v56, %v13126_v33  ;;  %v11471_v47 = vadd.f32 %v3608_v28, %v3538_v14  ;;  %v3539_v37 = vadd.f32 %v3531_v20, %v11291_v42  ;;  %v3599_v9 = vsel %vm72_vm5, 0.5, %v11304_v53  ;;  %v11490_v20 = vpop.permute.xlu1 %3707 }
 0x32f   :  { %v3532_v27 = vmul.f32 %v11282_v0, %v13127_v3  ;;  %v11479_v41 = vadd.f32 %v3626_v60, %v3556_v21  ;;  %v11481_v16 = vadd.f32 %v3644_v48, %v3574_v51  ;;  %v3557_v10 = vadd.f32 %v3549_v52, %v11294_v62  ;;  %v3706_v0 = vpop.permute.xlu0 %3705 }
 0x330   :  { %v3575_v55 = vadd.f32 %v3567_v5, %v11298_v25  ;;  %v3609_v2 = vmul.f32 %v11317_v13, %v3599_v9  ;;  %v3627_v42 = vmul.f32 %v11328_v61, %v3599_v9  ;;  %v3645_v33 = vmul.f32 %v11331_v59, %v3599_v9 }
 0x331   :  { %v3550_v53 = vmul.f32 %v11285_v45, %v13127_v3  ;;  %v3568_v14 = vmul.f32 %v11314_v56, %v13127_v3  ;;  %v3540_v62 = vadd.f32 %v3532_v27, %v11309_v29  ;;  %v3600_v25 = vsel %vm72_vm5, 0.5, %v11306_v11 }
 0x332   :  { %v11499_v21 = vstv %s11434_s17  ;;  %v11501_v51 = vadd.f32 %v3609_v2, %v3539_v37  ;;  %v11503_v28 = vadd.f32 %v3627_v42, %v3557_v10  ;;  %v11505_v45 = vadd.f32 %v3645_v33, %v3575_v55  ;;  %v11537_v55 = vpop.permute.xlu1 %3827  ;;  %s12258_s17 = sld [smem:[#allocation6 + $0x1]] }
 0x333   :  { %v3558_v60 = vadd.f32 %v3550_v53, %v11320_v17  ;;  %v3576_v48 = vadd.f32 %v3568_v14, %v11323_v26  ;;  %v3610_v56 = vmul.f32 %v11317_v13, %v3600_v25  ;;  %v3628_v29 = vmul.f32 %v11328_v61, %v3600_v25  ;;  %v11535_v10 = vpop.permute.xlu0 %3825 }
 0x334   :  { %v3646_v52 = vmul.f32 %v11331_v59, %v3600_v25  ;;  %v11513_v5 = vstv %s11461_s28  ;;  %v11516_v11 = vstv %s11463_s29  ;;  %v3709_v37 = vsel %vm71_vm4, 0.5, %v11358_v7  ;;  %s12260_s28 = sld [smem:[#allocation6 + $0x2]]  ;;  %s4922_s29 = smov [#allocation9]  }
 0x335   :  { %v3710_v17 = vsel %vm71_vm4, 0.5, %v11360_v24  ;;  %v11524_v9 = vadd.f32 %v3610_v56, %v3540_v62  ;;  %v11526_v26 = vadd.f32 %v3628_v29, %v3558_v60  ;;  %v3719_v61 = vmul.f32 %v11499_v21, %v3709_v37 }
 0x336   :  { %v11528_v13 = vadd.f32 %v3646_v52, %v3576_v48  ;;  %v3737_v59 = vmul.f32 %v11513_v5, %v3709_v37  ;;  %v3755_v3 = vmul.f32 %v11516_v11, %v3709_v37  ;;  %v3720_v27 = vmul.f32 %v11499_v21, %v3710_v17 }
 0x337   :  { %v3738_v7 = vmul.f32 %v11513_v5, %v3710_v17  ;;  %v11540_v24 = vadd.f32 %v3719_v61, %v11351_v15  ;;  %v3756_v2 = vmul.f32 %v11516_v11, %v3710_v17  ;;  %v3711_v42 = vsel %vm71_vm4, 0.5, %v11400_v31 }
 0x338   :  { %v3712_v33 = vsel %vm71_vm4, 0.5, %v11402_v54  ;;  %v11550_v53 = vadd.f32 %v3737_v59, %v11353_v34  ;;  %v11553_v14 = vadd.f32 %v3755_v3, %v11355_v12  ;;  %v11556_v62 = vadd.f32 %v3720_v27, %v11373_v35 }
 0x339   :  { %v11559_v15 = vadd.f32 %v3738_v7, %v11375_v6  ;;  %v11562_v25 = vadd.f32 %v3756_v2, %v11382_v36  ;;  %v3721_v31 = vmul.f32 %v11499_v21, %v3711_v42  ;;  %v3739_v60 = vmul.f32 %v11513_v5, %v3711_v42 }
 0x33a   :  { %v3757_v54 = vmul.f32 %v11516_v11, %v3711_v42  ;;  %v3722_v34 = vmul.f32 %v11499_v21, %v3712_v33  ;;  %v3740_v12 = vmul.f32 %v11513_v5, %v3712_v33  ;;  %v3758_v48 = vmul.f32 %v11516_v11, %v3712_v33 }
 0x33b   :  { %v3713_v35 = vsel %vm71_vm4, 0.5, %v11444_v50  ;;  %v11578_v6 = vadd.f32 %v3721_v31, %v11404_v58  ;;  %v11581_v36 = vadd.f32 %v3739_v60, %v11406_v22  ;;  %v11601_v22 = vpop.permute.xlu0 %3829 }
 0x33c   :  { %v11584_v56 = vadd.f32 %v3757_v54, %v11408_v18  ;;  %v3723_v29 = vmul.f32 %v11499_v21, %v3713_v35  ;;  %v11590_v52 = vadd.f32 %v3722_v34, %v11423_v19  ;;  %v11593_v50 = vadd.f32 %v3740_v12, %v11425_v46  ;;  %v11603_v18 = vpop.permute.xlu1 %3831 }
 0x33d   :  { %v11596_v37 = vadd.f32 %v3758_v48, %v11427_v38  ;;  %v3741_v58 = vmul.f32 %v11513_v5, %v3713_v35  ;;  %v3759_v19 = vmul.f32 %v11516_v11, %v3713_v35  ;;  %v3714_v46 = vsel %vm71_vm4, 0.5, %v11446_v4 }
 0x33e   :  { %v11606_v17 = vadd.f32 %v3723_v29, %v11436_v43  ;;  %v3715_v38 = vsel %vm71_vm4, 0.5, %v3706_v0  ;;  %v3724_v59 = vmul.f32 %v11499_v21, %v3714_v46  ;;  %v3742_v43 = vmul.f32 %v11513_v5, %v3714_v46 }
 0x33f   :  { %v11619_v61 = vadd.f32 %v3741_v58, %v11448_v32  ;;  %v3760_v3 = vmul.f32 %v11516_v11, %v3714_v46  ;;  %v11625_v4 = vadd.f32 %v3759_v19, %v11450_v57  ;;  %v3725_v0 = vmul.f32 %v11499_v21, %v3715_v38 }
 0x340   :  { %v3743_v27 = vmul.f32 %v11513_v5, %v3715_v38  ;;  %v3761_v7 = vmul.f32 %v11516_v11, %v3715_v38  ;;  %v11631_v32 = vadd.f32 %v3724_v59, %v11471_v47  ;;  %v11634_v2 = vadd.f32 %v3742_v43, %v11479_v41  ;;  %v13129_v38 = vld [vmem:[#allocation105_spill] sm:$0xff] }
 0x341   :  { %v11637_v42 = vadd.f32 %v3760_v3, %v11481_v16  ;;  %v3716_v57 = vsel %vm71_vm4, 0.5, %v11490_v20  ;;  %v11643_v33 = vadd.f32 %v3725_v0, %v11501_v51  ;;  %v11655_v54 = vstv %s11573_s30  ;;  %v11660_v51 = vpop.permute.xlu0 %3833  ;;  %s4482_s30 = sshll.u32 %s4922_s29, 4  ;;  %s4483_s30 = int_to_ptr.vmem [resolvable:$true] %s4482_s30 }
 0x342   :  { %v11646_v31 = vadd.f32 %v3743_v27, %v11503_v28  ;;  %v11649_v47 = vadd.f32 %v3761_v7, %v11505_v45  ;;  %v3726_v41 = vmul.f32 %v11499_v21, %v3716_v57  ;;  %v3744_v16 = vmul.f32 %v11513_v5, %v3716_v57  ;;  %v11662_v28 = vpop.permute.xlu1 %3835  ;;  %v13128_v45 = vld [vmem:[#allocation104_spill] sm:$0xff]  ;;  %v13130_v7 = vld [vmem:[#allocation107_spill] sm:$0xff]  ;;  %p4890_p5 = scmp.lt.s32.totalorder %s4483_s30, %s4483_s30 }
 0x343   :  { %v3762_v60 = vmul.f32 %v11516_v11, %v3716_v57  ;;  %v11658_v20 = vstv %s11575_s6  ;;  %v3773_v12 = vmul.f32 %v11655_v54, %v13128_v45  ;;  %v11672_v5 = vstv %s11587_s7  ;;  %s4885_s6 = scalar_lea.vmem %s4483_s30, 6144 }
 0x344   :  { %v11665_v34 = vadd.f32 %v3726_v41, %v11524_v9  ;;  %v3791_v21 = vmul.f32 %v11658_v20, %v13128_v45  ;;  %v11675_v11 = vadd.f32 %v3744_v16, %v11526_v26  ;;  %v3809_v35 = vmul.f32 %v11672_v5, %v13128_v45  ;;  %p4886_p4 = scmp.ne.s32.totalorder %s4483_s30, %s4885_s6  ;;  %p4891_p6 = scmp.lt.s32.totalorder %s4885_s6, %s4885_s6 }
 0x345   :  { %v11678_v48 = vadd.f32 %v3762_v60, %v11528_v13  ;;  %v11683_v29 = vstv %s11599_s8  ;;  %v11686_v9 = vstv %s11614_s9  ;;  %v11689_v58 = vstv %s11616_s10  ;;  %v11712_v41 = vpop.permute.xlu0 %3837 }
 0x346   :  { %v3781_v19 = vadd.f32 %v3773_v12, %v11540_v24  ;;  %v3799_v46 = vadd.f32 %v3791_v21, %v11550_v53  ;;  %v3841_v26 = vsel %vm72_vm5, 0.5, %v11535_v10  ;;  %v3774_v13 = vmul.f32 %v11655_v54, %v13129_v38  ;;  %v11714_v16 = vpop.permute.xlu1 %3839  ;;  %p4892_p7 = por %p4891_p6, %p4890_p5 }
 0x347   :  { %v3792_v59 = vmul.f32 %v11658_v20, %v13129_v38  ;;  %v3851_v43 = vmul.f32 %v11683_v29, %v3841_v26  ;;  %v3869_v3 = vmul.f32 %v11686_v9, %v3841_v26  ;;  %v3887_v0 = vmul.f32 %v11689_v58, %v3841_v26 }
 0x348   :  { %v3810_v24 = vmul.f32 %v11672_v5, %v13129_v38  ;;  %v3817_v53 = vadd.f32 %v3809_v35, %v11553_v14  ;;  %v3782_v27 = vadd.f32 %v3774_v13, %v11556_v62  ;;  %v3842_v10 = vsel %vm72_vm5, 0.5, %v11537_v55  ;;  %p4893_p8 = pnand %p4892_p7, %p4886_p4 }
 0x349   :  { %v3775_v57 = vmul.f32 %v11655_v54, %v13130_v7  ;;  %v11716_v60 = vadd.f32 %v3851_v43, %v3781_v19  ;;  %v11718_v45 = vadd.f32 %v3869_v3, %v3799_v46  ;;  %v3800_v12 = vadd.f32 %v3792_v59, %v11559_v15  ;;  %v13131_v46 = vld [vmem:[#allocation117_spill] sm:$0xff] }
 0x34a   :  { %v3818_v14 = vadd.f32 %v3810_v24, %v11562_v25  ;;  %v3852_v62 = vmul.f32 %v11683_v29, %v3842_v10  ;;  %v3870_v21 = vmul.f32 %v11686_v9, %v3842_v10  ;;  %v3888_v55 = vmul.f32 %v11689_v58, %v3842_v10 }
 0x34b   :  { %v3793_v35 = vmul.f32 %v11658_v20, %v13130_v7  ;;  %v11727_v26 = vadd.f32 %v3887_v0, %v3817_v53  ;;  %v3811_v19 = vmul.f32 %v11672_v5, %v13130_v7  ;;  %v3843_v15 = vsel %vm72_vm5, 0.5, %v11601_v22  ;;  %v11755_v7 = vpop.permute.xlu0 %3903 }
 0x34c   :  { %v3776_v25 = vmul.f32 %v11655_v54, %v13131_v46  ;;  %v11736_v38 = vadd.f32 %v3852_v62, %v3782_v27  ;;  %v11738_v13 = vadd.f32 %v3870_v21, %v3800_v12  ;;  %v11740_v59 = vadd.f32 %v3888_v55, %v3818_v14 }
 0x34d   :  { %v3783_v43 = vadd.f32 %v3775_v57, %v11578_v6  ;;  %v3801_v3 = vadd.f32 %v3793_v35, %v11581_v36  ;;  %v3853_v0 = vmul.f32 %v11683_v29, %v3843_v15  ;;  %v3871_v24 = vmul.f32 %v11686_v9, %v3843_v15  ;;  %v11757_v36 = vpop.permute.xlu1 %3905 }
 0x34e   :  { %v3889_v53 = vmul.f32 %v11689_v58, %v3843_v15  ;;  %v3819_v22 = vadd.f32 %v3811_v19, %v11584_v56  ;;  %v3794_v27 = vmul.f32 %v11658_v20, %v13131_v46  ;;  %v3812_v10 = vmul.f32 %v11672_v5, %v13131_v46  ;;  %v13132_v19 = vld [vmem:[#allocation121_spill] sm:$0xff] }
 0x34f   :  { %v3844_v6 = vsel %vm72_vm5, 0.5, %v11603_v18  ;;  %v11759_v57 = vadd.f32 %v3853_v0, %v3783_v43  ;;  %v11761_v12 = vadd.f32 %v3871_v24, %v3801_v3  ;;  %v3784_v56 = vadd.f32 %v3776_v25, %v11590_v52  ;;  %v13133_v3 = vld [vmem:[#allocation112_spill] sm:$0xff] }
 0x350   :  { %v3854_v14 = vmul.f32 %v11683_v29, %v3844_v6  ;;  %v11765_v62 = vadd.f32 %v3889_v53, %v3819_v22  ;;  %v3802_v21 = vadd.f32 %v3794_v27, %v11593_v50  ;;  %v3872_v55 = vmul.f32 %v11686_v9, %v3844_v6 }
 0x351   :  { %v3890_v18 = vmul.f32 %v11689_v58, %v3844_v6  ;;  %v3820_v35 = vadd.f32 %v3812_v10, %v11596_v37  ;;  %v3777_v15 = vmul.f32 %v11655_v54, %v13132_v19  ;;  %v3795_v46 = vmul.f32 %v11658_v20, %v13132_v19 }
 0x352   :  { %v3813_v52 = vmul.f32 %v11672_v5, %v13132_v19  ;;  %v11777_v25 = vadd.f32 %v3854_v14, %v3784_v56  ;;  %v11779_v43 = vadd.f32 %v3872_v55, %v3802_v21  ;;  %v3845_v50 = vsel %vm72_vm5, 0.5, %v11660_v51  ;;  %v3908_v56 = vpop.permute.xlu0 %3907  ;;  %v3910_v14 = vpop.permute.xlu1 %3909 }
 0x353   :  { %v3778_v37 = vmul.f32 %v11655_v54, %v13133_v3  ;;  %v11786_v0 = vadd.f32 %v3890_v18, %v3820_v35  ;;  %v3785_v24 = vadd.f32 %v3777_v15, %v11606_v17  ;;  %v3803_v53 = vadd.f32 %v3795_v46, %v11619_v61 }
 0x354   :  { %v3855_v22 = vmul.f32 %v11683_v29, %v3845_v50  ;;  %v11792_v27 = vadd.f32 %v3813_v52, %v11625_v4  ;;  %v3873_v10 = vmul.f32 %v11686_v9, %v3845_v50  ;;  %v3796_v6 = vmul.f32 %v11658_v20, %v13133_v3  ;;  %v13134_v4 = vld [vmem:[#allocation116_spill] sm:$0xff] }
 0x355   :  { %v3814_v51 = vmul.f32 %v11672_v5, %v13133_v3  ;;  %v3891_v17 = vmul.f32 %v11689_v58, %v3845_v50  ;;  %v3846_v61 = vsel %vm72_vm5, 0.5, %v11662_v28  ;;  %v3779_v55 = vmul.f32 %v11655_v54, %v13134_v4  ;;  %v13135_v3 = vld [vmem:[#allocation119_spill] sm:$0xff] }
 0x356   :  { %v11799_v21 = vadd.f32 %v3855_v22, %v3785_v24  ;;  %v11809_v18 = vadd.f32 %v3873_v10, %v3803_v53  ;;  %v3786_v35 = vadd.f32 %v3778_v37, %v11631_v32  ;;  %v3804_v19 = vadd.f32 %v3796_v6, %v11634_v2 }
 0x357   :  { %v3822_v15 = vadd.f32 %v3814_v51, %v11637_v42  ;;  %v3856_v46 = vmul.f32 %v11683_v29, %v3846_v61  ;;  %v3874_v28 = vmul.f32 %v11686_v9, %v3846_v61  ;;  %v3892_v52 = vmul.f32 %v11689_v58, %v3846_v61 }
 0x358   :  { %v3797_v50 = vmul.f32 %v11658_v20, %v13134_v4  ;;  %v3815_v32 = vmul.f32 %v11672_v5, %v13134_v4  ;;  %v3787_v2 = vadd.f32 %v3779_v55, %v11643_v33  ;;  %v3847_v42 = vsel %vm72_vm5, 0.5, %v11712_v41  ;;  %v3912_v41 = vpop.permute.xlu0 %3911 }
 0x359   :  { %v3780_v37 = vmul.f32 %v11655_v54, %v13135_v3  ;;  %v11831_v24 = vadd.f32 %v3856_v46, %v3786_v35  ;;  %v11833_v53 = vadd.f32 %v3874_v28, %v3804_v19  ;;  %v11835_v22 = vadd.f32 %v3892_v52, %v3822_v15  ;;  %v3914_v54 = vpop.permute.xlu1 %3913 }
 0x35a   :  { %v3805_v10 = vadd.f32 %v3797_v50, %v11646_v31  ;;  %v3823_v6 = vadd.f32 %v3815_v32, %v11649_v47  ;;  %v3857_v51 = vmul.f32 %v11683_v29, %v3847_v42  ;;  %v3875_v33 = vmul.f32 %v11686_v9, %v3847_v42 }
 0x35b   :  { %v3893_v61 = vmul.f32 %v11689_v58, %v3847_v42  ;;  %v3798_v4 = vmul.f32 %v11658_v20, %v13135_v3  ;;  %v3816_v55 = vmul.f32 %v11672_v5, %v13135_v3  ;;  %v3788_v31 = vadd.f32 %v3780_v37, %v11665_v34 }
 0x35c   :  { %v3848_v47 = vsel %vm72_vm5, 0.5, %v11714_v16  ;;  %v11850_v35 = vadd.f32 %v3857_v51, %v3787_v2  ;;  %v11852_v19 = vadd.f32 %v3875_v33, %v3805_v10  ;;  %v11864_v50 = vstv %s11807_s13  ;;  %v3916_v37 = vpop.permute.xlu0 %3915 }
 0x35d   :  { %v11854_v15 = vadd.f32 %v3893_v61, %v3823_v6  ;;  %v3858_v46 = vmul.f32 %v11683_v29, %v3848_v47  ;;  %v3806_v28 = vadd.f32 %v3798_v4, %v11675_v11  ;;  %v3824_v20 = vadd.f32 %v3816_v55, %v11678_v48  ;;  %v3918_v10 = vpop.permute.xlu1 %3917 }
 0x35e   :  { %v3876_v5 = vmul.f32 %v11686_v9, %v3848_v47  ;;  %v3894_v34 = vmul.f32 %v11689_v58, %v3848_v47  ;;  %v11867_v16 = vstv %s11814_s14  ;;  %v11870_v32 = vstv %s11816_s3 }
 0x35f   :  { %v11861_v52 = vadd.f32 %v3858_v46, %v3788_v31  ;;  %v3919_v11 = vsel %vm71_vm4, 0.5, %v11755_v7  ;;  %v3920_v48 = vsel %vm71_vm4, 0.5, %v11757_v36  ;;  %v3921_v7 = vsel %vm71_vm4, 0.5, %v3908_v56 }
 0x360   :  { %v11872_v2 = vadd.f32 %v3876_v5, %v3806_v28  ;;  %v11874_v42 = vadd.f32 %v3894_v34, %v3824_v20  ;;  %v3929_v29 = vmul.f32 %v11864_v50, %v3919_v11  ;;  %v3947_v9 = vmul.f32 %v11867_v16, %v3919_v11 }
 0x361   :  { %v3965_v58 = vmul.f32 %v11870_v32, %v3919_v11  ;;  %v3930_v3 = vmul.f32 %v11864_v50, %v3920_v48  ;;  %v3948_v6 = vmul.f32 %v11867_v16, %v3920_v48  ;;  %v3966_v51 = vmul.f32 %v11870_v32, %v3920_v48  ;;  %v4038_v5 = vpop.permute.xlu1 %4037 }
 0x362   :  { %v3922_v36 = vsel %vm71_vm4, 0.5, %v3910_v14  ;;  %v3899_v33 = vadd.f32 %v3891_v17, %v11792_v27  ;;  %v11894_v61 = vadd.f32 %v3929_v29, %v11716_v60  ;;  %v11897_v4 = vadd.f32 %v3947_v9, %v11718_v45 }
 0x363   :  { %v11900_v55 = vadd.f32 %v3965_v58, %v11727_v26  ;;  %v11903_v31 = vadd.f32 %v3930_v3, %v11736_v38  ;;  %v11906_v47 = vadd.f32 %v3948_v6, %v11738_v13  ;;  %v3931_v56 = vmul.f32 %v11864_v50, %v3921_v7 }
 0x364   :  { %v3949_v14 = vmul.f32 %v11867_v16, %v3921_v7  ;;  %v11911_v27 = vadd.f32 %v3966_v51, %v11740_v59  ;;  %v3967_v60 = vmul.f32 %v11870_v32, %v3921_v7  ;;  %v3932_v45 = vmul.f32 %v11864_v50, %v3922_v36 }
 0x365   :  { %v3950_v26 = vmul.f32 %v11867_v16, %v3922_v36  ;;  %v11921_v38 = vadd.f32 %v3931_v56, %v11759_v57  ;;  %v3968_v13 = vmul.f32 %v11870_v32, %v3922_v36  ;;  %v3923_v17 = vsel %vm71_vm4, 0.5, %v3912_v41  ;;  %v4036_v41 = vpop.permute.xlu0 %4035  ;;  %v4042_v56 = vpop.permute.xlu1 %4041 }
 0x366   :  { %v3924_v59 = vsel %vm71_vm4, 0.5, %v3914_v54  ;;  %v11929_v46 = vadd.f32 %v3949_v14, %v11761_v12  ;;  %v11932_v28 = vadd.f32 %v3967_v60, %v11765_v62  ;;  %v11935_v20 = vadd.f32 %v3932_v45, %v11777_v25 }
 0x367   :  { %v11938_v57 = vadd.f32 %v3950_v26, %v11779_v43  ;;  %v3933_v54 = vmul.f32 %v11864_v50, %v3923_v17  ;;  %v3951_v12 = vmul.f32 %v11867_v16, %v3923_v17  ;;  %v3969_v34 = vmul.f32 %v11870_v32, %v3923_v17 }
 0x368   :  { %v3934_v62 = vmul.f32 %v11864_v50, %v3924_v59  ;;  %v3952_v25 = vmul.f32 %v11867_v16, %v3924_v59  ;;  %v3970_v43 = vmul.f32 %v11870_v32, %v3924_v59  ;;  %v3925_v11 = vsel %vm71_vm4, 0.5, %v3916_v37 }
 0x369   :  { %v3926_v48 = vsel %vm71_vm4, 0.5, %v3918_v10  ;;  %v11959_v29 = vadd.f32 %v3968_v13, %v11786_v0  ;;  %v11962_v9 = vadd.f32 %v3933_v54, %v11799_v21  ;;  %v11965_v58 = vadd.f32 %v3951_v12, %v11809_v18 }
 0x36a   :  { %v11967_v3 = vadd.f32 %v3969_v34, %v3899_v33  ;;  %v11970_v6 = vadd.f32 %v3934_v62, %v11831_v24  ;;  %v11973_v37 = vadd.f32 %v3952_v25, %v11833_v53  ;;  %v3935_v10 = vmul.f32 %v11864_v50, %v3925_v11  ;;  %v4832_v25 = vld [vmem:[#allocation8 + $0x148] sm:$0xff] }
 0x36b   :  { %v3953_v51 = vmul.f32 %v11867_v16, %v3925_v11  ;;  %v11978_v0 = vadd.f32 %v3970_v43, %v11835_v22  ;;  %v3971_v21 = vmul.f32 %v11870_v32, %v3925_v11  ;;  %v3936_v18 = vmul.f32 %v11864_v50, %v3926_v48  ;;  %v4040_v22 = vpop.permute.xlu0 %4039 }
 0x36c   :  { %v3954_v7 = vmul.f32 %v11867_v16, %v3926_v48  ;;  %v11984_v24 = vadd.f32 %v3935_v10, %v11850_v35  ;;  %v3972_v53 = vmul.f32 %v11870_v32, %v3926_v48  ;;  %v11988_v36 = vstv %s11916_s15  ;;  %v4831_v32 = vld [vmem:[#allocation8 + $0x140] sm:$0xff] }
 0x36d   :  { %v11991_v33 = vstv %s11918_s18  ;;  %v11994_v14 = vadd.f32 %v3953_v51, %v11852_v19  ;;  %v11997_v50 = vadd.f32 %v3971_v21, %v11854_v15  ;;  %v12000_v16 = vadd.f32 %v3936_v18, %v11861_v52  ;;  %v4046_v51 = vpop.permute.xlu1 %4045 }
 0x36e   :  { %v12003_v35 = vadd.f32 %v3954_v7, %v11872_v2  ;;  %v3983_v60 = vmul.f32 %v4831_v32, %v11988_v36  ;;  %v4001_v45 = vmul.f32 %v4831_v32, %v11991_v33  ;;  %v12008_v26 = vstv %s11940_s19 }
 0x36f   :  { %v12011_v13 = vstv %s11942_s20  ;;  %v4019_v19 = vmul.f32 %v4831_v32, %v12008_v26  ;;  %v12015_v17 = vstv %s11948_s21  ;;  %v12018_v15 = vstv %s11950_s22  ;;  %v4044_v10 = vpop.permute.xlu0 %4043 }
 0x370   :  { %v4051_v52 = vsel %vm72_vm5, 0.5, %v4036_v41  ;;  %v12023_v2 = vadd.f32 %v3972_v53, %v11874_v42  ;;  %v3991_v59 = vadd.f32 %v3983_v60, %v11894_v61  ;;  %v4009_v34 = vadd.f32 %v4001_v45, %v11897_v4  ;;  %v4833_v60 = vld [vmem:[#allocation8 + $0x150] sm:$0xff] }
 0x371   :  { %v4061_v54 = vmul.f32 %v12011_v13, %v4051_v52  ;;  %v4079_v12 = vmul.f32 %v12015_v17, %v4051_v52  ;;  %v4097_v62 = vmul.f32 %v12018_v15, %v4051_v52  ;;  %v3984_v43 = vmul.f32 %v4832_v25, %v11988_v36 }
 0x372   :  { %v4002_v11 = vmul.f32 %v4832_v25, %v11991_v33  ;;  %v4027_v41 = vadd.f32 %v4019_v19, %v11900_v55  ;;  %v4020_v42 = vmul.f32 %v4832_v25, %v12008_v26  ;;  %v4052_v61 = vsel %vm72_vm5, 0.5, %v4038_v5 }
 0x373   :  { %v12033_v48 = vadd.f32 %v4061_v54, %v3991_v59  ;;  %v12038_v21 = vadd.f32 %v4079_v12, %v4009_v34  ;;  %v3992_v4 = vadd.f32 %v3984_v43, %v11903_v31  ;;  %v4062_v7 = vmul.f32 %v12011_v13, %v4052_v61 }
 0x374   :  { %v4010_v18 = vadd.f32 %v4002_v11, %v11906_v47  ;;  %v4028_v53 = vadd.f32 %v4020_v42, %v11911_v27  ;;  %v4080_v55 = vmul.f32 %v12015_v17, %v4052_v61  ;;  %v4098_v32 = vmul.f32 %v12018_v15, %v4052_v61  ;;  %v4834_v11 = vld [vmem:[#allocation8 + $0x158] sm:$0xff]  ;;  %v4048_v61 = vpop.permute.xlu0 %4047 }
 0x375   :  { %v3985_v45 = vmul.f32 %v4833_v60, %v11988_v36  ;;  %v12047_v5 = vadd.f32 %v4097_v62, %v4027_v41  ;;  %v4003_v19 = vmul.f32 %v4833_v60, %v11991_v33  ;;  %v4021_v52 = vmul.f32 %v4833_v60, %v12008_v26 }
 0x376   :  { %v4053_v31 = vsel %vm72_vm5, 0.5, %v4040_v22  ;;  %v12053_v47 = vadd.f32 %v4062_v7, %v3992_v4  ;;  %v12055_v59 = vadd.f32 %v4080_v55, %v4010_v18  ;;  %v12057_v27 = vadd.f32 %v4098_v32, %v4028_v53  ;;  %v12068_v4 = vpop.permute.xlu1 %4049  ;;  %v4835_v7 = vld [vmem:[#allocation8 + $0x160] sm:$0xff] }
 0x377   :  { %v4063_v54 = vmul.f32 %v12011_v13, %v4053_v31  ;;  %v3993_v12 = vadd.f32 %v3985_v45, %v11921_v38  ;;  %v4011_v34 = vadd.f32 %v4003_v19, %v11929_v46  ;;  %v4081_v62 = vmul.f32 %v12015_v17, %v4053_v31 }
 0x378   :  { %v4099_v25 = vmul.f32 %v12018_v15, %v4053_v31  ;;  %v4029_v43 = vadd.f32 %v4021_v52, %v11932_v28  ;;  %v3986_v22 = vmul.f32 %v4834_v11, %v11988_v36  ;;  %v4004_v41 = vmul.f32 %v4834_v11, %v11991_v33 }
 0x379   :  { %v4022_v42 = vmul.f32 %v4834_v11, %v12008_v26  ;;  %v12070_v18 = vadd.f32 %v4063_v54, %v3993_v12  ;;  %v12072_v38 = vadd.f32 %v4081_v62, %v4011_v34  ;;  %v4054_v46 = vsel %vm72_vm5, 0.5, %v4042_v56 }
 0x37a   :  { %v3987_v28 = vmul.f32 %v4835_v7, %v11988_v36  ;;  %v12077_v53 = vadd.f32 %v4099_v25, %v4029_v43  ;;  %v3994_v55 = vadd.f32 %v3986_v22, %v11935_v20  ;;  %v4012_v32 = vadd.f32 %v4004_v41, %v11938_v57  ;;  %v4836_v20 = vld [vmem:[#allocation8 + $0x168] sm:$0xff] }
 0x37b   :  { %v4064_v60 = vmul.f32 %v12011_v13, %v4054_v46  ;;  %v4082_v45 = vmul.f32 %v12015_v17, %v4054_v46  ;;  %v4100_v19 = vmul.f32 %v12018_v15, %v4054_v46  ;;  %v4005_v52 = vmul.f32 %v4835_v7, %v11991_v33 }
 0x37c   :  { %v4023_v31 = vmul.f32 %v4835_v7, %v12008_v26  ;;  %v4030_v56 = vadd.f32 %v4022_v42, %v11959_v29  ;;  %v4055_v12 = vsel %vm72_vm5, 0.5, %v4044_v10  ;;  %v3988_v57 = vmul.f32 %v4836_v20, %v11988_v36  ;;  %v4142_v10 = vpop.permute.xlu0 %4141  ;;  %v4144_v42 = vpop.permute.xlu1 %4143 }
 0x37d   :  { %v12087_v54 = vadd.f32 %v4064_v60, %v3994_v55  ;;  %v12092_v34 = vadd.f32 %v4082_v45, %v4012_v32  ;;  %v3995_v62 = vadd.f32 %v3987_v28, %v11962_v9  ;;  %v4013_v25 = vadd.f32 %v4005_v52, %v11965_v58  ;;  %v4837_v58 = vld [vmem:[#allocation8 + $0x170] sm:$0xff] }
 0x37e   :  { %v4031_v43 = vadd.f32 %v4023_v31, %v11967_v3  ;;  %v4065_v11 = vmul.f32 %v12011_v13, %v4055_v12  ;;  %v4083_v29 = vmul.f32 %v12015_v17, %v4055_v12  ;;  %v4101_v22 = vmul.f32 %v12018_v15, %v4055_v12 }
 0x37f   :  { %v4006_v41 = vmul.f32 %v4836_v20, %v11991_v33  ;;  %v12101_v46 = vadd.f32 %v4100_v19, %v4030_v56  ;;  %v4024_v7 = vmul.f32 %v4836_v20, %v12008_v26  ;;  %v4056_v9 = vsel %vm72_vm5, 0.5, %v4046_v51 }
 0x380   :  { %v3989_v3 = vmul.f32 %v4837_v58, %v11988_v36  ;;  %v12109_v28 = vadd.f32 %v4065_v11, %v3995_v62  ;;  %v12111_v55 = vadd.f32 %v4083_v29, %v4013_v25  ;;  %v12113_v32 = vadd.f32 %v4101_v22, %v4031_v43  ;;  %v4146_v29 = vpop.permute.xlu0 %4145  ;;  %v4148_v22 = vpop.permute.xlu1 %4147 }
 0x381   :  { %v3996_v60 = vadd.f32 %v3988_v57, %v11970_v6  ;;  %v4014_v45 = vadd.f32 %v4006_v41, %v11973_v37  ;;  %v4066_v51 = vmul.f32 %v12011_v13, %v4056_v9  ;;  %v4084_v19 = vmul.f32 %v12015_v17, %v4056_v9  ;;  %v4838_v41 = vld [vmem:[#allocation8 + $0x178] sm:$0xff] }
 0x382   :  { %v4102_v52 = vmul.f32 %v12018_v15, %v4056_v9  ;;  %v4032_v31 = vadd.f32 %v4024_v7, %v11978_v0  ;;  %v4007_v56 = vmul.f32 %v4837_v58, %v11991_v33  ;;  %v4025_v12 = vmul.f32 %v4837_v58, %v12008_v26 }
 0x383   :  { %v4057_v6 = vsel %vm72_vm5, 0.5, %v4048_v61  ;;  %v12129_v20 = vadd.f32 %v4066_v51, %v3996_v60  ;;  %v12131_v57 = vadd.f32 %v4084_v19, %v4014_v45  ;;  %v3997_v37 = vadd.f32 %v3989_v3, %v11984_v24 }
 0x384   :  { %v4067_v62 = vmul.f32 %v12011_v13, %v4057_v6  ;;  %v4015_v25 = vadd.f32 %v4007_v56, %v11994_v14  ;;  %v4033_v43 = vadd.f32 %v4025_v12, %v11997_v50  ;;  %v4085_v0 = vmul.f32 %v12015_v17, %v4057_v6  ;;  %v4150_v12 = vpop.permute.xlu0 %4149 }
 0x385   :  { %v4103_v11 = vmul.f32 %v12018_v15, %v4057_v6  ;;  %v12139_v61 = vadd.f32 %v4102_v52, %v4032_v31  ;;  %v3990_v24 = vmul.f32 %v4838_v41, %v11988_v36  ;;  %v4008_v7 = vmul.f32 %v4838_v41, %v11991_v33  ;;  %v4152_v6 = vpop.permute.xlu1 %4151 }
 0x386   :  { %v4026_v14 = vmul.f32 %v4838_v41, %v12008_v26  ;;  %v12144_v9 = vadd.f32 %v4067_v62, %v3997_v37  ;;  %v12146_v50 = vadd.f32 %v4085_v0, %v4015_v25  ;;  %v4058_v3 = vsel %vm72_vm5, 0.5, %v12068_v4 }
 0x387   :  { %v12148_v58 = vadd.f32 %v4103_v11, %v4033_v43  ;;  %v3998_v60 = vadd.f32 %v3990_v24, %v12000_v16  ;;  %v4016_v45 = vadd.f32 %v4008_v7, %v12003_v35  ;;  %v4068_v36 = vmul.f32 %v12011_v13, %v4058_v3 }
 0x388   :  { %v12157_v51 = vstv %s12107_s23  ;;  %v4086_v33 = vmul.f32 %v12015_v17, %v4058_v3  ;;  %v4104_v26 = vmul.f32 %v12018_v15, %v4058_v3  ;;  %v12162_v19 = vstv %s12116_s24 }
 0x389   :  { %v12165_v52 = vstv %s12118_s25  ;;  %v4034_v31 = vadd.f32 %v4026_v14, %v12023_v2  ;;  %v4157_v4 = vsel %vm71_vm4, 0.5, %v4142_v10  ;;  %v4158_v16 = vsel %vm71_vm4, 0.5, %v4144_v42 }
 0x38a   :  { %v4159_v35 = vsel %vm71_vm4, 0.5, %v4146_v29  ;;  %v12174_v13 = vadd.f32 %v4068_v36, %v3998_v60  ;;  %v12176_v17 = vadd.f32 %v4086_v33, %v4016_v45  ;;  %v4167_v15 = vmul.f32 %v12157_v51, %v4157_v4  ;;  %v4154_v45 = vpop.permute.xlu0 %4153  ;;  %v4156_v36 = vpop.permute.xlu1 %4155 }
 0x38b   :  { %v4185_v56 = vmul.f32 %v12162_v19, %v4157_v4  ;;  %v4203_v2 = vmul.f32 %v12165_v52, %v4157_v4  ;;  %v4168_v10 = vmul.f32 %v12157_v51, %v4158_v16  ;;  %v4186_v37 = vmul.f32 %v12162_v19, %v4158_v16 }
 0x38c   :  { %v4204_v42 = vmul.f32 %v12165_v52, %v4158_v16  ;;  %v12184_v62 = vadd.f32 %v4104_v26, %v4034_v31  ;;  %v12187_v25 = vadd.f32 %v4167_v15, %v12033_v48  ;;  %v4169_v43 = vmul.f32 %v12157_v51, %v4159_v35 }
 0x38d   :  { %v4187_v0 = vmul.f32 %v12162_v19, %v4159_v35  ;;  %v12192_v11 = vadd.f32 %v4185_v56, %v12038_v21  ;;  %v12195_v29 = vadd.f32 %v4203_v2, %v12047_v5  ;;  %v12198_v41 = vadd.f32 %v4168_v10, %v12053_v47 }
 0x38e   :  { %v12201_v24 = vadd.f32 %v4186_v37, %v12055_v59  ;;  %v12204_v7 = vadd.f32 %v4204_v42, %v12057_v27  ;;  %v12207_v48 = vadd.f32 %v4169_v43, %v12070_v18  ;;  %v4205_v14 = vmul.f32 %v12165_v52, %v4159_v35 }
 0x38f   :  { %v4160_v21 = vsel %vm71_vm4, 0.5, %v4148_v22  ;;  %v4161_v27 = vsel %vm71_vm4, 0.5, %v4150_v12  ;;  %v12224_v18 = vadd.f32 %v4187_v0, %v12072_v38  ;;  %v4162_v31 = vsel %vm71_vm4, 0.5, %v4152_v6 }
 0x390   :  { %v4170_v5 = vmul.f32 %v12157_v51, %v4160_v21  ;;  %v4188_v47 = vmul.f32 %v12162_v19, %v4160_v21  ;;  %v4206_v59 = vmul.f32 %v12165_v52, %v4160_v21  ;;  %v4171_v22 = vmul.f32 %v12157_v51, %v4161_v27 }
 0x391   :  { %v4189_v3 = vmul.f32 %v12162_v19, %v4161_v27  ;;  %v4207_v60 = vmul.f32 %v12165_v52, %v4161_v27  ;;  %v12234_v33 = vadd.f32 %v4205_v14, %v12077_v53  ;;  %v4208_v35 = vmul.f32 %v12165_v52, %v4162_v31 }
 0x392   :  { %v12237_v26 = vadd.f32 %v4170_v5, %v12087_v54  ;;  %v12240_v38 = vadd.f32 %v4188_v47, %v12092_v34  ;;  %v12249_v4 = vadd.f32 %v4206_v59, %v12101_v46  ;;  %v12252_v16 = vadd.f32 %v4171_v22, %v12109_v28  ;;  %v4276_v22 = vpop.permute.xlu1 %4275 }
 0x393   :  { %v12255_v53 = vadd.f32 %v4189_v3, %v12111_v55  ;;  %v4172_v54 = vmul.f32 %v12157_v51, %v4162_v31  ;;  %v4190_v34 = vmul.f32 %v12162_v19, %v4162_v31  ;;  %v4163_v46 = vsel %vm71_vm4, 0.5, %v4154_v45 }
 0x394   :  { %v4164_v28 = vsel %vm71_vm4, 0.5, %v4156_v36  ;;  %v12269_v55 = vadd.f32 %v4207_v60, %v12113_v32  ;;  %v4173_v15 = vmul.f32 %v12157_v51, %v4163_v46  ;;  %v4191_v56 = vmul.f32 %v12162_v19, %v4163_v46 }
 0x395   :  { %v4209_v12 = vmul.f32 %v12165_v52, %v4163_v46  ;;  %v12275_v6 = vadd.f32 %v4172_v54, %v12129_v20  ;;  %v12278_v2 = vadd.f32 %v4190_v34, %v12131_v57  ;;  %v4174_v10 = vmul.f32 %v12157_v51, %v4164_v28 }
 0x396   :  { %v4192_v37 = vmul.f32 %v12162_v19, %v4164_v28  ;;  %v12283_v32 = vadd.f32 %v4208_v35, %v12139_v61  ;;  %v12286_v42 = vadd.f32 %v4173_v15, %v12144_v9  ;;  %v12289_v20 = vadd.f32 %v4191_v56, %v12146_v50 }
 0x397   :  { %v12292_v57 = vadd.f32 %v4209_v12, %v12148_v58  ;;  %v12295_v51 = vadd.f32 %v4174_v10, %v12174_v13  ;;  %v12298_v19 = vmul.f32 %v12165_v52, %v4164_v28  ;;  %v12301_v61 = vstv %s12212_s26  ;;  %v4274_v13 = vpop.permute.xlu0 %4273 }
 0x398   :  { %v12304_v43 = vstv %s12219_s4  ;;  %v12307_v9 = vadd.f32 %v4192_v37, %v12176_v17  ;;  %v4221_v50 = vmul.f32 %v12301_v61, %v10894_v44  ;;  %v12314_v0 = vstv %s12221_s16 }
 0x399   :  { %v4239_v58 = vmul.f32 %v12304_v43, %v10894_v44  ;;  %v4257_v52 = vmul.f32 %v12314_v0, %v10894_v44  ;;  %v12319_v14 = vstv %s12229_s0  ;;  %v12322_v21 = vstv %s12231_s1 }
 0x39a   :  { %v12325_v5 = vstv %s12244_s2  ;;  %v12328_v17 = vstv %s12246_s27  ;;  %v12331_v47 = vstv %s12258_s17  ;;  %v12334_v59 = vstv %s12260_s28 }
 0x39b   :  { %v4229_v27 = vadd.f32 %v4221_v50, %v12187_v25  ;;  %v4247_v3 = vadd.f32 %v4239_v58, %v12192_v11  ;;  %v4265_v60 = vadd.f32 %v4257_v52, %v12195_v29  ;;  %v4289_v44 = vsel %vm72_vm5, 0.5, %v4274_v13 }
 0x39c   :  { %v4222_v45 = vmul.f32 %v12301_v61, %v10915_v8  ;;  %v4299_v36 = vmul.f32 %v12319_v14, %v4289_v44  ;;  %v4317_v31 = vmul.f32 %v12322_v21, %v4289_v44  ;;  %v4335_v54 = vmul.f32 %v12325_v5, %v4289_v44 }
 0x39d   :  { %v4240_v25 = vmul.f32 %v12304_v43, %v10915_v8  ;;  %v4258_v11 = vmul.f32 %v12314_v0, %v10915_v8  ;;  %v4290_v34 = vsel %vm72_vm5, 0.5, %v4276_v22  ;;  %v4223_v35 = vmul.f32 %v12301_v61, %v10974_v40 }
 0x39e   :  { %v4230_v29 = vadd.f32 %v4222_v45, %v12198_v41  ;;  %v4307_v46 = vadd.f32 %v4299_v36, %v4229_v27  ;;  %v4325_v28 = vadd.f32 %v4317_v31, %v4247_v3  ;;  %v4343_v15 = vadd.f32 %v4335_v54, %v4265_v60  ;;  %v4278_v41 = vpop.permute.xlu0 %4277 }
 0x39f   :  { %v4248_v56 = vadd.f32 %v4240_v25, %v12201_v24  ;;  %v4266_v12 = vadd.f32 %v4258_v11, %v12204_v7  ;;  %v4300_v10 = vmul.f32 %v12319_v14, %v4290_v34  ;;  %v4318_v37 = vmul.f32 %v12322_v21, %v4290_v34 }
 0x3a0   :  { %v4336_v8 = vmul.f32 %v12325_v5, %v4290_v34  ;;  %v4353_v50 = vadd.f32 %v12328_v17, %v4307_v46  ;;  %v4395_v58 = vadd.f32 %v12331_v47, %v4325_v28  ;;  %v4437_v13 = vadd.f32 %v12334_v59, %v4343_v15 }
 0x3a1   :  { %v4241_v52 = vmul.f32 %v12304_v43, %v10974_v40  ;;  %v4308_v27 = vadd.f32 %v4300_v10, %v4230_v29  ;;  %v4326_v24 = vadd.f32 %v4318_v37, %v4248_v56  ;;  %v4259_v7 = vmul.f32 %v12314_v0, %v10974_v40  ;;  %v4280_v29 = vpop.permute.xlu1 %4279 }
 0x3a2   :  { %v4344_v22 = vadd.f32 %v4336_v8, %v4266_v12  ;;  %4734 = vtanh.f32 %v4353_v50  ;;  %v4231_v3 = vadd.f32 %v4223_v35, %v12207_v48  ;;  %v4291_v44 = vsel %vm72_vm5, 0.5, %v4278_v41 }
 0x3a3   :  { %v4249_v60 = vadd.f32 %v4241_v52, %v12224_v18  ;;  %4736 = vtanh.f32 %v4395_v58  ;;  %v4354_v45 = vadd.f32 %v12328_v17, %v4308_v27  ;;  %v4396_v36 = vadd.f32 %v12331_v47, %v4326_v24  ;;  %v4282_v27 = vpop.permute.xlu0 %4281 }
 0x3a4   :  { %v4438_v31 = vadd.f32 %v12334_v59, %v4344_v22  ;;  %4738 = vtanh.f32 %v4437_v13  ;;  %v4267_v54 = vadd.f32 %v4259_v7, %v12234_v33  ;;  %v4301_v40 = vmul.f32 %v12319_v14, %v4291_v44 }
 0x3a5   :  { %v4319_v25 = vmul.f32 %v12322_v21, %v4291_v44  ;;  %4740 = vtanh.f32 %v4354_v45  ;;  %v4337_v48 = vmul.f32 %v12325_v5, %v4291_v44  ;;  %v4224_v18 = vmul.f32 %v12301_v61, %v10978_v23 }
 0x3a6   :  { %v4242_v11 = vmul.f32 %v12304_v43, %v10978_v23  ;;  %4742 = vtanh.f32 %v4396_v36  ;;  %v4309_v34 = vadd.f32 %v4301_v40, %v4231_v3  ;;  %v4260_v33 = vmul.f32 %v12314_v0, %v10978_v23 }
 0x3a7   :  { %v4327_v35 = vadd.f32 %v4319_v25, %v4249_v60  ;;  %4744 = vtanh.f32 %v4438_v31  ;;  %v4345_v46 = vadd.f32 %v4337_v48, %v4267_v54  ;;  %v4232_v28 = vadd.f32 %v4224_v18, %v12237_v26 }
 0x3a8   :  { %v4250_v15 = vadd.f32 %v4242_v11, %v12240_v38  ;;  %v4355_v56 = vadd.f32 %v12328_v17, %v4309_v34  ;;  %v4268_v10 = vadd.f32 %v4260_v33, %v12249_v4  ;;  %v4292_v37 = vsel %vm72_vm5, 0.5, %v4280_v29 }
 0x3a9   :  { %v4397_v12 = vadd.f32 %v12331_v47, %v4327_v35  ;;  %v4439_v8 = vadd.f32 %v12334_v59, %v4345_v46  ;;  %v4302_v41 = vmul.f32 %v12319_v14, %v4292_v37  ;;  %v4320_v23 = vmul.f32 %v12322_v21, %v4292_v37 }
 0x3aa   :  { %v4338_v50 = vmul.f32 %v12325_v5, %v4292_v37  ;;  %4746 = vtanh.f32 %v4355_v56  ;;  %v4225_v26 = vmul.f32 %v12301_v61, %v11027_v39  ;;  %v4243_v38 = vmul.f32 %v12304_v43, %v11027_v39 }
 0x3ab   :  { %v4261_v4 = vmul.f32 %v12314_v0, %v11027_v39  ;;  %4748 = vtanh.f32 %v4397_v12  ;;  %v4310_v58 = vadd.f32 %v4302_v41, %v4232_v28  ;;  %v4328_v13 = vadd.f32 %v4320_v23, %v4250_v15 }
 0x3ac   :  { %v4346_v52 = vadd.f32 %v4338_v50, %v4268_v10  ;;  %v4735_v24 = vpop.eup %4734  ;;  %4750 = vtanh.f32 %v4439_v8  ;;  %v4233_v22 = vadd.f32 %v4225_v26, %v12252_v16  ;;  %v4251_v7 = vadd.f32 %v4243_v38, %v12255_v53  ;;  %v4284_v8 = vpop.permute.xlu1 %4283 }
 0x3ad   :  { %v4269_v3 = vadd.f32 %v4261_v4, %v12269_v55  ;;  %v4737_v60 = vpop.eup %4736  ;;  %v4369_v44 = vmul.f32 0.5, %v4735_v24  ;;  %v4356_v45 = vadd.f32 %v12328_v17, %v4310_v58  ;;  %v4398_v36 = vadd.f32 %v12331_v47, %v4328_v13 }
 0x3ae   :  { %v4440_v39 = vadd.f32 %v12334_v59, %v4346_v52  ;;  %v4739_v31 = vpop.eup %4738  ;;  %v4411_v54 = vmul.f32 0.5, %v4737_v60  ;;  %v4293_v40 = vsel %vm72_vm5, 0.5, %v4282_v27  ;;  %v4226_v16 = vmul.f32 %v12301_v61, %v11031_v30 }
 0x3af   :  { %v4244_v53 = vmul.f32 %v12304_v43, %v11031_v30  ;;  %v4741_v55 = vpop.eup %4740  ;;  %v4377_v25 = vadd.f32 0.5, %v4369_v44  ;;  %v4453_v48 = vmul.f32 0.5, %v4739_v31  ;;  %4752 = vtanh.f32 %v4356_v45 }
 0x3b0   :  { %v4303_v18 = vmul.f32 %v12319_v14, %v4293_v40  ;;  %v4743_v11 = vpop.eup %4742  ;;  %v4419_v29 = vadd.f32 0.5, %v4411_v54  ;;  %v4370_v34 = vmul.f32 0.5, %v4741_v55  ;;  %4754 = vtanh.f32 %v4398_v36 }
 0x3b1   :  { %v4321_v35 = vmul.f32 %v12322_v21, %v4293_v40  ;;  %v4745_v33 = vpop.eup %4744  ;;  %4385 = vst [vmem:[#allocation9 + $0x40] sm:$0xff] %v4377_v25  ;;  %v4461_v46 = vadd.f32 0.5, %v4453_v48  ;;  %v4412_v28 = vmul.f32 0.5, %v4743_v11  ;;  %4756 = vtanh.f32 %v4440_v39 }
 0x3b2   :  { %v4311_v15 = vadd.f32 %v4303_v18, %v4233_v22  ;;  %4427 = vst [vmem:[#allocation9 + $0xc0] sm:$0xff] %v4419_v29  ;;  %v4378_v56 = vadd.f32 0.5, %v4370_v34  ;;  %v4454_v12 = vmul.f32 0.5, %v4745_v33  ;;  %v4339_v37 = vmul.f32 %v12325_v5, %v4293_v40  ;;  %v4286_v34 = vpop.permute.xlu0 %4285 }
 0x3b3   :  { %v4329_v10 = vadd.f32 %v4321_v35, %v4251_v7  ;;  %4469 = vst [vmem:[#allocation9 + $0x140] sm:$0xff] %v4461_v46  ;;  %v4420_v41 = vadd.f32 0.5, %v4412_v28  ;;  %v4262_v50 = vmul.f32 %v12314_v0, %v11031_v30  ;;  %v4234_v26 = vadd.f32 %v4226_v16, %v12275_v6 }
 0x3b4   :  { %v4357_v23 = vadd.f32 %v12328_v17, %v4311_v15  ;;  %v4747_v38 = vpop.eup %4746  ;;  %4386 = vst [vmem:[#allocation9 + $0x48] sm:$0xff] %v4378_v56  ;;  %v4462_v4 = vadd.f32 0.5, %v4454_v12  ;;  %v4347_v58 = vadd.f32 %v4339_v37, %v4269_v3  ;;  %v4252_v52 = vadd.f32 %v4244_v53, %v12278_v2  ;;  %v4288_v37 = vpop.permute.xlu1 %4287 }
 0x3b5   :  { %v4399_v13 = vadd.f32 %v12331_v47, %v4329_v10  ;;  %v4749_v27 = vpop.eup %4748  ;;  %4428 = vst [vmem:[#allocation9 + $0xc8] sm:$0xff] %v4420_v41  ;;  %v4371_v24 = vmul.f32 0.5, %v4747_v38  ;;  %v4270_v22 = vadd.f32 %v4262_v50, %v12283_v32  ;;  %v4294_v7 = vsel %vm72_vm5, 0.5, %v4284_v8 }
 0x3b6   :  { %4758 = vtanh.f32 %v4357_v23  ;;  %v4751_v30 = vpop.eup %4750  ;;  %4470 = vst [vmem:[#allocation9 + $0x148] sm:$0xff] %v4462_v4  ;;  %v4413_v6 = vmul.f32 0.5, %v4749_v27  ;;  %v4441_v60 = vadd.f32 %v12334_v59, %v4347_v58  ;;  %v4304_v3 = vmul.f32 %v12319_v14, %v4294_v7 }
 0x3b7   :  { %4760 = vtanh.f32 %v4399_v13  ;;  %v4379_v44 = vadd.f32 0.5, %v4371_v24  ;;  %v4455_v45 = vmul.f32 0.5, %v4751_v30  ;;  %v4322_v2 = vmul.f32 %v12322_v21, %v4294_v7 }
 0x3b8   :  { %v4340_v36 = vmul.f32 %v12325_v5, %v4294_v7  ;;  %v4421_v39 = vadd.f32 0.5, %v4413_v6  ;;  %4762 = vtanh.f32 %v4441_v60  ;;  %v4312_v32 = vadd.f32 %v4304_v3, %v4234_v26 }
 0x3b9   :  { %v4227_v31 = vmul.f32 %v12301_v61, %v11092_v1  ;;  %v4753_v54 = vpop.eup %4752  ;;  %4387 = vst [vmem:[#allocation9 + $0x50] sm:$0xff] %v4379_v44  ;;  %v4463_v40 = vadd.f32 0.5, %v4455_v45  ;;  %v4330_v16 = vadd.f32 %v4322_v2, %v4252_v52  ;;  %v4245_v55 = vmul.f32 %v12304_v43, %v11092_v1 }
 0x3ba   :  { %v4348_v53 = vadd.f32 %v4340_v36, %v4270_v22  ;;  %v4755_v25 = vpop.eup %4754  ;;  %v4218_v48 = vadd.f32 %v12298_v19, %v12184_v62  ;;  %4429 = vst [vmem:[#allocation9 + $0xd0] sm:$0xff] %v4421_v39  ;;  %v4372_v18 = vmul.f32 0.5, %v4753_v54  ;;  %v4358_v11 = vadd.f32 %v12328_v17, %v4312_v32 }
 0x3bb   :  { %v4263_v29 = vmul.f32 %v12314_v0, %v11092_v1  ;;  %v4757_v35 = vpop.eup %4756  ;;  %4471 = vst [vmem:[#allocation9 + $0x150] sm:$0xff] %v4463_v40  ;;  %v4414_v33 = vmul.f32 0.5, %v4755_v25  ;;  %v4400_v46 = vadd.f32 %v12331_v47, %v4330_v16  ;;  %v4235_v15 = vadd.f32 %v4227_v31, %v12286_v42 }
 0x3bc   :  { %v4442_v28 = vadd.f32 %v12334_v59, %v4348_v53  ;;  %v4380_v56 = vadd.f32 0.5, %v4372_v18  ;;  %v4456_v12 = vmul.f32 0.5, %v4757_v35  ;;  %4764 = vtanh.f32 %v4358_v11 }
 0x3bd   :  { %v4253_v62 = vadd.f32 %v4245_v55, %v12289_v20  ;;  %v4422_v19 = vadd.f32 0.5, %v4414_v33  ;;  %4766 = vtanh.f32 %v4400_v46  ;;  %v4295_v1 = vsel %vm72_vm5, 0.5, %v4286_v34 }
 0x3be   :  { %v4228_v10 = vmul.f32 %v12301_v61, %v11104_v49  ;;  %4388 = vst [vmem:[#allocation9 + $0x58] sm:$0xff] %v4380_v56  ;;  %v4464_v8 = vadd.f32 0.5, %v4456_v12  ;;  %4768 = vtanh.f32 %v4442_v28  ;;  %v4305_v41 = vmul.f32 %v12319_v14, %v4295_v1 }
 0x3bf   :  { %v4323_v42 = vmul.f32 %v12322_v21, %v4295_v1  ;;  %4430 = vst [vmem:[#allocation9 + $0xd8] sm:$0xff] %v4422_v19  ;;  %v4271_v20 = vadd.f32 %v4263_v29, %v12292_v57  ;;  %v4341_v50 = vmul.f32 %v12325_v5, %v4295_v1  ;;  %v4246_v26 = vmul.f32 %v12304_v43, %v11104_v49 }
 0x3c0   :  { %v4759_v23 = vpop.eup %4758  ;;  %v4264_v61 = vmul.f32 %v12314_v0, %v11104_v49  ;;  %4472 = vst [vmem:[#allocation9 + $0x158] sm:$0xff] %v4464_v8  ;;  %v4313_v58 = vadd.f32 %v4305_v41, %v4235_v15  ;;  %v4296_v52 = vsel %vm72_vm5, 0.5, %v4288_v37  ;;  %v4236_v57 = vadd.f32 %v4228_v10, %v12295_v51 }
 0x3c1   :  { %v4761_v38 = vpop.eup %4760  ;;  %v4373_v4 = vmul.f32 0.5, %v4759_v23  ;;  %v4331_v13 = vadd.f32 %v4323_v42, %v4253_v62  ;;  %v4349_v24 = vadd.f32 %v4341_v50, %v4271_v20  ;;  %v4254_v22 = vadd.f32 %v4246_v26, %v12307_v9 }
 0x3c2   :  { %v4415_v27 = vmul.f32 0.5, %v4761_v38  ;;  %v4763_v7 = vpop.eup %4762  ;;  %v4359_v43 = vadd.f32 %v12328_v17, %v4313_v58  ;;  %v4306_v0 = vmul.f32 %v12319_v14, %v4296_v52  ;;  %v4324_v63 = vmul.f32 %v12322_v21, %v4296_v52 }
 0x3c3   :  { %v4381_v30 = vadd.f32 0.5, %v4373_v4  ;;  %v4401_v49 = vadd.f32 %v12331_v47, %v4331_v13  ;;  %v4457_v60 = vmul.f32 0.5, %v4763_v7  ;;  %v4443_v3 = vadd.f32 %v12334_v59, %v4349_v24 }
 0x3c4   :  { %v4423_v6 = vadd.f32 0.5, %v4415_v27  ;;  %4770 = vtanh.f32 %v4359_v43  ;;  %v4272_v44 = vadd.f32 %v4264_v61, %v4218_v48  ;;  %v4314_v51 = vadd.f32 %v4306_v0, %v4236_v57 }
 0x3c5   :  { %4389 = vst [vmem:[#allocation9 + $0x60] sm:$0xff] %v4381_v30  ;;  %v4342_v9 = vmul.f32 %v12325_v5, %v4296_v52  ;;  %v4465_v45 = vadd.f32 0.5, %v4457_v60  ;;  %4772 = vtanh.f32 %v4401_v49  ;;  %v4332_v2 = vadd.f32 %v4324_v63, %v4254_v22 }
 0x3c6   :  { %4431 = vst [vmem:[#allocation9 + $0xe0] sm:$0xff] %v4423_v6  ;;  %v4765_v36 = vpop.eup %4764  ;;  %4774 = vtanh.f32 %v4443_v3  ;;  %v4360_v14 = vadd.f32 %v12328_v17, %v4314_v51 }
 0x3c7   :  { %v4350_v39 = vadd.f32 %v4342_v9, %v4272_v44  ;;  %v4767_v32 = vpop.eup %4766  ;;  %4473 = vst [vmem:[#allocation9 + $0x160] sm:$0xff] %v4465_v45  ;;  %v4374_v31 = vmul.f32 0.5, %v4765_v36  ;;  %v4402_v21 = vadd.f32 %v12331_v47, %v4332_v2 }
 0x3c8   :  { %v4769_v54 = vpop.eup %4768  ;;  %v4416_v40 = vmul.f32 0.5, %v4767_v32  ;;  %4776 = vtanh.f32 %v4360_v14 }
 0x3c9   :  { %v4444_v16 = vadd.f32 %v12334_v59, %v4350_v39  ;;  %v4382_v5 = vadd.f32 0.5, %v4374_v31  ;;  %v4458_v53 = vmul.f32 0.5, %v4769_v54  ;;  %4778 = vtanh.f32 %v4402_v21 }
 0x3ca   :  { %v4424_v55 = vadd.f32 0.5, %v4416_v40 }
 0x3cb   :  { %4780 = vtanh.f32 %v4444_v16  ;;  %4390 = vst [vmem:[#allocation9 + $0x68] sm:$0xff] %v4382_v5  ;;  %v4466_v25 = vadd.f32 0.5, %v4458_v53 }
 0x3cc   :  { %4432 = vst [vmem:[#allocation9 + $0xe8] sm:$0xff] %v4424_v55 }
 0x3cd   :  { %4474 = vst [vmem:[#allocation9 + $0x168] sm:$0xff] %v4466_v25 }
 0x3ce   :  { %v4771_v17 = vpop.eup %4770 }
 0x3cf   :  { %v4773_v48 = vpop.eup %4772  ;;  %v4375_v18 = vmul.f32 0.5, %v4771_v17 }
 0x3d0   :  { %v4775_v11 = vpop.eup %4774  ;;  %v4417_v29 = vmul.f32 0.5, %v4773_v48 }
 0x3d1   :  { %v4383_v47 = vadd.f32 0.5, %v4375_v18  ;;  %v4459_v34 = vmul.f32 0.5, %v4775_v11 }
 0x3d2   :  { %v4777_v35 = vpop.eup %4776  ;;  %v4425_v33 = vadd.f32 0.5, %v4417_v29 }
 0x3d3   :  { %v4779_v46 = vpop.eup %4778  ;;  %4391 = vst [vmem:[#allocation9 + $0x70] sm:$0xff] %v4383_v47  ;;  %v4467_v59 = vadd.f32 0.5, %v4459_v34  ;;  %v4376_v28 = vmul.f32 0.5, %v4777_v35 }
 0x3d4   :  { %4433 = vst [vmem:[#allocation9 + $0xf0] sm:$0xff] %v4425_v33  ;;  %v4418_v56 = vmul.f32 0.5, %v4779_v46 }
 0x3d5   :  { %v4781_v15 = vpop.eup %4780  ;;  %4475 = vst [vmem:[#allocation9 + $0x170] sm:$0xff] %v4467_v59  ;;  %v4384_v12 = vadd.f32 0.5, %v4376_v28 }
 0x3d6   :  { %v4460_v62 = vmul.f32 0.5, %v4781_v15  ;;  %v4426_v19 = vadd.f32 0.5, %v4418_v56 }
 0x3d7   :  { %4392 = vst [vmem:[#allocation9 + $0x78] sm:$0xff] %v4384_v12 }
 0x3d8   :  { %v4468_v1 = vadd.f32 0.5, %v4460_v62  ;;  %4434 = vst [vmem:[#allocation9 + $0xf8] sm:$0xff] %v4426_v19 }
 0x3da   :  { %4476 = vst [vmem:[#allocation9 + $0x178] sm:$0xff] %v4468_v1 }
 0x3db   :  { %4896 = shalt.err (!%p4893_p8)
}
 0x3dc   :  { %s4897_s9 = scalar_lea.hbm %s12487_s5, 6144 }
 0x3dd   :  { %p4898_p9 = scmp.ne.s32.totalorder %s12487_s5, %s4897_s9  ;;  %p4901_p10 = scmp.lt.u32.totalorder %s4897_s9, %s12487_s5 }
 0x3df   :  { %p4903_p11 = pnand %p4901_p10, %p4898_p9 }
 0x3e1   :  { %4906 = shalt.err (!%p4903_p11)
}
 0x3e2   :  { %4488 = dma.vmem_to_hbm [thread:$0]  %s4483_s30, 6144, %s12487_s5, [#allocation4], %s4918_s11, %s4918_s11, %s4919_s12  }
 0x3e3   :  { %4913 = dma.done.wait [#allocation4], 6144  }
 0x3e4   :  { %4914 = vsyncadd [#allocation4], 4294961152 }
 0x3e5   :  { %4492 = vsyncpa [#allocation3], 1 }
 0x3e6   :  { %4493 = vsyncpa [#allocation4], 1 }
 0x3e7   :  { %4494 = vsyncpa [#allocation5], 1 }
 0x3e8   :  { %4495 = vsyncpa [#allocation7], 1 }

</bundles_post_ra>
